<compile_context>
chip_gen: v7x
topology: tpu7x:2x2x1
jax: 0.10.0
libtpu: 0.0.40
codegen_flags: <defaults>
</compile_context>

<pallas_src>
import functools
import math

import jax
import jax.numpy as jnp
from jax.experimental import pallas as pl
from jax.experimental.pallas import tpu as pltpu

MXU_DTYPE = jnp.bfloat16   # matmul operands + inter-layer activation storage


def _default_vmem_limit():
    """Generation-aware scoped-VMEM cap (leave headroom for Mosaic scratch)."""
    try:
        cap = pltpu.get_tpu_info().vmem_capacity_bytes
    except Exception:
        cap = 128 * 1024 * 1024
    if cap <= 64 * 1024 * 1024:          # v7x-class: 64 MiB per TensorCore
        return 36 * 1024 * 1024
    return 48 * 1024 * 1024


_VMEM_LIMIT = _default_vmem_limit()


def _pick_tile(dim, nominal, align):
    """Largest tile <= nominal that divides `dim` and is `align`-aligned,
    falling back to the full dim (always legal for BlockSpec)."""
    if dim <= nominal or dim % align != 0:
        return dim
    t = (nominal // align) * align
    while dim % t != 0:
        t -= align
    return t


def _to_mxu(x):
    return x if x.dtype == MXU_DTYPE else x.astype(MXU_DTYPE)


def _apply_act(y, activation):
    if activation == "relu":
        return jnp.maximum(y, 0.0)
    return y


def _ln_rows(y, g, b, eps):
    """Row LayerNorm in f32 (y: (M, N) f32, g/b: (1, N) f32)."""
    mu = jnp.mean(y, axis=-1, keepdims=True)
    yc = y - mu
    var = jnp.mean(yc * yc, axis=-1, keepdims=True)
    return yc * jax.lax.rsqrt(var + eps) * g + b


# ----------------------------- grouped linear ------------------------------

def _linear_kernel(x_ref, w_ref, b_ref, o_ref, *, activation):
    # single-K-tile path: no accumulator scratch, no init/finalize branches
    y = jnp.dot(_to_mxu(x_ref[0]), _to_mxu(w_ref[0]),
                preferred_element_type=jnp.float32) + b_ref[0]
    o_ref[0] = _apply_act(y, activation).astype(o_ref.dtype)


def _linear_acc_kernel(x_ref, w_ref, b_ref, o_ref, acc_ref, *, activation):
    # fallback for K that does not fit a single VMEM tile
    k = pl.program_id(3)

    @pl.when(k == 0)
    def _():
        acc_ref[...] = jnp.zeros_like(acc_ref)

    acc_ref[...] += jnp.dot(_to_mxu(x_ref[0]), _to_mxu(w_ref[0]),
                            preferred_element_type=jnp.float32)

    @pl.when(k == pl.num_programs(3) - 1)
    def _():
        y = acc_ref[...] + b_ref[0]
        o_ref[0] = _apply_act(y, activation).astype(o_ref.dtype)


def grouped_linear(x, w, b, activation="none", out_dtype=MXU_DTYPE,
                   *, tm=256, tn=256, tk=2048):
    """x: (G, M, K), w: (G, K, N) bf16, b: (G, N) f32 -> (G, M, N) out_dtype."""
    G, M, K = x.shape
    N = w.shape[2]
    tm = _pick_tile(M, tm, 16)
    tn = _pick_tile(N, tn, 128)
    tk = _pick_tile(K, tk, 128)
    b3 = b.reshape(G, 1, N)

    if tk == K:
        return pl.pallas_call(
            functools.partial(_linear_kernel, activation=activation),
            out_shape=jax.ShapeDtypeStruct((G, M, N), out_dtype),
            grid=(G, M // tm, N // tn),
            in_specs=[
                pl.BlockSpec((1, tm, K), lambda g, i, j: (g, i, 0)),
                pl.BlockSpec((1, K, tn), lambda g, i, j: (g, 0, j)),
                pl.BlockSpec((1, 1, tn), lambda g, i, j: (g, 0, j)),
            ],
            out_specs=pl.BlockSpec((1, tm, tn), lambda g, i, j: (g, i, j)),
            compiler_params=pltpu.CompilerParams(
                dimension_semantics=("parallel", "parallel", "parallel"),
                vmem_limit_bytes=_VMEM_LIMIT),
        )(x, w, b3)

    return pl.pallas_call(
        functools.partial(_linear_acc_kernel, activation=activation),
        out_shape=jax.ShapeDtypeStruct((G, M, N), out_dtype),
        grid=(G, M // tm, N // tn, K // tk),
        in_specs=[
            pl.BlockSpec((1, tm, tk), lambda g, i, j, k: (g, i, k)),
            pl.BlockSpec((1, tk, tn), lambda g, i, j, k: (g, k, j)),
            pl.BlockSpec((1, 1, tn), lambda g, i, j, k: (g, 0, j)),
        ],
        out_specs=pl.BlockSpec((1, tm, tn), lambda g, i, j, k: (g, i, j)),
        scratch_shapes=[pltpu.VMEM((tm, tn), jnp.float32)],
        compiler_params=pltpu.CompilerParams(
            dimension_semantics=("parallel", "parallel", "parallel", "arbitrary"),
            vmem_limit_bytes=_VMEM_LIMIT),
    )(x, w, b3)


# --------------- fused linear (+ residual) + LayerNorm ----------------------
# Used for every Linear whose output immediately goes through a residual-add
# and LayerNorm (modality projections, attention output projections, FFN w2).
# Requires the full K and full N in one block, which holds for D<=2048.

def _linear_ln_kernel(x_ref, w_ref, b_ref, g_ref, bt_ref, o_ref, *, eps):
    y = jnp.dot(_to_mxu(x_ref[0]), _to_mxu(w_ref[0]),
                preferred_element_type=jnp.float32) + b_ref[0]
    o_ref[0] = _ln_rows(y, g_ref[0], bt_ref[0], eps).astype(o_ref.dtype)


def _linear_res_ln_kernel(x_ref, w_ref, b_ref, r_ref, g_ref, bt_ref, o_ref,
                          *, eps):
    y = jnp.dot(_to_mxu(x_ref[0]), _to_mxu(w_ref[0]),
                preferred_element_type=jnp.float32) + b_ref[0]
    y = y + r_ref[0].astype(jnp.float32)
    o_ref[0] = _ln_rows(y, g_ref[0], bt_ref[0], eps).astype(o_ref.dtype)


def grouped_linear_ln(x, w, b, gamma, beta, eps, residual=None,
                      out_dtype=MXU_DTYPE, *, tm=256):
    """LN(x @ w + b [+ residual]) with LN fused into the matmul finalize."""
    G, M, K = x.shape
    N = w.shape[2]
    if K > 4096:   # too big for a single-K-tile fused kernel -> unfused fallback
        y = grouped_linear(x, w, b, out_dtype=jnp.float32)
        return grouped_layernorm(y, gamma, beta, eps, residual=residual,
                                 out_dtype=out_dtype)
    tm = _pick_tile(M, tm, 16)
    x_spec = pl.BlockSpec((1, tm, K), lambda g, i: (g, i, 0))
    w_spec = pl.BlockSpec((1, K, N), lambda g, i: (g, 0, 0))
    vec_spec = pl.BlockSpec((1, 1, N), lambda g, i: (g, 0, 0))
    out_spec = pl.BlockSpec((1, tm, N), lambda g, i: (g, i, 0))
    b3 = b.reshape(G, 1, N)
    g3 = gamma.reshape(G, 1, N)
    bt3 = beta.reshape(G, 1, N)
    if residual is None:
        kernel = functools.partial(_linear_ln_kernel, eps=eps)
        args = [x, w, b3, g3, bt3]
        in_specs = [x_spec, w_spec, vec_spec, vec_spec, vec_spec]
    else:
        kernel = functools.partial(_linear_res_ln_kernel, eps=eps)
        args = [x, w, b3, residual, g3, bt3]
        in_specs = [x_spec, w_spec, vec_spec, out_spec, vec_spec, vec_spec]
    return pl.pallas_call(
        kernel,
        out_shape=jax.ShapeDtypeStruct((G, M, N), out_dtype),
        grid=(G, M // tm),
        in_specs=in_specs,
        out_specs=out_spec,
        compiler_params=pltpu.CompilerParams(
            dimension_semantics=("parallel", "parallel"),
            vmem_limit_bytes=_VMEM_LIMIT),
    )(*args)


# ---------------------- standalone LayerNorm, row-tiled ---------------------

def _ln_kernel(x_ref, g_ref, b_ref, o_ref, *, eps):
    x = x_ref[0].astype(jnp.float32)
    o_ref[0] = _ln_rows(x, g_ref[0], b_ref[0], eps).astype(o_ref.dtype)


def _add_ln_kernel(x_ref, r_ref, g_ref, b_ref, o_ref, *, eps):
    x = x_ref[0].astype(jnp.float32) + r_ref[0].astype(jnp.float32)
    o_ref[0] = _ln_rows(x, g_ref[0], b_ref[0], eps).astype(o_ref.dtype)


def grouped_layernorm(x, g, b, eps, residual=None, out_dtype=MXU_DTYPE, *,
                      tm=512):
    G, M, D = x.shape
    tm = _pick_tile(M, tm, 16)
    row_spec = pl.BlockSpec((1, tm, D), lambda gi, i: (gi, i, 0))
    vec_spec = pl.BlockSpec((1, 1, D), lambda gi, i: (gi, 0, 0))
    args = [x] if residual is None else [x, residual]
    kernel = _ln_kernel if residual is None else _add_ln_kernel
    return pl.pallas_call(
        functools.partial(kernel, eps=eps),
        out_shape=jax.ShapeDtypeStruct((G, M, D), out_dtype),
        grid=(G, M // tm),
        in_specs=[row_spec] * len(args) + [vec_spec, vec_spec],
        out_specs=row_spec,
        compiler_params=pltpu.CompilerParams(
            dimension_semantics=("parallel", "parallel"),
            vmem_limit_bytes=_VMEM_LIMIT),
    )(*args, g.reshape(G, 1, D), b.reshape(G, 1, D))


# ------------------------- head-batched attention ---------------------------
# bf16 MXU operands, f32 accumulation, head-batched einsums, lane-dense store.
# The 1/sqrt(dh) score scale is folded into Wq at parameter build time.
# TODO(synk): for very long sequences (tri-modal L = 3S) these whole-sequence
# blocks should get flash-style key-axis tiling to stay inside v7x's 64 MiB
# VMEM; MMER sequence lengths are modest so a single VMEM-resident block is
# used per (group*batch) item.

def _mha_core(q, k, v, nhead):
    """q: (Lq, D) bf16, k/v: (Lk, D) bf16 -> (Lq, D) f32."""
    Lq, D = q.shape
    dh = D // nhead
    qh = jnp.swapaxes(q.reshape(Lq, nhead, dh), 0, 1)           # (H, Lq, dh)
    kh = jnp.swapaxes(k.reshape(k.shape[0], nhead, dh), 0, 1)   # (H, Lk, dh)
    vh = jnp.swapaxes(v.reshape(v.shape[0], nhead, dh), 0, 1)   # (H, Lk, dh)
    s = jnp.einsum("hqd,hkd->hqk", qh, kh,
                   preferred_element_type=jnp.float32)          # (H, Lq, Lk)
    s = s - jnp.max(s, axis=-1, keepdims=True)
    p = jnp.exp(s)
    p = p * pl.reciprocal(jnp.sum(p, axis=-1, keepdims=True), approx=True)
    o = jnp.einsum("hqk,hkd->hqd", p.astype(v.dtype), vh,
                   preferred_element_type=jnp.float32)          # (H, Lq, dh)
    return jnp.swapaxes(o, 0, 1).reshape(Lq, D)                 # lane-dense


def _self_attn_kernel(qkv_ref, o_ref, *, nhead):
    x = qkv_ref[0]                                 # (L, 3D) fused q|k|v, bf16
    d = x.shape[-1] // 3
    o_ref[0] = _mha_core(x[:, :d], x[:, d:2 * d], x[:, 2 * d:], nhead
                         ).astype(o_ref.dtype)


def _cross_attn_kernel(q_ref, kv_ref, o_ref, *, nhead):
    q = q_ref[0]                                   # (Lq, D) bf16
    kv = kv_ref[0]                                 # (Lk, 2D) fused k|v, bf16
    d = q.shape[-1]
    o_ref[0] = _mha_core(q, kv[:, :d], kv[:, d:], nhead).astype(o_ref.dtype)


def self_attention(qkv, nhead, out_dtype=MXU_DTYPE):
    """qkv: (N, L, 3D) bf16 -> (N, L, D) out_dtype."""
    N, L, D3 = qkv.shape
    D = D3 // 3
    return pl.pallas_call(
        functools.partial(_self_attn_kernel, nhead=nhead),
        out_shape=jax.ShapeDtypeStruct((N, L, D), out_dtype),
        grid=(N,),
        in_specs=[pl.BlockSpec((1, L, D3), lambda i: (i, 0, 0))],
        out_specs=pl.BlockSpec((1, L, D), lambda i: (i, 0, 0)),
        compiler_params=pltpu.CompilerParams(
            dimension_semantics=("parallel",), vmem_limit_bytes=_VMEM_LIMIT),
    )(qkv)


def cross_attention(q, kv, nhead, out_dtype=MXU_DTYPE):
    """q: (N, Lq, D) bf16, kv: (N, Lk, 2D) bf16 -> (N, Lq, D)."""
    N, Lq, D = q.shape
    Lk = kv.shape[1]
    return pl.pallas_call(
        functools.partial(_cross_attn_kernel, nhead=nhead),
        out_shape=jax.ShapeDtypeStruct((N, Lq, D), out_dtype),
        grid=(N,),
        in_specs=[pl.BlockSpec((1, Lq, D), lambda i: (i, 0, 0)),
                  pl.BlockSpec((1, Lk, 2 * D), lambda i: (i, 0, 0))],
        out_specs=pl.BlockSpec((1, Lq, D), lambda i: (i, 0, 0)),
        compiler_params=pltpu.CompilerParams(
            dimension_semantics=("parallel",), vmem_limit_bytes=_VMEM_LIMIT),
    )(q, kv)


# --------------------------- transformer blocks ------------------------------
# Batch-first everywhere: activations are (G, B, S, D) bf16; G is the modality
# group (3 for the uni-modal encoders, 1 for the tri-modal encoder / decoder).

def encoder_layer(x, p, nhead, eps):
    G, B, S, D = x.shape
    x2 = x.reshape(G, B * S, D)
    qkv = grouped_linear(x2, p["wqkv"], p["bqkv"])               # (G, B*S, 3D)
    sa = self_attention(qkv.reshape(G * B, S, 3 * D), nhead)     # (G*B, S, D)
    # attention out-proj + residual + LN1 fused
    x2 = grouped_linear_ln(sa.reshape(G, B * S, D), p["wo"], p["bo"],
                           p["ln1_g"], p["ln1_b"], eps, residual=x2)
    h = grouped_linear(x2, p["w1"], p["b1"], activation="relu")
    # FFN second matmul + residual + LN2 fused
    x2 = grouped_linear_ln(h, p["w2"], p["b2"],
                           p["ln2_g"], p["ln2_b"], eps, residual=x2)
    return x2.reshape(G, B, S, D)


def encoder_stack(x, p, nhead, eps):
    G, B, S, D = x.shape
    for lp in p["layers"]:
        x = encoder_layer(x, lp, nhead, eps)
    x2 = grouped_layernorm(x.reshape(G, B * S, D), p["norm_g"], p["norm_b"], eps)
    return x2.reshape(G, B, S, D)


def decoder_layer(tgt, mem, p, nhead, eps):
    _, B, C, D = tgt.shape
    M = mem.shape[2]
    t2 = tgt.reshape(1, B * C, D)

    qkv = grouped_linear(t2, p["self_wqkv"], p["self_bqkv"])
    sa = self_attention(qkv.reshape(B, C, 3 * D), nhead)
    x = grouped_linear_ln(sa.reshape(1, B * C, D), p["self_wo"], p["self_bo"],
                          p["ln1_g"], p["ln1_b"], eps, residual=t2)

    q = grouped_linear(x, p["cross_wq"], p["cross_bq"]).reshape(B, C, D)
    kv = grouped_linear(mem.reshape(1, B * M, D), p["cross_wkv"], p["cross_bkv"])
    ca = cross_attention(q, kv.reshape(B, M, 2 * D), nhead)
    x = grouped_linear_ln(ca.reshape(1, B * C, D), p["cross_wo"], p["cross_bo"],
                          p["ln2_g"], p["ln2_b"], eps, residual=x)

    h = grouped_linear(x, p["w1"], p["b1"], activation="relu")
    x = grouped_linear_ln(h, p["w2"], p["b2"],
                          p["ln3_g"], p["ln3_b"], eps, residual=x)
    return x.reshape(1, B, C, D)


def emotion_decoder(memory, p, nhead, eps):
    # memory: (1, B, 3S, D) bf16 -> logits (B, num_cls)
    _, B, _, D = memory.shape
    C = p["queries"].shape[0]
    tgt = jnp.broadcast_to(p["queries"].astype(MXU_DTYPE)[None, None],
                           (1, B, C, D))
    for lp in p["layers"]:
        tgt = decoder_layer(tgt, memory, lp, nhead, eps)
    out = grouped_layernorm(tgt.reshape(1, B * C, D), p["norm_g"], p["norm_b"],
                            eps, out_dtype=jnp.float32)
    out = out.reshape(B, C, D)
    # classifier head: (D -> 1) matmul; lane-width-1, cheaper in plain XLA.
    logits = jax.nn.sigmoid(jnp.einsum("bcd,d->bc", out, p["cls_w"]) + p["cls_b"])
    return logits


def topk_mask(scores, k):
    # TODO(synk): TopK_custom is not defined in the reference code; using a
    # hard top-k indicator (True at the k largest scores per row, ties incl.).
    k = min(k, scores.shape[-1])
    kth = jax.lax.top_k(scores, k)[0][..., k - 1:k]
    return scores >= kth


# --------------------------------- model ------------------------------------

def mmer_forward(params, src1, src2, src3, cfg):
    eps, nhead, D = cfg["eps"], cfg["nhead"], cfg["d_model"]
    B, S, _ = src1.shape

    # Modality projections with the LayerNorm fused into the matmul finalize.
    def project(src, p):
        b_, s_, din = src.shape
        return grouped_linear_ln(src.reshape(1, b_ * s_, din), p["w"], p["b"],
                                 p["ln_g"], p["ln_b"], eps)

    x = jnp.concatenate([project(src1, params["proj1"]),
                         project(src2, params["proj2"]),
                         project(src3, params["proj3"])], axis=0)  # (3,B*S,D) bf16
    x = x.reshape(3, B, S, D)

    def branch(xin):
        f = encoder_stack(xin, params["uni_enc"], nhead, eps)        # (3,B,S,D)
        mem = jnp.transpose(f, (1, 0, 2, 3)).reshape(1, B, 3 * S, D)  # cat(dim=1)
        mem = encoder_stack(mem, params["tri_enc"], nhead, eps)      # (1,B,3S,D)
        return f, emotion_decoder(mem, params["decoder"], nhead, eps)

    f, logits = branch(x)

    # Scorer nets: (D -> 1) + sigmoid, plain XLA (lane width 1).
    # GradReverse is identity in the forward pass.
    scores = jax.nn.sigmoid(
        jnp.einsum("gbsd,gd->gbs", f.astype(jnp.float32), params["scorer_w"])
        + params["scorer_b"][:, None, None])                         # (3, B, S)

    mask = topk_mask(scores, cfg["k"])                               # bool (3,B,S)
    x_masked = jnp.where(mask[..., None], jnp.zeros((), x.dtype), x)  # (1-m)*x
    _, logits_masked = branch(x_masked)
    return logits, logits_masked


# --------------------------- parameter initialization ------------------------

class _Keys:
    def __init__(self, key):
        self._key = key

    def next(self):
        self._key, k = jax.random.split(self._key)
        return k


def _xavier(key, shape, dtype=jnp.float32):
    fan_in, fan_out = shape[-2], shape[-1]
    a = math.sqrt(6.0 / (fan_in + fan_out))
    return jax.random.uniform(key, shape, jnp.float32, -a, a).astype(dtype)


def _init_self_attn(kg, G, D, nhead):
    scale = 1.0 / math.sqrt(D // nhead)          # fold attention scale into Wq
    wq = _xavier(kg.next(), (G, D, D)) * scale
    wk = _xavier(kg.next(), (G, D, D))
    wv = _xavier(kg.next(), (G, D, D))
    return dict(
        wqkv=jnp.concatenate([wq, wk, wv], axis=-1).astype(MXU_DTYPE),
        bqkv=jnp.zeros((G, 3 * D), jnp.float32),
        wo=_xavier(kg.next(), (G, D, D), MXU_DTYPE),
        bo=jnp.zeros((G, D), jnp.float32),
    )


def _init_enc_layer(kg, G, D, FF, nhead):
    p = _init_self_attn(kg, G, D, nhead)
    p.update(
        ln1_g=jnp.ones((G, D)), ln1_b=jnp.zeros((G, D)),
        w1=_xavier(kg.next(), (G, D, FF), MXU_DTYPE), b1=jnp.zeros((G, FF)),
        w2=_xavier(kg.next(), (G, FF, D), MXU_DTYPE), b2=jnp.zeros((G, D)),
        ln2_g=jnp.ones((G, D)), ln2_b=jnp.zeros((G, D)),
    )
    return p


def _init_dec_layer(kg, D, FF, nhead):
    G = 1
    scale = 1.0 / math.sqrt(D // nhead)
    sa = _init_self_attn(kg, G, D, nhead)
    return dict(
        self_wqkv=sa["wqkv"], self_bqkv=sa["bqkv"],
        self_wo=sa["wo"], self_bo=sa["bo"],
        cross_wq=(_xavier(kg.next(), (G, D, D)) * scale).astype(MXU_DTYPE),
        cross_bq=jnp.zeros((G, D)),
        cross_wkv=jnp.concatenate(
            [_xavier(kg.next(), (G, D, D)), _xavier(kg.next(), (G, D, D))],
            axis=-1).astype(MXU_DTYPE),
        cross_bkv=jnp.zeros((G, 2 * D)),
        cross_wo=_xavier(kg.next(), (G, D, D), MXU_DTYPE),
        cross_bo=jnp.zeros((G, D)),
        ln1_g=jnp.ones((G, D)), ln1_b=jnp.zeros((G, D)),
        ln2_g=jnp.ones((G, D)), ln2_b=jnp.zeros((G, D)),
        ln3_g=jnp.ones((G, D)), ln3_b=jnp.zeros((G, D)),
        w1=_xavier(kg.next(), (G, D, FF), MXU_DTYPE), b1=jnp.zeros((G, FF)),
        w2=_xavier(kg.next(), (G, FF, D), MXU_DTYPE), b2=jnp.zeros((G, D)),
    )


def _init_encoder(kg, G, L, D, FF, nhead):
    return dict(layers=[_init_enc_layer(kg, G, D, FF, nhead) for _ in range(L)],
                norm_g=jnp.ones((G, D)), norm_b=jnp.zeros((G, D)))


def _init_decoder(kg, L, D, FF, C, nhead):
    return dict(
        queries=_xavier(kg.next(), (C, D)),
        layers=[_init_dec_layer(kg, D, FF, nhead) for _ in range(L)],
        norm_g=jnp.ones((1, D)), norm_b=jnp.zeros((1, D)),
        cls_w=_xavier(kg.next(), (D, 1)).reshape(D),
        cls_b=jnp.zeros((), jnp.float32),
    )


def _init_proj(kg, Din, D):
    return dict(w=_xavier(kg.next(), (1, Din, D), MXU_DTYPE),
                b=jnp.zeros((1, D)),
                ln_g=jnp.ones((1, D)), ln_b=jnp.zeros((1, D)))


def init_params(key, cfg, src_dims):
    kg = _Keys(key)
    D, FF, H = cfg["d_model"], cfg["dim_feedforward"], cfg["nhead"]
    L, Ld, C = cfg["num_encoder_layers"], cfg["num_decoder_layers"], cfg["num_cls"]
    return dict(
        proj1=_init_proj(kg, src_dims[0], D),
        proj2=_init_proj(kg, src_dims[1], D),
        proj3=_init_proj(kg, src_dims[2], D),
        uni_enc=_init_encoder(kg, 3, L, D, FF, H),   # text/video/audio stacked
        tri_enc=_init_encoder(kg, 1, L, D, FF, H),
        scorer_w=_xavier(kg.next(), (3, D, 1))[..., 0],
        scorer_b=jnp.zeros((3,)),
        decoder=_init_decoder(kg, Ld, D, FF, C, H),
    )


# --------------------------------- main --------------------------------------

if __name__ == "__main__":
    # Small, module-consistent configuration (scaled down from the defaults
    # d_model=512/nhead=8/4 encoder layers to keep the demo fast).
    cfg = dict(num_encoder_layers=2, num_decoder_layers=1, d_model=64, nhead=4,
               dim_feedforward=128, eps=1e-5, num_cls=6, k=3)
    B, S = 2, 8
    src_dims = (16, 12, 10)   # (text, video, audio) feature dims

    key = jax.random.PRNGKey(0)
    pkey, k1, k2, k3 = jax.random.split(key, 4)
    params = init_params(pkey, cfg, src_dims)

    src1 = jax.random.normal(k1, (B, S, src_dims[0]), jnp.float32)
    src2 = jax.random.normal(k2, (B, S, src_dims[1]), jnp.float32)
    src3 = jax.random.normal(k3, (B, S, src_dims[2]), jnp.float32)

    fwd = jax.jit(functools.partial(mmer_forward, cfg=cfg))
    logits, logits_masked = fwd(params, src1, src2, src3)
    jax.block_until_ready((logits, logits_masked))

    assert logits.shape == (B, cfg["num_cls"])
    assert logits_masked.shape == (B, cfg["num_cls"])
    assert bool(jnp.all(jnp.isfinite(logits)))
    assert bool(jnp.all(jnp.isfinite(logits_masked)))
    print("KERNEL_OK")
</pallas_src>

<mosaic_0001>
module attributes {stable_mosaic.version = 11 : i64} {
  func.func @_linear_kernel(%arg0: i32, %arg1: i32, %arg2: i32, %arg3: memref<1x12x64xbf16, #tpu.memory_space<vmem>>, %arg4: memref<1x64x192xbf16, #tpu.memory_space<vmem>>, %arg5: memref<1x1x192xf32, #tpu.memory_space<vmem>>, %arg6: memref<1x12x192xbf16, #tpu.memory_space<vmem>>) attributes {dimension_semantics = [#tpu.dimension_semantics<parallel>, #tpu.dimension_semantics<parallel>, #tpu.dimension_semantics<parallel>], iteration_bounds = array<i64: 1, 1, 1>, scalar_prefetch = 0 : i64, scratch_operands = 0 : i64, tpu.core_type = #tpu.core_type<tc>, window_params = [{transform_indices = @transform_0, window_bounds = array<i64: 1, 12, 64>}, {transform_indices = @transform_1, window_bounds = array<i64: 1, 64, 192>}, {transform_indices = @transform_2, window_bounds = array<i64: 1, 1, 192>}, {transform_indices = @transform_3, window_bounds = array<i64: 1, 12, 192>}]} {
    %c0 = arith.constant 0 : index
    %c0_0 = arith.constant 0 : index
    %c0_1 = arith.constant 0 : index
    %0 = vector.load %arg3[%c0, %c0_0, %c0_1] : memref<1x12x64xbf16, #tpu.memory_space<vmem>>, vector<1x12x64xbf16>
    %1 = vector.shape_cast %0 : vector<1x12x64xbf16> to vector<12x64xbf16>
    %c0_2 = arith.constant 0 : index
    %c0_3 = arith.constant 0 : index
    %c0_4 = arith.constant 0 : index
    %2 = vector.load %arg4[%c0_2, %c0_3, %c0_4] : memref<1x64x192xbf16, #tpu.memory_space<vmem>>, vector<1x64x192xbf16>
    %3 = vector.shape_cast %2 : vector<1x64x192xbf16> to vector<64x192xbf16>
    %cst = arith.constant dense<0.000000e+00> : vector<12x192xf32>
    %4 = tpu.matmul %1, %3, %cst {dimension_numbers = #tpu.dot_dimension_numbers<[1], [0], [0], [1], [0, 0, 1, 1], [], []>} : vector<12x64xbf16>, vector<64x192xbf16>, vector<12x192xf32> -> vector<12x192xf32>
    %c0_5 = arith.constant 0 : index
    %c0_6 = arith.constant 0 : index
    %c0_7 = arith.constant 0 : index
    %5 = vector.load %arg5[%c0_5, %c0_6, %c0_7] : memref<1x1x192xf32, #tpu.memory_space<vmem>>, vector<1x1x192xf32>
    %6 = vector.shape_cast %5 : vector<1x1x192xf32> to vector<1x192xf32>
    %7 = vector.broadcast %6 : vector<1x192xf32> to vector<12x192xf32>
    %8 = arith.addf %4, %7 : vector<12x192xf32>
    %9 = arith.truncf %8 : vector<12x192xf32> to vector<12x192xbf16>
    %c0_8 = arith.constant 0 : index
    %c0_9 = arith.constant 0 : index
    %c0_10 = arith.constant 0 : index
    %10 = vector.load %arg6[%c0_8, %c0_9, %c0_10] : memref<1x12x192xbf16, #tpu.memory_space<vmem>>, vector<1x12x192xbf16>
    %11 = vector.shape_cast %10 : vector<1x12x192xbf16> to vector<12x192xbf16>
    %12 = vector.shape_cast %9 : vector<12x192xbf16> to vector<1x12x192xbf16>
    tpu.vector_store %arg6[%c0_8, %c0_9, %c0_10], %12 {strides = array<i32>} : memref<1x12x192xbf16, #tpu.memory_space<vmem>>, vector<1x12x192xbf16>,
    return
  }
  func.func @transform_0(%arg0: i32, %arg1: i32, %arg2: i32) -> (i32, i32, i32) {
    %c0_i32 = arith.constant 0 : i32
    %c0_i32_0 = arith.constant 0 : i32
    return %arg0, %arg1, %c0_i32 : i32, i32, i32
  }
  func.func @transform_1(%arg0: i32, %arg1: i32, %arg2: i32) -> (i32, i32, i32) {
    %c0_i32 = arith.constant 0 : i32
    %c0_i32_0 = arith.constant 0 : i32
    return %arg0, %c0_i32, %arg2 : i32, i32, i32
  }
  func.func @transform_2(%arg0: i32, %arg1: i32, %arg2: i32) -> (i32, i32, i32) {
    %c0_i32 = arith.constant 0 : i32
    %c0_i32_0 = arith.constant 0 : i32
    return %arg0, %c0_i32, %arg2 : i32, i32, i32
  }
  func.func @transform_3(%arg0: i32, %arg1: i32, %arg2: i32) -> (i32, i32, i32) {
    %c0_i32 = arith.constant 0 : i32
    return %arg0, %arg1, %arg2 : i32, i32, i32
  }
}

module attributes {stable_mosaic.version = 11 : i64} {
  func.func @_self_attn_kernel(%arg0: i32, %arg1: memref<1x6x192xbf16, #tpu.memory_space<vmem>>, %arg2: memref<1x6x64xbf16, #tpu.memory_space<vmem>>) attributes {dimension_semantics = [#tpu.dimension_semantics<parallel>], iteration_bounds = array<i64: 2>, scalar_prefetch = 0 : i64, scratch_operands = 0 : i64, tpu.core_type = #tpu.core_type<tc>, window_params = [{transform_indices = @transform_0, window_bounds = array<i64: 1, 6, 192>}, {transform_indices = @transform_1, window_bounds = array<i64: 1, 6, 64>}]} {
    %c0 = arith.constant 0 : index
    %c0_0 = arith.constant 0 : index
    %c0_1 = arith.constant 0 : index
    %0 = vector.load %arg1[%c0, %c0_0, %c0_1] : memref<1x6x192xbf16, #tpu.memory_space<vmem>>, vector<1x6x192xbf16>
    %1 = vector.shape_cast %0 : vector<1x6x192xbf16> to vector<6x192xbf16>
    %2 = vector.extract_strided_slice %1 {offsets = [0, 0], sizes = [6, 64], strides = [1, 1]} : vector<6x192xbf16> to vector<6x64xbf16>
    %3 = vector.extract_strided_slice %1 {offsets = [0, 64], sizes = [6, 64], strides = [1, 1]} : vector<6x192xbf16> to vector<6x64xbf16>
    %4 = vector.extract_strided_slice %1 {offsets = [0, 128], sizes = [6, 64], strides = [1, 1]} : vector<6x192xbf16> to vector<6x64xbf16>
    %5 = vector.shape_cast %2 : vector<6x64xbf16> to vector<6x4x16xbf16>
    %6 = tpu.transpose %5, [1, 0, 2] : vector<6x4x16xbf16> -> vector<4x6x16xbf16>
    %7 = vector.shape_cast %3 : vector<6x64xbf16> to vector<6x4x16xbf16>
    %8 = tpu.transpose %7, [1, 0, 2] : vector<6x4x16xbf16> -> vector<4x6x16xbf16>
    %9 = vector.shape_cast %4 : vector<6x64xbf16> to vector<6x4x16xbf16>
    %10 = tpu.transpose %9, [1, 0, 2] : vector<6x4x16xbf16> -> vector<4x6x16xbf16>
    "tpu.trace_start"() <{level = 10 : i32, message = "hqd,hkd->hqk"}> : () -> ()
    %cst = arith.constant dense<0.000000e+00> : vector<4x6x6xf32>
    %11 = tpu.matmul %6, %8, %cst {dimension_numbers = #tpu.dot_dimension_numbers<[2], [2], [1], [1], [0, 0, 0, 1, 1, 1], [0], [0]>} : vector<4x6x16xbf16>, vector<4x6x16xbf16>, vector<4x6x6xf32> -> vector<4x6x6xf32>
    "tpu.trace_stop"() : () -> ()
    %cst_2 = arith.constant dense<0xFF800000> : vector<4x6xf32>
    %12 = vector.multi_reduction <maximumf>, %11, %cst_2 [2] : vector<4x6x6xf32> to vector<4x6xf32>
    %13 = vector.shape_cast %12 : vector<4x6xf32> to vector<4x6x1xf32>
    %14 = vector.broadcast %13 : vector<4x6x1xf32> to vector<4x6x6xf32>
    %15 = arith.subf %11, %14 : vector<4x6x6xf32>
    %16 = math.exp %15 : vector<4x6x6xf32>
    %cst_3 = arith.constant dense<0.000000e+00> : vector<4x6xf32>
    %17 = vector.multi_reduction <add>, %16, %cst_3 [2] : vector<4x6x6xf32> to vector<4x6xf32>
    %18 = vector.shape_cast %17 : vector<4x6xf32> to vector<4x6x1xf32>
    %19 = tpu.reciprocal %18 {approx = true} : vector<4x6x1xf32> -> vector<4x6x1xf32>
    %20 = vector.broadcast %19 : vector<4x6x1xf32> to vector<4x6x6xf32>
    %21 = arith.mulf %16, %20 : vector<4x6x6xf32>
    %22 = arith.truncf %21 : vector<4x6x6xf32> to vector<4x6x6xbf16>
    "tpu.trace_start"() <{level = 10 : i32, message = "hqk,hkd->hqd"}> : () -> ()
    %cst_4 = arith.constant dense<0.000000e+00> : vector<4x6x16xf32>
    %23 = tpu.matmul %22, %10, %cst_4 {dimension_numbers = #tpu.dot_dimension_numbers<[2], [1], [1], [2], [0, 0, 0, 1, 1, 2], [0], [0]>} : vector<4x6x6xbf16>, vector<4x6x16xbf16>, vector<4x6x16xf32> -> vector<4x6x16xf32>
    "tpu.trace_stop"() : () -> ()
    %24 = tpu.transpose %23, [1, 0, 2] : vector<4x6x16xf32> -> vector<6x4x16xf32>
    %25 = vector.shape_cast %24 : vector<6x4x16xf32> to vector<6x64xf32>
    %26 = arith.truncf %25 : vector<6x64xf32> to vector<6x64xbf16>
    %c0_5 = arith.constant 0 : index
    %c0_6 = arith.constant 0 : index
    %c0_7 = arith.constant 0 : index
    %27 = vector.load %arg2[%c0_5, %c0_6, %c0_7] : memref<1x6x64xbf16, #tpu.memory_space<vmem>>, vector<1x6x64xbf16>
    %28 = vector.shape_cast %27 : vector<1x6x64xbf16> to vector<6x64xbf16>
    %29 = vector.shape_cast %26 : vector<6x64xbf16> to vector<1x6x64xbf16>
    tpu.vector_store %arg2[%c0_5, %c0_6, %c0_7], %29 {strides = array<i32>} : memref<1x6x64xbf16, #tpu.memory_space<vmem>>, vector<1x6x64xbf16>,
    return
  }
  func.func @transform_0(%arg0: i32) -> (i32, i32, i32) {
    %c0_i32 = arith.constant 0 : i32
    %c0_i32_0 = arith.constant 0 : i32
    %c0_i32_1 = arith.constant 0 : i32
    return %arg0, %c0_i32, %c0_i32_0 : i32, i32, i32
  }
  func.func @transform_1(%arg0: i32) -> (i32, i32, i32) {
    %c0_i32 = arith.constant 0 : i32
    %c0_i32_0 = arith.constant 0 : i32
    %c0_i32_1 = arith.constant 0 : i32
    return %arg0, %c0_i32, %c0_i32_0 : i32, i32, i32
  }
}

module attributes {stable_mosaic.version = 11 : i64} {
  func.func @_linear_res_ln_kernel(%arg0: i32, %arg1: i32, %arg2: memref<1x12x64xbf16, #tpu.memory_space<vmem>>, %arg3: memref<1x64x64xbf16, #tpu.memory_space<vmem>>, %arg4: memref<1x1x64xf32, #tpu.memory_space<vmem>>, %arg5: memref<1x12x64xbf16, #tpu.memory_space<vmem>>, %arg6: memref<1x1x64xf32, #tpu.memory_space<vmem>>, %arg7: memref<1x1x64xf32, #tpu.memory_space<vmem>>, %arg8: memref<1x12x64xbf16, #tpu.memory_space<vmem>>) attributes {dimension_semantics = [#tpu.dimension_semantics<parallel>, #tpu.dimension_semantics<parallel>], iteration_bounds = array<i64: 1, 1>, scalar_prefetch = 0 : i64, scratch_operands = 0 : i64, tpu.core_type = #tpu.core_type<tc>, window_params = [{transform_indices = @transform_0, window_bounds = array<i64: 1, 12, 64>}, {transform_indices = @transform_1, window_bounds = array<i64: 1, 64, 64>}, {transform_indices = @transform_2, window_bounds = array<i64: 1, 1, 64>}, {transform_indices = @transform_3, window_bounds = array<i64: 1, 12, 64>}, {transform_indices = @transform_4, window_bounds = array<i64: 1, 1, 64>}, {transform_indices = @transform_5, window_bounds = array<i64: 1, 1, 64>}, {transform_indices = @transform_6, window_bounds = array<i64: 1, 12, 64>}]} {
    %c0 = arith.constant 0 : index
    %c0_0 = arith.constant 0 : index
    %c0_1 = arith.constant 0 : index
    %0 = vector.load %arg2[%c0, %c0_0, %c0_1] : memref<1x12x64xbf16, #tpu.memory_space<vmem>>, vector<1x12x64xbf16>
    %1 = vector.shape_cast %0 : vector<1x12x64xbf16> to vector<12x64xbf16>
    %c0_2 = arith.constant 0 : index
    %c0_3 = arith.constant 0 : index
    %c0_4 = arith.constant 0 : index
    %2 = vector.load %arg3[%c0_2, %c0_3, %c0_4] : memref<1x64x64xbf16, #tpu.memory_space<vmem>>, vector<1x64x64xbf16>
    %3 = vector.shape_cast %2 : vector<1x64x64xbf16> to vector<64x64xbf16>
    %cst = arith.constant dense<0.000000e+00> : vector<12x64xf32>
    %4 = tpu.matmul %1, %3, %cst {dimension_numbers = #tpu.dot_dimension_numbers<[1], [0], [0], [1], [0, 0, 1, 1], [], []>} : vector<12x64xbf16>, vector<64x64xbf16>, vector<12x64xf32> -> vector<12x64xf32>
    %c0_5 = arith.constant 0 : index
    %c0_6 = arith.constant 0 : index
    %c0_7 = arith.constant 0 : index
    %5 = vector.load %arg4[%c0_5, %c0_6, %c0_7] : memref<1x1x64xf32, #tpu.memory_space<vmem>>, vector<1x1x64xf32>
    %6 = vector.shape_cast %5 : vector<1x1x64xf32> to vector<1x64xf32>
    %7 = vector.broadcast %6 : vector<1x64xf32> to vector<12x64xf32>
    %8 = arith.addf %4, %7 : vector<12x64xf32>
    %c0_8 = arith.constant 0 : index
    %c0_9 = arith.constant 0 : index
    %c0_10 = arith.constant 0 : index
    %9 = vector.load %arg5[%c0_8, %c0_9, %c0_10] : memref<1x12x64xbf16, #tpu.memory_space<vmem>>, vector<1x12x64xbf16>
    %10 = vector.shape_cast %9 : vector<1x12x64xbf16> to vector<12x64xbf16>
    %11 = arith.extf %10 : vector<12x64xbf16> to vector<12x64xf32>
    %12 = arith.addf %8, %11 : vector<12x64xf32>
    %c0_11 = arith.constant 0 : index
    %c0_12 = arith.constant 0 : index
    %c0_13 = arith.constant 0 : index
    %13 = vector.load %arg6[%c0_11, %c0_12, %c0_13] : memref<1x1x64xf32, #tpu.memory_space<vmem>>, vector<1x1x64xf32>
    %14 = vector.shape_cast %13 : vector<1x1x64xf32> to vector<1x64xf32>
    %c0_14 = arith.constant 0 : index
    %c0_15 = arith.constant 0 : index
    %c0_16 = arith.constant 0 : index
    %15 = vector.load %arg7[%c0_14, %c0_15, %c0_16] : memref<1x1x64xf32, #tpu.memory_space<vmem>>, vector<1x1x64xf32>
    %16 = vector.shape_cast %15 : vector<1x1x64xf32> to vector<1x64xf32>
    %cst_17 = arith.constant dense<0.000000e+00> : vector<12xf32>
    %17 = vector.multi_reduction <add>, %12, %cst_17 [1] : vector<12x64xf32> to vector<12xf32>
    %18 = vector.shape_cast %17 : vector<12xf32> to vector<12x1xf32>
    %cst_18 = arith.constant 6.400000e+01 : f32
    %19 = vector.broadcast %cst_18 : f32 to vector<12x1xf32>
    %20 = arith.divf %18, %19 : vector<12x1xf32>
    %21 = vector.broadcast %20 : vector<12x1xf32> to vector<12x64xf32>
    %22 = arith.subf %12, %21 : vector<12x64xf32>
    %23 = arith.mulf %22, %22 : vector<12x64xf32>
    %cst_19 = arith.constant dense<0.000000e+00> : vector<12xf32>
    %24 = vector.multi_reduction <add>, %23, %cst_19 [1] : vector<12x64xf32> to vector<12xf32>
    %25 = vector.shape_cast %24 : vector<12xf32> to vector<12x1xf32>
    %cst_20 = arith.constant 6.400000e+01 : f32
    %26 = vector.broadcast %cst_20 : f32 to vector<12x1xf32>
    %27 = arith.divf %25, %26 : vector<12x1xf32>
    %cst_21 = arith.constant 9.99999974E-6 : f32
    %28 = vector.broadcast %cst_21 : f32 to vector<12x1xf32>
    %29 = arith.addf %27, %28 : vector<12x1xf32>
    %30 = math.rsqrt %29 : vector<12x1xf32>
    %31 = vector.broadcast %30 : vector<12x1xf32> to vector<12x64xf32>
    %32 = arith.mulf %22, %31 : vector<12x64xf32>
    %33 = vector.broadcast %14 : vector<1x64xf32> to vector<12x64xf32>
    %34 = arith.mulf %32, %33 : vector<12x64xf32>
    %35 = vector.broadcast %16 : vector<1x64xf32> to vector<12x64xf32>
    %36 = arith.addf %34, %35 : vector<12x64xf32>
    %37 = arith.truncf %36 : vector<12x64xf32> to vector<12x64xbf16>
    %c0_22 = arith.constant 0 : index
    %c0_23 = arith.constant 0 : index
    %c0_24 = arith.constant 0 : index
    %38 = vector.load %arg8[%c0_22, %c0_23, %c0_24] : memref<1x12x64xbf16, #tpu.memory_space<vmem>>, vector<1x12x64xbf16>
    %39 = vector.shape_cast %38 : vector<1x12x64xbf16> to vector<12x64xbf16>
    %40 = vector.shape_cast %37 : vector<12x64xbf16> to vector<1x12x64xbf16>
    tpu.vector_store %arg8[%c0_22, %c0_23, %c0_24], %40 {strides = array<i32>} : memref<1x12x64xbf16, #tpu.memory_space<vmem>>, vector<1x12x64xbf16>,
    return
  }
  func.func @transform_0(%arg0: i32, %arg1: i32) -> (i32, i32, i32) {
    %c0_i32 = arith.constant 0 : i32
    %c0_i32_0 = arith.constant 0 : i32
    return %arg0, %arg1, %c0_i32 : i32, i32, i32
  }
  func.func @transform_1(%arg0: i32, %arg1: i32) -> (i32, i32, i32) {
    %c0_i32 = arith.constant 0 : i32
    %c0_i32_0 = arith.constant 0 : i32
    %c0_i32_1 = arith.constant 0 : i32
    return %arg0, %c0_i32, %c0_i32_0 : i32, i32, i32
  }
  func.func @transform_2(%arg0: i32, %arg1: i32) -> (i32, i32, i32) {
    %c0_i32 = arith.constant 0 : i32
    %c0_i32_0 = arith.constant 0 : i32
    %c0_i32_1 = arith.constant 0 : i32
    return %arg0, %c0_i32, %c0_i32_0 : i32, i32, i32
  }
  func.func @transform_3(%arg0: i32, %arg1: i32) -> (i32, i32, i32) {
    %c0_i32 = arith.constant 0 : i32
    %c0_i32_0 = arith.constant 0 : i32
    return %arg0, %arg1, %c0_i32 : i32, i32, i32
  }
  func.func @transform_4(%arg0: i32, %arg1: i32) -> (i32, i32, i32) {
    %c0_i32 = arith.constant 0 : i32
    %c0_i32_0 = arith.constant 0 : i32
    %c0_i32_1 = arith.constant 0 : i32
    return %arg0, %c0_i32, %c0_i32_0 : i32, i32, i32
  }
  func.func @transform_5(%arg0: i32, %arg1: i32) -> (i32, i32, i32) {
    %c0_i32 = arith.constant 0 : i32
    %c0_i32_0 = arith.constant 0 : i32
    %c0_i32_1 = arith.constant 0 : i32
    return %arg0, %c0_i32, %c0_i32_0 : i32, i32, i32
  }
  func.func @transform_6(%arg0: i32, %arg1: i32) -> (i32, i32, i32) {
    %c0_i32 = arith.constant 0 : i32
    %c0_i32_0 = arith.constant 0 : i32
    return %arg0, %arg1, %c0_i32 : i32, i32, i32
  }
}

module attributes {stable_mosaic.version = 11 : i64} {
  func.func @_linear_kernel(%arg0: i32, %arg1: i32, %arg2: i32, %arg3: memref<1x12x64xbf16, #tpu.memory_space<vmem>>, %arg4: memref<1x64x64xbf16, #tpu.memory_space<vmem>>, %arg5: memref<1x1x64xf32, #tpu.memory_space<vmem>>, %arg6: memref<1x12x64xbf16, #tpu.memory_space<vmem>>) attributes {dimension_semantics = [#tpu.dimension_semantics<parallel>, #tpu.dimension_semantics<parallel>, #tpu.dimension_semantics<parallel>], iteration_bounds = array<i64: 1, 1, 1>, scalar_prefetch = 0 : i64, scratch_operands = 0 : i64, tpu.core_type = #tpu.core_type<tc>, window_params = [{transform_indices = @transform_0, window_bounds = array<i64: 1, 12, 64>}, {transform_indices = @transform_1, window_bounds = array<i64: 1, 64, 64>}, {transform_indices = @transform_2, window_bounds = array<i64: 1, 1, 64>}, {transform_indices = @transform_3, window_bounds = array<i64: 1, 12, 64>}]} {
    %c0 = arith.constant 0 : index
    %c0_0 = arith.constant 0 : index
    %c0_1 = arith.constant 0 : index
    %0 = vector.load %arg3[%c0, %c0_0, %c0_1] : memref<1x12x64xbf16, #tpu.memory_space<vmem>>, vector<1x12x64xbf16>
    %1 = vector.shape_cast %0 : vector<1x12x64xbf16> to vector<12x64xbf16>
    %c0_2 = arith.constant 0 : index
    %c0_3 = arith.constant 0 : index
    %c0_4 = arith.constant 0 : index
    %2 = vector.load %arg4[%c0_2, %c0_3, %c0_4] : memref<1x64x64xbf16, #tpu.memory_space<vmem>>, vector<1x64x64xbf16>
    %3 = vector.shape_cast %2 : vector<1x64x64xbf16> to vector<64x64xbf16>
    %cst = arith.constant dense<0.000000e+00> : vector<12x64xf32>
    %4 = tpu.matmul %1, %3, %cst {dimension_numbers = #tpu.dot_dimension_numbers<[1], [0], [0], [1], [0, 0, 1, 1], [], []>} : vector<12x64xbf16>, vector<64x64xbf16>, vector<12x64xf32> -> vector<12x64xf32>
    %c0_5 = arith.constant 0 : index
    %c0_6 = arith.constant 0 : index
    %c0_7 = arith.constant 0 : index
    %5 = vector.load %arg5[%c0_5, %c0_6, %c0_7] : memref<1x1x64xf32, #tpu.memory_space<vmem>>, vector<1x1x64xf32>
    %6 = vector.shape_cast %5 : vector<1x1x64xf32> to vector<1x64xf32>
    %7 = vector.broadcast %6 : vector<1x64xf32> to vector<12x64xf32>
    %8 = arith.addf %4, %7 : vector<12x64xf32>
    %9 = arith.truncf %8 : vector<12x64xf32> to vector<12x64xbf16>
    %c0_8 = arith.constant 0 : index
    %c0_9 = arith.constant 0 : index
    %c0_10 = arith.constant 0 : index
    %10 = vector.load %arg6[%c0_8, %c0_9, %c0_10] : memref<1x12x64xbf16, #tpu.memory_space<vmem>>, vector<1x12x64xbf16>
    %11 = vector.shape_cast %10 : vector<1x12x64xbf16> to vector<12x64xbf16>
    %12 = vector.shape_cast %9 : vector<12x64xbf16> to vector<1x12x64xbf16>
    tpu.vector_store %arg6[%c0_8, %c0_9, %c0_10], %12 {strides = array<i32>} : memref<1x12x64xbf16, #tpu.memory_space<vmem>>, vector<1x12x64xbf16>,
    return
  }
  func.func @transform_0(%arg0: i32, %arg1: i32, %arg2: i32) -> (i32, i32, i32) {
    %c0_i32 = arith.constant 0 : i32
    %c0_i32_0 = arith.constant 0 : i32
    return %arg0, %arg1, %c0_i32 : i32, i32, i32
  }
  func.func @transform_1(%arg0: i32, %arg1: i32, %arg2: i32) -> (i32, i32, i32) {
    %c0_i32 = arith.constant 0 : i32
    %c0_i32_0 = arith.constant 0 : i32
    return %arg0, %c0_i32, %arg2 : i32, i32, i32
  }
  func.func @transform_2(%arg0: i32, %arg1: i32, %arg2: i32) -> (i32, i32, i32) {
    %c0_i32 = arith.constant 0 : i32
    %c0_i32_0 = arith.constant 0 : i32
    return %arg0, %c0_i32, %arg2 : i32, i32, i32
  }
  func.func @transform_3(%arg0: i32, %arg1: i32, %arg2: i32) -> (i32, i32, i32) {
    %c0_i32 = arith.constant 0 : i32
    return %arg0, %arg1, %arg2 : i32, i32, i32
  }
}

module attributes {stable_mosaic.version = 11 : i64} {
  func.func @_linear_ln_kernel(%arg0: i32, %arg1: i32, %arg2: memref<1x16x10xf32, #tpu.memory_space<vmem>>, %arg3: memref<1x10x64xbf16, #tpu.memory_space<vmem>>, %arg4: memref<1x1x64xf32, #tpu.memory_space<vmem>>, %arg5: memref<1x1x64xf32, #tpu.memory_space<vmem>>, %arg6: memref<1x1x64xf32, #tpu.memory_space<vmem>>, %arg7: memref<1x16x64xbf16, #tpu.memory_space<vmem>>) attributes {dimension_semantics = [#tpu.dimension_semantics<parallel>, #tpu.dimension_semantics<parallel>], iteration_bounds = array<i64: 1, 1>, scalar_prefetch = 0 : i64, scratch_operands = 0 : i64, tpu.core_type = #tpu.core_type<tc>, window_params = [{transform_indices = @transform_0, window_bounds = array<i64: 1, 16, 10>}, {transform_indices = @transform_1, window_bounds = array<i64: 1, 10, 64>}, {transform_indices = @transform_2, window_bounds = array<i64: 1, 1, 64>}, {transform_indices = @transform_3, window_bounds = array<i64: 1, 1, 64>}, {transform_indices = @transform_4, window_bounds = array<i64: 1, 1, 64>}, {transform_indices = @transform_5, window_bounds = array<i64: 1, 16, 64>}]} {
    %c0 = arith.constant 0 : index
    %c0_0 = arith.constant 0 : index
    %c0_1 = arith.constant 0 : index
    %0 = vector.load %arg2[%c0, %c0_0, %c0_1] : memref<1x16x10xf32, #tpu.memory_space<vmem>>, vector<1x16x10xf32>
    %1 = vector.shape_cast %0 : vector<1x16x10xf32> to vector<16x10xf32>
    %2 = arith.truncf %1 : vector<16x10xf32> to vector<16x10xbf16>
    %c0_2 = arith.constant 0 : index
    %c0_3 = arith.constant 0 : index
    %c0_4 = arith.constant 0 : index
    %3 = vector.load %arg3[%c0_2, %c0_3, %c0_4] : memref<1x10x64xbf16, #tpu.memory_space<vmem>>, vector<1x10x64xbf16>
    %4 = vector.shape_cast %3 : vector<1x10x64xbf16> to vector<10x64xbf16>
    %cst = arith.constant dense<0.000000e+00> : vector<16x64xf32>
    %5 = tpu.matmul %2, %4, %cst {dimension_numbers = #tpu.dot_dimension_numbers<[1], [0], [0], [1], [0, 0, 1, 1], [], []>} : vector<16x10xbf16>, vector<10x64xbf16>, vector<16x64xf32> -> vector<16x64xf32>
    %c0_5 = arith.constant 0 : index
    %c0_6 = arith.constant 0 : index
    %c0_7 = arith.constant 0 : index
    %6 = vector.load %arg4[%c0_5, %c0_6, %c0_7] : memref<1x1x64xf32, #tpu.memory_space<vmem>>, vector<1x1x64xf32>
    %7 = vector.shape_cast %6 : vector<1x1x64xf32> to vector<1x64xf32>
    %8 = vector.broadcast %7 : vector<1x64xf32> to vector<16x64xf32>
    %9 = arith.addf %5, %8 : vector<16x64xf32>
    %c0_8 = arith.constant 0 : index
    %c0_9 = arith.constant 0 : index
    %c0_10 = arith.constant 0 : index
    %10 = vector.load %arg5[%c0_8, %c0_9, %c0_10] : memref<1x1x64xf32, #tpu.memory_space<vmem>>, vector<1x1x64xf32>
    %11 = vector.shape_cast %10 : vector<1x1x64xf32> to vector<1x64xf32>
    %c0_11 = arith.constant 0 : index
    %c0_12 = arith.constant 0 : index
    %c0_13 = arith.constant 0 : index
    %12 = vector.load %arg6[%c0_11, %c0_12, %c0_13] : memref<1x1x64xf32, #tpu.memory_space<vmem>>, vector<1x1x64xf32>
    %13 = vector.shape_cast %12 : vector<1x1x64xf32> to vector<1x64xf32>
    %cst_14 = arith.constant dense<0.000000e+00> : vector<16xf32>
    %14 = vector.multi_reduction <add>, %9, %cst_14 [1] : vector<16x64xf32> to vector<16xf32>
    %15 = vector.shape_cast %14 : vector<16xf32> to vector<16x1xf32>
    %cst_15 = arith.constant 6.400000e+01 : f32
    %16 = vector.broadcast %cst_15 : f32 to vector<16x1xf32>
    %17 = arith.divf %15, %16 : vector<16x1xf32>
    %18 = vector.broadcast %17 : vector<16x1xf32> to vector<16x64xf32>
    %19 = arith.subf %9, %18 : vector<16x64xf32>
    %20 = arith.mulf %19, %19 : vector<16x64xf32>
    %cst_16 = arith.constant dense<0.000000e+00> : vector<16xf32>
    %21 = vector.multi_reduction <add>, %20, %cst_16 [1] : vector<16x64xf32> to vector<16xf32>
    %22 = vector.shape_cast %21 : vector<16xf32> to vector<16x1xf32>
    %cst_17 = arith.constant 6.400000e+01 : f32
    %23 = vector.broadcast %cst_17 : f32 to vector<16x1xf32>
    %24 = arith.divf %22, %23 : vector<16x1xf32>
    %cst_18 = arith.constant 9.99999974E-6 : f32
    %25 = vector.broadcast %cst_18 : f32 to vector<16x1xf32>
    %26 = arith.addf %24, %25 : vector<16x1xf32>
    %27 = math.rsqrt %26 : vector<16x1xf32>
    %28 = vector.broadcast %27 : vector<16x1xf32> to vector<16x64xf32>
    %29 = arith.mulf %19, %28 : vector<16x64xf32>
    %30 = vector.broadcast %11 : vector<1x64xf32> to vector<16x64xf32>
    %31 = arith.mulf %29, %30 : vector<16x64xf32>
    %32 = vector.broadcast %13 : vector<1x64xf32> to vector<16x64xf32>
    %33 = arith.addf %31, %32 : vector<16x64xf32>
    %34 = arith.truncf %33 : vector<16x64xf32> to vector<16x64xbf16>
    %c0_19 = arith.constant 0 : index
    %c0_20 = arith.constant 0 : index
    %c0_21 = arith.constant 0 : index
    %35 = vector.load %arg7[%c0_19, %c0_20, %c0_21] : memref<1x16x64xbf16, #tpu.memory_space<vmem>>, vector<1x16x64xbf16>
    %36 = vector.shape_cast %35 : vector<1x16x64xbf16> to vector<16x64xbf16>
    %37 = vector.shape_cast %34 : vector<16x64xbf16> to vector<1x16x64xbf16>
    tpu.vector_store %arg7[%c0_19, %c0_20, %c0_21], %37 {strides = array<i32>} : memref<1x16x64xbf16, #tpu.memory_space<vmem>>, vector<1x16x64xbf16>,
    return
  }
  func.func @transform_0(%arg0: i32, %arg1: i32) -> (i32, i32, i32) {
    %c0_i32 = arith.constant 0 : i32
    %c0_i32_0 = arith.constant 0 : i32
    return %arg0, %arg1, %c0_i32 : i32, i32, i32
  }
  func.func @transform_1(%arg0: i32, %arg1: i32) -> (i32, i32, i32) {
    %c0_i32 = arith.constant 0 : i32
    %c0_i32_0 = arith.constant 0 : i32
    %c0_i32_1 = arith.constant 0 : i32
    return %arg0, %c0_i32, %c0_i32_0 : i32, i32, i32
  }
  func.func @transform_2(%arg0: i32, %arg1: i32) -> (i32, i32, i32) {
    %c0_i32 = arith.constant 0 : i32
    %c0_i32_0 = arith.constant 0 : i32
    %c0_i32_1 = arith.constant 0 : i32
    return %arg0, %c0_i32, %c0_i32_0 : i32, i32, i32
  }
  func.func @transform_3(%arg0: i32, %arg1: i32) -> (i32, i32, i32) {
    %c0_i32 = arith.constant 0 : i32
    %c0_i32_0 = arith.constant 0 : i32
    %c0_i32_1 = arith.constant 0 : i32
    return %arg0, %c0_i32, %c0_i32_0 : i32, i32, i32
  }
  func.func @transform_4(%arg0: i32, %arg1: i32) -> (i32, i32, i32) {
    %c0_i32 = arith.constant 0 : i32
    %c0_i32_0 = arith.constant 0 : i32
    %c0_i32_1 = arith.constant 0 : i32
    return %arg0, %c0_i32, %c0_i32_0 : i32, i32, i32
  }
  func.func @transform_5(%arg0: i32, %arg1: i32) -> (i32, i32, i32) {
    %c0_i32 = arith.constant 0 : i32
    %c0_i32_0 = arith.constant 0 : i32
    return %arg0, %arg1, %c0_i32 : i32, i32, i32
  }
}

module attributes {stable_mosaic.version = 11 : i64} {
  func.func @_linear_ln_kernel(%arg0: i32, %arg1: i32, %arg2: memref<1x16x16xf32, #tpu.memory_space<vmem>>, %arg3: memref<1x16x64xbf16, #tpu.memory_space<vmem>>, %arg4: memref<1x1x64xf32, #tpu.memory_space<vmem>>, %arg5: memref<1x1x64xf32, #tpu.memory_space<vmem>>, %arg6: memref<1x1x64xf32, #tpu.memory_space<vmem>>, %arg7: memref<1x16x64xbf16, #tpu.memory_space<vmem>>) attributes {dimension_semantics = [#tpu.dimension_semantics<parallel>, #tpu.dimension_semantics<parallel>], iteration_bounds = array<i64: 1, 1>, scalar_prefetch = 0 : i64, scratch_operands = 0 : i64, tpu.core_type = #tpu.core_type<tc>, window_params = [{transform_indices = @transform_0, window_bounds = array<i64: 1, 16, 16>}, {transform_indices = @transform_1, window_bounds = array<i64: 1, 16, 64>}, {transform_indices = @transform_2, window_bounds = array<i64: 1, 1, 64>}, {transform_indices = @transform_3, window_bounds = array<i64: 1, 1, 64>}, {transform_indices = @transform_4, window_bounds = array<i64: 1, 1, 64>}, {transform_indices = @transform_5, window_bounds = array<i64: 1, 16, 64>}]} {
    %c0 = arith.constant 0 : index
    %c0_0 = arith.constant 0 : index
    %c0_1 = arith.constant 0 : index
    %0 = vector.load %arg2[%c0, %c0_0, %c0_1] : memref<1x16x16xf32, #tpu.memory_space<vmem>>, vector<1x16x16xf32>
    %1 = vector.shape_cast %0 : vector<1x16x16xf32> to vector<16x16xf32>
    %2 = arith.truncf %1 : vector<16x16xf32> to vector<16x16xbf16>
    %c0_2 = arith.constant 0 : index
    %c0_3 = arith.constant 0 : index
    %c0_4 = arith.constant 0 : index
    %3 = vector.load %arg3[%c0_2, %c0_3, %c0_4] : memref<1x16x64xbf16, #tpu.memory_space<vmem>>, vector<1x16x64xbf16>
    %4 = vector.shape_cast %3 : vector<1x16x64xbf16> to vector<16x64xbf16>
    %cst = arith.constant dense<0.000000e+00> : vector<16x64xf32>
    %5 = tpu.matmul %2, %4, %cst {dimension_numbers = #tpu.dot_dimension_numbers<[1], [0], [0], [1], [0, 0, 1, 1], [], []>} : vector<16x16xbf16>, vector<16x64xbf16>, vector<16x64xf32> -> vector<16x64xf32>
    %c0_5 = arith.constant 0 : index
    %c0_6 = arith.constant 0 : index
    %c0_7 = arith.constant 0 : index
    %6 = vector.load %arg4[%c0_5, %c0_6, %c0_7] : memref<1x1x64xf32, #tpu.memory_space<vmem>>, vector<1x1x64xf32>
    %7 = vector.shape_cast %6 : vector<1x1x64xf32> to vector<1x64xf32>
    %8 = vector.broadcast %7 : vector<1x64xf32> to vector<16x64xf32>
    %9 = arith.addf %5, %8 : vector<16x64xf32>
    %c0_8 = arith.constant 0 : index
    %c0_9 = arith.constant 0 : index
    %c0_10 = arith.constant 0 : index
    %10 = vector.load %arg5[%c0_8, %c0_9, %c0_10] : memref<1x1x64xf32, #tpu.memory_space<vmem>>, vector<1x1x64xf32>
    %11 = vector.shape_cast %10 : vector<1x1x64xf32> to vector<1x64xf32>
    %c0_11 = arith.constant 0 : index
    %c0_12 = arith.constant 0 : index
    %c0_13 = arith.constant 0 : index
    %12 = vector.load %arg6[%c0_11, %c0_12, %c0_13] : memref<1x1x64xf32, #tpu.memory_space<vmem>>, vector<1x1x64xf32>
    %13 = vector.shape_cast %12 : vector<1x1x64xf32> to vector<1x64xf32>
    %cst_14 = arith.constant dense<0.000000e+00> : vector<16xf32>
    %14 = vector.multi_reduction <add>, %9, %cst_14 [1] : vector<16x64xf32> to vector<16xf32>
    %15 = vector.shape_cast %14 : vector<16xf32> to vector<16x1xf32>
    %cst_15 = arith.constant 6.400000e+01 : f32
    %16 = vector.broadcast %cst_15 : f32 to vector<16x1xf32>
    %17 = arith.divf %15, %16 : vector<16x1xf32>
    %18 = vector.broadcast %17 : vector<16x1xf32> to vector<16x64xf32>
    %19 = arith.subf %9, %18 : vector<16x64xf32>
    %20 = arith.mulf %19, %19 : vector<16x64xf32>
    %cst_16 = arith.constant dense<0.000000e+00> : vector<16xf32>
    %21 = vector.multi_reduction <add>, %20, %cst_16 [1] : vector<16x64xf32> to vector<16xf32>
    %22 = vector.shape_cast %21 : vector<16xf32> to vector<16x1xf32>
    %cst_17 = arith.constant 6.400000e+01 : f32
    %23 = vector.broadcast %cst_17 : f32 to vector<16x1xf32>
    %24 = arith.divf %22, %23 : vector<16x1xf32>
    %cst_18 = arith.constant 9.99999974E-6 : f32
    %25 = vector.broadcast %cst_18 : f32 to vector<16x1xf32>
    %26 = arith.addf %24, %25 : vector<16x1xf32>
    %27 = math.rsqrt %26 : vector<16x1xf32>
    %28 = vector.broadcast %27 : vector<16x1xf32> to vector<16x64xf32>
    %29 = arith.mulf %19, %28 : vector<16x64xf32>
    %30 = vector.broadcast %11 : vector<1x64xf32> to vector<16x64xf32>
    %31 = arith.mulf %29, %30 : vector<16x64xf32>
    %32 = vector.broadcast %13 : vector<1x64xf32> to vector<16x64xf32>
    %33 = arith.addf %31, %32 : vector<16x64xf32>
    %34 = arith.truncf %33 : vector<16x64xf32> to vector<16x64xbf16>
    %c0_19 = arith.constant 0 : index
    %c0_20 = arith.constant 0 : index
    %c0_21 = arith.constant 0 : index
    %35 = vector.load %arg7[%c0_19, %c0_20, %c0_21] : memref<1x16x64xbf16, #tpu.memory_space<vmem>>, vector<1x16x64xbf16>
    %36 = vector.shape_cast %35 : vector<1x16x64xbf16> to vector<16x64xbf16>
    %37 = vector.shape_cast %34 : vector<16x64xbf16> to vector<1x16x64xbf16>
    tpu.vector_store %arg7[%c0_19, %c0_20, %c0_21], %37 {strides = array<i32>} : memref<1x16x64xbf16, #tpu.memory_space<vmem>>, vector<1x16x64xbf16>,
    return
  }
  func.func @transform_0(%arg0: i32, %arg1: i32) -> (i32, i32, i32) {
    %c0_i32 = arith.constant 0 : i32
    %c0_i32_0 = arith.constant 0 : i32
    return %arg0, %arg1, %c0_i32 : i32, i32, i32
  }
  func.func @transform_1(%arg0: i32, %arg1: i32) -> (i32, i32, i32) {
    %c0_i32 = arith.constant 0 : i32
    %c0_i32_0 = arith.constant 0 : i32
    %c0_i32_1 = arith.constant 0 : i32
    return %arg0, %c0_i32, %c0_i32_0 : i32, i32, i32
  }
  func.func @transform_2(%arg0: i32, %arg1: i32) -> (i32, i32, i32) {
    %c0_i32 = arith.constant 0 : i32
    %c0_i32_0 = arith.constant 0 : i32
    %c0_i32_1 = arith.constant 0 : i32
    return %arg0, %c0_i32, %c0_i32_0 : i32, i32, i32
  }
  func.func @transform_3(%arg0: i32, %arg1: i32) -> (i32, i32, i32) {
    %c0_i32 = arith.constant 0 : i32
    %c0_i32_0 = arith.constant 0 : i32
    %c0_i32_1 = arith.constant 0 : i32
    return %arg0, %c0_i32, %c0_i32_0 : i32, i32, i32
  }
  func.func @transform_4(%arg0: i32, %arg1: i32) -> (i32, i32, i32) {
    %c0_i32 = arith.constant 0 : i32
    %c0_i32_0 = arith.constant 0 : i32
    %c0_i32_1 = arith.constant 0 : i32
    return %arg0, %c0_i32, %c0_i32_0 : i32, i32, i32
  }
  func.func @transform_5(%arg0: i32, %arg1: i32) -> (i32, i32, i32) {
    %c0_i32 = arith.constant 0 : i32
    %c0_i32_0 = arith.constant 0 : i32
    return %arg0, %arg1, %c0_i32 : i32, i32, i32
  }
}

module attributes {stable_mosaic.version = 11 : i64} {
  func.func @_linear_ln_kernel(%arg0: i32, %arg1: i32, %arg2: memref<1x16x12xf32, #tpu.memory_space<vmem>>, %arg3: memref<1x12x64xbf16, #tpu.memory_space<vmem>>, %arg4: memref<1x1x64xf32, #tpu.memory_space<vmem>>, %arg5: memref<1x1x64xf32, #tpu.memory_space<vmem>>, %arg6: memref<1x1x64xf32, #tpu.memory_space<vmem>>, %arg7: memref<1x16x64xbf16, #tpu.memory_space<vmem>>) attributes {dimension_semantics = [#tpu.dimension_semantics<parallel>, #tpu.dimension_semantics<parallel>], iteration_bounds = array<i64: 1, 1>, scalar_prefetch = 0 : i64, scratch_operands = 0 : i64, tpu.core_type = #tpu.core_type<tc>, window_params = [{transform_indices = @transform_0, window_bounds = array<i64: 1, 16, 12>}, {transform_indices = @transform_1, window_bounds = array<i64: 1, 12, 64>}, {transform_indices = @transform_2, window_bounds = array<i64: 1, 1, 64>}, {transform_indices = @transform_3, window_bounds = array<i64: 1, 1, 64>}, {transform_indices = @transform_4, window_bounds = array<i64: 1, 1, 64>}, {transform_indices = @transform_5, window_bounds = array<i64: 1, 16, 64>}]} {
    %c0 = arith.constant 0 : index
    %c0_0 = arith.constant 0 : index
    %c0_1 = arith.constant 0 : index
    %0 = vector.load %arg2[%c0, %c0_0, %c0_1] : memref<1x16x12xf32, #tpu.memory_space<vmem>>, vector<1x16x12xf32>
    %1 = vector.shape_cast %0 : vector<1x16x12xf32> to vector<16x12xf32>
    %2 = arith.truncf %1 : vector<16x12xf32> to vector<16x12xbf16>
    %c0_2 = arith.constant 0 : index
    %c0_3 = arith.constant 0 : index
    %c0_4 = arith.constant 0 : index
    %3 = vector.load %arg3[%c0_2, %c0_3, %c0_4] : memref<1x12x64xbf16, #tpu.memory_space<vmem>>, vector<1x12x64xbf16>
    %4 = vector.shape_cast %3 : vector<1x12x64xbf16> to vector<12x64xbf16>
    %cst = arith.constant dense<0.000000e+00> : vector<16x64xf32>
    %5 = tpu.matmul %2, %4, %cst {dimension_numbers = #tpu.dot_dimension_numbers<[1], [0], [0], [1], [0, 0, 1, 1], [], []>} : vector<16x12xbf16>, vector<12x64xbf16>, vector<16x64xf32> -> vector<16x64xf32>
    %c0_5 = arith.constant 0 : index
    %c0_6 = arith.constant 0 : index
    %c0_7 = arith.constant 0 : index
    %6 = vector.load %arg4[%c0_5, %c0_6, %c0_7] : memref<1x1x64xf32, #tpu.memory_space<vmem>>, vector<1x1x64xf32>
    %7 = vector.shape_cast %6 : vector<1x1x64xf32> to vector<1x64xf32>
    %8 = vector.broadcast %7 : vector<1x64xf32> to vector<16x64xf32>
    %9 = arith.addf %5, %8 : vector<16x64xf32>
    %c0_8 = arith.constant 0 : index
    %c0_9 = arith.constant 0 : index
    %c0_10 = arith.constant 0 : index
    %10 = vector.load %arg5[%c0_8, %c0_9, %c0_10] : memref<1x1x64xf32, #tpu.memory_space<vmem>>, vector<1x1x64xf32>
    %11 = vector.shape_cast %10 : vector<1x1x64xf32> to vector<1x64xf32>
    %c0_11 = arith.constant 0 : index
    %c0_12 = arith.constant 0 : index
    %c0_13 = arith.constant 0 : index
    %12 = vector.load %arg6[%c0_11, %c0_12, %c0_13] : memref<1x1x64xf32, #tpu.memory_space<vmem>>, vector<1x1x64xf32>
    %13 = vector.shape_cast %12 : vector<1x1x64xf32> to vector<1x64xf32>
    %cst_14 = arith.constant dense<0.000000e+00> : vector<16xf32>
    %14 = vector.multi_reduction <add>, %9, %cst_14 [1] : vector<16x64xf32> to vector<16xf32>
    %15 = vector.shape_cast %14 : vector<16xf32> to vector<16x1xf32>
    %cst_15 = arith.constant 6.400000e+01 : f32
    %16 = vector.broadcast %cst_15 : f32 to vector<16x1xf32>
    %17 = arith.divf %15, %16 : vector<16x1xf32>
    %18 = vector.broadcast %17 : vector<16x1xf32> to vector<16x64xf32>
    %19 = arith.subf %9, %18 : vector<16x64xf32>
    %20 = arith.mulf %19, %19 : vector<16x64xf32>
    %cst_16 = arith.constant dense<0.000000e+00> : vector<16xf32>
    %21 = vector.multi_reduction <add>, %20, %cst_16 [1] : vector<16x64xf32> to vector<16xf32>
    %22 = vector.shape_cast %21 : vector<16xf32> to vector<16x1xf32>
    %cst_17 = arith.constant 6.400000e+01 : f32
    %23 = vector.broadcast %cst_17 : f32 to vector<16x1xf32>
    %24 = arith.divf %22, %23 : vector<16x1xf32>
    %cst_18 = arith.constant 9.99999974E-6 : f32
    %25 = vector.broadcast %cst_18 : f32 to vector<16x1xf32>
    %26 = arith.addf %24, %25 : vector<16x1xf32>
    %27 = math.rsqrt %26 : vector<16x1xf32>
    %28 = vector.broadcast %27 : vector<16x1xf32> to vector<16x64xf32>
    %29 = arith.mulf %19, %28 : vector<16x64xf32>
    %30 = vector.broadcast %11 : vector<1x64xf32> to vector<16x64xf32>
    %31 = arith.mulf %29, %30 : vector<16x64xf32>
    %32 = vector.broadcast %13 : vector<1x64xf32> to vector<16x64xf32>
    %33 = arith.addf %31, %32 : vector<16x64xf32>
    %34 = arith.truncf %33 : vector<16x64xf32> to vector<16x64xbf16>
    %c0_19 = arith.constant 0 : index
    %c0_20 = arith.constant 0 : index
    %c0_21 = arith.constant 0 : index
    %35 = vector.load %arg7[%c0_19, %c0_20, %c0_21] : memref<1x16x64xbf16, #tpu.memory_space<vmem>>, vector<1x16x64xbf16>
    %36 = vector.shape_cast %35 : vector<1x16x64xbf16> to vector<16x64xbf16>
    %37 = vector.shape_cast %34 : vector<16x64xbf16> to vector<1x16x64xbf16>
    tpu.vector_store %arg7[%c0_19, %c0_20, %c0_21], %37 {strides = array<i32>} : memref<1x16x64xbf16, #tpu.memory_space<vmem>>, vector<1x16x64xbf16>,
    return
  }
  func.func @transform_0(%arg0: i32, %arg1: i32) -> (i32, i32, i32) {
    %c0_i32 = arith.constant 0 : i32
    %c0_i32_0 = arith.constant 0 : i32
    return %arg0, %arg1, %c0_i32 : i32, i32, i32
  }
  func.func @transform_1(%arg0: i32, %arg1: i32) -> (i32, i32, i32) {
    %c0_i32 = arith.constant 0 : i32
    %c0_i32_0 = arith.constant 0 : i32
    %c0_i32_1 = arith.constant 0 : i32
    return %arg0, %c0_i32, %c0_i32_0 : i32, i32, i32
  }
  func.func @transform_2(%arg0: i32, %arg1: i32) -> (i32, i32, i32) {
    %c0_i32 = arith.constant 0 : i32
    %c0_i32_0 = arith.constant 0 : i32
    %c0_i32_1 = arith.constant 0 : i32
    return %arg0, %c0_i32, %c0_i32_0 : i32, i32, i32
  }
  func.func @transform_3(%arg0: i32, %arg1: i32) -> (i32, i32, i32) {
    %c0_i32 = arith.constant 0 : i32
    %c0_i32_0 = arith.constant 0 : i32
    %c0_i32_1 = arith.constant 0 : i32
    return %arg0, %c0_i32, %c0_i32_0 : i32, i32, i32
  }
  func.func @transform_4(%arg0: i32, %arg1: i32) -> (i32, i32, i32) {
    %c0_i32 = arith.constant 0 : i32
    %c0_i32_0 = arith.constant 0 : i32
    %c0_i32_1 = arith.constant 0 : i32
    return %arg0, %c0_i32, %c0_i32_0 : i32, i32, i32
  }
  func.func @transform_5(%arg0: i32, %arg1: i32) -> (i32, i32, i32) {
    %c0_i32 = arith.constant 0 : i32
    %c0_i32_0 = arith.constant 0 : i32
    return %arg0, %arg1, %c0_i32 : i32, i32, i32
  }
}

module attributes {stable_mosaic.version = 11 : i64} {
  func.func @_linear_kernel(%arg0: i32, %arg1: i32, %arg2: i32, %arg3: memref<1x16x64xbf16, #tpu.memory_space<vmem>>, %arg4: memref<1x64x192xbf16, #tpu.memory_space<vmem>>, %arg5: memref<1x1x192xf32, #tpu.memory_space<vmem>>, %arg6: memref<1x16x192xbf16, #tpu.memory_space<vmem>>) attributes {dimension_semantics = [#tpu.dimension_semantics<parallel>, #tpu.dimension_semantics<parallel>, #tpu.dimension_semantics<parallel>], iteration_bounds = array<i64: 3, 1, 1>, scalar_prefetch = 0 : i64, scratch_operands = 0 : i64, tpu.core_type = #tpu.core_type<tc>, window_params = [{transform_indices = @transform_0, window_bounds = array<i64: 1, 16, 64>}, {transform_indices = @transform_1, window_bounds = array<i64: 1, 64, 192>}, {transform_indices = @transform_2, window_bounds = array<i64: 1, 1, 192>}, {transform_indices = @transform_3, window_bounds = array<i64: 1, 16, 192>}]} {
    %c0 = arith.constant 0 : index
    %c0_0 = arith.constant 0 : index
    %c0_1 = arith.constant 0 : index
    %0 = vector.load %arg3[%c0, %c0_0, %c0_1] : memref<1x16x64xbf16, #tpu.memory_space<vmem>>, vector<1x16x64xbf16>
    %1 = vector.shape_cast %0 : vector<1x16x64xbf16> to vector<16x64xbf16>
    %c0_2 = arith.constant 0 : index
    %c0_3 = arith.constant 0 : index
    %c0_4 = arith.constant 0 : index
    %2 = vector.load %arg4[%c0_2, %c0_3, %c0_4] : memref<1x64x192xbf16, #tpu.memory_space<vmem>>, vector<1x64x192xbf16>
    %3 = vector.shape_cast %2 : vector<1x64x192xbf16> to vector<64x192xbf16>
    %cst = arith.constant dense<0.000000e+00> : vector<16x192xf32>
    %4 = tpu.matmul %1, %3, %cst {dimension_numbers = #tpu.dot_dimension_numbers<[1], [0], [0], [1], [0, 0, 1, 1], [], []>} : vector<16x64xbf16>, vector<64x192xbf16>, vector<16x192xf32> -> vector<16x192xf32>
    %c0_5 = arith.constant 0 : index
    %c0_6 = arith.constant 0 : index
    %c0_7 = arith.constant 0 : index
    %5 = vector.load %arg5[%c0_5, %c0_6, %c0_7] : memref<1x1x192xf32, #tpu.memory_space<vmem>>, vector<1x1x192xf32>
    %6 = vector.shape_cast %5 : vector<1x1x192xf32> to vector<1x192xf32>
    %7 = vector.broadcast %6 : vector<1x192xf32> to vector<16x192xf32>
    %8 = arith.addf %4, %7 : vector<16x192xf32>
    %9 = arith.truncf %8 : vector<16x192xf32> to vector<16x192xbf16>
    %c0_8 = arith.constant 0 : index
    %c0_9 = arith.constant 0 : index
    %c0_10 = arith.constant 0 : index
    %10 = vector.load %arg6[%c0_8, %c0_9, %c0_10] : memref<1x16x192xbf16, #tpu.memory_space<vmem>>, vector<1x16x192xbf16>
    %11 = vector.shape_cast %10 : vector<1x16x192xbf16> to vector<16x192xbf16>
    %12 = vector.shape_cast %9 : vector<16x192xbf16> to vector<1x16x192xbf16>
    tpu.vector_store %arg6[%c0_8, %c0_9, %c0_10], %12 {strides = array<i32>} : memref<1x16x192xbf16, #tpu.memory_space<vmem>>, vector<1x16x192xbf16>,
    return
  }
  func.func @transform_0(%arg0: i32, %arg1: i32, %arg2: i32) -> (i32, i32, i32) {
    %c0_i32 = arith.constant 0 : i32
    %c0_i32_0 = arith.constant 0 : i32
    return %arg0, %arg1, %c0_i32 : i32, i32, i32
  }
  func.func @transform_1(%arg0: i32, %arg1: i32, %arg2: i32) -> (i32, i32, i32) {
    %c0_i32 = arith.constant 0 : i32
    %c0_i32_0 = arith.constant 0 : i32
    return %arg0, %c0_i32, %arg2 : i32, i32, i32
  }
  func.func @transform_2(%arg0: i32, %arg1: i32, %arg2: i32) -> (i32, i32, i32) {
    %c0_i32 = arith.constant 0 : i32
    %c0_i32_0 = arith.constant 0 : i32
    return %arg0, %c0_i32, %arg2 : i32, i32, i32
  }
  func.func @transform_3(%arg0: i32, %arg1: i32, %arg2: i32) -> (i32, i32, i32) {
    %c0_i32 = arith.constant 0 : i32
    return %arg0, %arg1, %arg2 : i32, i32, i32
  }
}

module attributes {stable_mosaic.version = 11 : i64} {
  func.func @_self_attn_kernel(%arg0: i32, %arg1: memref<1x8x192xbf16, #tpu.memory_space<vmem>>, %arg2: memref<1x8x64xbf16, #tpu.memory_space<vmem>>) attributes {dimension_semantics = [#tpu.dimension_semantics<parallel>], iteration_bounds = array<i64: 6>, scalar_prefetch = 0 : i64, scratch_operands = 0 : i64, tpu.core_type = #tpu.core_type<tc>, window_params = [{transform_indices = @transform_0, window_bounds = array<i64: 1, 8, 192>}, {transform_indices = @transform_1, window_bounds = array<i64: 1, 8, 64>}]} {
    %c0 = arith.constant 0 : index
    %c0_0 = arith.constant 0 : index
    %c0_1 = arith.constant 0 : index
    %0 = vector.load %arg1[%c0, %c0_0, %c0_1] : memref<1x8x192xbf16, #tpu.memory_space<vmem>>, vector<1x8x192xbf16>
    %1 = vector.shape_cast %0 : vector<1x8x192xbf16> to vector<8x192xbf16>
    %2 = vector.extract_strided_slice %1 {offsets = [0, 0], sizes = [8, 64], strides = [1, 1]} : vector<8x192xbf16> to vector<8x64xbf16>
    %3 = vector.extract_strided_slice %1 {offsets = [0, 64], sizes = [8, 64], strides = [1, 1]} : vector<8x192xbf16> to vector<8x64xbf16>
    %4 = vector.extract_strided_slice %1 {offsets = [0, 128], sizes = [8, 64], strides = [1, 1]} : vector<8x192xbf16> to vector<8x64xbf16>
    %5 = vector.shape_cast %2 : vector<8x64xbf16> to vector<8x4x16xbf16>
    %6 = tpu.transpose %5, [1, 0, 2] : vector<8x4x16xbf16> -> vector<4x8x16xbf16>
    %7 = vector.shape_cast %3 : vector<8x64xbf16> to vector<8x4x16xbf16>
    %8 = tpu.transpose %7, [1, 0, 2] : vector<8x4x16xbf16> -> vector<4x8x16xbf16>
    %9 = vector.shape_cast %4 : vector<8x64xbf16> to vector<8x4x16xbf16>
    %10 = tpu.transpose %9, [1, 0, 2] : vector<8x4x16xbf16> -> vector<4x8x16xbf16>
    "tpu.trace_start"() <{level = 10 : i32, message = "hqd,hkd->hqk"}> : () -> ()
    %cst = arith.constant dense<0.000000e+00> : vector<4x8x8xf32>
    %11 = tpu.matmul %6, %8, %cst {dimension_numbers = #tpu.dot_dimension_numbers<[2], [2], [1], [1], [0, 0, 0, 1, 1, 1], [0], [0]>} : vector<4x8x16xbf16>, vector<4x8x16xbf16>, vector<4x8x8xf32> -> vector<4x8x8xf32>
    "tpu.trace_stop"() : () -> ()
    %cst_2 = arith.constant dense<0xFF800000> : vector<4x8xf32>
    %12 = vector.multi_reduction <maximumf>, %11, %cst_2 [2] : vector<4x8x8xf32> to vector<4x8xf32>
    %13 = vector.shape_cast %12 : vector<4x8xf32> to vector<4x8x1xf32>
    %14 = vector.broadcast %13 : vector<4x8x1xf32> to vector<4x8x8xf32>
    %15 = arith.subf %11, %14 : vector<4x8x8xf32>
    %16 = math.exp %15 : vector<4x8x8xf32>
    %cst_3 = arith.constant dense<0.000000e+00> : vector<4x8xf32>
    %17 = vector.multi_reduction <add>, %16, %cst_3 [2] : vector<4x8x8xf32> to vector<4x8xf32>
    %18 = vector.shape_cast %17 : vector<4x8xf32> to vector<4x8x1xf32>
    %19 = tpu.reciprocal %18 {approx = true} : vector<4x8x1xf32> -> vector<4x8x1xf32>
    %20 = vector.broadcast %19 : vector<4x8x1xf32> to vector<4x8x8xf32>
    %21 = arith.mulf %16, %20 : vector<4x8x8xf32>
    %22 = arith.truncf %21 : vector<4x8x8xf32> to vector<4x8x8xbf16>
    "tpu.trace_start"() <{level = 10 : i32, message = "hqk,hkd->hqd"}> : () -> ()
    %cst_4 = arith.constant dense<0.000000e+00> : vector<4x8x16xf32>
    %23 = tpu.matmul %22, %10, %cst_4 {dimension_numbers = #tpu.dot_dimension_numbers<[2], [1], [1], [2], [0, 0, 0, 1, 1, 2], [0], [0]>} : vector<4x8x8xbf16>, vector<4x8x16xbf16>, vector<4x8x16xf32> -> vector<4x8x16xf32>
    "tpu.trace_stop"() : () -> ()
    %24 = tpu.transpose %23, [1, 0, 2] : vector<4x8x16xf32> -> vector<8x4x16xf32>
    %25 = vector.shape_cast %24 : vector<8x4x16xf32> to vector<8x64xf32>
    %26 = arith.truncf %25 : vector<8x64xf32> to vector<8x64xbf16>
    %c0_5 = arith.constant 0 : index
    %c0_6 = arith.constant 0 : index
    %c0_7 = arith.constant 0 : index
    %27 = vector.load %arg2[%c0_5, %c0_6, %c0_7] : memref<1x8x64xbf16, #tpu.memory_space<vmem>>, vector<1x8x64xbf16>
    %28 = vector.shape_cast %27 : vector<1x8x64xbf16> to vector<8x64xbf16>
    %29 = vector.shape_cast %26 : vector<8x64xbf16> to vector<1x8x64xbf16>
    tpu.vector_store %arg2[%c0_5, %c0_6, %c0_7], %29 {strides = array<i32>} : memref<1x8x64xbf16, #tpu.memory_space<vmem>>, vector<1x8x64xbf16>,
    return
  }
  func.func @transform_0(%arg0: i32) -> (i32, i32, i32) {
    %c0_i32 = arith.constant 0 : i32
    %c0_i32_0 = arith.constant 0 : i32
    %c0_i32_1 = arith.constant 0 : i32
    return %arg0, %c0_i32, %c0_i32_0 : i32, i32, i32
  }
  func.func @transform_1(%arg0: i32) -> (i32, i32, i32) {
    %c0_i32 = arith.constant 0 : i32
    %c0_i32_0 = arith.constant 0 : i32
    %c0_i32_1 = arith.constant 0 : i32
    return %arg0, %c0_i32, %c0_i32_0 : i32, i32, i32
  }
}

module attributes {stable_mosaic.version = 11 : i64} {
  func.func @_linear_res_ln_kernel(%arg0: i32, %arg1: i32, %arg2: memref<1x16x64xbf16, #tpu.memory_space<vmem>>, %arg3: memref<1x64x64xbf16, #tpu.memory_space<vmem>>, %arg4: memref<1x1x64xf32, #tpu.memory_space<vmem>>, %arg5: memref<1x16x64xbf16, #tpu.memory_space<vmem>>, %arg6: memref<1x1x64xf32, #tpu.memory_space<vmem>>, %arg7: memref<1x1x64xf32, #tpu.memory_space<vmem>>, %arg8: memref<1x16x64xbf16, #tpu.memory_space<vmem>>) attributes {dimension_semantics = [#tpu.dimension_semantics<parallel>, #tpu.dimension_semantics<parallel>], iteration_bounds = array<i64: 3, 1>, scalar_prefetch = 0 : i64, scratch_operands = 0 : i64, tpu.core_type = #tpu.core_type<tc>, window_params = [{transform_indices = @transform_0, window_bounds = array<i64: 1, 16, 64>}, {transform_indices = @transform_1, window_bounds = array<i64: 1, 64, 64>}, {transform_indices = @transform_2, window_bounds = array<i64: 1, 1, 64>}, {transform_indices = @transform_3, window_bounds = array<i64: 1, 16, 64>}, {transform_indices = @transform_4, window_bounds = array<i64: 1, 1, 64>}, {transform_indices = @transform_5, window_bounds = array<i64: 1, 1, 64>}, {transform_indices = @transform_6, window_bounds = array<i64: 1, 16, 64>}]} {
    %c0 = arith.constant 0 : index
    %c0_0 = arith.constant 0 : index
    %c0_1 = arith.constant 0 : index
    %0 = vector.load %arg2[%c0, %c0_0, %c0_1] : memref<1x16x64xbf16, #tpu.memory_space<vmem>>, vector<1x16x64xbf16>
    %1 = vector.shape_cast %0 : vector<1x16x64xbf16> to vector<16x64xbf16>
    %c0_2 = arith.constant 0 : index
    %c0_3 = arith.constant 0 : index
    %c0_4 = arith.constant 0 : index
    %2 = vector.load %arg3[%c0_2, %c0_3, %c0_4] : memref<1x64x64xbf16, #tpu.memory_space<vmem>>, vector<1x64x64xbf16>
    %3 = vector.shape_cast %2 : vector<1x64x64xbf16> to vector<64x64xbf16>
    %cst = arith.constant dense<0.000000e+00> : vector<16x64xf32>
    %4 = tpu.matmul %1, %3, %cst {dimension_numbers = #tpu.dot_dimension_numbers<[1], [0], [0], [1], [0, 0, 1, 1], [], []>} : vector<16x64xbf16>, vector<64x64xbf16>, vector<16x64xf32> -> vector<16x64xf32>
    %c0_5 = arith.constant 0 : index
    %c0_6 = arith.constant 0 : index
    %c0_7 = arith.constant 0 : index
    %5 = vector.load %arg4[%c0_5, %c0_6, %c0_7] : memref<1x1x64xf32, #tpu.memory_space<vmem>>, vector<1x1x64xf32>
    %6 = vector.shape_cast %5 : vector<1x1x64xf32> to vector<1x64xf32>
    %7 = vector.broadcast %6 : vector<1x64xf32> to vector<16x64xf32>
    %8 = arith.addf %4, %7 : vector<16x64xf32>
    %c0_8 = arith.constant 0 : index
    %c0_9 = arith.constant 0 : index
    %c0_10 = arith.constant 0 : index
    %9 = vector.load %arg5[%c0_8, %c0_9, %c0_10] : memref<1x16x64xbf16, #tpu.memory_space<vmem>>, vector<1x16x64xbf16>
    %10 = vector.shape_cast %9 : vector<1x16x64xbf16> to vector<16x64xbf16>
    %11 = arith.extf %10 : vector<16x64xbf16> to vector<16x64xf32>
    %12 = arith.addf %8, %11 : vector<16x64xf32>
    %c0_11 = arith.constant 0 : index
    %c0_12 = arith.constant 0 : index
    %c0_13 = arith.constant 0 : index
    %13 = vector.load %arg6[%c0_11, %c0_12, %c0_13] : memref<1x1x64xf32, #tpu.memory_space<vmem>>, vector<1x1x64xf32>
    %14 = vector.shape_cast %13 : vector<1x1x64xf32> to vector<1x64xf32>
    %c0_14 = arith.constant 0 : index
    %c0_15 = arith.constant 0 : index
    %c0_16 = arith.constant 0 : index
    %15 = vector.load %arg7[%c0_14, %c0_15, %c0_16] : memref<1x1x64xf32, #tpu.memory_space<vmem>>, vector<1x1x64xf32>
    %16 = vector.shape_cast %15 : vector<1x1x64xf32> to vector<1x64xf32>
    %cst_17 = arith.constant dense<0.000000e+00> : vector<16xf32>
    %17 = vector.multi_reduction <add>, %12, %cst_17 [1] : vector<16x64xf32> to vector<16xf32>
    %18 = vector.shape_cast %17 : vector<16xf32> to vector<16x1xf32>
    %cst_18 = arith.constant 6.400000e+01 : f32
    %19 = vector.broadcast %cst_18 : f32 to vector<16x1xf32>
    %20 = arith.divf %18, %19 : vector<16x1xf32>
    %21 = vector.broadcast %20 : vector<16x1xf32> to vector<16x64xf32>
    %22 = arith.subf %12, %21 : vector<16x64xf32>
    %23 = arith.mulf %22, %22 : vector<16x64xf32>
    %cst_19 = arith.constant dense<0.000000e+00> : vector<16xf32>
    %24 = vector.multi_reduction <add>, %23, %cst_19 [1] : vector<16x64xf32> to vector<16xf32>
    %25 = vector.shape_cast %24 : vector<16xf32> to vector<16x1xf32>
    %cst_20 = arith.constant 6.400000e+01 : f32
    %26 = vector.broadcast %cst_20 : f32 to vector<16x1xf32>
    %27 = arith.divf %25, %26 : vector<16x1xf32>
    %cst_21 = arith.constant 9.99999974E-6 : f32
    %28 = vector.broadcast %cst_21 : f32 to vector<16x1xf32>
    %29 = arith.addf %27, %28 : vector<16x1xf32>
    %30 = math.rsqrt %29 : vector<16x1xf32>
    %31 = vector.broadcast %30 : vector<16x1xf32> to vector<16x64xf32>
    %32 = arith.mulf %22, %31 : vector<16x64xf32>
    %33 = vector.broadcast %14 : vector<1x64xf32> to vector<16x64xf32>
    %34 = arith.mulf %32, %33 : vector<16x64xf32>
    %35 = vector.broadcast %16 : vector<1x64xf32> to vector<16x64xf32>
    %36 = arith.addf %34, %35 : vector<16x64xf32>
    %37 = arith.truncf %36 : vector<16x64xf32> to vector<16x64xbf16>
    %c0_22 = arith.constant 0 : index
    %c0_23 = arith.constant 0 : index
    %c0_24 = arith.constant 0 : index
    %38 = vector.load %arg8[%c0_22, %c0_23, %c0_24] : memref<1x16x64xbf16, #tpu.memory_space<vmem>>, vector<1x16x64xbf16>
    %39 = vector.shape_cast %38 : vector<1x16x64xbf16> to vector<16x64xbf16>
    %40 = vector.shape_cast %37 : vector<16x64xbf16> to vector<1x16x64xbf16>
    tpu.vector_store %arg8[%c0_22, %c0_23, %c0_24], %40 {strides = array<i32>} : memref<1x16x64xbf16, #tpu.memory_space<vmem>>, vector<1x16x64xbf16>,
    return
  }
  func.func @transform_0(%arg0: i32, %arg1: i32) -> (i32, i32, i32) {
    %c0_i32 = arith.constant 0 : i32
    %c0_i32_0 = arith.constant 0 : i32
    return %arg0, %arg1, %c0_i32 : i32, i32, i32
  }
  func.func @transform_1(%arg0: i32, %arg1: i32) -> (i32, i32, i32) {
    %c0_i32 = arith.constant 0 : i32
    %c0_i32_0 = arith.constant 0 : i32
    %c0_i32_1 = arith.constant 0 : i32
    return %arg0, %c0_i32, %c0_i32_0 : i32, i32, i32
  }
  func.func @transform_2(%arg0: i32, %arg1: i32) -> (i32, i32, i32) {
    %c0_i32 = arith.constant 0 : i32
    %c0_i32_0 = arith.constant 0 : i32
    %c0_i32_1 = arith.constant 0 : i32
    return %arg0, %c0_i32, %c0_i32_0 : i32, i32, i32
  }
  func.func @transform_3(%arg0: i32, %arg1: i32) -> (i32, i32, i32) {
    %c0_i32 = arith.constant 0 : i32
    %c0_i32_0 = arith.constant 0 : i32
    return %arg0, %arg1, %c0_i32 : i32, i32, i32
  }
  func.func @transform_4(%arg0: i32, %arg1: i32) -> (i32, i32, i32) {
    %c0_i32 = arith.constant 0 : i32
    %c0_i32_0 = arith.constant 0 : i32
    %c0_i32_1 = arith.constant 0 : i32
    return %arg0, %c0_i32, %c0_i32_0 : i32, i32, i32
  }
  func.func @transform_5(%arg0: i32, %arg1: i32) -> (i32, i32, i32) {
    %c0_i32 = arith.constant 0 : i32
    %c0_i32_0 = arith.constant 0 : i32
    %c0_i32_1 = arith.constant 0 : i32
    return %arg0, %c0_i32, %c0_i32_0 : i32, i32, i32
  }
  func.func @transform_6(%arg0: i32, %arg1: i32) -> (i32, i32, i32) {
    %c0_i32 = arith.constant 0 : i32
    %c0_i32_0 = arith.constant 0 : i32
    return %arg0, %arg1, %c0_i32 : i32, i32, i32
  }
}

module attributes {stable_mosaic.version = 11 : i64} {
  func.func @_linear_kernel(%arg0: i32, %arg1: i32, %arg2: i32, %arg3: memref<1x16x64xbf16, #tpu.memory_space<vmem>>, %arg4: memref<1x64x128xbf16, #tpu.memory_space<vmem>>, %arg5: memref<1x1x128xf32, #tpu.memory_space<vmem>>, %arg6: memref<1x16x128xbf16, #tpu.memory_space<vmem>>) attributes {dimension_semantics = [#tpu.dimension_semantics<parallel>, #tpu.dimension_semantics<parallel>, #tpu.dimension_semantics<parallel>], iteration_bounds = array<i64: 3, 1, 1>, scalar_prefetch = 0 : i64, scratch_operands = 0 : i64, tpu.core_type = #tpu.core_type<tc>, window_params = [{transform_indices = @transform_0, window_bounds = array<i64: 1, 16, 64>}, {transform_indices = @transform_1, window_bounds = array<i64: 1, 64, 128>}, {transform_indices = @transform_2, window_bounds = array<i64: 1, 1, 128>}, {transform_indices = @transform_3, window_bounds = array<i64: 1, 16, 128>}]} {
    %c0 = arith.constant 0 : index
    %c0_0 = arith.constant 0 : index
    %c0_1 = arith.constant 0 : index
    %0 = vector.load %arg3[%c0, %c0_0, %c0_1] : memref<1x16x64xbf16, #tpu.memory_space<vmem>>, vector<1x16x64xbf16>
    %1 = vector.shape_cast %0 : vector<1x16x64xbf16> to vector<16x64xbf16>
    %c0_2 = arith.constant 0 : index
    %c0_3 = arith.constant 0 : index
    %c0_4 = arith.constant 0 : index
    %2 = vector.load %arg4[%c0_2, %c0_3, %c0_4] : memref<1x64x128xbf16, #tpu.memory_space<vmem>>, vector<1x64x128xbf16>
    %3 = vector.shape_cast %2 : vector<1x64x128xbf16> to vector<64x128xbf16>
    %cst = arith.constant dense<0.000000e+00> : vector<16x128xf32>
    %4 = tpu.matmul %1, %3, %cst {dimension_numbers = #tpu.dot_dimension_numbers<[1], [0], [0], [1], [0, 0, 1, 1], [], []>} : vector<16x64xbf16>, vector<64x128xbf16>, vector<16x128xf32> -> vector<16x128xf32>
    %c0_5 = arith.constant 0 : index
    %c0_6 = arith.constant 0 : index
    %c0_7 = arith.constant 0 : index
    %5 = vector.load %arg5[%c0_5, %c0_6, %c0_7] : memref<1x1x128xf32, #tpu.memory_space<vmem>>, vector<1x1x128xf32>
    %6 = vector.shape_cast %5 : vector<1x1x128xf32> to vector<1x128xf32>
    %7 = vector.broadcast %6 : vector<1x128xf32> to vector<16x128xf32>
    %8 = arith.addf %4, %7 : vector<16x128xf32>
    %cst_8 = arith.constant 0.000000e+00 : f32
    %9 = vector.broadcast %cst_8 : f32 to vector<16x128xf32>
    %10 = arith.maximumf %8, %9 : vector<16x128xf32>
    %11 = arith.truncf %10 : vector<16x128xf32> to vector<16x128xbf16>
    %c0_9 = arith.constant 0 : index
    %c0_10 = arith.constant 0 : index
    %c0_11 = arith.constant 0 : index
    %12 = vector.load %arg6[%c0_9, %c0_10, %c0_11] : memref<1x16x128xbf16, #tpu.memory_space<vmem>>, vector<1x16x128xbf16>
    %13 = vector.shape_cast %12 : vector<1x16x128xbf16> to vector<16x128xbf16>
    %14 = vector.shape_cast %11 : vector<16x128xbf16> to vector<1x16x128xbf16>
    tpu.vector_store %arg6[%c0_9, %c0_10, %c0_11], %14 {strides = array<i32>} : memref<1x16x128xbf16, #tpu.memory_space<vmem>>, vector<1x16x128xbf16>,
    return
  }
  func.func @transform_0(%arg0: i32, %arg1: i32, %arg2: i32) -> (i32, i32, i32) {
    %c0_i32 = arith.constant 0 : i32
    %c0_i32_0 = arith.constant 0 : i32
    return %arg0, %arg1, %c0_i32 : i32, i32, i32
  }
  func.func @transform_1(%arg0: i32, %arg1: i32, %arg2: i32) -> (i32, i32, i32) {
    %c0_i32 = arith.constant 0 : i32
    %c0_i32_0 = arith.constant 0 : i32
    return %arg0, %c0_i32, %arg2 : i32, i32, i32
  }
  func.func @transform_2(%arg0: i32, %arg1: i32, %arg2: i32) -> (i32, i32, i32) {
    %c0_i32 = arith.constant 0 : i32
    %c0_i32_0 = arith.constant 0 : i32
    return %arg0, %c0_i32, %arg2 : i32, i32, i32
  }
  func.func @transform_3(%arg0: i32, %arg1: i32, %arg2: i32) -> (i32, i32, i32) {
    %c0_i32 = arith.constant 0 : i32
    return %arg0, %arg1, %arg2 : i32, i32, i32
  }
}

module attributes {stable_mosaic.version = 11 : i64} {
  func.func @_linear_res_ln_kernel(%arg0: i32, %arg1: i32, %arg2: memref<1x16x128xbf16, #tpu.memory_space<vmem>>, %arg3: memref<1x128x64xbf16, #tpu.memory_space<vmem>>, %arg4: memref<1x1x64xf32, #tpu.memory_space<vmem>>, %arg5: memref<1x16x64xbf16, #tpu.memory_space<vmem>>, %arg6: memref<1x1x64xf32, #tpu.memory_space<vmem>>, %arg7: memref<1x1x64xf32, #tpu.memory_space<vmem>>, %arg8: memref<1x16x64xbf16, #tpu.memory_space<vmem>>) attributes {dimension_semantics = [#tpu.dimension_semantics<parallel>, #tpu.dimension_semantics<parallel>], iteration_bounds = array<i64: 3, 1>, scalar_prefetch = 0 : i64, scratch_operands = 0 : i64, tpu.core_type = #tpu.core_type<tc>, window_params = [{transform_indices = @transform_0, window_bounds = array<i64: 1, 16, 128>}, {transform_indices = @transform_1, window_bounds = array<i64: 1, 128, 64>}, {transform_indices = @transform_2, window_bounds = array<i64: 1, 1, 64>}, {transform_indices = @transform_3, window_bounds = array<i64: 1, 16, 64>}, {transform_indices = @transform_4, window_bounds = array<i64: 1, 1, 64>}, {transform_indices = @transform_5, window_bounds = array<i64: 1, 1, 64>}, {transform_indices = @transform_6, window_bounds = array<i64: 1, 16, 64>}]} {
    %c0 = arith.constant 0 : index
    %c0_0 = arith.constant 0 : index
    %c0_1 = arith.constant 0 : index
    %0 = vector.load %arg2[%c0, %c0_0, %c0_1] : memref<1x16x128xbf16, #tpu.memory_space<vmem>>, vector<1x16x128xbf16>
    %1 = vector.shape_cast %0 : vector<1x16x128xbf16> to vector<16x128xbf16>
    %c0_2 = arith.constant 0 : index
    %c0_3 = arith.constant 0 : index
    %c0_4 = arith.constant 0 : index
    %2 = vector.load %arg3[%c0_2, %c0_3, %c0_4] : memref<1x128x64xbf16, #tpu.memory_space<vmem>>, vector<1x128x64xbf16>
    %3 = vector.shape_cast %2 : vector<1x128x64xbf16> to vector<128x64xbf16>
    %cst = arith.constant dense<0.000000e+00> : vector<16x64xf32>
    %4 = tpu.matmul %1, %3, %cst {dimension_numbers = #tpu.dot_dimension_numbers<[1], [0], [0], [1], [0, 0, 1, 1], [], []>} : vector<16x128xbf16>, vector<128x64xbf16>, vector<16x64xf32> -> vector<16x64xf32>
    %c0_5 = arith.constant 0 : index
    %c0_6 = arith.constant 0 : index
    %c0_7 = arith.constant 0 : index
    %5 = vector.load %arg4[%c0_5, %c0_6, %c0_7] : memref<1x1x64xf32, #tpu.memory_space<vmem>>, vector<1x1x64xf32>
    %6 = vector.shape_cast %5 : vector<1x1x64xf32> to vector<1x64xf32>
    %7 = vector.broadcast %6 : vector<1x64xf32> to vector<16x64xf32>
    %8 = arith.addf %4, %7 : vector<16x64xf32>
    %c0_8 = arith.constant 0 : index
    %c0_9 = arith.constant 0 : index
    %c0_10 = arith.constant 0 : index
    %9 = vector.load %arg5[%c0_8, %c0_9, %c0_10] : memref<1x16x64xbf16, #tpu.memory_space<vmem>>, vector<1x16x64xbf16>
    %10 = vector.shape_cast %9 : vector<1x16x64xbf16> to vector<16x64xbf16>
    %11 = arith.extf %10 : vector<16x64xbf16> to vector<16x64xf32>
    %12 = arith.addf %8, %11 : vector<16x64xf32>
    %c0_11 = arith.constant 0 : index
    %c0_12 = arith.constant 0 : index
    %c0_13 = arith.constant 0 : index
    %13 = vector.load %arg6[%c0_11, %c0_12, %c0_13] : memref<1x1x64xf32, #tpu.memory_space<vmem>>, vector<1x1x64xf32>
    %14 = vector.shape_cast %13 : vector<1x1x64xf32> to vector<1x64xf32>
    %c0_14 = arith.constant 0 : index
    %c0_15 = arith.constant 0 : index
    %c0_16 = arith.constant 0 : index
    %15 = vector.load %arg7[%c0_14, %c0_15, %c0_16] : memref<1x1x64xf32, #tpu.memory_space<vmem>>, vector<1x1x64xf32>
    %16 = vector.shape_cast %15 : vector<1x1x64xf32> to vector<1x64xf32>
    %cst_17 = arith.constant dense<0.000000e+00> : vector<16xf32>
    %17 = vector.multi_reduction <add>, %12, %cst_17 [1] : vector<16x64xf32> to vector<16xf32>
    %18 = vector.shape_cast %17 : vector<16xf32> to vector<16x1xf32>
    %cst_18 = arith.constant 6.400000e+01 : f32
    %19 = vector.broadcast %cst_18 : f32 to vector<16x1xf32>
    %20 = arith.divf %18, %19 : vector<16x1xf32>
    %21 = vector.broadcast %20 : vector<16x1xf32> to vector<16x64xf32>
    %22 = arith.subf %12, %21 : vector<16x64xf32>
    %23 = arith.mulf %22, %22 : vector<16x64xf32>
    %cst_19 = arith.constant dense<0.000000e+00> : vector<16xf32>
    %24 = vector.multi_reduction <add>, %23, %cst_19 [1] : vector<16x64xf32> to vector<16xf32>
    %25 = vector.shape_cast %24 : vector<16xf32> to vector<16x1xf32>
    %cst_20 = arith.constant 6.400000e+01 : f32
    %26 = vector.broadcast %cst_20 : f32 to vector<16x1xf32>
    %27 = arith.divf %25, %26 : vector<16x1xf32>
    %cst_21 = arith.constant 9.99999974E-6 : f32
    %28 = vector.broadcast %cst_21 : f32 to vector<16x1xf32>
    %29 = arith.addf %27, %28 : vector<16x1xf32>
    %30 = math.rsqrt %29 : vector<16x1xf32>
    %31 = vector.broadcast %30 : vector<16x1xf32> to vector<16x64xf32>
    %32 = arith.mulf %22, %31 : vector<16x64xf32>
    %33 = vector.broadcast %14 : vector<1x64xf32> to vector<16x64xf32>
    %34 = arith.mulf %32, %33 : vector<16x64xf32>
    %35 = vector.broadcast %16 : vector<1x64xf32> to vector<16x64xf32>
    %36 = arith.addf %34, %35 : vector<16x64xf32>
    %37 = arith.truncf %36 : vector<16x64xf32> to vector<16x64xbf16>
    %c0_22 = arith.constant 0 : index
    %c0_23 = arith.constant 0 : index
    %c0_24 = arith.constant 0 : index
    %38 = vector.load %arg8[%c0_22, %c0_23, %c0_24] : memref<1x16x64xbf16, #tpu.memory_space<vmem>>, vector<1x16x64xbf16>
    %39 = vector.shape_cast %38 : vector<1x16x64xbf16> to vector<16x64xbf16>
    %40 = vector.shape_cast %37 : vector<16x64xbf16> to vector<1x16x64xbf16>
    tpu.vector_store %arg8[%c0_22, %c0_23, %c0_24], %40 {strides = array<i32>} : memref<1x16x64xbf16, #tpu.memory_space<vmem>>, vector<1x16x64xbf16>,
    return
  }
  func.func @transform_0(%arg0: i32, %arg1: i32) -> (i32, i32, i32) {
    %c0_i32 = arith.constant 0 : i32
    %c0_i32_0 = arith.constant 0 : i32
    return %arg0, %arg1, %c0_i32 : i32, i32, i32
  }
  func.func @transform_1(%arg0: i32, %arg1: i32) -> (i32, i32, i32) {
    %c0_i32 = arith.constant 0 : i32
    %c0_i32_0 = arith.constant 0 : i32
    %c0_i32_1 = arith.constant 0 : i32
    return %arg0, %c0_i32, %c0_i32_0 : i32, i32, i32
  }
  func.func @transform_2(%arg0: i32, %arg1: i32) -> (i32, i32, i32) {
    %c0_i32 = arith.constant 0 : i32
    %c0_i32_0 = arith.constant 0 : i32
    %c0_i32_1 = arith.constant 0 : i32
    return %arg0, %c0_i32, %c0_i32_0 : i32, i32, i32
  }
  func.func @transform_3(%arg0: i32, %arg1: i32) -> (i32, i32, i32) {
    %c0_i32 = arith.constant 0 : i32
    %c0_i32_0 = arith.constant 0 : i32
    return %arg0, %arg1, %c0_i32 : i32, i32, i32
  }
  func.func @transform_4(%arg0: i32, %arg1: i32) -> (i32, i32, i32) {
    %c0_i32 = arith.constant 0 : i32
    %c0_i32_0 = arith.constant 0 : i32
    %c0_i32_1 = arith.constant 0 : i32
    return %arg0, %c0_i32, %c0_i32_0 : i32, i32, i32
  }
  func.func @transform_5(%arg0: i32, %arg1: i32) -> (i32, i32, i32) {
    %c0_i32 = arith.constant 0 : i32
    %c0_i32_0 = arith.constant 0 : i32
    %c0_i32_1 = arith.constant 0 : i32
    return %arg0, %c0_i32, %c0_i32_0 : i32, i32, i32
  }
  func.func @transform_6(%arg0: i32, %arg1: i32) -> (i32, i32, i32) {
    %c0_i32 = arith.constant 0 : i32
    %c0_i32_0 = arith.constant 0 : i32
    return %arg0, %arg1, %c0_i32 : i32, i32, i32
  }
}

module attributes {stable_mosaic.version = 11 : i64} {
  func.func @_ln_kernel(%arg0: i32, %arg1: i32, %arg2: memref<1x16x64xbf16, #tpu.memory_space<vmem>>, %arg3: memref<1x1x64xf32, #tpu.memory_space<vmem>>, %arg4: memref<1x1x64xf32, #tpu.memory_space<vmem>>, %arg5: memref<1x16x64xbf16, #tpu.memory_space<vmem>>) attributes {dimension_semantics = [#tpu.dimension_semantics<parallel>, #tpu.dimension_semantics<parallel>], iteration_bounds = array<i64: 3, 1>, scalar_prefetch = 0 : i64, scratch_operands = 0 : i64, tpu.core_type = #tpu.core_type<tc>, window_params = [{transform_indices = @transform_0, window_bounds = array<i64: 1, 16, 64>}, {transform_indices = @transform_1, window_bounds = array<i64: 1, 1, 64>}, {transform_indices = @transform_2, window_bounds = array<i64: 1, 1, 64>}, {transform_indices = @transform_3, window_bounds = array<i64: 1, 16, 64>}]} {
    %c0 = arith.constant 0 : index
    %c0_0 = arith.constant 0 : index
    %c0_1 = arith.constant 0 : index
    %0 = vector.load %arg2[%c0, %c0_0, %c0_1] : memref<1x16x64xbf16, #tpu.memory_space<vmem>>, vector<1x16x64xbf16>
    %1 = vector.shape_cast %0 : vector<1x16x64xbf16> to vector<16x64xbf16>
    %2 = arith.extf %1 : vector<16x64xbf16> to vector<16x64xf32>
    %c0_2 = arith.constant 0 : index
    %c0_3 = arith.constant 0 : index
    %c0_4 = arith.constant 0 : index
    %3 = vector.load %arg3[%c0_2, %c0_3, %c0_4] : memref<1x1x64xf32, #tpu.memory_space<vmem>>, vector<1x1x64xf32>
    %4 = vector.shape_cast %3 : vector<1x1x64xf32> to vector<1x64xf32>
    %c0_5 = arith.constant 0 : index
    %c0_6 = arith.constant 0 : index
    %c0_7 = arith.constant 0 : index
    %5 = vector.load %arg4[%c0_5, %c0_6, %c0_7] : memref<1x1x64xf32, #tpu.memory_space<vmem>>, vector<1x1x64xf32>
    %6 = vector.shape_cast %5 : vector<1x1x64xf32> to vector<1x64xf32>
    %cst = arith.constant dense<0.000000e+00> : vector<16xf32>
    %7 = vector.multi_reduction <add>, %2, %cst [1] : vector<16x64xf32> to vector<16xf32>
    %8 = vector.shape_cast %7 : vector<16xf32> to vector<16x1xf32>
    %cst_8 = arith.constant 6.400000e+01 : f32
    %9 = vector.broadcast %cst_8 : f32 to vector<16x1xf32>
    %10 = arith.divf %8, %9 : vector<16x1xf32>
    %11 = vector.broadcast %10 : vector<16x1xf32> to vector<16x64xf32>
    %12 = arith.subf %2, %11 : vector<16x64xf32>
    %13 = arith.mulf %12, %12 : vector<16x64xf32>
    %cst_9 = arith.constant dense<0.000000e+00> : vector<16xf32>
    %14 = vector.multi_reduction <add>, %13, %cst_9 [1] : vector<16x64xf32> to vector<16xf32>
    %15 = vector.shape_cast %14 : vector<16xf32> to vector<16x1xf32>
    %cst_10 = arith.constant 6.400000e+01 : f32
    %16 = vector.broadcast %cst_10 : f32 to vector<16x1xf32>
    %17 = arith.divf %15, %16 : vector<16x1xf32>
    %cst_11 = arith.constant 9.99999974E-6 : f32
    %18 = vector.broadcast %cst_11 : f32 to vector<16x1xf32>
    %19 = arith.addf %17, %18 : vector<16x1xf32>
    %20 = math.rsqrt %19 : vector<16x1xf32>
    %21 = vector.broadcast %20 : vector<16x1xf32> to vector<16x64xf32>
    %22 = arith.mulf %12, %21 : vector<16x64xf32>
    %23 = vector.broadcast %4 : vector<1x64xf32> to vector<16x64xf32>
    %24 = arith.mulf %22, %23 : vector<16x64xf32>
    %25 = vector.broadcast %6 : vector<1x64xf32> to vector<16x64xf32>
    %26 = arith.addf %24, %25 : vector<16x64xf32>
    %27 = arith.truncf %26 : vector<16x64xf32> to vector<16x64xbf16>
    %c0_12 = arith.constant 0 : index
    %c0_13 = arith.constant 0 : index
    %c0_14 = arith.constant 0 : index
    %28 = vector.load %arg5[%c0_12, %c0_13, %c0_14] : memref<1x16x64xbf16, #tpu.memory_space<vmem>>, vector<1x16x64xbf16>
    %29 = vector.shape_cast %28 : vector<1x16x64xbf16> to vector<16x64xbf16>
    %30 = vector.shape_cast %27 : vector<16x64xbf16> to vector<1x16x64xbf16>
    tpu.vector_store %arg5[%c0_12, %c0_13, %c0_14], %30 {strides = array<i32>} : memref<1x16x64xbf16, #tpu.memory_space<vmem>>, vector<1x16x64xbf16>,
    return
  }
  func.func @transform_0(%arg0: i32, %arg1: i32) -> (i32, i32, i32) {
    %c0_i32 = arith.constant 0 : i32
    %c0_i32_0 = arith.constant 0 : i32
    return %arg0, %arg1, %c0_i32 : i32, i32, i32
  }
  func.func @transform_1(%arg0: i32, %arg1: i32) -> (i32, i32, i32) {
    %c0_i32 = arith.constant 0 : i32
    %c0_i32_0 = arith.constant 0 : i32
    %c0_i32_1 = arith.constant 0 : i32
    return %arg0, %c0_i32, %c0_i32_0 : i32, i32, i32
  }
  func.func @transform_2(%arg0: i32, %arg1: i32) -> (i32, i32, i32) {
    %c0_i32 = arith.constant 0 : i32
    %c0_i32_0 = arith.constant 0 : i32
    %c0_i32_1 = arith.constant 0 : i32
    return %arg0, %c0_i32, %c0_i32_0 : i32, i32, i32
  }
  func.func @transform_3(%arg0: i32, %arg1: i32) -> (i32, i32, i32) {
    %c0_i32 = arith.constant 0 : i32
    %c0_i32_0 = arith.constant 0 : i32
    return %arg0, %arg1, %c0_i32 : i32, i32, i32
  }
}

module attributes {stable_mosaic.version = 11 : i64} {
  func.func @_linear_kernel(%arg0: i32, %arg1: i32, %arg2: i32, %arg3: memref<1x48x64xbf16, #tpu.memory_space<vmem>>, %arg4: memref<1x64x192xbf16, #tpu.memory_space<vmem>>, %arg5: memref<1x1x192xf32, #tpu.memory_space<vmem>>, %arg6: memref<1x48x192xbf16, #tpu.memory_space<vmem>>) attributes {dimension_semantics = [#tpu.dimension_semantics<parallel>, #tpu.dimension_semantics<parallel>, #tpu.dimension_semantics<parallel>], iteration_bounds = array<i64: 1, 1, 1>, scalar_prefetch = 0 : i64, scratch_operands = 0 : i64, tpu.core_type = #tpu.core_type<tc>, window_params = [{transform_indices = @transform_0, window_bounds = array<i64: 1, 48, 64>}, {transform_indices = @transform_1, window_bounds = array<i64: 1, 64, 192>}, {transform_indices = @transform_2, window_bounds = array<i64: 1, 1, 192>}, {transform_indices = @transform_3, window_bounds = array<i64: 1, 48, 192>}]} {
    %c0 = arith.constant 0 : index
    %c0_0 = arith.constant 0 : index
    %c0_1 = arith.constant 0 : index
    %0 = vector.load %arg3[%c0, %c0_0, %c0_1] : memref<1x48x64xbf16, #tpu.memory_space<vmem>>, vector<1x48x64xbf16>
    %1 = vector.shape_cast %0 : vector<1x48x64xbf16> to vector<48x64xbf16>
    %c0_2 = arith.constant 0 : index
    %c0_3 = arith.constant 0 : index
    %c0_4 = arith.constant 0 : index
    %2 = vector.load %arg4[%c0_2, %c0_3, %c0_4] : memref<1x64x192xbf16, #tpu.memory_space<vmem>>, vector<1x64x192xbf16>
    %3 = vector.shape_cast %2 : vector<1x64x192xbf16> to vector<64x192xbf16>
    %cst = arith.constant dense<0.000000e+00> : vector<48x192xf32>
    %4 = tpu.matmul %1, %3, %cst {dimension_numbers = #tpu.dot_dimension_numbers<[1], [0], [0], [1], [0, 0, 1, 1], [], []>} : vector<48x64xbf16>, vector<64x192xbf16>, vector<48x192xf32> -> vector<48x192xf32>
    %c0_5 = arith.constant 0 : index
    %c0_6 = arith.constant 0 : index
    %c0_7 = arith.constant 0 : index
    %5 = vector.load %arg5[%c0_5, %c0_6, %c0_7] : memref<1x1x192xf32, #tpu.memory_space<vmem>>, vector<1x1x192xf32>
    %6 = vector.shape_cast %5 : vector<1x1x192xf32> to vector<1x192xf32>
    %7 = vector.broadcast %6 : vector<1x192xf32> to vector<48x192xf32>
    %8 = arith.addf %4, %7 : vector<48x192xf32>
    %9 = arith.truncf %8 : vector<48x192xf32> to vector<48x192xbf16>
    %c0_8 = arith.constant 0 : index
    %c0_9 = arith.constant 0 : index
    %c0_10 = arith.constant 0 : index
    %10 = vector.load %arg6[%c0_8, %c0_9, %c0_10] : memref<1x48x192xbf16, #tpu.memory_space<vmem>>, vector<1x48x192xbf16>
    %11 = vector.shape_cast %10 : vector<1x48x192xbf16> to vector<48x192xbf16>
    %12 = vector.shape_cast %9 : vector<48x192xbf16> to vector<1x48x192xbf16>
    tpu.vector_store %arg6[%c0_8, %c0_9, %c0_10], %12 {strides = array<i32>} : memref<1x48x192xbf16, #tpu.memory_space<vmem>>, vector<1x48x192xbf16>,
    return
  }
  func.func @transform_0(%arg0: i32, %arg1: i32, %arg2: i32) -> (i32, i32, i32) {
    %c0_i32 = arith.constant 0 : i32
    %c0_i32_0 = arith.constant 0 : i32
    return %arg0, %arg1, %c0_i32 : i32, i32, i32
  }
  func.func @transform_1(%arg0: i32, %arg1: i32, %arg2: i32) -> (i32, i32, i32) {
    %c0_i32 = arith.constant 0 : i32
    %c0_i32_0 = arith.constant 0 : i32
    return %arg0, %c0_i32, %arg2 : i32, i32, i32
  }
  func.func @transform_2(%arg0: i32, %arg1: i32, %arg2: i32) -> (i32, i32, i32) {
    %c0_i32 = arith.constant 0 : i32
    %c0_i32_0 = arith.constant 0 : i32
    return %arg0, %c0_i32, %arg2 : i32, i32, i32
  }
  func.func @transform_3(%arg0: i32, %arg1: i32, %arg2: i32) -> (i32, i32, i32) {
    %c0_i32 = arith.constant 0 : i32
    return %arg0, %arg1, %arg2 : i32, i32, i32
  }
}

module attributes {stable_mosaic.version = 11 : i64} {
  func.func @_self_attn_kernel(%arg0: i32, %arg1: memref<1x24x192xbf16, #tpu.memory_space<vmem>>, %arg2: memref<1x24x64xbf16, #tpu.memory_space<vmem>>) attributes {dimension_semantics = [#tpu.dimension_semantics<parallel>], iteration_bounds = array<i64: 2>, scalar_prefetch = 0 : i64, scratch_operands = 0 : i64, tpu.core_type = #tpu.core_type<tc>, window_params = [{transform_indices = @transform_0, window_bounds = array<i64: 1, 24, 192>}, {transform_indices = @transform_1, window_bounds = array<i64: 1, 24, 64>}]} {
    %c0 = arith.constant 0 : index
    %c0_0 = arith.constant 0 : index
    %c0_1 = arith.constant 0 : index
    %0 = vector.load %arg1[%c0, %c0_0, %c0_1] : memref<1x24x192xbf16, #tpu.memory_space<vmem>>, vector<1x24x192xbf16>
    %1 = vector.shape_cast %0 : vector<1x24x192xbf16> to vector<24x192xbf16>
    %2 = vector.extract_strided_slice %1 {offsets = [0, 0], sizes = [24, 64], strides = [1, 1]} : vector<24x192xbf16> to vector<24x64xbf16>
    %3 = vector.extract_strided_slice %1 {offsets = [0, 64], sizes = [24, 64], strides = [1, 1]} : vector<24x192xbf16> to vector<24x64xbf16>
    %4 = vector.extract_strided_slice %1 {offsets = [0, 128], sizes = [24, 64], strides = [1, 1]} : vector<24x192xbf16> to vector<24x64xbf16>
    %5 = vector.shape_cast %2 : vector<24x64xbf16> to vector<24x4x16xbf16>
    %6 = tpu.transpose %5, [1, 0, 2] : vector<24x4x16xbf16> -> vector<4x24x16xbf16>
    %7 = vector.shape_cast %3 : vector<24x64xbf16> to vector<24x4x16xbf16>
    %8 = tpu.transpose %7, [1, 0, 2] : vector<24x4x16xbf16> -> vector<4x24x16xbf16>
    %9 = vector.shape_cast %4 : vector<24x64xbf16> to vector<24x4x16xbf16>
    %10 = tpu.transpose %9, [1, 0, 2] : vector<24x4x16xbf16> -> vector<4x24x16xbf16>
    "tpu.trace_start"() <{level = 10 : i32, message = "hqd,hkd->hqk"}> : () -> ()
    %cst = arith.constant dense<0.000000e+00> : vector<4x24x24xf32>
    %11 = tpu.matmul %6, %8, %cst {dimension_numbers = #tpu.dot_dimension_numbers<[2], [2], [1], [1], [0, 0, 0, 1, 1, 1], [0], [0]>} : vector<4x24x16xbf16>, vector<4x24x16xbf16>, vector<4x24x24xf32> -> vector<4x24x24xf32>
    "tpu.trace_stop"() : () -> ()
    %cst_2 = arith.constant dense<0xFF800000> : vector<4x24xf32>
    %12 = vector.multi_reduction <maximumf>, %11, %cst_2 [2] : vector<4x24x24xf32> to vector<4x24xf32>
    %13 = vector.shape_cast %12 : vector<4x24xf32> to vector<4x24x1xf32>
    %14 = vector.broadcast %13 : vector<4x24x1xf32> to vector<4x24x24xf32>
    %15 = arith.subf %11, %14 : vector<4x24x24xf32>
    %16 = math.exp %15 : vector<4x24x24xf32>
    %cst_3 = arith.constant dense<0.000000e+00> : vector<4x24xf32>
    %17 = vector.multi_reduction <add>, %16, %cst_3 [2] : vector<4x24x24xf32> to vector<4x24xf32>
    %18 = vector.shape_cast %17 : vector<4x24xf32> to vector<4x24x1xf32>
    %19 = tpu.reciprocal %18 {approx = true} : vector<4x24x1xf32> -> vector<4x24x1xf32>
    %20 = vector.broadcast %19 : vector<4x24x1xf32> to vector<4x24x24xf32>
    %21 = arith.mulf %16, %20 : vector<4x24x24xf32>
    %22 = arith.truncf %21 : vector<4x24x24xf32> to vector<4x24x24xbf16>
    "tpu.trace_start"() <{level = 10 : i32, message = "hqk,hkd->hqd"}> : () -> ()
    %cst_4 = arith.constant dense<0.000000e+00> : vector<4x24x16xf32>
    %23 = tpu.matmul %22, %10, %cst_4 {dimension_numbers = #tpu.dot_dimension_numbers<[2], [1], [1], [2], [0, 0, 0, 1, 1, 2], [0], [0]>} : vector<4x24x24xbf16>, vector<4x24x16xbf16>, vector<4x24x16xf32> -> vector<4x24x16xf32>
    "tpu.trace_stop"() : () -> ()
    %24 = tpu.transpose %23, [1, 0, 2] : vector<4x24x16xf32> -> vector<24x4x16xf32>
    %25 = vector.shape_cast %24 : vector<24x4x16xf32> to vector<24x64xf32>
    %26 = arith.truncf %25 : vector<24x64xf32> to vector<24x64xbf16>
    %c0_5 = arith.constant 0 : index
    %c0_6 = arith.constant 0 : index
    %c0_7 = arith.constant 0 : index
    %27 = vector.load %arg2[%c0_5, %c0_6, %c0_7] : memref<1x24x64xbf16, #tpu.memory_space<vmem>>, vector<1x24x64xbf16>
    %28 = vector.shape_cast %27 : vector<1x24x64xbf16> to vector<24x64xbf16>
    %29 = vector.shape_cast %26 : vector<24x64xbf16> to vector<1x24x64xbf16>
    tpu.vector_store %arg2[%c0_5, %c0_6, %c0_7], %29 {strides = array<i32>} : memref<1x24x64xbf16, #tpu.memory_space<vmem>>, vector<1x24x64xbf16>,
    return
  }
  func.func @transform_0(%arg0: i32) -> (i32, i32, i32) {
    %c0_i32 = arith.constant 0 : i32
    %c0_i32_0 = arith.constant 0 : i32
    %c0_i32_1 = arith.constant 0 : i32
    return %arg0, %c0_i32, %c0_i32_0 : i32, i32, i32
  }
  func.func @transform_1(%arg0: i32) -> (i32, i32, i32) {
    %c0_i32 = arith.constant 0 : i32
    %c0_i32_0 = arith.constant 0 : i32
    %c0_i32_1 = arith.constant 0 : i32
    return %arg0, %c0_i32, %c0_i32_0 : i32, i32, i32
  }
}

module attributes {stable_mosaic.version = 11 : i64} {
  func.func @_linear_res_ln_kernel(%arg0: i32, %arg1: i32, %arg2: memref<1x48x64xbf16, #tpu.memory_space<vmem>>, %arg3: memref<1x64x64xbf16, #tpu.memory_space<vmem>>, %arg4: memref<1x1x64xf32, #tpu.memory_space<vmem>>, %arg5: memref<1x48x64xbf16, #tpu.memory_space<vmem>>, %arg6: memref<1x1x64xf32, #tpu.memory_space<vmem>>, %arg7: memref<1x1x64xf32, #tpu.memory_space<vmem>>, %arg8: memref<1x48x64xbf16, #tpu.memory_space<vmem>>) attributes {dimension_semantics = [#tpu.dimension_semantics<parallel>, #tpu.dimension_semantics<parallel>], iteration_bounds = array<i64: 1, 1>, scalar_prefetch = 0 : i64, scratch_operands = 0 : i64, tpu.core_type = #tpu.core_type<tc>, window_params = [{transform_indices = @transform_0, window_bounds = array<i64: 1, 48, 64>}, {transform_indices = @transform_1, window_bounds = array<i64: 1, 64, 64>}, {transform_indices = @transform_2, window_bounds = array<i64: 1, 1, 64>}, {transform_indices = @transform_3, window_bounds = array<i64: 1, 48, 64>}, {transform_indices = @transform_4, window_bounds = array<i64: 1, 1, 64>}, {transform_indices = @transform_5, window_bounds = array<i64: 1, 1, 64>}, {transform_indices = @transform_6, window_bounds = array<i64: 1, 48, 64>}]} {
    %c0 = arith.constant 0 : index
    %c0_0 = arith.constant 0 : index
    %c0_1 = arith.constant 0 : index
    %0 = vector.load %arg2[%c0, %c0_0, %c0_1] : memref<1x48x64xbf16, #tpu.memory_space<vmem>>, vector<1x48x64xbf16>
    %1 = vector.shape_cast %0 : vector<1x48x64xbf16> to vector<48x64xbf16>
    %c0_2 = arith.constant 0 : index
    %c0_3 = arith.constant 0 : index
    %c0_4 = arith.constant 0 : index
    %2 = vector.load %arg3[%c0_2, %c0_3, %c0_4] : memref<1x64x64xbf16, #tpu.memory_space<vmem>>, vector<1x64x64xbf16>
    %3 = vector.shape_cast %2 : vector<1x64x64xbf16> to vector<64x64xbf16>
    %cst = arith.constant dense<0.000000e+00> : vector<48x64xf32>
    %4 = tpu.matmul %1, %3, %cst {dimension_numbers = #tpu.dot_dimension_numbers<[1], [0], [0], [1], [0, 0, 1, 1], [], []>} : vector<48x64xbf16>, vector<64x64xbf16>, vector<48x64xf32> -> vector<48x64xf32>
    %c0_5 = arith.constant 0 : index
    %c0_6 = arith.constant 0 : index
    %c0_7 = arith.constant 0 : index
    %5 = vector.load %arg4[%c0_5, %c0_6, %c0_7] : memref<1x1x64xf32, #tpu.memory_space<vmem>>, vector<1x1x64xf32>
    %6 = vector.shape_cast %5 : vector<1x1x64xf32> to vector<1x64xf32>
    %7 = vector.broadcast %6 : vector<1x64xf32> to vector<48x64xf32>
    %8 = arith.addf %4, %7 : vector<48x64xf32>
    %c0_8 = arith.constant 0 : index
    %c0_9 = arith.constant 0 : index
    %c0_10 = arith.constant 0 : index
    %9 = vector.load %arg5[%c0_8, %c0_9, %c0_10] : memref<1x48x64xbf16, #tpu.memory_space<vmem>>, vector<1x48x64xbf16>
    %10 = vector.shape_cast %9 : vector<1x48x64xbf16> to vector<48x64xbf16>
    %11 = arith.extf %10 : vector<48x64xbf16> to vector<48x64xf32>
    %12 = arith.addf %8, %11 : vector<48x64xf32>
    %c0_11 = arith.constant 0 : index
    %c0_12 = arith.constant 0 : index
    %c0_13 = arith.constant 0 : index
    %13 = vector.load %arg6[%c0_11, %c0_12, %c0_13] : memref<1x1x64xf32, #tpu.memory_space<vmem>>, vector<1x1x64xf32>
    %14 = vector.shape_cast %13 : vector<1x1x64xf32> to vector<1x64xf32>
    %c0_14 = arith.constant 0 : index
    %c0_15 = arith.constant 0 : index
    %c0_16 = arith.constant 0 : index
    %15 = vector.load %arg7[%c0_14, %c0_15, %c0_16] : memref<1x1x64xf32, #tpu.memory_space<vmem>>, vector<1x1x64xf32>
    %16 = vector.shape_cast %15 : vector<1x1x64xf32> to vector<1x64xf32>
    %cst_17 = arith.constant dense<0.000000e+00> : vector<48xf32>
    %17 = vector.multi_reduction <add>, %12, %cst_17 [1] : vector<48x64xf32> to vector<48xf32>
    %18 = vector.shape_cast %17 : vector<48xf32> to vector<48x1xf32>
    %cst_18 = arith.constant 6.400000e+01 : f32
    %19 = vector.broadcast %cst_18 : f32 to vector<48x1xf32>
    %20 = arith.divf %18, %19 : vector<48x1xf32>
    %21 = vector.broadcast %20 : vector<48x1xf32> to vector<48x64xf32>
    %22 = arith.subf %12, %21 : vector<48x64xf32>
    %23 = arith.mulf %22, %22 : vector<48x64xf32>
    %cst_19 = arith.constant dense<0.000000e+00> : vector<48xf32>
    %24 = vector.multi_reduction <add>, %23, %cst_19 [1] : vector<48x64xf32> to vector<48xf32>
    %25 = vector.shape_cast %24 : vector<48xf32> to vector<48x1xf32>
    %cst_20 = arith.constant 6.400000e+01 : f32
    %26 = vector.broadcast %cst_20 : f32 to vector<48x1xf32>
    %27 = arith.divf %25, %26 : vector<48x1xf32>
    %cst_21 = arith.constant 9.99999974E-6 : f32
    %28 = vector.broadcast %cst_21 : f32 to vector<48x1xf32>
    %29 = arith.addf %27, %28 : vector<48x1xf32>
    %30 = math.rsqrt %29 : vector<48x1xf32>
    %31 = vector.broadcast %30 : vector<48x1xf32> to vector<48x64xf32>
    %32 = arith.mulf %22, %31 : vector<48x64xf32>
    %33 = vector.broadcast %14 : vector<1x64xf32> to vector<48x64xf32>
    %34 = arith.mulf %32, %33 : vector<48x64xf32>
    %35 = vector.broadcast %16 : vector<1x64xf32> to vector<48x64xf32>
    %36 = arith.addf %34, %35 : vector<48x64xf32>
    %37 = arith.truncf %36 : vector<48x64xf32> to vector<48x64xbf16>
    %c0_22 = arith.constant 0 : index
    %c0_23 = arith.constant 0 : index
    %c0_24 = arith.constant 0 : index
    %38 = vector.load %arg8[%c0_22, %c0_23, %c0_24] : memref<1x48x64xbf16, #tpu.memory_space<vmem>>, vector<1x48x64xbf16>
    %39 = vector.shape_cast %38 : vector<1x48x64xbf16> to vector<48x64xbf16>
    %40 = vector.shape_cast %37 : vector<48x64xbf16> to vector<1x48x64xbf16>
    tpu.vector_store %arg8[%c0_22, %c0_23, %c0_24], %40 {strides = array<i32>} : memref<1x48x64xbf16, #tpu.memory_space<vmem>>, vector<1x48x64xbf16>,
    return
  }
  func.func @transform_0(%arg0: i32, %arg1: i32) -> (i32, i32, i32) {
    %c0_i32 = arith.constant 0 : i32
    %c0_i32_0 = arith.constant 0 : i32
    return %arg0, %arg1, %c0_i32 : i32, i32, i32
  }
  func.func @transform_1(%arg0: i32, %arg1: i32) -> (i32, i32, i32) {
    %c0_i32 = arith.constant 0 : i32
    %c0_i32_0 = arith.constant 0 : i32
    %c0_i32_1 = arith.constant 0 : i32
    return %arg0, %c0_i32, %c0_i32_0 : i32, i32, i32
  }
  func.func @transform_2(%arg0: i32, %arg1: i32) -> (i32, i32, i32) {
    %c0_i32 = arith.constant 0 : i32
    %c0_i32_0 = arith.constant 0 : i32
    %c0_i32_1 = arith.constant 0 : i32
    return %arg0, %c0_i32, %c0_i32_0 : i32, i32, i32
  }
  func.func @transform_3(%arg0: i32, %arg1: i32) -> (i32, i32, i32) {
    %c0_i32 = arith.constant 0 : i32
    %c0_i32_0 = arith.constant 0 : i32
    return %arg0, %arg1, %c0_i32 : i32, i32, i32
  }
  func.func @transform_4(%arg0: i32, %arg1: i32) -> (i32, i32, i32) {
    %c0_i32 = arith.constant 0 : i32
    %c0_i32_0 = arith.constant 0 : i32
    %c0_i32_1 = arith.constant 0 : i32
    return %arg0, %c0_i32, %c0_i32_0 : i32, i32, i32
  }
  func.func @transform_5(%arg0: i32, %arg1: i32) -> (i32, i32, i32) {
    %c0_i32 = arith.constant 0 : i32
    %c0_i32_0 = arith.constant 0 : i32
    %c0_i32_1 = arith.constant 0 : i32
    return %arg0, %c0_i32, %c0_i32_0 : i32, i32, i32
  }
  func.func @transform_6(%arg0: i32, %arg1: i32) -> (i32, i32, i32) {
    %c0_i32 = arith.constant 0 : i32
    %c0_i32_0 = arith.constant 0 : i32
    return %arg0, %arg1, %c0_i32 : i32, i32, i32
  }
}

module attributes {stable_mosaic.version = 11 : i64} {
  func.func @_linear_kernel(%arg0: i32, %arg1: i32, %arg2: i32, %arg3: memref<1x48x64xbf16, #tpu.memory_space<vmem>>, %arg4: memref<1x64x128xbf16, #tpu.memory_space<vmem>>, %arg5: memref<1x1x128xf32, #tpu.memory_space<vmem>>, %arg6: memref<1x48x128xbf16, #tpu.memory_space<vmem>>) attributes {dimension_semantics = [#tpu.dimension_semantics<parallel>, #tpu.dimension_semantics<parallel>, #tpu.dimension_semantics<parallel>], iteration_bounds = array<i64: 1, 1, 1>, scalar_prefetch = 0 : i64, scratch_operands = 0 : i64, tpu.core_type = #tpu.core_type<tc>, window_params = [{transform_indices = @transform_0, window_bounds = array<i64: 1, 48, 64>}, {transform_indices = @transform_1, window_bounds = array<i64: 1, 64, 128>}, {transform_indices = @transform_2, window_bounds = array<i64: 1, 1, 128>}, {transform_indices = @transform_3, window_bounds = array<i64: 1, 48, 128>}]} {
    %c0 = arith.constant 0 : index
    %c0_0 = arith.constant 0 : index
    %c0_1 = arith.constant 0 : index
    %0 = vector.load %arg3[%c0, %c0_0, %c0_1] : memref<1x48x64xbf16, #tpu.memory_space<vmem>>, vector<1x48x64xbf16>
    %1 = vector.shape_cast %0 : vector<1x48x64xbf16> to vector<48x64xbf16>
    %c0_2 = arith.constant 0 : index
    %c0_3 = arith.constant 0 : index
    %c0_4 = arith.constant 0 : index
    %2 = vector.load %arg4[%c0_2, %c0_3, %c0_4] : memref<1x64x128xbf16, #tpu.memory_space<vmem>>, vector<1x64x128xbf16>
    %3 = vector.shape_cast %2 : vector<1x64x128xbf16> to vector<64x128xbf16>
    %cst = arith.constant dense<0.000000e+00> : vector<48x128xf32>
    %4 = tpu.matmul %1, %3, %cst {dimension_numbers = #tpu.dot_dimension_numbers<[1], [0], [0], [1], [0, 0, 1, 1], [], []>} : vector<48x64xbf16>, vector<64x128xbf16>, vector<48x128xf32> -> vector<48x128xf32>
    %c0_5 = arith.constant 0 : index
    %c0_6 = arith.constant 0 : index
    %c0_7 = arith.constant 0 : index
    %5 = vector.load %arg5[%c0_5, %c0_6, %c0_7] : memref<1x1x128xf32, #tpu.memory_space<vmem>>, vector<1x1x128xf32>
    %6 = vector.shape_cast %5 : vector<1x1x128xf32> to vector<1x128xf32>
    %7 = vector.broadcast %6 : vector<1x128xf32> to vector<48x128xf32>
    %8 = arith.addf %4, %7 : vector<48x128xf32>
    %cst_8 = arith.constant 0.000000e+00 : f32
    %9 = vector.broadcast %cst_8 : f32 to vector<48x128xf32>
    %10 = arith.maximumf %8, %9 : vector<48x128xf32>
    %11 = arith.truncf %10 : vector<48x128xf32> to vector<48x128xbf16>
    %c0_9 = arith.constant 0 : index
    %c0_10 = arith.constant 0 : index
    %c0_11 = arith.constant 0 : index
    %12 = vector.load %arg6[%c0_9, %c0_10, %c0_11] : memref<1x48x128xbf16, #tpu.memory_space<vmem>>, vector<1x48x128xbf16>
    %13 = vector.shape_cast %12 : vector<1x48x128xbf16> to vector<48x128xbf16>
    %14 = vector.shape_cast %11 : vector<48x128xbf16> to vector<1x48x128xbf16>
    tpu.vector_store %arg6[%c0_9, %c0_10, %c0_11], %14 {strides = array<i32>} : memref<1x48x128xbf16, #tpu.memory_space<vmem>>, vector<1x48x128xbf16>,
    return
  }
  func.func @transform_0(%arg0: i32, %arg1: i32, %arg2: i32) -> (i32, i32, i32) {
    %c0_i32 = arith.constant 0 : i32
    %c0_i32_0 = arith.constant 0 : i32
    return %arg0, %arg1, %c0_i32 : i32, i32, i32
  }
  func.func @transform_1(%arg0: i32, %arg1: i32, %arg2: i32) -> (i32, i32, i32) {
    %c0_i32 = arith.constant 0 : i32
    %c0_i32_0 = arith.constant 0 : i32
    return %arg0, %c0_i32, %arg2 : i32, i32, i32
  }
  func.func @transform_2(%arg0: i32, %arg1: i32, %arg2: i32) -> (i32, i32, i32) {
    %c0_i32 = arith.constant 0 : i32
    %c0_i32_0 = arith.constant 0 : i32
    return %arg0, %c0_i32, %arg2 : i32, i32, i32
  }
  func.func @transform_3(%arg0: i32, %arg1: i32, %arg2: i32) -> (i32, i32, i32) {
    %c0_i32 = arith.constant 0 : i32
    return %arg0, %arg1, %arg2 : i32, i32, i32
  }
}

module attributes {stable_mosaic.version = 11 : i64} {
  func.func @_linear_res_ln_kernel(%arg0: i32, %arg1: i32, %arg2: memref<1x48x128xbf16, #tpu.memory_space<vmem>>, %arg3: memref<1x128x64xbf16, #tpu.memory_space<vmem>>, %arg4: memref<1x1x64xf32, #tpu.memory_space<vmem>>, %arg5: memref<1x48x64xbf16, #tpu.memory_space<vmem>>, %arg6: memref<1x1x64xf32, #tpu.memory_space<vmem>>, %arg7: memref<1x1x64xf32, #tpu.memory_space<vmem>>, %arg8: memref<1x48x64xbf16, #tpu.memory_space<vmem>>) attributes {dimension_semantics = [#tpu.dimension_semantics<parallel>, #tpu.dimension_semantics<parallel>], iteration_bounds = array<i64: 1, 1>, scalar_prefetch = 0 : i64, scratch_operands = 0 : i64, tpu.core_type = #tpu.core_type<tc>, window_params = [{transform_indices = @transform_0, window_bounds = array<i64: 1, 48, 128>}, {transform_indices = @transform_1, window_bounds = array<i64: 1, 128, 64>}, {transform_indices = @transform_2, window_bounds = array<i64: 1, 1, 64>}, {transform_indices = @transform_3, window_bounds = array<i64: 1, 48, 64>}, {transform_indices = @transform_4, window_bounds = array<i64: 1, 1, 64>}, {transform_indices = @transform_5, window_bounds = array<i64: 1, 1, 64>}, {transform_indices = @transform_6, window_bounds = array<i64: 1, 48, 64>}]} {
    %c0 = arith.constant 0 : index
    %c0_0 = arith.constant 0 : index
    %c0_1 = arith.constant 0 : index
    %0 = vector.load %arg2[%c0, %c0_0, %c0_1] : memref<1x48x128xbf16, #tpu.memory_space<vmem>>, vector<1x48x128xbf16>
    %1 = vector.shape_cast %0 : vector<1x48x128xbf16> to vector<48x128xbf16>
    %c0_2 = arith.constant 0 : index
    %c0_3 = arith.constant 0 : index
    %c0_4 = arith.constant 0 : index
    %2 = vector.load %arg3[%c0_2, %c0_3, %c0_4] : memref<1x128x64xbf16, #tpu.memory_space<vmem>>, vector<1x128x64xbf16>
    %3 = vector.shape_cast %2 : vector<1x128x64xbf16> to vector<128x64xbf16>
    %cst = arith.constant dense<0.000000e+00> : vector<48x64xf32>
    %4 = tpu.matmul %1, %3, %cst {dimension_numbers = #tpu.dot_dimension_numbers<[1], [0], [0], [1], [0, 0, 1, 1], [], []>} : vector<48x128xbf16>, vector<128x64xbf16>, vector<48x64xf32> -> vector<48x64xf32>
    %c0_5 = arith.constant 0 : index
    %c0_6 = arith.constant 0 : index
    %c0_7 = arith.constant 0 : index
    %5 = vector.load %arg4[%c0_5, %c0_6, %c0_7] : memref<1x1x64xf32, #tpu.memory_space<vmem>>, vector<1x1x64xf32>
    %6 = vector.shape_cast %5 : vector<1x1x64xf32> to vector<1x64xf32>
    %7 = vector.broadcast %6 : vector<1x64xf32> to vector<48x64xf32>
    %8 = arith.addf %4, %7 : vector<48x64xf32>
    %c0_8 = arith.constant 0 : index
    %c0_9 = arith.constant 0 : index
    %c0_10 = arith.constant 0 : index
    %9 = vector.load %arg5[%c0_8, %c0_9, %c0_10] : memref<1x48x64xbf16, #tpu.memory_space<vmem>>, vector<1x48x64xbf16>
    %10 = vector.shape_cast %9 : vector<1x48x64xbf16> to vector<48x64xbf16>
    %11 = arith.extf %10 : vector<48x64xbf16> to vector<48x64xf32>
    %12 = arith.addf %8, %11 : vector<48x64xf32>
    %c0_11 = arith.constant 0 : index
    %c0_12 = arith.constant 0 : index
    %c0_13 = arith.constant 0 : index
    %13 = vector.load %arg6[%c0_11, %c0_12, %c0_13] : memref<1x1x64xf32, #tpu.memory_space<vmem>>, vector<1x1x64xf32>
    %14 = vector.shape_cast %13 : vector<1x1x64xf32> to vector<1x64xf32>
    %c0_14 = arith.constant 0 : index
    %c0_15 = arith.constant 0 : index
    %c0_16 = arith.constant 0 : index
    %15 = vector.load %arg7[%c0_14, %c0_15, %c0_16] : memref<1x1x64xf32, #tpu.memory_space<vmem>>, vector<1x1x64xf32>
    %16 = vector.shape_cast %15 : vector<1x1x64xf32> to vector<1x64xf32>
    %cst_17 = arith.constant dense<0.000000e+00> : vector<48xf32>
    %17 = vector.multi_reduction <add>, %12, %cst_17 [1] : vector<48x64xf32> to vector<48xf32>
    %18 = vector.shape_cast %17 : vector<48xf32> to vector<48x1xf32>
    %cst_18 = arith.constant 6.400000e+01 : f32
    %19 = vector.broadcast %cst_18 : f32 to vector<48x1xf32>
    %20 = arith.divf %18, %19 : vector<48x1xf32>
    %21 = vector.broadcast %20 : vector<48x1xf32> to vector<48x64xf32>
    %22 = arith.subf %12, %21 : vector<48x64xf32>
    %23 = arith.mulf %22, %22 : vector<48x64xf32>
    %cst_19 = arith.constant dense<0.000000e+00> : vector<48xf32>
    %24 = vector.multi_reduction <add>, %23, %cst_19 [1] : vector<48x64xf32> to vector<48xf32>
    %25 = vector.shape_cast %24 : vector<48xf32> to vector<48x1xf32>
    %cst_20 = arith.constant 6.400000e+01 : f32
    %26 = vector.broadcast %cst_20 : f32 to vector<48x1xf32>
    %27 = arith.divf %25, %26 : vector<48x1xf32>
    %cst_21 = arith.constant 9.99999974E-6 : f32
    %28 = vector.broadcast %cst_21 : f32 to vector<48x1xf32>
    %29 = arith.addf %27, %28 : vector<48x1xf32>
    %30 = math.rsqrt %29 : vector<48x1xf32>
    %31 = vector.broadcast %30 : vector<48x1xf32> to vector<48x64xf32>
    %32 = arith.mulf %22, %31 : vector<48x64xf32>
    %33 = vector.broadcast %14 : vector<1x64xf32> to vector<48x64xf32>
    %34 = arith.mulf %32, %33 : vector<48x64xf32>
    %35 = vector.broadcast %16 : vector<1x64xf32> to vector<48x64xf32>
    %36 = arith.addf %34, %35 : vector<48x64xf32>
    %37 = arith.truncf %36 : vector<48x64xf32> to vector<48x64xbf16>
    %c0_22 = arith.constant 0 : index
    %c0_23 = arith.constant 0 : index
    %c0_24 = arith.constant 0 : index
    %38 = vector.load %arg8[%c0_22, %c0_23, %c0_24] : memref<1x48x64xbf16, #tpu.memory_space<vmem>>, vector<1x48x64xbf16>
    %39 = vector.shape_cast %38 : vector<1x48x64xbf16> to vector<48x64xbf16>
    %40 = vector.shape_cast %37 : vector<48x64xbf16> to vector<1x48x64xbf16>
    tpu.vector_store %arg8[%c0_22, %c0_23, %c0_24], %40 {strides = array<i32>} : memref<1x48x64xbf16, #tpu.memory_space<vmem>>, vector<1x48x64xbf16>,
    return
  }
  func.func @transform_0(%arg0: i32, %arg1: i32) -> (i32, i32, i32) {
    %c0_i32 = arith.constant 0 : i32
    %c0_i32_0 = arith.constant 0 : i32
    return %arg0, %arg1, %c0_i32 : i32, i32, i32
  }
  func.func @transform_1(%arg0: i32, %arg1: i32) -> (i32, i32, i32) {
    %c0_i32 = arith.constant 0 : i32
    %c0_i32_0 = arith.constant 0 : i32
    %c0_i32_1 = arith.constant 0 : i32
    return %arg0, %c0_i32, %c0_i32_0 : i32, i32, i32
  }
  func.func @transform_2(%arg0: i32, %arg1: i32) -> (i32, i32, i32) {
    %c0_i32 = arith.constant 0 : i32
    %c0_i32_0 = arith.constant 0 : i32
    %c0_i32_1 = arith.constant 0 : i32
    return %arg0, %c0_i32, %c0_i32_0 : i32, i32, i32
  }
  func.func @transform_3(%arg0: i32, %arg1: i32) -> (i32, i32, i32) {
    %c0_i32 = arith.constant 0 : i32
    %c0_i32_0 = arith.constant 0 : i32
    return %arg0, %arg1, %c0_i32 : i32, i32, i32
  }
  func.func @transform_4(%arg0: i32, %arg1: i32) -> (i32, i32, i32) {
    %c0_i32 = arith.constant 0 : i32
    %c0_i32_0 = arith.constant 0 : i32
    %c0_i32_1 = arith.constant 0 : i32
    return %arg0, %c0_i32, %c0_i32_0 : i32, i32, i32
  }
  func.func @transform_5(%arg0: i32, %arg1: i32) -> (i32, i32, i32) {
    %c0_i32 = arith.constant 0 : i32
    %c0_i32_0 = arith.constant 0 : i32
    %c0_i32_1 = arith.constant 0 : i32
    return %arg0, %c0_i32, %c0_i32_0 : i32, i32, i32
  }
  func.func @transform_6(%arg0: i32, %arg1: i32) -> (i32, i32, i32) {
    %c0_i32 = arith.constant 0 : i32
    %c0_i32_0 = arith.constant 0 : i32
    return %arg0, %arg1, %c0_i32 : i32, i32, i32
  }
}

module attributes {stable_mosaic.version = 11 : i64} {
  func.func @_ln_kernel(%arg0: i32, %arg1: i32, %arg2: memref<1x48x64xbf16, #tpu.memory_space<vmem>>, %arg3: memref<1x1x64xf32, #tpu.memory_space<vmem>>, %arg4: memref<1x1x64xf32, #tpu.memory_space<vmem>>, %arg5: memref<1x48x64xbf16, #tpu.memory_space<vmem>>) attributes {dimension_semantics = [#tpu.dimension_semantics<parallel>, #tpu.dimension_semantics<parallel>], iteration_bounds = array<i64: 1, 1>, scalar_prefetch = 0 : i64, scratch_operands = 0 : i64, tpu.core_type = #tpu.core_type<tc>, window_params = [{transform_indices = @transform_0, window_bounds = array<i64: 1, 48, 64>}, {transform_indices = @transform_1, window_bounds = array<i64: 1, 1, 64>}, {transform_indices = @transform_2, window_bounds = array<i64: 1, 1, 64>}, {transform_indices = @transform_3, window_bounds = array<i64: 1, 48, 64>}]} {
    %c0 = arith.constant 0 : index
    %c0_0 = arith.constant 0 : index
    %c0_1 = arith.constant 0 : index
    %0 = vector.load %arg2[%c0, %c0_0, %c0_1] : memref<1x48x64xbf16, #tpu.memory_space<vmem>>, vector<1x48x64xbf16>
    %1 = vector.shape_cast %0 : vector<1x48x64xbf16> to vector<48x64xbf16>
    %2 = arith.extf %1 : vector<48x64xbf16> to vector<48x64xf32>
    %c0_2 = arith.constant 0 : index
    %c0_3 = arith.constant 0 : index
    %c0_4 = arith.constant 0 : index
    %3 = vector.load %arg3[%c0_2, %c0_3, %c0_4] : memref<1x1x64xf32, #tpu.memory_space<vmem>>, vector<1x1x64xf32>
    %4 = vector.shape_cast %3 : vector<1x1x64xf32> to vector<1x64xf32>
    %c0_5 = arith.constant 0 : index
    %c0_6 = arith.constant 0 : index
    %c0_7 = arith.constant 0 : index
    %5 = vector.load %arg4[%c0_5, %c0_6, %c0_7] : memref<1x1x64xf32, #tpu.memory_space<vmem>>, vector<1x1x64xf32>
    %6 = vector.shape_cast %5 : vector<1x1x64xf32> to vector<1x64xf32>
    %cst = arith.constant dense<0.000000e+00> : vector<48xf32>
    %7 = vector.multi_reduction <add>, %2, %cst [1] : vector<48x64xf32> to vector<48xf32>
    %8 = vector.shape_cast %7 : vector<48xf32> to vector<48x1xf32>
    %cst_8 = arith.constant 6.400000e+01 : f32
    %9 = vector.broadcast %cst_8 : f32 to vector<48x1xf32>
    %10 = arith.divf %8, %9 : vector<48x1xf32>
    %11 = vector.broadcast %10 : vector<48x1xf32> to vector<48x64xf32>
    %12 = arith.subf %2, %11 : vector<48x64xf32>
    %13 = arith.mulf %12, %12 : vector<48x64xf32>
    %cst_9 = arith.constant dense<0.000000e+00> : vector<48xf32>
    %14 = vector.multi_reduction <add>, %13, %cst_9 [1] : vector<48x64xf32> to vector<48xf32>
    %15 = vector.shape_cast %14 : vector<48xf32> to vector<48x1xf32>
    %cst_10 = arith.constant 6.400000e+01 : f32
    %16 = vector.broadcast %cst_10 : f32 to vector<48x1xf32>
    %17 = arith.divf %15, %16 : vector<48x1xf32>
    %cst_11 = arith.constant 9.99999974E-6 : f32
    %18 = vector.broadcast %cst_11 : f32 to vector<48x1xf32>
    %19 = arith.addf %17, %18 : vector<48x1xf32>
    %20 = math.rsqrt %19 : vector<48x1xf32>
    %21 = vector.broadcast %20 : vector<48x1xf32> to vector<48x64xf32>
    %22 = arith.mulf %12, %21 : vector<48x64xf32>
    %23 = vector.broadcast %4 : vector<1x64xf32> to vector<48x64xf32>
    %24 = arith.mulf %22, %23 : vector<48x64xf32>
    %25 = vector.broadcast %6 : vector<1x64xf32> to vector<48x64xf32>
    %26 = arith.addf %24, %25 : vector<48x64xf32>
    %27 = arith.truncf %26 : vector<48x64xf32> to vector<48x64xbf16>
    %c0_12 = arith.constant 0 : index
    %c0_13 = arith.constant 0 : index
    %c0_14 = arith.constant 0 : index
    %28 = vector.load %arg5[%c0_12, %c0_13, %c0_14] : memref<1x48x64xbf16, #tpu.memory_space<vmem>>, vector<1x48x64xbf16>
    %29 = vector.shape_cast %28 : vector<1x48x64xbf16> to vector<48x64xbf16>
    %30 = vector.shape_cast %27 : vector<48x64xbf16> to vector<1x48x64xbf16>
    tpu.vector_store %arg5[%c0_12, %c0_13, %c0_14], %30 {strides = array<i32>} : memref<1x48x64xbf16, #tpu.memory_space<vmem>>, vector<1x48x64xbf16>,
    return
  }
  func.func @transform_0(%arg0: i32, %arg1: i32) -> (i32, i32, i32) {
    %c0_i32 = arith.constant 0 : i32
    %c0_i32_0 = arith.constant 0 : i32
    return %arg0, %arg1, %c0_i32 : i32, i32, i32
  }
  func.func @transform_1(%arg0: i32, %arg1: i32) -> (i32, i32, i32) {
    %c0_i32 = arith.constant 0 : i32
    %c0_i32_0 = arith.constant 0 : i32
    %c0_i32_1 = arith.constant 0 : i32
    return %arg0, %c0_i32, %c0_i32_0 : i32, i32, i32
  }
  func.func @transform_2(%arg0: i32, %arg1: i32) -> (i32, i32, i32) {
    %c0_i32 = arith.constant 0 : i32
    %c0_i32_0 = arith.constant 0 : i32
    %c0_i32_1 = arith.constant 0 : i32
    return %arg0, %c0_i32, %c0_i32_0 : i32, i32, i32
  }
  func.func @transform_3(%arg0: i32, %arg1: i32) -> (i32, i32, i32) {
    %c0_i32 = arith.constant 0 : i32
    %c0_i32_0 = arith.constant 0 : i32
    return %arg0, %arg1, %c0_i32 : i32, i32, i32
  }
}

module attributes {stable_mosaic.version = 11 : i64} {
  func.func @_linear_kernel(%arg0: i32, %arg1: i32, %arg2: i32, %arg3: memref<1x48x64xbf16, #tpu.memory_space<vmem>>, %arg4: memref<1x64x128xbf16, #tpu.memory_space<vmem>>, %arg5: memref<1x1x128xf32, #tpu.memory_space<vmem>>, %arg6: memref<1x48x128xbf16, #tpu.memory_space<vmem>>) attributes {dimension_semantics = [#tpu.dimension_semantics<parallel>, #tpu.dimension_semantics<parallel>, #tpu.dimension_semantics<parallel>], iteration_bounds = array<i64: 1, 1, 1>, scalar_prefetch = 0 : i64, scratch_operands = 0 : i64, tpu.core_type = #tpu.core_type<tc>, window_params = [{transform_indices = @transform_0, window_bounds = array<i64: 1, 48, 64>}, {transform_indices = @transform_1, window_bounds = array<i64: 1, 64, 128>}, {transform_indices = @transform_2, window_bounds = array<i64: 1, 1, 128>}, {transform_indices = @transform_3, window_bounds = array<i64: 1, 48, 128>}]} {
    %c0 = arith.constant 0 : index
    %c0_0 = arith.constant 0 : index
    %c0_1 = arith.constant 0 : index
    %0 = vector.load %arg3[%c0, %c0_0, %c0_1] : memref<1x48x64xbf16, #tpu.memory_space<vmem>>, vector<1x48x64xbf16>
    %1 = vector.shape_cast %0 : vector<1x48x64xbf16> to vector<48x64xbf16>
    %c0_2 = arith.constant 0 : index
    %c0_3 = arith.constant 0 : index
    %c0_4 = arith.constant 0 : index
    %2 = vector.load %arg4[%c0_2, %c0_3, %c0_4] : memref<1x64x128xbf16, #tpu.memory_space<vmem>>, vector<1x64x128xbf16>
    %3 = vector.shape_cast %2 : vector<1x64x128xbf16> to vector<64x128xbf16>
    %cst = arith.constant dense<0.000000e+00> : vector<48x128xf32>
    %4 = tpu.matmul %1, %3, %cst {dimension_numbers = #tpu.dot_dimension_numbers<[1], [0], [0], [1], [0, 0, 1, 1], [], []>} : vector<48x64xbf16>, vector<64x128xbf16>, vector<48x128xf32> -> vector<48x128xf32>
    %c0_5 = arith.constant 0 : index
    %c0_6 = arith.constant 0 : index
    %c0_7 = arith.constant 0 : index
    %5 = vector.load %arg5[%c0_5, %c0_6, %c0_7] : memref<1x1x128xf32, #tpu.memory_space<vmem>>, vector<1x1x128xf32>
    %6 = vector.shape_cast %5 : vector<1x1x128xf32> to vector<1x128xf32>
    %7 = vector.broadcast %6 : vector<1x128xf32> to vector<48x128xf32>
    %8 = arith.addf %4, %7 : vector<48x128xf32>
    %9 = arith.truncf %8 : vector<48x128xf32> to vector<48x128xbf16>
    %c0_8 = arith.constant 0 : index
    %c0_9 = arith.constant 0 : index
    %c0_10 = arith.constant 0 : index
    %10 = vector.load %arg6[%c0_8, %c0_9, %c0_10] : memref<1x48x128xbf16, #tpu.memory_space<vmem>>, vector<1x48x128xbf16>
    %11 = vector.shape_cast %10 : vector<1x48x128xbf16> to vector<48x128xbf16>
    %12 = vector.shape_cast %9 : vector<48x128xbf16> to vector<1x48x128xbf16>
    tpu.vector_store %arg6[%c0_8, %c0_9, %c0_10], %12 {strides = array<i32>} : memref<1x48x128xbf16, #tpu.memory_space<vmem>>, vector<1x48x128xbf16>,
    return
  }
  func.func @transform_0(%arg0: i32, %arg1: i32, %arg2: i32) -> (i32, i32, i32) {
    %c0_i32 = arith.constant 0 : i32
    %c0_i32_0 = arith.constant 0 : i32
    return %arg0, %arg1, %c0_i32 : i32, i32, i32
  }
  func.func @transform_1(%arg0: i32, %arg1: i32, %arg2: i32) -> (i32, i32, i32) {
    %c0_i32 = arith.constant 0 : i32
    %c0_i32_0 = arith.constant 0 : i32
    return %arg0, %c0_i32, %arg2 : i32, i32, i32
  }
  func.func @transform_2(%arg0: i32, %arg1: i32, %arg2: i32) -> (i32, i32, i32) {
    %c0_i32 = arith.constant 0 : i32
    %c0_i32_0 = arith.constant 0 : i32
    return %arg0, %c0_i32, %arg2 : i32, i32, i32
  }
  func.func @transform_3(%arg0: i32, %arg1: i32, %arg2: i32) -> (i32, i32, i32) {
    %c0_i32 = arith.constant 0 : i32
    return %arg0, %arg1, %arg2 : i32, i32, i32
  }
}

module attributes {stable_mosaic.version = 11 : i64} {
  func.func @_cross_attn_kernel(%arg0: i32, %arg1: memref<1x6x64xbf16, #tpu.memory_space<vmem>>, %arg2: memref<1x24x128xbf16, #tpu.memory_space<vmem>>, %arg3: memref<1x6x64xbf16, #tpu.memory_space<vmem>>) attributes {dimension_semantics = [#tpu.dimension_semantics<parallel>], iteration_bounds = array<i64: 2>, scalar_prefetch = 0 : i64, scratch_operands = 0 : i64, tpu.core_type = #tpu.core_type<tc>, window_params = [{transform_indices = @transform_0, window_bounds = array<i64: 1, 6, 64>}, {transform_indices = @transform_1, window_bounds = array<i64: 1, 24, 128>}, {transform_indices = @transform_2, window_bounds = array<i64: 1, 6, 64>}]} {
    %c0 = arith.constant 0 : index
    %c0_0 = arith.constant 0 : index
    %c0_1 = arith.constant 0 : index
    %0 = vector.load %arg1[%c0, %c0_0, %c0_1] : memref<1x6x64xbf16, #tpu.memory_space<vmem>>, vector<1x6x64xbf16>
    %1 = vector.shape_cast %0 : vector<1x6x64xbf16> to vector<6x64xbf16>
    %c0_2 = arith.constant 0 : index
    %c0_3 = arith.constant 0 : index
    %c0_4 = arith.constant 0 : index
    %2 = vector.load %arg2[%c0_2, %c0_3, %c0_4] : memref<1x24x128xbf16, #tpu.memory_space<vmem>>, vector<1x24x128xbf16>
    %3 = vector.shape_cast %2 : vector<1x24x128xbf16> to vector<24x128xbf16>
    %4 = vector.extract_strided_slice %3 {offsets = [0, 0], sizes = [24, 64], strides = [1, 1]} : vector<24x128xbf16> to vector<24x64xbf16>
    %5 = vector.extract_strided_slice %3 {offsets = [0, 64], sizes = [24, 64], strides = [1, 1]} : vector<24x128xbf16> to vector<24x64xbf16>
    %6 = vector.shape_cast %1 : vector<6x64xbf16> to vector<6x4x16xbf16>
    %7 = tpu.transpose %6, [1, 0, 2] : vector<6x4x16xbf16> -> vector<4x6x16xbf16>
    %8 = vector.shape_cast %4 : vector<24x64xbf16> to vector<24x4x16xbf16>
    %9 = tpu.transpose %8, [1, 0, 2] : vector<24x4x16xbf16> -> vector<4x24x16xbf16>
    %10 = vector.shape_cast %5 : vector<24x64xbf16> to vector<24x4x16xbf16>
    %11 = tpu.transpose %10, [1, 0, 2] : vector<24x4x16xbf16> -> vector<4x24x16xbf16>
    "tpu.trace_start"() <{level = 10 : i32, message = "hqd,hkd->hqk"}> : () -> ()
    %cst = arith.constant dense<0.000000e+00> : vector<4x6x24xf32>
    %12 = tpu.matmul %7, %9, %cst {dimension_numbers = #tpu.dot_dimension_numbers<[2], [2], [1], [1], [0, 0, 0, 1, 1, 1], [0], [0]>} : vector<4x6x16xbf16>, vector<4x24x16xbf16>, vector<4x6x24xf32> -> vector<4x6x24xf32>
    "tpu.trace_stop"() : () -> ()
    %cst_5 = arith.constant dense<0xFF800000> : vector<4x6xf32>
    %13 = vector.multi_reduction <maximumf>, %12, %cst_5 [2] : vector<4x6x24xf32> to vector<4x6xf32>
    %14 = vector.shape_cast %13 : vector<4x6xf32> to vector<4x6x1xf32>
    %15 = vector.broadcast %14 : vector<4x6x1xf32> to vector<4x6x24xf32>
    %16 = arith.subf %12, %15 : vector<4x6x24xf32>
    %17 = math.exp %16 : vector<4x6x24xf32>
    %cst_6 = arith.constant dense<0.000000e+00> : vector<4x6xf32>
    %18 = vector.multi_reduction <add>, %17, %cst_6 [2] : vector<4x6x24xf32> to vector<4x6xf32>
    %19 = vector.shape_cast %18 : vector<4x6xf32> to vector<4x6x1xf32>
    %20 = tpu.reciprocal %19 {approx = true} : vector<4x6x1xf32> -> vector<4x6x1xf32>
    %21 = vector.broadcast %20 : vector<4x6x1xf32> to vector<4x6x24xf32>
    %22 = arith.mulf %17, %21 : vector<4x6x24xf32>
    %23 = arith.truncf %22 : vector<4x6x24xf32> to vector<4x6x24xbf16>
    "tpu.trace_start"() <{level = 10 : i32, message = "hqk,hkd->hqd"}> : () -> ()
    %cst_7 = arith.constant dense<0.000000e+00> : vector<4x6x16xf32>
    %24 = tpu.matmul %23, %11, %cst_7 {dimension_numbers = #tpu.dot_dimension_numbers<[2], [1], [1], [2], [0, 0, 0, 1, 1, 2], [0], [0]>} : vector<4x6x24xbf16>, vector<4x24x16xbf16>, vector<4x6x16xf32> -> vector<4x6x16xf32>
    "tpu.trace_stop"() : () -> ()
    %25 = tpu.transpose %24, [1, 0, 2] : vector<4x6x16xf32> -> vector<6x4x16xf32>
    %26 = vector.shape_cast %25 : vector<6x4x16xf32> to vector<6x64xf32>
    %27 = arith.truncf %26 : vector<6x64xf32> to vector<6x64xbf16>
    %c0_8 = arith.constant 0 : index
    %c0_9 = arith.constant 0 : index
    %c0_10 = arith.constant 0 : index
    %28 = vector.load %arg3[%c0_8, %c0_9, %c0_10] : memref<1x6x64xbf16, #tpu.memory_space<vmem>>, vector<1x6x64xbf16>
    %29 = vector.shape_cast %28 : vector<1x6x64xbf16> to vector<6x64xbf16>
    %30 = vector.shape_cast %27 : vector<6x64xbf16> to vector<1x6x64xbf16>
    tpu.vector_store %arg3[%c0_8, %c0_9, %c0_10], %30 {strides = array<i32>} : memref<1x6x64xbf16, #tpu.memory_space<vmem>>, vector<1x6x64xbf16>,
    return
  }
  func.func @transform_0(%arg0: i32) -> (i32, i32, i32) {
    %c0_i32 = arith.constant 0 : i32
    %c0_i32_0 = arith.constant 0 : i32
    %c0_i32_1 = arith.constant 0 : i32
    return %arg0, %c0_i32, %c0_i32_0 : i32, i32, i32
  }
  func.func @transform_1(%arg0: i32) -> (i32, i32, i32) {
    %c0_i32 = arith.constant 0 : i32
    %c0_i32_0 = arith.constant 0 : i32
    %c0_i32_1 = arith.constant 0 : i32
    return %arg0, %c0_i32, %c0_i32_0 : i32, i32, i32
  }
  func.func @transform_2(%arg0: i32) -> (i32, i32, i32) {
    %c0_i32 = arith.constant 0 : i32
    %c0_i32_0 = arith.constant 0 : i32
    %c0_i32_1 = arith.constant 0 : i32
    return %arg0, %c0_i32, %c0_i32_0 : i32, i32, i32
  }
}

module attributes {stable_mosaic.version = 11 : i64} {
  func.func @_linear_kernel(%arg0: i32, %arg1: i32, %arg2: i32, %arg3: memref<1x12x64xbf16, #tpu.memory_space<vmem>>, %arg4: memref<1x64x128xbf16, #tpu.memory_space<vmem>>, %arg5: memref<1x1x128xf32, #tpu.memory_space<vmem>>, %arg6: memref<1x12x128xbf16, #tpu.memory_space<vmem>>) attributes {dimension_semantics = [#tpu.dimension_semantics<parallel>, #tpu.dimension_semantics<parallel>, #tpu.dimension_semantics<parallel>], iteration_bounds = array<i64: 1, 1, 1>, scalar_prefetch = 0 : i64, scratch_operands = 0 : i64, tpu.core_type = #tpu.core_type<tc>, window_params = [{transform_indices = @transform_0, window_bounds = array<i64: 1, 12, 64>}, {transform_indices = @transform_1, window_bounds = array<i64: 1, 64, 128>}, {transform_indices = @transform_2, window_bounds = array<i64: 1, 1, 128>}, {transform_indices = @transform_3, window_bounds = array<i64: 1, 12, 128>}]} {
    %c0 = arith.constant 0 : index
    %c0_0 = arith.constant 0 : index
    %c0_1 = arith.constant 0 : index
    %0 = vector.load %arg3[%c0, %c0_0, %c0_1] : memref<1x12x64xbf16, #tpu.memory_space<vmem>>, vector<1x12x64xbf16>
    %1 = vector.shape_cast %0 : vector<1x12x64xbf16> to vector<12x64xbf16>
    %c0_2 = arith.constant 0 : index
    %c0_3 = arith.constant 0 : index
    %c0_4 = arith.constant 0 : index
    %2 = vector.load %arg4[%c0_2, %c0_3, %c0_4] : memref<1x64x128xbf16, #tpu.memory_space<vmem>>, vector<1x64x128xbf16>
    %3 = vector.shape_cast %2 : vector<1x64x128xbf16> to vector<64x128xbf16>
    %cst = arith.constant dense<0.000000e+00> : vector<12x128xf32>
    %4 = tpu.matmul %1, %3, %cst {dimension_numbers = #tpu.dot_dimension_numbers<[1], [0], [0], [1], [0, 0, 1, 1], [], []>} : vector<12x64xbf16>, vector<64x128xbf16>, vector<12x128xf32> -> vector<12x128xf32>
    %c0_5 = arith.constant 0 : index
    %c0_6 = arith.constant 0 : index
    %c0_7 = arith.constant 0 : index
    %5 = vector.load %arg5[%c0_5, %c0_6, %c0_7] : memref<1x1x128xf32, #tpu.memory_space<vmem>>, vector<1x1x128xf32>
    %6 = vector.shape_cast %5 : vector<1x1x128xf32> to vector<1x128xf32>
    %7 = vector.broadcast %6 : vector<1x128xf32> to vector<12x128xf32>
    %8 = arith.addf %4, %7 : vector<12x128xf32>
    %cst_8 = arith.constant 0.000000e+00 : f32
    %9 = vector.broadcast %cst_8 : f32 to vector<12x128xf32>
    %10 = arith.maximumf %8, %9 : vector<12x128xf32>
    %11 = arith.truncf %10 : vector<12x128xf32> to vector<12x128xbf16>
    %c0_9 = arith.constant 0 : index
    %c0_10 = arith.constant 0 : index
    %c0_11 = arith.constant 0 : index
    %12 = vector.load %arg6[%c0_9, %c0_10, %c0_11] : memref<1x12x128xbf16, #tpu.memory_space<vmem>>, vector<1x12x128xbf16>
    %13 = vector.shape_cast %12 : vector<1x12x128xbf16> to vector<12x128xbf16>
    %14 = vector.shape_cast %11 : vector<12x128xbf16> to vector<1x12x128xbf16>
    tpu.vector_store %arg6[%c0_9, %c0_10, %c0_11], %14 {strides = array<i32>} : memref<1x12x128xbf16, #tpu.memory_space<vmem>>, vector<1x12x128xbf16>,
    return
  }
  func.func @transform_0(%arg0: i32, %arg1: i32, %arg2: i32) -> (i32, i32, i32) {
    %c0_i32 = arith.constant 0 : i32
    %c0_i32_0 = arith.constant 0 : i32
    return %arg0, %arg1, %c0_i32 : i32, i32, i32
  }
  func.func @transform_1(%arg0: i32, %arg1: i32, %arg2: i32) -> (i32, i32, i32) {
    %c0_i32 = arith.constant 0 : i32
    %c0_i32_0 = arith.constant 0 : i32
    return %arg0, %c0_i32, %arg2 : i32, i32, i32
  }
  func.func @transform_2(%arg0: i32, %arg1: i32, %arg2: i32) -> (i32, i32, i32) {
    %c0_i32 = arith.constant 0 : i32
    %c0_i32_0 = arith.constant 0 : i32
    return %arg0, %c0_i32, %arg2 : i32, i32, i32
  }
  func.func @transform_3(%arg0: i32, %arg1: i32, %arg2: i32) -> (i32, i32, i32) {
    %c0_i32 = arith.constant 0 : i32
    return %arg0, %arg1, %arg2 : i32, i32, i32
  }
}

module attributes {stable_mosaic.version = 11 : i64} {
  func.func @_linear_res_ln_kernel(%arg0: i32, %arg1: i32, %arg2: memref<1x12x128xbf16, #tpu.memory_space<vmem>>, %arg3: memref<1x128x64xbf16, #tpu.memory_space<vmem>>, %arg4: memref<1x1x64xf32, #tpu.memory_space<vmem>>, %arg5: memref<1x12x64xbf16, #tpu.memory_space<vmem>>, %arg6: memref<1x1x64xf32, #tpu.memory_space<vmem>>, %arg7: memref<1x1x64xf32, #tpu.memory_space<vmem>>, %arg8: memref<1x12x64xbf16, #tpu.memory_space<vmem>>) attributes {dimension_semantics = [#tpu.dimension_semantics<parallel>, #tpu.dimension_semantics<parallel>], iteration_bounds = array<i64: 1, 1>, scalar_prefetch = 0 : i64, scratch_operands = 0 : i64, tpu.core_type = #tpu.core_type<tc>, window_params = [{transform_indices = @transform_0, window_bounds = array<i64: 1, 12, 128>}, {transform_indices = @transform_1, window_bounds = array<i64: 1, 128, 64>}, {transform_indices = @transform_2, window_bounds = array<i64: 1, 1, 64>}, {transform_indices = @transform_3, window_bounds = array<i64: 1, 12, 64>}, {transform_indices = @transform_4, window_bounds = array<i64: 1, 1, 64>}, {transform_indices = @transform_5, window_bounds = array<i64: 1, 1, 64>}, {transform_indices = @transform_6, window_bounds = array<i64: 1, 12, 64>}]} {
    %c0 = arith.constant 0 : index
    %c0_0 = arith.constant 0 : index
    %c0_1 = arith.constant 0 : index
    %0 = vector.load %arg2[%c0, %c0_0, %c0_1] : memref<1x12x128xbf16, #tpu.memory_space<vmem>>, vector<1x12x128xbf16>
    %1 = vector.shape_cast %0 : vector<1x12x128xbf16> to vector<12x128xbf16>
    %c0_2 = arith.constant 0 : index
    %c0_3 = arith.constant 0 : index
    %c0_4 = arith.constant 0 : index
    %2 = vector.load %arg3[%c0_2, %c0_3, %c0_4] : memref<1x128x64xbf16, #tpu.memory_space<vmem>>, vector<1x128x64xbf16>
    %3 = vector.shape_cast %2 : vector<1x128x64xbf16> to vector<128x64xbf16>
    %cst = arith.constant dense<0.000000e+00> : vector<12x64xf32>
    %4 = tpu.matmul %1, %3, %cst {dimension_numbers = #tpu.dot_dimension_numbers<[1], [0], [0], [1], [0, 0, 1, 1], [], []>} : vector<12x128xbf16>, vector<128x64xbf16>, vector<12x64xf32> -> vector<12x64xf32>
    %c0_5 = arith.constant 0 : index
    %c0_6 = arith.constant 0 : index
    %c0_7 = arith.constant 0 : index
    %5 = vector.load %arg4[%c0_5, %c0_6, %c0_7] : memref<1x1x64xf32, #tpu.memory_space<vmem>>, vector<1x1x64xf32>
    %6 = vector.shape_cast %5 : vector<1x1x64xf32> to vector<1x64xf32>
    %7 = vector.broadcast %6 : vector<1x64xf32> to vector<12x64xf32>
    %8 = arith.addf %4, %7 : vector<12x64xf32>
    %c0_8 = arith.constant 0 : index
    %c0_9 = arith.constant 0 : index
    %c0_10 = arith.constant 0 : index
    %9 = vector.load %arg5[%c0_8, %c0_9, %c0_10] : memref<1x12x64xbf16, #tpu.memory_space<vmem>>, vector<1x12x64xbf16>
    %10 = vector.shape_cast %9 : vector<1x12x64xbf16> to vector<12x64xbf16>
    %11 = arith.extf %10 : vector<12x64xbf16> to vector<12x64xf32>
    %12 = arith.addf %8, %11 : vector<12x64xf32>
    %c0_11 = arith.constant 0 : index
    %c0_12 = arith.constant 0 : index
    %c0_13 = arith.constant 0 : index
    %13 = vector.load %arg6[%c0_11, %c0_12, %c0_13] : memref<1x1x64xf32, #tpu.memory_space<vmem>>, vector<1x1x64xf32>
    %14 = vector.shape_cast %13 : vector<1x1x64xf32> to vector<1x64xf32>
    %c0_14 = arith.constant 0 : index
    %c0_15 = arith.constant 0 : index
    %c0_16 = arith.constant 0 : index
    %15 = vector.load %arg7[%c0_14, %c0_15, %c0_16] : memref<1x1x64xf32, #tpu.memory_space<vmem>>, vector<1x1x64xf32>
    %16 = vector.shape_cast %15 : vector<1x1x64xf32> to vector<1x64xf32>
    %cst_17 = arith.constant dense<0.000000e+00> : vector<12xf32>
    %17 = vector.multi_reduction <add>, %12, %cst_17 [1] : vector<12x64xf32> to vector<12xf32>
    %18 = vector.shape_cast %17 : vector<12xf32> to vector<12x1xf32>
    %cst_18 = arith.constant 6.400000e+01 : f32
    %19 = vector.broadcast %cst_18 : f32 to vector<12x1xf32>
    %20 = arith.divf %18, %19 : vector<12x1xf32>
    %21 = vector.broadcast %20 : vector<12x1xf32> to vector<12x64xf32>
    %22 = arith.subf %12, %21 : vector<12x64xf32>
    %23 = arith.mulf %22, %22 : vector<12x64xf32>
    %cst_19 = arith.constant dense<0.000000e+00> : vector<12xf32>
    %24 = vector.multi_reduction <add>, %23, %cst_19 [1] : vector<12x64xf32> to vector<12xf32>
    %25 = vector.shape_cast %24 : vector<12xf32> to vector<12x1xf32>
    %cst_20 = arith.constant 6.400000e+01 : f32
    %26 = vector.broadcast %cst_20 : f32 to vector<12x1xf32>
    %27 = arith.divf %25, %26 : vector<12x1xf32>
    %cst_21 = arith.constant 9.99999974E-6 : f32
    %28 = vector.broadcast %cst_21 : f32 to vector<12x1xf32>
    %29 = arith.addf %27, %28 : vector<12x1xf32>
    %30 = math.rsqrt %29 : vector<12x1xf32>
    %31 = vector.broadcast %30 : vector<12x1xf32> to vector<12x64xf32>
    %32 = arith.mulf %22, %31 : vector<12x64xf32>
    %33 = vector.broadcast %14 : vector<1x64xf32> to vector<12x64xf32>
    %34 = arith.mulf %32, %33 : vector<12x64xf32>
    %35 = vector.broadcast %16 : vector<1x64xf32> to vector<12x64xf32>
    %36 = arith.addf %34, %35 : vector<12x64xf32>
    %37 = arith.truncf %36 : vector<12x64xf32> to vector<12x64xbf16>
    %c0_22 = arith.constant 0 : index
    %c0_23 = arith.constant 0 : index
    %c0_24 = arith.constant 0 : index
    %38 = vector.load %arg8[%c0_22, %c0_23, %c0_24] : memref<1x12x64xbf16, #tpu.memory_space<vmem>>, vector<1x12x64xbf16>
    %39 = vector.shape_cast %38 : vector<1x12x64xbf16> to vector<12x64xbf16>
    %40 = vector.shape_cast %37 : vector<12x64xbf16> to vector<1x12x64xbf16>
    tpu.vector_store %arg8[%c0_22, %c0_23, %c0_24], %40 {strides = array<i32>} : memref<1x12x64xbf16, #tpu.memory_space<vmem>>, vector<1x12x64xbf16>,
    return
  }
  func.func @transform_0(%arg0: i32, %arg1: i32) -> (i32, i32, i32) {
    %c0_i32 = arith.constant 0 : i32
    %c0_i32_0 = arith.constant 0 : i32
    return %arg0, %arg1, %c0_i32 : i32, i32, i32
  }
  func.func @transform_1(%arg0: i32, %arg1: i32) -> (i32, i32, i32) {
    %c0_i32 = arith.constant 0 : i32
    %c0_i32_0 = arith.constant 0 : i32
    %c0_i32_1 = arith.constant 0 : i32
    return %arg0, %c0_i32, %c0_i32_0 : i32, i32, i32
  }
  func.func @transform_2(%arg0: i32, %arg1: i32) -> (i32, i32, i32) {
    %c0_i32 = arith.constant 0 : i32
    %c0_i32_0 = arith.constant 0 : i32
    %c0_i32_1 = arith.constant 0 : i32
    return %arg0, %c0_i32, %c0_i32_0 : i32, i32, i32
  }
  func.func @transform_3(%arg0: i32, %arg1: i32) -> (i32, i32, i32) {
    %c0_i32 = arith.constant 0 : i32
    %c0_i32_0 = arith.constant 0 : i32
    return %arg0, %arg1, %c0_i32 : i32, i32, i32
  }
  func.func @transform_4(%arg0: i32, %arg1: i32) -> (i32, i32, i32) {
    %c0_i32 = arith.constant 0 : i32
    %c0_i32_0 = arith.constant 0 : i32
    %c0_i32_1 = arith.constant 0 : i32
    return %arg0, %c0_i32, %c0_i32_0 : i32, i32, i32
  }
  func.func @transform_5(%arg0: i32, %arg1: i32) -> (i32, i32, i32) {
    %c0_i32 = arith.constant 0 : i32
    %c0_i32_0 = arith.constant 0 : i32
    %c0_i32_1 = arith.constant 0 : i32
    return %arg0, %c0_i32, %c0_i32_0 : i32, i32, i32
  }
  func.func @transform_6(%arg0: i32, %arg1: i32) -> (i32, i32, i32) {
    %c0_i32 = arith.constant 0 : i32
    %c0_i32_0 = arith.constant 0 : i32
    return %arg0, %arg1, %c0_i32 : i32, i32, i32
  }
}

module attributes {stable_mosaic.version = 11 : i64} {
  func.func @_ln_kernel(%arg0: i32, %arg1: i32, %arg2: memref<1x12x64xbf16, #tpu.memory_space<vmem>>, %arg3: memref<1x1x64xf32, #tpu.memory_space<vmem>>, %arg4: memref<1x1x64xf32, #tpu.memory_space<vmem>>, %arg5: memref<1x12x64xf32, #tpu.memory_space<vmem>>) attributes {dimension_semantics = [#tpu.dimension_semantics<parallel>, #tpu.dimension_semantics<parallel>], iteration_bounds = array<i64: 1, 1>, scalar_prefetch = 0 : i64, scratch_operands = 0 : i64, tpu.core_type = #tpu.core_type<tc>, window_params = [{transform_indices = @transform_0, window_bounds = array<i64: 1, 12, 64>}, {transform_indices = @transform_1, window_bounds = array<i64: 1, 1, 64>}, {transform_indices = @transform_2, window_bounds = array<i64: 1, 1, 64>}, {transform_indices = @transform_3, window_bounds = array<i64: 1, 12, 64>}]} {
    %c0 = arith.constant 0 : index
    %c0_0 = arith.constant 0 : index
    %c0_1 = arith.constant 0 : index
    %0 = vector.load %arg2[%c0, %c0_0, %c0_1] : memref<1x12x64xbf16, #tpu.memory_space<vmem>>, vector<1x12x64xbf16>
    %1 = vector.shape_cast %0 : vector<1x12x64xbf16> to vector<12x64xbf16>
    %2 = arith.extf %1 : vector<12x64xbf16> to vector<12x64xf32>
    %c0_2 = arith.constant 0 : index
    %c0_3 = arith.constant 0 : index
    %c0_4 = arith.constant 0 : index
    %3 = vector.load %arg3[%c0_2, %c0_3, %c0_4] : memref<1x1x64xf32, #tpu.memory_space<vmem>>, vector<1x1x64xf32>
    %4 = vector.shape_cast %3 : vector<1x1x64xf32> to vector<1x64xf32>
    %c0_5 = arith.constant 0 : index
    %c0_6 = arith.constant 0 : index
    %c0_7 = arith.constant 0 : index
    %5 = vector.load %arg4[%c0_5, %c0_6, %c0_7] : memref<1x1x64xf32, #tpu.memory_space<vmem>>, vector<1x1x64xf32>
    %6 = vector.shape_cast %5 : vector<1x1x64xf32> to vector<1x64xf32>
    %cst = arith.constant dense<0.000000e+00> : vector<12xf32>
    %7 = vector.multi_reduction <add>, %2, %cst [1] : vector<12x64xf32> to vector<12xf32>
    %8 = vector.shape_cast %7 : vector<12xf32> to vector<12x1xf32>
    %cst_8 = arith.constant 6.400000e+01 : f32
    %9 = vector.broadcast %cst_8 : f32 to vector<12x1xf32>
    %10 = arith.divf %8, %9 : vector<12x1xf32>
    %11 = vector.broadcast %10 : vector<12x1xf32> to vector<12x64xf32>
    %12 = arith.subf %2, %11 : vector<12x64xf32>
    %13 = arith.mulf %12, %12 : vector<12x64xf32>
    %cst_9 = arith.constant dense<0.000000e+00> : vector<12xf32>
    %14 = vector.multi_reduction <add>, %13, %cst_9 [1] : vector<12x64xf32> to vector<12xf32>
    %15 = vector.shape_cast %14 : vector<12xf32> to vector<12x1xf32>
    %cst_10 = arith.constant 6.400000e+01 : f32
    %16 = vector.broadcast %cst_10 : f32 to vector<12x1xf32>
    %17 = arith.divf %15, %16 : vector<12x1xf32>
    %cst_11 = arith.constant 9.99999974E-6 : f32
    %18 = vector.broadcast %cst_11 : f32 to vector<12x1xf32>
    %19 = arith.addf %17, %18 : vector<12x1xf32>
    %20 = math.rsqrt %19 : vector<12x1xf32>
    %21 = vector.broadcast %20 : vector<12x1xf32> to vector<12x64xf32>
    %22 = arith.mulf %12, %21 : vector<12x64xf32>
    %23 = vector.broadcast %4 : vector<1x64xf32> to vector<12x64xf32>
    %24 = arith.mulf %22, %23 : vector<12x64xf32>
    %25 = vector.broadcast %6 : vector<1x64xf32> to vector<12x64xf32>
    %26 = arith.addf %24, %25 : vector<12x64xf32>
    %c0_12 = arith.constant 0 : index
    %c0_13 = arith.constant 0 : index
    %c0_14 = arith.constant 0 : index
    %27 = vector.load %arg5[%c0_12, %c0_13, %c0_14] : memref<1x12x64xf32, #tpu.memory_space<vmem>>, vector<1x12x64xf32>
    %28 = vector.shape_cast %27 : vector<1x12x64xf32> to vector<12x64xf32>
    %29 = vector.shape_cast %26 : vector<12x64xf32> to vector<1x12x64xf32>
    tpu.vector_store %arg5[%c0_12, %c0_13, %c0_14], %29 {strides = array<i32>} : memref<1x12x64xf32, #tpu.memory_space<vmem>>, vector<1x12x64xf32>,
    return
  }
  func.func @transform_0(%arg0: i32, %arg1: i32) -> (i32, i32, i32) {
    %c0_i32 = arith.constant 0 : i32
    %c0_i32_0 = arith.constant 0 : i32
    return %arg0, %arg1, %c0_i32 : i32, i32, i32
  }
  func.func @transform_1(%arg0: i32, %arg1: i32) -> (i32, i32, i32) {
    %c0_i32 = arith.constant 0 : i32
    %c0_i32_0 = arith.constant 0 : i32
    %c0_i32_1 = arith.constant 0 : i32
    return %arg0, %c0_i32, %c0_i32_0 : i32, i32, i32
  }
  func.func @transform_2(%arg0: i32, %arg1: i32) -> (i32, i32, i32) {
    %c0_i32 = arith.constant 0 : i32
    %c0_i32_0 = arith.constant 0 : i32
    %c0_i32_1 = arith.constant 0 : i32
    return %arg0, %c0_i32, %c0_i32_0 : i32, i32, i32
  }
  func.func @transform_3(%arg0: i32, %arg1: i32) -> (i32, i32, i32) {
    %c0_i32 = arith.constant 0 : i32
    %c0_i32_0 = arith.constant 0 : i32
    return %arg0, %arg1, %c0_i32 : i32, i32, i32
  }
}

</mosaic_0001>

<bundles_post_ra>
// kernel: mmer_forward.92
= control target key start
LH: loop header
LB: loop body
LE: loop exit
PB: predicated region body
PF: predicated region fallthrough
CT: control target
= control target key end

     0   :  { %v181_v1 = vmov 0   ;;  %vm82_vm0 = vcmask 523264   ;;  %v27_v10 = vlaneseq  ;;  %vm141_vm1 = vcmask 1043456   ;;  %s238_s1 = inlined_call_operand.vmem [shape: bf16[1,64,192], index: 1, kind: input, shape index: {}]   ;;  %s239_s0 = inlined_call_operand.vmem [shape: bf16[1,12,64], index: 0, kind: input, shape index: {}]   ;;  %s240_s2 = inlined_call_operand.vmem [shape: f32[1,1,192], index: 2, kind: input, shape index: {}]   ;;  %s241_s3 = inlined_call_operand.vmem [shape: bf16[1,12,192], index: 3, kind: output, shape index: {}]  }
   0x1   :  { %v168_v0 = vld [vmem:[%s238_s1 + $0x4] ss:$8 sps:$4 sm:$0xff]   ;;  %118 = vmatprep.mubr.bf16.mxu0 %v181_v1  ;;  %v170_v2 = vld [vmem:[%s238_s1] ss:$8 sps:$4 sm:$0xff]   ;;  %v171_v3 = vld [vmem:[%s238_s1 + $0x14] ss:$8 sps:$4 sm:$0xff]  }
   0x2   :  { %86 = vmatprep.subr.bf16.mxu0 %v168_v0  ;;  %v173_v4 = vld [vmem:[%s238_s1 + $0x10] ss:$8 sps:$4 sm:$0xff]   ;;  %v174_v5 = vld [vmem:[%s238_s1 + $0x24] ss:$8 sps:$4 sm:$0xff]   ;;  %v176_v6 = vld [vmem:[%s238_s1 + $0x20] ss:$8 sps:$4 sm:$0xff]  }
   0x3   :  { %87 = vmatpush1.bf16.msra.mxu0 %v170_v2  ;;  %v177_v7 = vld [vmem:[%s238_s1 + $0x34] ss:$8 sps:$4 sm:$0xff]   ;;  %v179_v8 = vld [vmem:[%s238_s1 + $0x30] ss:$8 sps:$4 sm:$0xff]   ;;  %v180_v9 = vld [vmem:[%s239_s0] sm:$0x3f]  }
   0x4   :  { %88 = vmatprep.subr.bf16.mxu0 %v171_v3  ;;  %v28_v11 = vshrl.u32 %v27_v10, 7  ;;  %v25_v13 = vld [vmem:[%s240_s2] sm:$0x3]  ;;  %vm142_vm2 = vcmask 523268   ;;  %vm145_vm3 = vcmask 1041408   ;;  %vm146_vm4 = vcmask 521220  }
   0x5   :  { %vm143_vm5 = vmor %vm142_vm2, %vm141_vm1 }
   0x6   :  { %v29_v12 = vsub.s32 0, %v28_v11  ;;  %v33_v14 = vsub.s32 1, %v28_v11  ;;  %vm147_vm6 = vmor %vm146_vm4, %vm145_vm3 }
   0x7   :  { %89 = vmatpush1.bf16.msra.mxu0 %v173_v4 }
   0x8   :  { %90 = vmatprep.subr.bf16.mxu0 %v174_v5  ;;  %v30_v15 = vrot.slane %v25_v13, %v29_v12  ;;  %v34_v16 = vrot.slane %v25_v13, %v33_v14 }
   0xb   :  { %91 = vmatpush1.bf16.msra.mxu0 %v176_v6 }
   0xc   :  { %92 = vmatprep.subr.bf16.mxu0 %v177_v7 }
   0xf   :  { %93 = vmatpush1.bf16.msra.mxu0 %v179_v8 }
  0x12   :  { %162 = vmatmul.mubr.msk.bf16.vlgmr.msra.gmra.mrb[0].mxu0 %vm82_vm0, %v180_v9 }
  0xe5   :  { %v120_v17 = vpop.f32.mrb[0].mxu0 }
  0xe6   :  { %v121_v18 = vadd.f32 %v120_v17, %v30_v15  ;;  %v122_v19 = vpop.f32.mrb[1].mxu0 }
  0xe7   :  { %v123_v20 = vadd.f32 %v122_v19, %v34_v16  ;;  %v124_v21 = vpop.f32.mrb[2].mxu0 }
  0xe8   :  { %v125_v22 = vadd.f32 %v124_v21, %v30_v15  ;;  %v126_v23 = vpop.f32.mrb[3].mxu0 }
  0xe9   :  { %v165_v24 = vpack.c.bf16 %v123_v20, %v121_v18  ;;  %v127_v25 = vadd.f32 %v126_v23, %v34_v16 }
  0xeb   :  { %144 = vst.msk [vmem:[%s241_s3] sm:$0xff] %vm143_vm5, %v165_v24  ;;  %v166_v26 = vpack.c.bf16 %v127_v25, %v125_v22 }
  0xed   :  { %148 = vst.msk [vmem:[%s241_s3 + $0x8] sm:$0x33] %vm147_vm6, %v166_v26 }

// kernel: mmer_forward.95
= control target key start
LH: loop header
LB: loop body
LE: loop exit
PB: predicated region body
PF: predicated region fallthrough
CT: control target
= control target key end

     0   :  { %v157_v0 = vmov 0.0   ;;  %vm158_vm0 = vmmov 0   ;;  %vm61_vm1 = vcmask 523264   ;;  %vm114_vm2 = vcmask 519168   ;;  %s203_s1 = inlined_call_operand.vmem [shape: bf16[1,64,64], index: 1, kind: input, shape index: {}]   ;;  %s204_s0 = inlined_call_operand.vmem [shape: bf16[1,12,64], index: 0, kind: input, shape index: {}]   ;;  %s205_s2 = inlined_call_operand.vmem [shape: f32[1,1,64], index: 2, kind: input, shape index: {}]   ;;  %s206_s3 = inlined_call_operand.vmem [shape: bf16[1,12,64], index: 3, kind: output, shape index: {}]  }
   0x1   :  { %138 = vmatprep.subr.bf16.mxu0 %v157_v0  ;;  %v152_v1 = vld [vmem:[%s203_s1] sm:$0xff]   ;;  %146 = vmatprep.mubr.msk.bf16.mxu0 %vm158_vm0, %v157_v0  ;;  %v153_v2 = vld [vmem:[%s203_s1 + $0x8] sm:$0xff]   ;;  %v154_v3 = vld [vmem:[%s203_s1 + $0x10] sm:$0xff]   ;;  %vm116_vm3 = vcmask 517120  }
   0x2   :  { %139 = vmatpush3.bf16.msra.mxu0 %v152_v1  ;;  %v155_v4 = vld [vmem:[%s203_s1 + $0x18] sm:$0xff]   ;;  %v156_v5 = vld [vmem:[%s204_s0] sm:$0x3f]  }
   0x3   :  { %140 = vmatprep.subr.bf16.mxu0 %v157_v0  ;;  %v122_v6 = vld [vmem:[%s205_s2] ss:$0 sm:$0xff] }
   0x6   :  { %141 = vmatpush3.bf16.msra.mxu0 %v153_v2 }
   0x7   :  { %142 = vmatprep.subr.bf16.mxu0 %v157_v0 }
   0xa   :  { %143 = vmatpush3.bf16.msra.mxu0 %v154_v3 }
   0xb   :  { %144 = vmatprep.subr.bf16.mxu0 %v157_v0 }
   0xe   :  { %145 = vmatpush3.bf16.msra.mxu0 %v155_v4 }
  0x11   :  { %147 = vmatmul.mubr.msk.bf16.vlgmr.msra.gmra.mrb[0].mxu0 %vm61_vm1, %v156_v5 }
  0xe4   :  { %v99_v7 = vpop.f32.mrb[0].mxu0 }
  0xe5   :  { %v100_v8 = vadd.f32 %v122_v6, %v99_v7  ;;  %v148_v9 = vpop.f32.mrb[1].mxu0 }
  0xe6   :  { %v102_v10 = vpop.f32.mrb[2].mxu0 }
  0xe7   :  { %v131_v11 = vpack.c.bf16 %v100_v8, %v100_v8  ;;  %v103_v12 = vadd.f32 %v122_v6, %v102_v10  ;;  %v149_v13 = vpop.f32.mrb[3].mxu0 }
  0xe9   :  { %115 = vst.msk [vmem:[%s206_s3] sm:$0xf] %vm114_vm2, %v131_v11  ;;  %v132_v14 = vpack.c.bf16 %v103_v12, %v103_v12 }
  0xeb   :  { %117 = vst.msk [vmem:[%s206_s3 + $0x4] sm:$0x3] %vm116_vm3, %v132_v14 }

// kernel: mmer_forward.94
= control target key start
LH: loop header
LB: loop body
LE: loop exit
PB: predicated region body
PF: predicated region fallthrough
CT: control target
= control target key end

     0   :  { %v223_v0 = vmov 0.0   ;;  %vm224_vm0 = vmmov 0   ;;  %vm70_vm1 = vcmask 523264   ;;  %vm126_vm2 = vcmask 519168   ;;  %s302_s1 = inlined_call_operand.vmem [shape: bf16[1,64,64], index: 1, kind: input, shape index: {}]   ;;  %s303_s0 = inlined_call_operand.vmem [shape: bf16[1,12,64], index: 0, kind: input, shape index: {}]   ;;  %s304_s3 = inlined_call_operand.vmem [shape: bf16[1,12,64], index: 3, kind: input, shape index: {}]   ;;  %s305_s2 = inlined_call_operand.vmem [shape: f32[1,1,64], index: 2, kind: input, shape index: {}]   ;;  %s306_s4 = inlined_call_operand.vmem [shape: f32[1,1,64], index: 4, kind: input, shape index: {}]   ;;  %s307_s5 = inlined_call_operand.vmem [shape: f32[1,1,64], index: 5, kind: input, shape index: {}]   ;;  %s308_s6 = inlined_call_operand.vmem [shape: bf16[1,12,64], index: 6, kind: output, shape index: {}]  }
   0x1   :  { %200 = vmatprep.subr.bf16.mxu0 %v223_v0  ;;  %v214_v1 = vld [vmem:[%s302_s1] sm:$0xff]   ;;  %208 = vmatprep.mubr.msk.bf16.mxu0 %vm224_vm0, %v223_v0  ;;  %v215_v2 = vld [vmem:[%s302_s1 + $0x8] sm:$0xff]   ;;  %v216_v3 = vld [vmem:[%s302_s1 + $0x10] sm:$0xff]   ;;  %vm176_vm3 = vcmask 517120  }
   0x2   :  { %201 = vmatpush3.bf16.msra.mxu0 %v214_v1  ;;  %v217_v4 = vld [vmem:[%s302_s1 + $0x18] sm:$0xff]   ;;  %v218_v5 = vld [vmem:[%s303_s0] sm:$0x3f]  }
   0x3   :  { %202 = vmatprep.subr.bf16.mxu0 %v223_v0  ;;  %v115_v6 = vld [vmem:[%s304_s3] sm:$0xf]  ;;  %v116_v8 = vld [vmem:[%s304_s3 + $0x4] sm:$0x3] }
   0x4   :  { %v182_v7 = vld [vmem:[%s305_s2] ss:$0 sm:$0xff]  ;;  %v117_v9 = vunpack.c.l.bf16 %v115_v6  ;;  %v118_v13 = vunpack.c.l.bf16 %v116_v8 }
   0x5   :  { %v189_v38 = vld [vmem:[%s306_s4] ss:$0 sm:$0xff] }
   0x6   :  { %203 = vmatpush3.bf16.msra.mxu0 %v215_v2  ;;  %v190_v40 = vld [vmem:[%s307_s5] ss:$0 sm:$0xff] }
   0x7   :  { %204 = vmatprep.subr.bf16.mxu0 %v223_v0 }
   0xa   :  { %205 = vmatpush3.bf16.msra.mxu0 %v216_v3 }
   0xb   :  { %206 = vmatprep.subr.bf16.mxu0 %v223_v0 }
   0xe   :  { %207 = vmatpush3.bf16.msra.mxu0 %v217_v4 }
  0x11   :  { %209 = vmatmul.mubr.msk.bf16.vlgmr.msra.gmra.mrb[0].mxu0 %vm70_vm1, %v218_v5 }
  0xe4   :  { %v108_v10 = vpop.f32.mrb[0].mxu0 }
  0xe5   :  { %v109_v11 = vadd.f32 %v182_v7, %v108_v10  ;;  %v210_v12 = vpop.f32.mrb[1].mxu0 }
  0xe6   :  { %v111_v14 = vpop.f32.mrb[2].mxu0 }
  0xe7   :  { %v112_v15 = vadd.f32 %v182_v7, %v111_v14  ;;  %v211_v16 = vpop.f32.mrb[3].mxu0  ;;  %v119_v17 = vadd.f32 %v117_v9, %v109_v11 }
  0xe9   :  { %v123_v18 = vsel %vm70_vm1, %v119_v17, 0.0  ;;  %v120_v19 = vadd.f32 %v118_v13, %v112_v15 }
  0xea   :  { %124 = vadd.xlane.f32.xlu0 %v123_v18 }
  0xeb   :  { %v127_v20 = vsel %vm126_vm2, %v120_v19, 0.0 }
  0xee   :  { %128 = vadd.xlane.f32.xlu0 %v127_v20 }
 0x177   :  { %v125_v21 = vpop.xlane.xlu0 %124 }
 0x178   :  { %v131_v22 = vmul.f32 0.015625, %v125_v21 }
 0x17a   :  { %v133_v23 = vsub.f32 %v119_v17, %v131_v22 }
 0x17b   :  { %v129_v24 = vpop.xlane.xlu0 %128 }
 0x17c   :  { %v132_v25 = vmul.f32 0.015625, %v129_v24  ;;  %v135_v26 = vmul.f32 %v133_v23, %v133_v23 }
 0x17e   :  { %v134_v27 = vsub.f32 %v120_v19, %v132_v25  ;;  %v137_v28 = vsel %vm70_vm1, %v135_v26, 0.0 }
 0x17f   :  { %138 = vadd.xlane.f32.xlu1 %v137_v28 }
 0x180   :  { %v136_v29 = vmul.f32 %v134_v27, %v134_v27 }
 0x182   :  { %v140_v30 = vsel %vm126_vm2, %v136_v29, 0.0 }
 0x183   :  { %141 = vadd.xlane.f32.xlu1 %v140_v30 }
 0x20c   :  { %v139_v31 = vpop.xlane.xlu1 %138 }
 0x20d   :  { %v143_v32 = vmul.f32 0.015625, %v139_v31 }
 0x20f   :  { %v145_v33 = vadd.f32 1e-05, %v143_v32 }
 0x210   :  { %v142_v34 = vpop.xlane.xlu1 %141 }
 0x211   :  { %219 = vrsqrt.f32 %v145_v33  ;;  %v144_v35 = vmul.f32 0.015625, %v142_v34 }
 0x213   :  { %v146_v36 = vadd.f32 1e-05, %v144_v35 }
 0x215   :  { %221 = vrsqrt.f32 %v146_v36 }
 0x21b   :  { %v220_v37 = vpop.eup %219 }
 0x21c   :  { %v149_v39 = vmul.f32 %v220_v37, %v133_v23 }
 0x21e   :  { %v157_v41 = vmul.f32 %v189_v38, %v149_v39 }
 0x21f   :  { %v222_v42 = vpop.eup %221 }
 0x220   :  { %v165_v43 = vadd.f32 %v190_v40, %v157_v41  ;;  %v150_v44 = vmul.f32 %v222_v42, %v134_v27 }
 0x222   :  { %v193_v45 = vpack.c.bf16 %v165_v43, %v165_v43  ;;  %v158_v46 = vmul.f32 %v189_v38, %v150_v44 }
 0x224   :  { %175 = vst.msk [vmem:[%s308_s6] sm:$0xf] %vm126_vm2, %v193_v45  ;;  %v166_v47 = vadd.f32 %v190_v40, %v158_v46 }
 0x226   :  { %v194_v48 = vpack.c.bf16 %v166_v47, %v166_v47 }
 0x228   :  { %177 = vst.msk [vmem:[%s308_s6 + $0x4] sm:$0x3] %vm176_vm3, %v194_v48 }

// kernel: mmer_forward.93
= control target key start
LH: loop header
LB: loop body
LE: loop exit
PB: predicated region body
PF: predicated region fallthrough
CT: control target
= control target key end

     0   :  { %s1311_s6 = smov 0   ;;  %s1505_s0 = inlined_call_operand.vmem [shape: bf16[2,6,192], index: 0, kind: input, shape index: {}]   ;;  %s1506_s1 = inlined_call_operand.vmem [shape: bf16[2,6,64], index: 1, kind: output, shape index: {}]  }
   0x1 LB: > { %s1161_s7 = sadd.s32 4294967295, %s1287_s6   ;;  %p1165_p0 = scmp.ge.s32.totalorder %s1287_s6, 1  ;;  %s1287_s6 = sphi %s1311_s6, %s11_s6  }
   0x2   : > { %p87_p1 = scmp.lt.s32.totalorder %s1287_s6, 3 }
   0x4   : > { %p88_p2 = pnand %p1165_p0, %p87_p1 }
   0x5   : > { %p106_p3 = scmp.lt.s32.totalorder (!%p88_p2), %s1161_s7, 1  ;;  %s1289_s12 = smov (!%p88_p2), 80   ;;  %v1293_v1 = vmov (!%p88_p2), 1983009808   ;;  %v127_v3 = vlaneseq (!%p88_p2)  ;;  %v1294_v4 = vmov (!%p88_p2), 1934713408  }
   0x6   : > { %91 = sbr.rel (%p88_p2) target bundleno = 1171 (0x493), region = 24  ;;  %s1290_s13 = smov (!%p88_p2), 112   ;;  %v125_v2 = vunpack.c.l.s4 (!%p88_p2), %v1293_v1  ;;  %v142_v5 = vunpack.c.l.s4 (!%p88_p2), %v1294_v4  ;;  %v1295_v31 = vmov (!%p88_p2), 0.0   ;;  %v1296_v32 = vmov (!%p88_p2), 0  }
   0x7   : > { %s1291_s14 = smov (!%p88_p2), 96   ;;  %s1292_s15 = smov (!%p88_p2), 64   ;;  %v128_v7 = vshrl.u32 (!%p88_p2), %v127_v3, 7  ;;  %1197 = vmatprep.subr.bf16.mxu0 (!%p88_p2), %v1295_v31  ;;  %1203 = vmatprep.subr.bf16.mxu1 (!%p88_p2), %v1295_v31  ;;  %vm1297_vm0 = vmmov (!%p88_p2), 0   ;;  %vm781_vm1 = vcmask (!%p88_p2), 1042432   ;;  %vm543_vm2 = vcmask (!%p88_p2), 130048  }
   0x8   : > { %v126_v6 = vunpack.c.0.s8 (!%p88_p2), %v125_v2  ;;  %v143_v8 = vunpack.c.0.s8 (!%p88_p2), %v142_v5  ;;  %1199 = vmatprep.mubr.msk.bf16.mxu0 (!%p88_p2), %vm1297_vm0, %v1295_v31  ;;  %1205 = vmatprep.mubr.msk.bf16.mxu1 (!%p88_p2), %vm1297_vm0, %v1295_v31  ;;  %vm728_vm3 = vcmask (!%p88_p2), 46080   ;;  %vm777_vm4 = vcmask (!%p88_p2), 48128   ;;  %s1298_s16 = smov (!%p88_p2), 32   ;;  %s1299_s17 = smov (!%p88_p2), 16  }
   0x9   : > { %s1300_s18 = smov (!%p88_p2), 48   ;;  %vm1101_vm5 = vcmask (!%p88_p2), 261120   ;;  %vm1103_vm6 = vcmask (!%p88_p2), 392192   ;;  %vm1106_vm7 = vcmask (!%p88_p2), 518144  }
   0xa   : > { %v1326_v9 = vsub.s32 (!%p88_p2), %v126_v6, %v128_v7  ;;  %v1328_v11 = vsub.s32 (!%p88_p2), %v143_v8, %v128_v7 }
   0xd   : > { %s1508_s7 = smov (!%p106_p3, %s1161_s7), 1 }
   0xe   : > { %s1180_s8 = sshll.u32 %s1508_s7, 3  ;;  %s1168_s19 = sshll.u32 %s1508_s7, 2 }
   0xf   : > { %s110_s11 = scalar_lea.vmem %s1505_s0, %s1180_s8  ;;  %s114_s22 = scalar_lea.vmem %s1506_s1, %s1168_s19 }
  0x10   : > { %v116_v0 = vld [vmem:[%s110_s11] sm:$0x77] }
  0x11   : > { %122 = vrot.lane.b32.xlu1 %v116_v0, %s1289_s12  ;;  %118 = vrot.lane.b32.xlu0 %v116_v0, %s1290_s13  ;;  %v403_v17 = vrot.slane %v116_v0, 4  ;;  %v130_v23 = vrot.slane %v116_v0, %v1326_v9 }
  0x13   : > { %v414_v30 = vrot.slane %v403_v17, %v1326_v9 }
  0x15   : > { %120 = vrot.lane.b32.xlu0 %v116_v0, %s1291_s14  ;;  %259 = vrot.lane.b32.xlu1 %v116_v0, %s1292_s15 }
  0x83   : > { %v123_v10 = vpop.permute.xlu1 %122  ;;  %v119_v12 = vpop.permute.xlu0 %118 }
  0x84   : > { %v171_v13 = vrot.slane %v123_v10, %v1326_v9  ;;  %v406_v14 = vrot.slane %v123_v10, 4  ;;  %v163_v15 = vrot.slane %v119_v12, %v1326_v9  ;;  %v404_v16 = vrot.slane %v119_v12, 4  ;;  %261 = vrot.lane.b32.xlu0 %v119_v12, %s1292_s15 }
  0x86   : > { %v455_v18 = vrot.slane %v406_v14, %v1326_v9  ;;  %v172_v19 = vcombine.low %v163_v15, %v171_v13  ;;  %v173_v20 = vcombine.high %v163_v15, %v171_v13  ;;  %v447_v21 = vrot.slane %v404_v16, %v1326_v9 }
  0x87   : > { %v121_v22 = vpop.permute.xlu0 %120 }
  0x88   : > { %v180_v24 = vrot.slane %v172_v19, %v1328_v11  ;;  %v456_v25 = vcombine.low %v447_v21, %v455_v18  ;;  %v457_v26 = vcombine.high %v447_v21, %v455_v18  ;;  %265 = vrot.lane.b32.xlu0 %v123_v10, %s1292_s15  ;;  %v188_v27 = vrot.slane %v173_v20, %v1328_v11 }
  0x89   : > { %v138_v28 = vrot.slane %v121_v22, %v1326_v9  ;;  %v405_v29 = vrot.slane %v121_v22, 4  ;;  %263 = vrot.lane.b32.xlu1 %v121_v22, %s1292_s15 }
  0x8a   : > { %v181_v33 = vcombine.high %v180_v24, %v1296_v32  ;;  %v464_v34 = vrot.slane %v456_v25, %v1328_v11  ;;  %v472_v35 = vrot.slane %v457_v26, %v1328_v11  ;;  %v194_v39 = vshrl.u32 %v180_v24, 16 }
  0x8b   : > { %v139_v36 = vcombine.low %v130_v23, %v138_v28  ;;  %v140_v37 = vcombine.high %v130_v23, %v138_v28  ;;  %v422_v38 = vrot.slane %v405_v29, %v1326_v9  ;;  %v208_v41 = vshrl.u32 %v188_v27, 16 }
  0x8c   : > { %v465_v40 = vcombine.high %v464_v34, %v1296_v32  ;;  %v201_v45 = vshrl.u32 %v181_v33, 16  ;;  %v478_v46 = vshrl.u32 %v464_v34, 16  ;;  %v492_v47 = vshrl.u32 %v472_v35, 16 }
  0x8d   : > { %v147_v42 = vrot.slane %v139_v36, %v1328_v11  ;;  %v155_v43 = vrot.slane %v140_v37, %v1328_v11  ;;  %v423_v44 = vcombine.low %v414_v30, %v422_v38  ;;  %v424_v48 = vcombine.high %v414_v30, %v422_v38 }
  0x8e   : > { %v485_v56 = vshrl.u32 %v465_v40, 16 }
  0x8f   : > { %v148_v49 = vcombine.high %v147_v42, %v1296_v32  ;;  %v191_v50 = vpack.i.b16 %v180_v24, %v147_v42  ;;  %v193_v51 = vshrl.u32 %v147_v42, 16  ;;  %v205_v52 = vpack.i.b16 %v188_v27, %v155_v43 }
  0x90   : > { %v207_v53 = vshrl.u32 %v155_v43, 16  ;;  %v431_v54 = vrot.slane %v423_v44, %v1328_v11  ;;  %v439_v55 = vrot.slane %v424_v48, %v1328_v11 }
  0x91   : > { %v195_v57 = vpack.i.b16 %v194_v39, %v193_v51  ;;  %v199_v58 = vpack.i.b16 %v181_v33, %v148_v49  ;;  %v200_v59 = vshrl.u32 %v148_v49, 16  ;;  %v211_v60 = vcombine.low %v191_v50, %v205_v52  ;;  %v260_v50 = vpop.permute.xlu1 %259 }
  0x92   : > { %v209_v61 = vpack.i.b16 %v208_v41, %v207_v53  ;;  %v432_v62 = vcombine.high %v431_v54, %v1296_v32  ;;  %v475_v63 = vpack.i.b16 %v464_v34, %v431_v54  ;;  %v477_v0 = vshrl.u32 %v431_v54, 16 }
  0x93   : > { %v218_v1 = vrot.slane %v211_v60, %v1326_v9  ;;  %v489_v2 = vpack.i.b16 %v472_v35, %v439_v55  ;;  %v491_v3 = vshrl.u32 %v439_v55, 16  ;;  %v202_v6 = vpack.i.b16 %v201_v45, %v200_v59 }
  0x94   : > { %v229_v4 = vcombine.low %v195_v57, %v209_v61  ;;  %v479_v5 = vpack.i.b16 %v478_v46, %v477_v0  ;;  %v484_v7 = vshrl.u32 %v432_v62, 16  ;;  %v483_v13 = vpack.i.b16 %v465_v40, %v432_v62 }
  0x95   : > { %v493_v8 = vpack.i.b16 %v492_v47, %v491_v3  ;;  %v495_v10 = vcombine.low %v475_v63, %v489_v2  ;;  %v220_v12 = vcombine.low %v218_v1, %v199_v58 }
  0x96   : > { %v236_v14 = vrot.slane %v229_v4, %v1326_v9  ;;  %v486_v15 = vpack.i.b16 %v485_v56, %v484_v7  ;;  %v274_v56 = vrot.slane %v260_v50, %v1326_v9 }
  0x97   : > { %v513_v16 = vcombine.low %v479_v5, %v493_v8  ;;  %v1362_v17 = vrot.slane %v220_v12, %v1328_v11  ;;  %v502_v18 = vrot.slane %v495_v10, %v1326_v9 }
  0x98   : > { %v238_v19 = vcombine.low %v236_v14, %v202_v6 }
  0x99   : > { %v504_v20 = vcombine.low %v502_v18, %v483_v13  ;;  %v520_v21 = vrot.slane %v513_v16, %v1326_v9  ;;  %v1371_v23 = vcombine.high %v1362_v17, %v1296_v32  ;;  %v250_v27 = vshrl.u32 %v1362_v17, 16 }
  0x9a   : > { %v1367_v22 = vrot.slane %v238_v19, %v1328_v11 }
  0x9b   : > { %v1374_v24 = vrot.slane %v504_v20, %v1328_v11  ;;  %v522_v25 = vcombine.low %v520_v21, %v486_v15  ;;  %v256_v36 = vshrl.u32 %v1371_v23, 16 }
  0x9c   : > { %v249_v26 = vpack.i.b16 %v1367_v22, %v1362_v17  ;;  %v251_v28 = vshrl.u32 %v1367_v22, 16  ;;  %v1382_v29 = vcombine.high %v1367_v22, %v1296_v32 }
  0x9d   : > { %v1385_v30 = vrot.slane %v522_v25, %v1328_v11  ;;  %v512_v33 = vcombine.high %v1374_v24, %v1296_v32  ;;  %v534_v39 = vshrl.u32 %v1374_v24, 16 }
  0x9e   : > { %v1389_v34 = vpack.i.b16 %v251_v28, %v250_v27  ;;  %v255_v35 = vpack.i.b16 %v1382_v29, %v1371_v23  ;;  %v257_v37 = vshrl.u32 %v1382_v29, 16 }
  0x9f   : > { %v533_v38 = vpack.i.b16 %v1385_v30, %v1374_v24  ;;  %v535_v40 = vshrl.u32 %v1385_v30, 16  ;;  %v530_v41 = vcombine.high %v1385_v30, %v1296_v32  ;;  %v540_v45 = vshrl.u32 %v512_v33, 16 }
  0xa0   : > { %v1401_v42 = vpack.i.b16 %v257_v37, %v256_v36 }
  0xa1   : > { %v1403_v43 = vpack.i.b16 %v535_v40, %v534_v39  ;;  %v539_v44 = vpack.i.b16 %v530_v41, %v512_v33  ;;  %v541_v46 = vshrl.u32 %v530_v41, 16  ;;  %v783_v17 = vsel %vm781_vm1, %v533_v38, 0 }
  0xa3   : > { %v1406_v47 = vsel %vm781_vm1, %v539_v44, 0  ;;  %v542_v48 = vpack.i.b16 %v541_v46, %v540_v45  ;;  %v829_v22 = vsel %vm781_vm1, %v1403_v43, 0 }
  0xa5   : > { %v1409_v49 = vsel %vm781_vm1, %v542_v48, 0 }
  0xf6   : > { %v262_v51 = vpop.permute.xlu0 %261 }
  0xf7   : > { %v307_v53 = vrot.slane %v262_v51, %v1326_v9 }
  0xfa   : > { %v266_v52 = vpop.permute.xlu0 %265 }
  0xfb   : > { %v264_v54 = vpop.permute.xlu1 %263  ;;  %v315_v55 = vrot.slane %v266_v52, %v1326_v9 }
  0xfc   : > { %v282_v57 = vrot.slane %v264_v54, %v1326_v9 }
  0xfd   : > { %v316_v58 = vcombine.low %v307_v53, %v315_v55  ;;  %v317_v59 = vcombine.high %v307_v53, %v315_v55 }
  0xfe   : > { %v283_v60 = vcombine.low %v274_v56, %v282_v57  ;;  %v284_v61 = vcombine.high %v274_v56, %v282_v57 }
  0xff   : > { %v324_v62 = vrot.slane %v316_v58, %v1328_v11  ;;  %v332_v63 = vrot.slane %v317_v59, %v1328_v11 }
 0x100   : > { %v291_v0 = vrot.slane %v283_v60, %v1328_v11  ;;  %v299_v1 = vrot.slane %v284_v61, %v1328_v11 }
 0x101   : > { %v325_v2 = vcombine.high %v324_v62, %v1296_v32  ;;  %v338_v3 = vshrl.u32 %v324_v62, 16  ;;  %v352_v4 = vshrl.u32 %v332_v63, 16 }
 0x102   : > { %v292_v5 = vcombine.high %v291_v0, %v1296_v32  ;;  %v337_v6 = vshrl.u32 %v291_v0, 16  ;;  %v351_v7 = vshrl.u32 %v299_v1, 16  ;;  %v335_v8 = vpack.i.b16 %v324_v62, %v291_v0 }
 0x103   : > { %v349_v10 = vpack.i.b16 %v332_v63, %v299_v1  ;;  %v345_v14 = vshrl.u32 %v325_v2, 16 }
 0x104   : > { %v344_v12 = vshrl.u32 %v292_v5, 16  ;;  %v339_v13 = vpack.i.b16 %v338_v3, %v337_v6  ;;  %v353_v15 = vpack.i.b16 %v352_v4, %v351_v7  ;;  %v343_v20 = vpack.i.b16 %v325_v2, %v292_v5 }
 0x105   : > { %v355_v16 = vcombine.low %v335_v8, %v349_v10 }
 0x106   : > { %v373_v18 = vcombine.low %v339_v13, %v353_v15  ;;  %v346_v21 = vpack.i.b16 %v345_v14, %v344_v12 }
 0x107   : > { %v362_v19 = vrot.slane %v355_v16, %v1326_v9 }
 0x108   : > { %v380_v25 = vrot.slane %v373_v18, %v1326_v9 }
 0x109   : > { %v364_v27 = vcombine.low %v362_v19, %v343_v20 }
 0x10a   : > { %v382_v28 = vcombine.low %v380_v25, %v346_v21 }
 0x10b   : > { %v371_v33 = vrot.slane %v364_v27, %v1328_v11 }
 0x10c   : > { %v389_v36 = vrot.slane %v382_v28, %v1328_v11 }
 0x10d   : > { %v394_v39 = vshrl.u32 %v371_v33, 16  ;;  %v372_v46 = vcombine.high %v371_v33, %v1296_v32 }
 0x10e   : > { %v393_v37 = vpack.i.b16 %v389_v36, %v371_v33  ;;  %v395_v40 = vshrl.u32 %v389_v36, 16  ;;  %v390_v41 = vcombine.high %v389_v36, %v1296_v32 }
 0x10f   : > { %v400_v52 = vshrl.u32 %v372_v46, 16 }
 0x110   : > { %v548_v44 = vsel %vm543_vm2, %v393_v37, 0  ;;  %v396_v45 = vpack.i.b16 %v395_v40, %v394_v39  ;;  %v401_v50 = vshrl.u32 %v390_v41, 16  ;;  %v399_v51 = vpack.i.b16 %v390_v41, %v372_v46 }
 0x111   : > { %1198 = vmatpush3.bf16.xpose.msra.mxu0 %v548_v44 }
 0x112   : > { %v594_v48 = vsel %vm543_vm2, %v396_v45, 0  ;;  %1209 = vmatprep.subr.bf16.mxu0 %v1295_v31  ;;  %v402_v53 = vpack.i.b16 %v401_v50, %v400_v52  ;;  %v640_v54 = vsel %vm543_vm2, %v399_v51, 0 }
 0x113   : > { %1204 = vmatpush3.bf16.xpose.msra.mxu1 %v594_v48 }
 0x114   : > { %1215 = vmatprep.subr.bf16.mxu1 %v1295_v31  ;;  %v686_v32 = vsel %vm543_vm2, %v402_v53, 0 }
 0x118   : > { %1200 = vmatmul.mubr.msk.bf16.vlgmr.msra.gmra.mrb[0].mxu0 %vm543_vm2, %v249_v26 }
 0x119   : > { %1210 = vmatpush3.bf16.xpose.msra.mxu0 %v640_v54  ;;  %1211 = vmatprep.mubr.msk.bf16.mxu0 %vm1297_vm0, %v1295_v31 }
 0x11a   : > { %1206 = vmatmul.mubr.msk.bf16.vlgmr.msra.gmra.mrb[0].mxu1 %vm543_vm2, %v1389_v34  ;;  %1221 = vmatprep.subr.bf16.mxu0 %v1295_v31 }
 0x11b   : > { %1216 = vmatpush3.bf16.xpose.msra.mxu1 %v686_v32  ;;  %1217 = vmatprep.mubr.msk.bf16.mxu1 %vm1297_vm0, %v1295_v31 }
 0x11c   : > { %1227 = vmatprep.subr.bf16.mxu1 %v1295_v31 }
 0x120   : > { %1212 = vmatmul.mubr.msk.bf16.vlgmr.msra.gmra.mrb[4].mxu0 %vm543_vm2, %v255_v35 }
 0x121   : > { %1222 = vmatpush3.bf16.msra.mxu0 %v783_v17  ;;  %1223 = vmatprep.mubr.msk.bf16.mxu0 %vm1297_vm0, %v1295_v31 }
 0x122   : > { %1218 = vmatmul.mubr.msk.bf16.vlgmr.msra.gmra.mrb[4].mxu1 %vm543_vm2, %v1401_v42  ;;  %1233 = vmatprep.subr.bf16.mxu0 %v1295_v31 }
 0x123   : > { %1228 = vmatpush3.bf16.msra.mxu1 %v829_v22  ;;  %1229 = vmatprep.mubr.msk.bf16.mxu1 %vm1297_vm0, %v1295_v31 }
 0x124   : > { %1239 = vmatprep.subr.bf16.mxu1 %v1295_v31 }
 0x1eb   : > { %v584_v23 = vpop.f32.mrb[0].mxu0 }
 0x1ec   : > { %v1201_v24 = vpop.f32.mrb[1].mxu0  ;;  %v729_v26 = vsel %vm728_vm3, %v584_v23, -inf }
 0x1ed   : > { %v630_v29 = vpop.f32.mrb[0].mxu1  ;;  %730 = vmax.xlane.f32.xlu1 %v729_v26  ;;  %v587_v30 = vpop.f32.mrb[2].mxu0 }
 0x1ee   : > { %v1202_v34 = vpop.f32.mrb[3].mxu0  ;;  %v1207_v35 = vpop.f32.mrb[1].mxu1  ;;  %v732_v38 = vsel %vm728_vm3, %v630_v29, -inf }
 0x1ef   : > { %733 = vmax.xlane.f32.xlu0 %v732_v38  ;;  %v633_v42 = vpop.f32.mrb[2].mxu1 }
 0x1f0   : > { %v1208_v43 = vpop.f32.mrb[3].mxu1 }
 0x1f3   : > { %v676_v55 = vpop.f32.mrb[4].mxu0 }
 0x1f4   : > { %v1213_v56 = vpop.f32.mrb[5].mxu0  ;;  %v735_v57 = vsel %vm728_vm3, %v676_v55, -inf }
 0x1f5   : > { %v722_v58 = vpop.f32.mrb[4].mxu1  ;;  %736 = vmax.xlane.f32.xlu0 %v735_v57  ;;  %v679_v59 = vpop.f32.mrb[6].mxu0 }
 0x1f6   : > { %v1214_v60 = vpop.f32.mrb[7].mxu0  ;;  %v1219_v61 = vpop.f32.mrb[5].mxu1  ;;  %v738_v62 = vsel %vm728_vm3, %v722_v58, -inf }
 0x1f7   : > { %739 = vmax.xlane.f32.xlu1 %v738_v62  ;;  %v725_v63 = vpop.f32.mrb[6].mxu1 }
 0x1f8   : > { %v1220_v0 = vpop.f32.mrb[7].mxu1 }
 0x27a   : > { %v731_v1 = vpop.xlane.xlu1 %730 }
 0x27b   : > { %v741_v2 = vsub.f32 %v584_v23, %v731_v1 }
 0x27c   : > { %v734_v3 = vpop.xlane.xlu0 %733 }
 0x27d   : > { %v745_v4 = vmul.f32 1.442695, %v741_v2  ;;  %v742_v5 = vsub.f32 %v630_v29, %v734_v3 }
 0x27f   : > { %1265 = vpow2.f32 %v745_v4  ;;  %v747_v6 = vmul.f32 1.442695, %v742_v5 }
 0x281   : > { %1267 = vpow2.f32 %v747_v6 }
 0x282   : > { %v737_v7 = vpop.xlane.xlu0 %736 }
 0x283   : > { %v743_v8 = vsub.f32 %v676_v55, %v737_v7 }
 0x284   : > { %v740_v10 = vpop.xlane.xlu1 %739 }
 0x285   : > { %v749_v12 = vmul.f32 1.442695, %v743_v8  ;;  %v744_v13 = vsub.f32 %v722_v58, %v740_v10 }
 0x287   : > { %1269 = vpow2.f32 %v749_v12  ;;  %v751_v14 = vmul.f32 1.442695, %v744_v13 }
 0x289   : > { %v1266_v15 = vpop.eup %1265  ;;  %1271 = vpow2.f32 %v751_v14 }
 0x28a   : > { %v753_v16 = vsel %vm728_vm3, %v1266_v15, 0.0 }
 0x28b   : > { %v1268_v18 = vpop.eup %1267  ;;  %754 = vadd.xlane.f32.xlu0 %v753_v16 }
 0x28c   : > { %v756_v19 = vsel %vm728_vm3, %v1268_v18, 0.0 }
 0x28d   : > { %757 = vadd.xlane.f32.xlu1 %v756_v19 }
 0x291   : > { %v1270_v20 = vpop.eup %1269 }
 0x292   : > { %v759_v21 = vsel %vm728_vm3, %v1270_v20, 0.0 }
 0x293   : > { %v1272_v25 = vpop.eup %1271  ;;  %760 = vadd.xlane.f32.xlu0 %v759_v21 }
 0x294   : > { %v762_v27 = vsel %vm728_vm3, %v1272_v25, 0.0 }
 0x295   : > { %763 = vadd.xlane.f32.xlu1 %v762_v27 }
 0x318   : > { %v755_v28 = vpop.xlane.xlu0 %754 }
 0x319   : > { %1273 = vrcp.f32 %v755_v28 }
 0x31a   : > { %v758_v33 = vpop.xlane.xlu1 %757 }
 0x31b   : > { %1275 = vrcp.f32 %v758_v33 }
 0x320   : > { %v761_v36 = vpop.xlane.xlu0 %760 }
 0x321   : > { %1277 = vrcp.f32 %v761_v36 }
 0x322   : > { %v764_v37 = vpop.xlane.xlu1 %763 }
 0x323   : > { %v1274_v39 = vpop.eup %1273  ;;  %1279 = vrcp.f32 %v764_v37 }
 0x324   : > { %v769_v40 = vmul.f32 %v1274_v39, %v1266_v15 }
 0x325   : > { %v1276_v41 = vpop.eup %1275 }
 0x326   : > { %v770_v44 = vmul.f32 %v1276_v41, %v1268_v18  ;;  %v773_v45 = vpack.c.bf16 %v769_v40, %v769_v40 }
 0x328   : > { %1224 = vmatmul.mubr.msk.bf16.vlgmr.msra.gmra.mrb[8].mxu0 %vm777_vm4, %v773_v45  ;;  %v774_v46 = vpack.c.bf16 %v770_v44, %v770_v44 }
 0x329   : > { %1234 = vmatpush3.bf16.msra.mxu0 %v1406_v47  ;;  %1235 = vmatprep.mubr.msk.bf16.mxu0 %vm1297_vm0, %v1295_v31 }
 0x32a   : > { %1230 = vmatmul.mubr.msk.bf16.vlgmr.msra.gmra.mrb[8].mxu1 %vm777_vm4, %v774_v46 }
 0x32b   : > { %v1278_v48 = vpop.eup %1277  ;;  %1240 = vmatpush3.bf16.msra.mxu1 %v1409_v49  ;;  %1241 = vmatprep.mubr.msk.bf16.mxu1 %vm1297_vm0, %v1295_v31 }
 0x32c   : > { %v771_v50 = vmul.f32 %v1278_v48, %v1270_v20 }
 0x32d   : > { %v1280_v51 = vpop.eup %1279 }
 0x32e   : > { %v772_v52 = vmul.f32 %v1280_v51, %v1272_v25  ;;  %v775_v53 = vpack.c.bf16 %v771_v50, %v771_v50 }
 0x330   : > { %1236 = vmatmul.mubr.msk.bf16.vlgmr.msra.gmra.mrb[12].mxu0 %vm777_vm4, %v775_v53  ;;  %v776_v54 = vpack.c.bf16 %v772_v52, %v772_v52 }
 0x332   : > { %1242 = vmatmul.mubr.msk.bf16.vlgmr.msra.gmra.mrb[12].mxu1 %vm777_vm4, %v776_v54 }
 0x3fb   : > { %v819_v47 = vpop.f32.mrb[8].mxu0 }
 0x3fc   : > { %v1225_v32 = vpop.f32.mrb[9].mxu0 }
 0x3fd   : > { %v822_v17 = vpop.f32.mrb[10].mxu0  ;;  %v865_v22 = vpop.f32.mrb[8].mxu1 }
 0x3fe   : > { %v1226_v23 = vpop.f32.mrb[11].mxu0  ;;  %v1231_v24 = vpop.f32.mrb[9].mxu1 }
 0x3ff   : > { %v868_v26 = vpop.f32.mrb[10].mxu1 }
 0x400   : > { %v1232_v49 = vpop.f32.mrb[11].mxu1 }
 0x403   : > { %v911_v29 = vpop.f32.mrb[12].mxu0 }
 0x404   : > { %v963_v30 = vcombine.low %v819_v47, %v911_v29  ;;  %v964_v34 = vcombine.high %v819_v47, %v911_v29  ;;  %v1237_v35 = vpop.f32.mrb[13].mxu0 }
 0x405   : > { %v914_v38 = vpop.f32.mrb[14].mxu0  ;;  %v957_v42 = vpop.f32.mrb[12].mxu1 }
 0x406   : > { %v979_v43 = vcombine.low %v865_v22, %v957_v42  ;;  %v980_v55 = vcombine.high %v865_v22, %v957_v42  ;;  %v1238_v56 = vpop.f32.mrb[15].mxu0  ;;  %v1243_v57 = vpop.f32.mrb[13].mxu1  ;;  %v971_v59 = vrot.slane %v963_v30, %v1326_v9  ;;  %v978_v60 = vrot.slane %v964_v34, %v1326_v9 }
 0x407   : > { %v960_v58 = vpop.f32.mrb[14].mxu1 }
 0x408   : > { %v987_v61 = vrot.slane %v979_v43, %v1326_v9  ;;  %v994_v62 = vrot.slane %v980_v55, %v1326_v9  ;;  %v1244_v63 = vpop.f32.mrb[15].mxu1 }
 0x40a   : > { %v995_v0 = vcombine.low %v971_v59, %v987_v61  ;;  %v996_v1 = vcombine.high %v971_v59, %v987_v61  ;;  %v1011_v2 = vcombine.low %v978_v60, %v994_v62 }
 0x40c   : > { %v1003_v3 = vrot.slane %v995_v0, %v1328_v11  ;;  %v1010_v4 = vrot.slane %v996_v1, %v1328_v11  ;;  %v1018_v5 = vrot.slane %v1011_v2, %v1328_v11 }
 0x40e   : > { %v1021_v6 = vcombine.low %v1003_v3, %v1010_v4  ;;  %v1177_v7 = vcombine.high %v1003_v3, %v1010_v4  ;;  %v1044_v8 = vcombine.high %v1018_v5, %v1295_v31  ;;  %v1043_v10 = vrot.slane %v1018_v5, %v1326_v9 }
 0x410   : > { %v1028_v12 = vrot.slane %v1021_v6, %v1326_v9  ;;  %v1036_v13 = vrot.slane %v1177_v7, %v1326_v9  ;;  %v1051_v14 = vrot.slane %v1044_v8, %v1326_v9 }
 0x412   : > { %v1053_v15 = vcombine.high %v1028_v12, %v1036_v13  ;;  %v1069_v16 = vcombine.high %v1043_v10, %v1051_v14  ;;  %v1052_v18 = vcombine.low %v1028_v12, %v1036_v13  ;;  %v1068_v19 = vcombine.low %v1043_v10, %v1051_v14 }
 0x414   : > { %v1067_v20 = vrot.slane %v1053_v15, %v1328_v11  ;;  %v1083_v21 = vrot.slane %v1069_v16, %v1328_v11  ;;  %v1060_v25 = vrot.slane %v1052_v18, %v1328_v11  ;;  %v1076_v31 = vrot.slane %v1068_v19, %v1328_v11 }
 0x416   : > { %v1086_v27 = vcombine.low %v1067_v20, %v1083_v21  ;;  %v1085_v28 = vcombine.high %v1060_v25, %v1076_v31  ;;  %v1087_v33 = vcombine.high %v1067_v20, %v1083_v21  ;;  %v1084_v36 = vcombine.low %v1060_v25, %v1076_v31 }
 0x418   : > { %1093 = vrot.lane.b32.xlu1 %v1086_v27, %s1298_s16  ;;  %1089 = vrot.lane.b32.xlu0 %v1085_v28, %s1299_s17 }
 0x41c   : > { %1097 = vrot.lane.b32.xlu1 %v1087_v33, %s1300_s18 }
 0x48a   : > { %v1094_v9 = vpop.permute.xlu1 %1093  ;;  %v1090_v37 = vpop.permute.xlu0 %1089 }
 0x48b   : > { %v1100_v39 = vsel %vm543_vm2, %v1084_v36, %v1090_v37 }
 0x48c   : > { %v1102_v41 = vsel %vm1101_vm5, %v1100_v39, %v1094_v9 }
 0x48e   : > { %v1098_v40 = vpop.permute.xlu1 %1097 }
 0x48f   : > { %v1104_v11 = vsel %vm1103_vm6, %v1102_v41, %v1098_v40 }
 0x490   : > { %v1105_v44 = vpack.c.bf16 %v1104_v11, %v1104_v11 }
 0x492   : > { %1107 = vst.msk [vmem:[%s114_s22] sm:$0x7] %vm1106_vm7, %v1105_v44 }
 0x493 PF: > { %s11_s6 = sadd.s32 1, %s1287_s6  }
 0x494   : > { %p8_p4 = scmp.ge.s32.totalorder %s11_s6, 4  }
 0x496   :  { %10 = sbr.rel (!%p8_p4) target bundleno = 1 (0x1), region = 54 }

// kernel: mmer_forward.69
= control target key start
LH: loop header
LB: loop body
LE: loop exit
PB: predicated region body
PF: predicated region fallthrough
CT: control target
= control target key end

     0   :  { %vm42_vm0 = vcmask 1044480   ;;  %v172_v0 = vmov 0.0   ;;  %vm173_vm1 = vmmov 0   ;;  %vm38_vm2 = vcmask 80896   ;;  %s232_s1 = inlined_call_operand.vmem [shape: bf16[1,10,64], index: 1, kind: input, shape index: {}]   ;;  %s233_s0 = inlined_call_operand.vmem [shape: f32[1,16,10], index: 0, kind: input, shape index: {}]   ;;  %s234_s2 = inlined_call_operand.vmem [shape: f32[1,1,64], index: 2, kind: input, shape index: {}]   ;;  %s235_s3 = inlined_call_operand.vmem [shape: f32[1,1,64], index: 3, kind: input, shape index: {}]   ;;  %s236_s4 = inlined_call_operand.vmem [shape: f32[1,1,64], index: 4, kind: input, shape index: {}]   ;;  %s237_s5 = inlined_call_operand.vmem [shape: bf16[1,16,64], index: 5, kind: output, shape index: {}]  }
   0x1   :  { %159 = vmatprep.subr.bf16.mxu0 %v172_v0  ;;  %v167_v1 = vld [vmem:[%s232_s1] sm:$0x1f]   ;;  %161 = vmatprep.mubr.msk.bf16.mxu0 %vm173_vm1, %v172_v0  ;;  %v22_v3 = vld [vmem:[%s233_s0 + $0x8] sm:$0xff]  ;;  %vm89_vm3 = vcmask 523264   ;;  %vm141_vm4 = vcmask 519168  }
   0x2   :  { %v21_v2 = vld [vmem:[%s233_s0] sm:$0xff]  ;;  %v44_v4 = vsel %vm42_vm0, %v167_v1, 0 }
   0x3   :  { %v23_v5 = vpack.c.bf16 %v22_v3, %v21_v2  ;;  %160 = vmatpush3.bf16.msra.mxu0 %v44_v4  ;;  %v148_v6 = vld [vmem:[%s234_s2] ss:$0 sm:$0xff] }
   0x4   :  { %v151_v32 = vld [vmem:[%s235_s3] ss:$0 sm:$0xff] }
   0x5   :  { %v152_v34 = vld [vmem:[%s236_s4] ss:$0 sm:$0xff] }
   0x6   :  { %162 = vmatmul.mubr.msk.bf16.vlgmr.msra.gmra.mrb[0].mxu0 %vm38_vm2, %v23_v5 }
  0xd9   :  { %v80_v7 = vpop.f32.mrb[0].mxu0 }
  0xda   :  { %v81_v8 = vadd.f32 %v148_v6, %v80_v7  ;;  %v163_v9 = vpop.f32.mrb[1].mxu0 }
  0xdb   :  { %v83_v10 = vpop.f32.mrb[2].mxu0 }
  0xdc   :  { %v84_v11 = vadd.f32 %v148_v6, %v83_v10  ;;  %v164_v12 = vpop.f32.mrb[3].mxu0  ;;  %v90_v13 = vsel %vm89_vm3, %v81_v8, 0.0 }
  0xdd   :  { %91 = vadd.xlane.f32.xlu0 %v90_v13 }
  0xde   :  { %v93_v14 = vsel %vm89_vm3, %v84_v11, 0.0 }
  0xe1   :  { %94 = vadd.xlane.f32.xlu0 %v93_v14 }
 0x16a   :  { %v92_v15 = vpop.xlane.xlu0 %91 }
 0x16b   :  { %v97_v16 = vmul.f32 0.015625, %v92_v15 }
 0x16d   :  { %v99_v17 = vsub.f32 %v81_v8, %v97_v16 }
 0x16e   :  { %v95_v18 = vpop.xlane.xlu0 %94 }
 0x16f   :  { %v98_v19 = vmul.f32 0.015625, %v95_v18  ;;  %v101_v20 = vmul.f32 %v99_v17, %v99_v17 }
 0x171   :  { %v100_v21 = vsub.f32 %v84_v11, %v98_v19  ;;  %v103_v22 = vsel %vm89_vm3, %v101_v20, 0.0 }
 0x172   :  { %104 = vadd.xlane.f32.xlu1 %v103_v22 }
 0x173   :  { %v102_v23 = vmul.f32 %v100_v21, %v100_v21 }
 0x175   :  { %v106_v24 = vsel %vm89_vm3, %v102_v23, 0.0 }
 0x176   :  { %107 = vadd.xlane.f32.xlu1 %v106_v24 }
 0x1ff   :  { %v105_v25 = vpop.xlane.xlu1 %104 }
 0x200   :  { %v109_v26 = vmul.f32 0.015625, %v105_v25 }
 0x202   :  { %v111_v27 = vadd.f32 1e-05, %v109_v26 }
 0x203   :  { %v108_v28 = vpop.xlane.xlu1 %107 }
 0x204   :  { %168 = vrsqrt.f32 %v111_v27  ;;  %v110_v29 = vmul.f32 0.015625, %v108_v28 }
 0x206   :  { %v112_v30 = vadd.f32 1e-05, %v110_v29 }
 0x208   :  { %170 = vrsqrt.f32 %v112_v30 }
 0x20e   :  { %v169_v31 = vpop.eup %168 }
 0x20f   :  { %v115_v33 = vmul.f32 %v169_v31, %v99_v17 }
 0x211   :  { %v123_v35 = vmul.f32 %v151_v32, %v115_v33 }
 0x212   :  { %v171_v36 = vpop.eup %170 }
 0x213   :  { %v131_v37 = vadd.f32 %v152_v34, %v123_v35  ;;  %v116_v38 = vmul.f32 %v171_v36, %v100_v21 }
 0x215   :  { %v155_v39 = vpack.c.bf16 %v131_v37, %v131_v37  ;;  %v124_v40 = vmul.f32 %v151_v32, %v116_v38 }
 0x217   :  { %142 = vst.msk [vmem:[%s237_s5] sm:$0xf] %vm141_vm4, %v155_v39  ;;  %v132_v41 = vadd.f32 %v152_v34, %v124_v40 }
 0x219   :  { %v156_v42 = vpack.c.bf16 %v132_v41, %v132_v41 }
 0x21b   :  { %143 = vst.msk [vmem:[%s237_s5 + $0x4] sm:$0xf] %vm141_vm4, %v156_v42 }

// kernel: mmer_forward.67
= control target key start
LH: loop header
LB: loop body
LE: loop exit
PB: predicated region body
PF: predicated region fallthrough
CT: control target
= control target key end

     0   :  { %v169_v0 = vmov 0.0   ;;  %vm170_vm0 = vmmov 0   ;;  %vm39_vm1 = vcmask 130048   ;;  %vm86_vm2 = vcmask 523264   ;;  %s229_s1 = inlined_call_operand.vmem [shape: bf16[1,16,64], index: 1, kind: input, shape index: {}]   ;;  %s230_s0 = inlined_call_operand.vmem [shape: f32[1,16,16], index: 0, kind: input, shape index: {}]   ;;  %s231_s2 = inlined_call_operand.vmem [shape: f32[1,1,64], index: 2, kind: input, shape index: {}]   ;;  %s232_s3 = inlined_call_operand.vmem [shape: f32[1,1,64], index: 3, kind: input, shape index: {}]   ;;  %s233_s4 = inlined_call_operand.vmem [shape: f32[1,1,64], index: 4, kind: input, shape index: {}]   ;;  %s234_s5 = inlined_call_operand.vmem [shape: bf16[1,16,64], index: 5, kind: output, shape index: {}]  }
   0x1   :  { %156 = vmatprep.subr.bf16.mxu0 %v169_v0  ;;  %v164_v1 = vld [vmem:[%s229_s1] sm:$0xff]   ;;  %158 = vmatprep.mubr.msk.bf16.mxu0 %vm170_vm0, %v169_v0  ;;  %v22_v3 = vld [vmem:[%s230_s0 + $0x8] sm:$0xff]  ;;  %vm138_vm3 = vcmask 519168  }
   0x2   :  { %v21_v2 = vld [vmem:[%s230_s0] sm:$0xff]  ;;  %157 = vmatpush3.bf16.msra.mxu0 %v164_v1 }
   0x3   :  { %v23_v4 = vpack.c.bf16 %v22_v3, %v21_v2  ;;  %v145_v5 = vld [vmem:[%s231_s2] ss:$0 sm:$0xff] }
   0x4   :  { %v148_v31 = vld [vmem:[%s232_s3] ss:$0 sm:$0xff] }
   0x5   :  { %159 = vmatmul.mubr.msk.bf16.vlgmr.msra.gmra.mrb[0].mxu0 %vm39_vm1, %v23_v4  ;;  %v149_v33 = vld [vmem:[%s233_s4] ss:$0 sm:$0xff] }
  0xd8   :  { %v77_v6 = vpop.f32.mrb[0].mxu0 }
  0xd9   :  { %v78_v7 = vadd.f32 %v145_v5, %v77_v6  ;;  %v160_v8 = vpop.f32.mrb[1].mxu0 }
  0xda   :  { %v80_v9 = vpop.f32.mrb[2].mxu0 }
  0xdb   :  { %v81_v10 = vadd.f32 %v145_v5, %v80_v9  ;;  %v161_v11 = vpop.f32.mrb[3].mxu0  ;;  %v87_v12 = vsel %vm86_vm2, %v78_v7, 0.0 }
  0xdc   :  { %88 = vadd.xlane.f32.xlu0 %v87_v12 }
  0xdd   :  { %v90_v13 = vsel %vm86_vm2, %v81_v10, 0.0 }
  0xe0   :  { %91 = vadd.xlane.f32.xlu0 %v90_v13 }
 0x169   :  { %v89_v14 = vpop.xlane.xlu0 %88 }
 0x16a   :  { %v94_v15 = vmul.f32 0.015625, %v89_v14 }
 0x16c   :  { %v96_v16 = vsub.f32 %v78_v7, %v94_v15 }
 0x16d   :  { %v92_v17 = vpop.xlane.xlu0 %91 }
 0x16e   :  { %v95_v18 = vmul.f32 0.015625, %v92_v17  ;;  %v98_v19 = vmul.f32 %v96_v16, %v96_v16 }
 0x170   :  { %v97_v20 = vsub.f32 %v81_v10, %v95_v18  ;;  %v100_v21 = vsel %vm86_vm2, %v98_v19, 0.0 }
 0x171   :  { %101 = vadd.xlane.f32.xlu1 %v100_v21 }
 0x172   :  { %v99_v22 = vmul.f32 %v97_v20, %v97_v20 }
 0x174   :  { %v103_v23 = vsel %vm86_vm2, %v99_v22, 0.0 }
 0x175   :  { %104 = vadd.xlane.f32.xlu1 %v103_v23 }
 0x1fe   :  { %v102_v24 = vpop.xlane.xlu1 %101 }
 0x1ff   :  { %v106_v25 = vmul.f32 0.015625, %v102_v24 }
 0x201   :  { %v108_v26 = vadd.f32 1e-05, %v106_v25 }
 0x202   :  { %v105_v27 = vpop.xlane.xlu1 %104 }
 0x203   :  { %165 = vrsqrt.f32 %v108_v26  ;;  %v107_v28 = vmul.f32 0.015625, %v105_v27 }
 0x205   :  { %v109_v29 = vadd.f32 1e-05, %v107_v28 }
 0x207   :  { %167 = vrsqrt.f32 %v109_v29 }
 0x20d   :  { %v166_v30 = vpop.eup %165 }
 0x20e   :  { %v112_v32 = vmul.f32 %v166_v30, %v96_v16 }
 0x210   :  { %v120_v34 = vmul.f32 %v148_v31, %v112_v32 }
 0x211   :  { %v168_v35 = vpop.eup %167 }
 0x212   :  { %v128_v36 = vadd.f32 %v149_v33, %v120_v34  ;;  %v113_v37 = vmul.f32 %v168_v35, %v97_v20 }
 0x214   :  { %v152_v38 = vpack.c.bf16 %v128_v36, %v128_v36  ;;  %v121_v39 = vmul.f32 %v148_v31, %v113_v37 }
 0x216   :  { %139 = vst.msk [vmem:[%s234_s5] sm:$0xf] %vm138_vm3, %v152_v38  ;;  %v129_v40 = vadd.f32 %v149_v33, %v121_v39 }
 0x218   :  { %v153_v41 = vpack.c.bf16 %v129_v40, %v129_v40 }
 0x21a   :  { %140 = vst.msk [vmem:[%s234_s5 + $0x4] sm:$0xf] %vm138_vm3, %v153_v41 }

// kernel: mmer_forward.68
= control target key start
LH: loop header
LB: loop body
LE: loop exit
PB: predicated region body
PF: predicated region fallthrough
CT: control target
= control target key end

     0   :  { %vm42_vm0 = vcmask 1045504   ;;  %v172_v0 = vmov 0.0   ;;  %vm173_vm1 = vmmov 0   ;;  %vm38_vm2 = vcmask 97280   ;;  %s232_s1 = inlined_call_operand.vmem [shape: bf16[1,12,64], index: 1, kind: input, shape index: {}]   ;;  %s233_s0 = inlined_call_operand.vmem [shape: f32[1,16,12], index: 0, kind: input, shape index: {}]   ;;  %s234_s2 = inlined_call_operand.vmem [shape: f32[1,1,64], index: 2, kind: input, shape index: {}]   ;;  %s235_s3 = inlined_call_operand.vmem [shape: f32[1,1,64], index: 3, kind: input, shape index: {}]   ;;  %s236_s4 = inlined_call_operand.vmem [shape: f32[1,1,64], index: 4, kind: input, shape index: {}]   ;;  %s237_s5 = inlined_call_operand.vmem [shape: bf16[1,16,64], index: 5, kind: output, shape index: {}]  }
   0x1   :  { %159 = vmatprep.subr.bf16.mxu0 %v172_v0  ;;  %v167_v1 = vld [vmem:[%s232_s1] sm:$0x3f]   ;;  %161 = vmatprep.mubr.msk.bf16.mxu0 %vm173_vm1, %v172_v0  ;;  %v22_v3 = vld [vmem:[%s233_s0 + $0x8] sm:$0xff]  ;;  %vm89_vm3 = vcmask 523264   ;;  %vm141_vm4 = vcmask 519168  }
   0x2   :  { %v21_v2 = vld [vmem:[%s233_s0] sm:$0xff]  ;;  %v44_v4 = vsel %vm42_vm0, %v167_v1, 0 }
   0x3   :  { %v23_v5 = vpack.c.bf16 %v22_v3, %v21_v2  ;;  %160 = vmatpush3.bf16.msra.mxu0 %v44_v4  ;;  %v148_v6 = vld [vmem:[%s234_s2] ss:$0 sm:$0xff] }
   0x4   :  { %v151_v32 = vld [vmem:[%s235_s3] ss:$0 sm:$0xff] }
   0x5   :  { %v152_v34 = vld [vmem:[%s236_s4] ss:$0 sm:$0xff] }
   0x6   :  { %162 = vmatmul.mubr.msk.bf16.vlgmr.msra.gmra.mrb[0].mxu0 %vm38_vm2, %v23_v5 }
  0xd9   :  { %v80_v7 = vpop.f32.mrb[0].mxu0 }
  0xda   :  { %v81_v8 = vadd.f32 %v148_v6, %v80_v7  ;;  %v163_v9 = vpop.f32.mrb[1].mxu0 }
  0xdb   :  { %v83_v10 = vpop.f32.mrb[2].mxu0 }
  0xdc   :  { %v84_v11 = vadd.f32 %v148_v6, %v83_v10  ;;  %v164_v12 = vpop.f32.mrb[3].mxu0  ;;  %v90_v13 = vsel %vm89_vm3, %v81_v8, 0.0 }
  0xdd   :  { %91 = vadd.xlane.f32.xlu0 %v90_v13 }
  0xde   :  { %v93_v14 = vsel %vm89_vm3, %v84_v11, 0.0 }
  0xe1   :  { %94 = vadd.xlane.f32.xlu0 %v93_v14 }
 0x16a   :  { %v92_v15 = vpop.xlane.xlu0 %91 }
 0x16b   :  { %v97_v16 = vmul.f32 0.015625, %v92_v15 }
 0x16d   :  { %v99_v17 = vsub.f32 %v81_v8, %v97_v16 }
 0x16e   :  { %v95_v18 = vpop.xlane.xlu0 %94 }
 0x16f   :  { %v98_v19 = vmul.f32 0.015625, %v95_v18  ;;  %v101_v20 = vmul.f32 %v99_v17, %v99_v17 }
 0x171   :  { %v100_v21 = vsub.f32 %v84_v11, %v98_v19  ;;  %v103_v22 = vsel %vm89_vm3, %v101_v20, 0.0 }
 0x172   :  { %104 = vadd.xlane.f32.xlu1 %v103_v22 }
 0x173   :  { %v102_v23 = vmul.f32 %v100_v21, %v100_v21 }
 0x175   :  { %v106_v24 = vsel %vm89_vm3, %v102_v23, 0.0 }
 0x176   :  { %107 = vadd.xlane.f32.xlu1 %v106_v24 }
 0x1ff   :  { %v105_v25 = vpop.xlane.xlu1 %104 }
 0x200   :  { %v109_v26 = vmul.f32 0.015625, %v105_v25 }
 0x202   :  { %v111_v27 = vadd.f32 1e-05, %v109_v26 }
 0x203   :  { %v108_v28 = vpop.xlane.xlu1 %107 }
 0x204   :  { %168 = vrsqrt.f32 %v111_v27  ;;  %v110_v29 = vmul.f32 0.015625, %v108_v28 }
 0x206   :  { %v112_v30 = vadd.f32 1e-05, %v110_v29 }
 0x208   :  { %170 = vrsqrt.f32 %v112_v30 }
 0x20e   :  { %v169_v31 = vpop.eup %168 }
 0x20f   :  { %v115_v33 = vmul.f32 %v169_v31, %v99_v17 }
 0x211   :  { %v123_v35 = vmul.f32 %v151_v32, %v115_v33 }
 0x212   :  { %v171_v36 = vpop.eup %170 }
 0x213   :  { %v131_v37 = vadd.f32 %v152_v34, %v123_v35  ;;  %v116_v38 = vmul.f32 %v171_v36, %v100_v21 }
 0x215   :  { %v155_v39 = vpack.c.bf16 %v131_v37, %v131_v37  ;;  %v124_v40 = vmul.f32 %v151_v32, %v116_v38 }
 0x217   :  { %142 = vst.msk [vmem:[%s237_s5] sm:$0xf] %vm141_vm4, %v155_v39  ;;  %v132_v41 = vadd.f32 %v152_v34, %v124_v40 }
 0x219   :  { %v156_v42 = vpack.c.bf16 %v132_v41, %v132_v41 }
 0x21b   :  { %143 = vst.msk [vmem:[%s237_s5 + $0x4] sm:$0xf] %vm141_vm4, %v156_v42 }

// kernel: mmer_forward.70
= control target key start
LH: loop header
LB: loop body
LE: loop exit
PB: predicated region body
PF: predicated region fallthrough
CT: control target
= control target key end

     0   :  { %s687_s12 = smov 0   ;;  %s689_s13 = smov 0   ;;  %s732_s0 = inlined_call_operand.vmem [shape: bf16[3,16,64], index: 0, kind: input, shape index: {}]   ;;  %s733_s1 = inlined_call_operand.vmem [shape: bf16[3,64,192], index: 1, kind: input, shape index: {}]   ;;  %s734_s2 = inlined_call_operand.vmem [shape: f32[3,1,192], index: 2, kind: input, shape index: {}]   ;;  %s735_s3 = inlined_call_operand.vmem [shape: bf16[3,16,192], index: 3, kind: output, shape index: {}]  }
   0x1   :  { %s691_s14 = smov 0  }
   0x2 LB: > { %s32_s15 = sadd.s32 1, %s660_s13  ;;  %p577_p0 = scmp.ge.s32.totalorder %s664_s14, 1  ;;  %s664_s14 = sphi %s691_s14, %s13_s14   ;;  %s660_s13 = sphi %s689_s13, %s737_s13   ;;  %s656_s12 = sphi %s687_s12, %s736_s12  }
   0x3   : > { %p34_p1 = scmp.ge.s32.totalorder %s32_s15, 3  ;;  %p200_p2 = scmp.lt.s32.totalorder %s664_s14, 4 }
   0x5   : > { %s739_s15 = smov (%p34_p1, %s32_s15), 0  ;;  %p201_p3 = pnand %p577_p0, %p200_p2 }
   0x6   : > { %p255_p4 = scmp.lt.s32.totalorder (!%p201_p3), %s656_s12, 2  ;;  %v666_v0 = vmov (!%p201_p3), 0   ;;  %vm367_vm0 = vcmask (!%p201_p3), 523264   ;;  %v312_v10 = vlaneseq (!%p201_p3)  ;;  %vm426_vm1 = vcmask (!%p201_p3), 1043456  }
   0x7   : > { %204 = sbr.rel (%p201_p3) target bundleno = 254 (0xfe), region = 32  ;;  %403 = vmatprep.mubr.bf16.mxu0 (!%p201_p3), %v666_v0  ;;  %vm427_vm2 = vcmask (!%p201_p3), 523268  }
   0x8   : > { %v313_v11 = vshrl.u32 (!%p201_p3), %v312_v10, 7  ;;  %vm428_vm3 = vmor (!%p201_p3), %vm427_vm2, %vm426_vm1 }
   0xa   : > { %v314_v12 = vsub.s32 (!%p201_p3), 0, %v313_v11  ;;  %v318_v14 = vsub.s32 (!%p201_p3), 1, %v313_v11 }
   0xe   : > { %s741_s12 = smov (!%p255_p4, %s656_s12), 2 }
   0xf   : > { %s600_s16 = sshll.u32 %s741_s12, 6  ;;  %s599_s20 = sshll.u32 %s741_s12, 3 }
  0x10   : > { %s272_s19 = scalar_lea.vmem %s733_s1, %s600_s16  ;;  %s262_s23 = scalar_lea.vmem %s732_s0, %s599_s20 }
  0x11   : > { %v629_v1 = vld [vmem:[%s272_s19 + $0x4] ss:$8 sps:$4 sm:$0xff]   ;;  %v631_v2 = vld [vmem:[%s272_s19] ss:$8 sps:$4 sm:$0xff]   ;;  %v632_v3 = vld [vmem:[%s272_s19 + $0x14] ss:$8 sps:$4 sm:$0xff]  }
  0x12   : > { %371 = vmatprep.subr.bf16.mxu0 %v629_v1  ;;  %v634_v4 = vld [vmem:[%s272_s19 + $0x10] ss:$8 sps:$4 sm:$0xff]   ;;  %v635_v5 = vld [vmem:[%s272_s19 + $0x24] ss:$8 sps:$4 sm:$0xff]   ;;  %v637_v6 = vld [vmem:[%s272_s19 + $0x20] ss:$8 sps:$4 sm:$0xff]  }
  0x13   : > { %372 = vmatpush1.bf16.msra.mxu0 %v631_v2  ;;  %v638_v7 = vld [vmem:[%s272_s19 + $0x34] ss:$8 sps:$4 sm:$0xff]   ;;  %v640_v8 = vld [vmem:[%s272_s19 + $0x30] ss:$8 sps:$4 sm:$0xff]   ;;  %v641_v9 = vld [vmem:[%s262_s23] sm:$0xff]   ;;  %s582_s24 = sshll.u32 %s741_s12, 1 }
  0x14   : > { %373 = vmatprep.subr.bf16.mxu0 %v632_v3  ;;  %s281_s27 = scalar_lea.vmem %s734_s2, %s582_s24  ;;  %s601_s28 = sshll.u32 %s741_s12, 4 }
  0x15   : > { %v310_v13 = vld [vmem:[%s281_s27] sm:$0x3]  ;;  %s296_s4 = scalar_lea.vmem %s735_s3, %s601_s28 }
  0x16   : > { %v315_v15 = vrot.slane %v310_v13, %v314_v12  ;;  %v319_v16 = vrot.slane %v310_v13, %v318_v14 }
  0x17   : > { %374 = vmatpush1.bf16.msra.mxu0 %v634_v4 }
  0x18   : > { %375 = vmatprep.subr.bf16.mxu0 %v635_v5 }
  0x1b   : > { %376 = vmatpush1.bf16.msra.mxu0 %v637_v6 }
  0x1c   : > { %377 = vmatprep.subr.bf16.mxu0 %v638_v7 }
  0x1f   : > { %378 = vmatpush1.bf16.msra.mxu0 %v640_v8 }
  0x22   : > { %594 = vmatmul.mubr.msk.bf16.vlgmr.msra.gmra.mrb[0].mxu0 %vm367_vm0, %v641_v9 }
  0xf5   : > { %v405_v17 = vpop.f32.mrb[0].mxu0 }
  0xf6   : > { %v406_v18 = vadd.f32 %v405_v17, %v315_v15  ;;  %v407_v19 = vpop.f32.mrb[1].mxu0 }
  0xf7   : > { %v408_v20 = vadd.f32 %v407_v19, %v319_v16  ;;  %v409_v21 = vpop.f32.mrb[2].mxu0 }
  0xf8   : > { %v410_v22 = vadd.f32 %v409_v21, %v315_v15  ;;  %v411_v23 = vpop.f32.mrb[3].mxu0 }
  0xf9   : > { %v602_v24 = vpack.c.bf16 %v408_v20, %v406_v18  ;;  %v412_v25 = vadd.f32 %v411_v23, %v319_v16 }
  0xfb   : > { %429 = vst.msk [vmem:[%s296_s4] sm:$0xff] %vm428_vm3, %v602_v24  ;;  %v603_v26 = vpack.c.bf16 %v412_v25, %v410_v22 }
  0xfd   : > { %430 = vst.msk [vmem:[%s296_s4 + $0x8] sm:$0xff] %vm428_vm3, %v603_v26 }
  0xfe PF: > { %s13_s14 = sadd.s32 1, %s664_s14   ;;  %s736_s12 = smov %s660_s13 }
  0xff   : > { %p10_p5 = scmp.ge.s32.totalorder %s13_s14, 5   ;;  %s737_s13 = smov %s739_s15 }
 0x101   :  { %12 = sbr.rel (!%p10_p5) target bundleno = 2 (0x2), region = 68 }

// kernel: mmer_forward.71
= control target key start
LH: loop header
LB: loop body
LE: loop exit
PB: predicated region body
PF: predicated region fallthrough
CT: control target
= control target key end

     0   :  { %s1347_s6 = smov 0   ;;  %s1541_s0 = inlined_call_operand.vmem [shape: bf16[6,8,192], index: 0, kind: input, shape index: {}]   ;;  %s1542_s1 = inlined_call_operand.vmem [shape: bf16[6,8,64], index: 1, kind: output, shape index: {}]  }
   0x1 LB: > { %s1190_s7 = sadd.s32 4294967295, %s1323_s6   ;;  %p1194_p0 = scmp.ge.s32.totalorder %s1323_s6, 1  ;;  %s1323_s6 = sphi %s1347_s6, %s11_s6  }
   0x2   : > { %p87_p1 = scmp.lt.s32.totalorder %s1323_s6, 7 }
   0x4   : > { %p88_p2 = pnand %p1194_p0, %p87_p1 }
   0x5   : > { %p106_p3 = scmp.lt.s32.totalorder (!%p88_p2), %s1190_s7, 5  ;;  %s1325_s12 = smov (!%p88_p2), 112   ;;  %v1329_v1 = vmov (!%p88_p2), 1983009808   ;;  %v140_v3 = vlaneseq (!%p88_p2)  ;;  %v1330_v6 = vmov (!%p88_p2), 1934713408  }
   0x6   : > { %91 = sbr.rel (%p88_p2) target bundleno = 1170 (0x492), region = 24  ;;  %s1326_s13 = smov (!%p88_p2), 80   ;;  %v138_v2 = vunpack.c.l.s4 (!%p88_p2), %v1329_v1  ;;  %v155_v7 = vunpack.c.l.s4 (!%p88_p2), %v1330_v6  ;;  %v1331_v28 = vmov (!%p88_p2), 0.0   ;;  %vm1332_vm0 = vmmov (!%p88_p2), 0  }
   0x7   : > { %s1327_s14 = smov (!%p88_p2), 96   ;;  %s1328_s15 = smov (!%p88_p2), 64   ;;  %v141_v5 = vshrl.u32 (!%p88_p2), %v140_v3, 7  ;;  %1233 = vmatprep.subr.bf16.mxu0 (!%p88_p2), %v1331_v28  ;;  %1239 = vmatprep.subr.bf16.mxu1 (!%p88_p2), %v1331_v28  ;;  %vm799_vm1 = vcmask (!%p88_p2), 1043456   ;;  %vm562_vm2 = vcmask (!%p88_p2), 130048   ;;  %vm747_vm3 = vcmask (!%p88_p2), 64512  }
   0x8   : > { %v139_v4 = vunpack.c.0.s8 (!%p88_p2), %v138_v2  ;;  %v156_v17 = vunpack.c.0.s8 (!%p88_p2), %v155_v7  ;;  %1235 = vmatprep.mubr.msk.bf16.mxu0 (!%p88_p2), %vm1332_vm0, %v1331_v28  ;;  %1241 = vmatprep.mubr.msk.bf16.mxu1 (!%p88_p2), %vm1332_vm0, %v1331_v28  ;;  %s1334_s16 = smov (!%p88_p2), 32   ;;  %s1335_s17 = smov (!%p88_p2), 16   ;;  %vm1130_vm4 = vcmask (!%p88_p2), 261120   ;;  %vm1132_vm5 = vcmask (!%p88_p2), 392192  }
   0x9   : > { %s1336_s18 = smov (!%p88_p2), 48   ;;  %vm1135_vm6 = vcmask (!%p88_p2), 519168  }
   0xa   : > { %v1363_v15 = vsub.s32 (!%p88_p2), %v139_v4, %v141_v5  ;;  %v1369_v30 = vsub.s32 (!%p88_p2), %v156_v17, %v141_v5 }
   0xd   : > { %s1544_s7 = smov (!%p106_p3, %s1190_s7), 5 }
   0xe   : > { %s1216_s8 = sshll.u32 %s1544_s7, 3  ;;  %s1197_s19 = sshll.u32 %s1544_s7, 2 }
   0xf   : > { %s110_s11 = scalar_lea.vmem %s1541_s0, %s1216_s8  ;;  %s114_s22 = scalar_lea.vmem %s1542_s1, %s1197_s19 }
  0x10   : > { %v116_v0 = vld [vmem:[%s110_s11] sm:$0xff] }
  0x11   : > { %118 = vrot.lane.b32.xlu0 %v116_v0, %s1325_s12  ;;  %122 = vrot.lane.b32.xlu1 %v116_v0, %s1326_s13  ;;  %v127_v10 = vshrl.u32 %v116_v0, 16  ;;  %v416_v12 = vrot.slane %v116_v0, 4 }
  0x13   : > { %v423_v21 = vshrl.u32 %v416_v12, 16 }
  0x15   : > { %120 = vrot.lane.b32.xlu0 %v116_v0, %s1327_s14  ;;  %266 = vrot.lane.b32.xlu1 %v116_v0, %s1328_s15 }
  0x83   : > { %v119_v8 = vpop.permute.xlu0 %118  ;;  %v123_v9 = vpop.permute.xlu1 %122 }
  0x84   : > { %v128_v11 = vshrl.u32 %v119_v8, 16  ;;  %v417_v13 = vrot.slane %v119_v8, 4  ;;  %268 = vrot.lane.b32.xlu0 %v119_v8, %s1328_s15  ;;  %v419_v14 = vrot.slane %v123_v9, 4  ;;  %v126_v16 = vpack.i.b16 %v119_v8, %v116_v0 }
  0x85   : > { %v134_v18 = vshrl.u32 %v123_v9, 16 }
  0x86   : > { %v129_v20 = vpack.i.b16 %v128_v11, %v127_v10  ;;  %v424_v22 = vshrl.u32 %v417_v13, 16  ;;  %v422_v24 = vpack.i.b16 %v417_v13, %v416_v12  ;;  %v430_v25 = vshrl.u32 %v419_v14, 16 }
  0x87   : > { %v121_v19 = vpop.permute.xlu0 %120  ;;  %v143_v29 = vrot.slane %v126_v16, %v1363_v15  ;;  %v1333_v12 = vmov 0  }
  0x88   : > { %v132_v23 = vpack.i.b16 %v123_v9, %v121_v19  ;;  %272 = vrot.lane.b32.xlu0 %v123_v9, %s1328_s15  ;;  %v133_v26 = vshrl.u32 %v121_v19, 16  ;;  %v418_v27 = vrot.slane %v121_v19, 4  ;;  %270 = vrot.lane.b32.xlu1 %v121_v19, %s1328_s15  ;;  %v177_v35 = vrot.slane %v129_v20, %v1363_v15 }
  0x89   : > { %v425_v36 = vpack.i.b16 %v424_v22, %v423_v21  ;;  %v439_v39 = vrot.slane %v422_v24, %v1363_v15 }
  0x8a   : > { %v151_v31 = vrot.slane %v132_v23, %v1363_v15  ;;  %v135_v32 = vpack.i.b16 %v134_v18, %v133_v26  ;;  %v428_v33 = vpack.i.b16 %v419_v14, %v418_v27  ;;  %v429_v34 = vshrl.u32 %v418_v27, 16 }
  0x8b   : > { %v473_v49 = vrot.slane %v425_v36, %v1363_v15 }
  0x8c   : > { %v152_v37 = vcombine.low %v143_v29, %v151_v31  ;;  %v153_v38 = vcombine.high %v143_v29, %v151_v31  ;;  %v185_v40 = vrot.slane %v135_v32, %v1363_v15  ;;  %v431_v41 = vpack.i.b16 %v430_v25, %v429_v34 }
  0x8d   : > { %v447_v42 = vrot.slane %v428_v33, %v1363_v15 }
  0x8e   : > { %v160_v43 = vrot.slane %v152_v37, %v1369_v30  ;;  %v167_v44 = vrot.slane %v153_v38, %v1369_v30  ;;  %v186_v45 = vcombine.low %v177_v35, %v185_v40  ;;  %v187_v46 = vcombine.high %v177_v35, %v185_v40 }
  0x8f   : > { %v448_v47 = vcombine.low %v439_v39, %v447_v42  ;;  %v449_v48 = vcombine.high %v439_v39, %v447_v42  ;;  %v481_v52 = vrot.slane %v431_v41, %v1363_v15 }
  0x90   : > { %v204_v50 = vcombine.low %v160_v43, %v167_v44  ;;  %v1198_v51 = vcombine.high %v160_v43, %v167_v44  ;;  %v194_v53 = vrot.slane %v186_v45, %v1369_v30  ;;  %v201_v54 = vrot.slane %v187_v46, %v1369_v30  ;;  %v267_v45 = vpop.permute.xlu1 %266 }
  0x91   : > { %v456_v55 = vrot.slane %v448_v47, %v1369_v30  ;;  %v463_v56 = vrot.slane %v449_v48, %v1369_v30  ;;  %v482_v59 = vcombine.low %v473_v49, %v481_v52  ;;  %v483_v60 = vcombine.high %v473_v49, %v481_v52 }
  0x92   : > { %v211_v57 = vrot.slane %v204_v50, %v1363_v15  ;;  %v219_v58 = vrot.slane %v1198_v51, %v1363_v15  ;;  %v229_v61 = vcombine.low %v194_v53, %v201_v54  ;;  %v1199_v62 = vcombine.high %v194_v53, %v201_v54 }
  0x93   : > { %v500_v63 = vcombine.low %v456_v55, %v463_v56  ;;  %v1202_v0 = vcombine.high %v456_v55, %v463_v56  ;;  %v490_v1 = vrot.slane %v482_v59, %v1369_v30  ;;  %v497_v2 = vrot.slane %v483_v60, %v1369_v30 }
  0x94   : > { %v220_v3 = vcombine.low %v211_v57, %v219_v58  ;;  %v236_v4 = vrot.slane %v229_v61, %v1363_v15  ;;  %v244_v5 = vrot.slane %v1199_v62, %v1363_v15  ;;  %v277_v47 = vshrl.u32 %v267_v45, 16 }
  0x95   : > { %v507_v6 = vrot.slane %v500_v63, %v1363_v15  ;;  %v515_v8 = vrot.slane %v1202_v0, %v1363_v15  ;;  %v525_v9 = vcombine.low %v490_v1, %v497_v2  ;;  %v1203_v10 = vcombine.high %v490_v1, %v497_v2 }
  0x96   : > { %v1397_v7 = vrot.slane %v220_v3, %v1369_v30  ;;  %v245_v11 = vcombine.low %v236_v4, %v244_v5 }
  0x97   : > { %v516_v14 = vcombine.low %v507_v6, %v515_v8  ;;  %v532_v16 = vrot.slane %v525_v9, %v1363_v15  ;;  %v540_v18 = vrot.slane %v1203_v10, %v1363_v15 }
  0x98   : > { %v1402_v13 = vcombine.high %v1397_v7, %v1333_v12  ;;  %v1406_v17 = vrot.slane %v245_v11, %v1369_v30  ;;  %v257_v19 = vshrl.u32 %v1397_v7, 16 }
  0x99   : > { %v1411_v20 = vrot.slane %v516_v14, %v1369_v30  ;;  %v541_v24 = vcombine.low %v532_v16, %v540_v18 }
  0x9a   : > { %v256_v21 = vpack.i.b16 %v1406_v17, %v1397_v7  ;;  %v258_v22 = vshrl.u32 %v1406_v17, 16  ;;  %v1418_v23 = vcombine.high %v1406_v17, %v1333_v12  ;;  %v263_v25 = vshrl.u32 %v1402_v13, 16 }
  0x9b   : > { %v524_v26 = vcombine.high %v1411_v20, %v1333_v12  ;;  %v1428_v31 = vrot.slane %v541_v24, %v1369_v30  ;;  %v553_v33 = vshrl.u32 %v1411_v20, 16 }
  0x9c   : > { %v1423_v27 = vpack.i.b16 %v258_v22, %v257_v19  ;;  %v262_v29 = vpack.i.b16 %v1418_v23, %v1402_v13  ;;  %v264_v32 = vshrl.u32 %v1418_v23, 16 }
  0x9d   : > { %v552_v34 = vpack.i.b16 %v1428_v31, %v1411_v20  ;;  %v554_v36 = vshrl.u32 %v1428_v31, 16  ;;  %v549_v37 = vcombine.high %v1428_v31, %v1333_v12  ;;  %v559_v40 = vshrl.u32 %v524_v26, 16 }
  0x9e   : > { %v1434_v35 = vpack.i.b16 %v264_v32, %v263_v25 }
  0x9f   : > { %v1439_v38 = vpack.i.b16 %v554_v36, %v553_v33  ;;  %v558_v39 = vpack.i.b16 %v549_v37, %v524_v26  ;;  %v560_v41 = vshrl.u32 %v549_v37, 16  ;;  %v801_v7 = vsel %vm799_vm1, %v552_v34, 0 }
  0xa1   : > { %v1442_v42 = vsel %vm799_vm1, %v558_v39, 0  ;;  %v561_v43 = vpack.i.b16 %v560_v41, %v559_v40  ;;  %v847_v17 = vsel %vm799_vm1, %v1439_v38, 0 }
  0xa3   : > { %v1445_v44 = vsel %vm799_vm1, %v561_v43, 0 }
  0xf6   : > { %v269_v46 = vpop.permute.xlu0 %268 }
  0xf7   : > { %v278_v48 = vshrl.u32 %v269_v46, 16  ;;  %v276_v49 = vpack.i.b16 %v269_v46, %v267_v45 }
  0xf9   : > { %v279_v53 = vpack.i.b16 %v278_v48, %v277_v47  ;;  %v293_v56 = vrot.slane %v276_v49, %v1363_v15 }
  0xfa   : > { %v273_v50 = vpop.permute.xlu0 %272  ;;  %v271_v51 = vpop.permute.xlu1 %270 }
  0xfb   : > { %v284_v52 = vshrl.u32 %v273_v50, 16  ;;  %v283_v54 = vshrl.u32 %v271_v51, 16  ;;  %v282_v55 = vpack.i.b16 %v273_v50, %v271_v51  ;;  %v327_v59 = vrot.slane %v279_v53, %v1363_v15 }
  0xfd   : > { %v285_v57 = vpack.i.b16 %v284_v52, %v283_v54  ;;  %v301_v58 = vrot.slane %v282_v55, %v1363_v15 }
  0xff   : > { %v302_v60 = vcombine.low %v293_v56, %v301_v58  ;;  %v303_v61 = vcombine.high %v293_v56, %v301_v58  ;;  %v335_v62 = vrot.slane %v285_v57, %v1363_v15 }
 0x101   : > { %v310_v63 = vrot.slane %v302_v60, %v1369_v30  ;;  %v317_v0 = vrot.slane %v303_v61, %v1369_v30  ;;  %v336_v1 = vcombine.low %v327_v59, %v335_v62  ;;  %v337_v2 = vcombine.high %v327_v59, %v335_v62 }
 0x103   : > { %v344_v3 = vrot.slane %v336_v1, %v1369_v30  ;;  %v351_v4 = vrot.slane %v337_v2, %v1369_v30  ;;  %v354_v5 = vcombine.low %v310_v63, %v317_v0  ;;  %v1200_v6 = vcombine.high %v310_v63, %v317_v0 }
 0x105   : > { %v379_v8 = vcombine.low %v344_v3, %v351_v4  ;;  %v1201_v9 = vcombine.high %v344_v3, %v351_v4  ;;  %v361_v10 = vrot.slane %v354_v5, %v1363_v15  ;;  %v369_v11 = vrot.slane %v1200_v6, %v1363_v15 }
 0x107   : > { %v370_v14 = vcombine.low %v361_v10, %v369_v11  ;;  %v386_v16 = vrot.slane %v379_v8, %v1363_v15  ;;  %v394_v18 = vrot.slane %v1201_v9, %v1363_v15 }
 0x109   : > { %v377_v19 = vrot.slane %v370_v14, %v1369_v30  ;;  %v395_v22 = vcombine.low %v386_v16, %v394_v18 }
 0x10b   : > { %v402_v24 = vrot.slane %v395_v22, %v1369_v30  ;;  %v407_v26 = vshrl.u32 %v377_v19, 16  ;;  %v378_v39 = vcombine.high %v377_v19, %v1333_v12 }
 0x10d   : > { %v406_v25 = vpack.i.b16 %v402_v24, %v377_v19  ;;  %v408_v32 = vshrl.u32 %v402_v24, 16  ;;  %v403_v33 = vcombine.high %v402_v24, %v1333_v12  ;;  %v413_v45 = vshrl.u32 %v378_v39, 16 }
 0x10f   : > { %v567_v36 = vsel %vm562_vm2, %v406_v25, 0  ;;  %v409_v37 = vpack.i.b16 %v408_v32, %v407_v26  ;;  %v414_v41 = vshrl.u32 %v403_v33, 16  ;;  %v412_v43 = vpack.i.b16 %v403_v33, %v378_v39 }
 0x110   : > { %1234 = vmatpush3.bf16.xpose.msra.mxu0 %v567_v36 }
 0x111   : > { %v613_v40 = vsel %vm562_vm2, %v409_v37, 0  ;;  %1245 = vmatprep.subr.bf16.mxu0 %v1331_v28  ;;  %v415_v46 = vpack.i.b16 %v414_v41, %v413_v45  ;;  %v659_v47 = vsel %vm562_vm2, %v412_v43, 0 }
 0x112   : > { %1240 = vmatpush3.bf16.xpose.msra.mxu1 %v613_v40 }
 0x113   : > { %1251 = vmatprep.subr.bf16.mxu1 %v1331_v28  ;;  %v705_v12 = vsel %vm562_vm2, %v415_v46, 0 }
 0x117   : > { %1236 = vmatmul.mubr.msk.bf16.vlgmr.msra.gmra.mrb[0].mxu0 %vm562_vm2, %v256_v21 }
 0x118   : > { %1246 = vmatpush3.bf16.xpose.msra.mxu0 %v659_v47  ;;  %1247 = vmatprep.mubr.msk.bf16.mxu0 %vm1332_vm0, %v1331_v28 }
 0x119   : > { %1242 = vmatmul.mubr.msk.bf16.vlgmr.msra.gmra.mrb[0].mxu1 %vm562_vm2, %v1423_v27  ;;  %1257 = vmatprep.subr.bf16.mxu0 %v1331_v28 }
 0x11a   : > { %1252 = vmatpush3.bf16.xpose.msra.mxu1 %v705_v12  ;;  %1253 = vmatprep.mubr.msk.bf16.mxu1 %vm1332_vm0, %v1331_v28 }
 0x11b   : > { %1263 = vmatprep.subr.bf16.mxu1 %v1331_v28 }
 0x11f   : > { %1248 = vmatmul.mubr.msk.bf16.vlgmr.msra.gmra.mrb[4].mxu0 %vm562_vm2, %v262_v29 }
 0x120   : > { %1258 = vmatpush3.bf16.msra.mxu0 %v801_v7  ;;  %1259 = vmatprep.mubr.msk.bf16.mxu0 %vm1332_vm0, %v1331_v28 }
 0x121   : > { %1254 = vmatmul.mubr.msk.bf16.vlgmr.msra.gmra.mrb[4].mxu1 %vm562_vm2, %v1434_v35  ;;  %1269 = vmatprep.subr.bf16.mxu0 %v1331_v28 }
 0x122   : > { %1264 = vmatpush3.bf16.msra.mxu1 %v847_v17  ;;  %1265 = vmatprep.mubr.msk.bf16.mxu1 %vm1332_vm0, %v1331_v28 }
 0x123   : > { %1275 = vmatprep.subr.bf16.mxu1 %v1331_v28 }
 0x1ea   : > { %v603_v13 = vpop.f32.mrb[0].mxu0 }
 0x1eb   : > { %v1237_v20 = vpop.f32.mrb[1].mxu0  ;;  %v748_v21 = vsel %vm747_vm3, %v603_v13, -inf }
 0x1ec   : > { %v649_v23 = vpop.f32.mrb[0].mxu1  ;;  %749 = vmax.xlane.f32.xlu1 %v748_v21  ;;  %v606_v27 = vpop.f32.mrb[2].mxu0 }
 0x1ed   : > { %v1238_v29 = vpop.f32.mrb[3].mxu0  ;;  %v1243_v31 = vpop.f32.mrb[1].mxu1  ;;  %v751_v34 = vsel %vm747_vm3, %v649_v23, -inf }
 0x1ee   : > { %752 = vmax.xlane.f32.xlu0 %v751_v34  ;;  %v652_v35 = vpop.f32.mrb[2].mxu1 }
 0x1ef   : > { %v1244_v38 = vpop.f32.mrb[3].mxu1 }
 0x1f2   : > { %v695_v48 = vpop.f32.mrb[4].mxu0 }
 0x1f3   : > { %v1249_v49 = vpop.f32.mrb[5].mxu0  ;;  %v754_v50 = vsel %vm747_vm3, %v695_v48, -inf }
 0x1f4   : > { %v741_v51 = vpop.f32.mrb[4].mxu1  ;;  %755 = vmax.xlane.f32.xlu0 %v754_v50  ;;  %v698_v52 = vpop.f32.mrb[6].mxu0 }
 0x1f5   : > { %v1250_v53 = vpop.f32.mrb[7].mxu0  ;;  %v1255_v54 = vpop.f32.mrb[5].mxu1  ;;  %v757_v55 = vsel %vm747_vm3, %v741_v51, -inf }
 0x1f6   : > { %758 = vmax.xlane.f32.xlu1 %v757_v55  ;;  %v744_v56 = vpop.f32.mrb[6].mxu1 }
 0x1f7   : > { %v1256_v57 = vpop.f32.mrb[7].mxu1 }
 0x279   : > { %v750_v58 = vpop.xlane.xlu1 %749 }
 0x27a   : > { %v760_v59 = vsub.f32 %v603_v13, %v750_v58 }
 0x27b   : > { %v753_v60 = vpop.xlane.xlu0 %752 }
 0x27c   : > { %v764_v61 = vmul.f32 1.442695, %v760_v59  ;;  %v761_v62 = vsub.f32 %v649_v23, %v753_v60 }
 0x27e   : > { %1301 = vpow2.f32 %v764_v61  ;;  %v766_v63 = vmul.f32 1.442695, %v761_v62 }
 0x280   : > { %1303 = vpow2.f32 %v766_v63 }
 0x281   : > { %v756_v0 = vpop.xlane.xlu0 %755 }
 0x282   : > { %v762_v1 = vsub.f32 %v695_v48, %v756_v0 }
 0x283   : > { %v759_v2 = vpop.xlane.xlu1 %758 }
 0x284   : > { %v768_v3 = vmul.f32 1.442695, %v762_v1  ;;  %v763_v4 = vsub.f32 %v741_v51, %v759_v2 }
 0x286   : > { %1305 = vpow2.f32 %v768_v3  ;;  %v770_v5 = vmul.f32 1.442695, %v763_v4 }
 0x288   : > { %v1302_v6 = vpop.eup %1301  ;;  %1307 = vpow2.f32 %v770_v5 }
 0x289   : > { %v772_v8 = vsel %vm747_vm3, %v1302_v6, 0.0 }
 0x28a   : > { %v1304_v9 = vpop.eup %1303  ;;  %773 = vadd.xlane.f32.xlu0 %v772_v8 }
 0x28b   : > { %v775_v10 = vsel %vm747_vm3, %v1304_v9, 0.0 }
 0x28c   : > { %776 = vadd.xlane.f32.xlu1 %v775_v10 }
 0x290   : > { %v1306_v11 = vpop.eup %1305 }
 0x291   : > { %v778_v14 = vsel %vm747_vm3, %v1306_v11, 0.0 }
 0x292   : > { %v1308_v16 = vpop.eup %1307  ;;  %779 = vadd.xlane.f32.xlu0 %v778_v14 }
 0x293   : > { %v781_v18 = vsel %vm747_vm3, %v1308_v16, 0.0 }
 0x294   : > { %782 = vadd.xlane.f32.xlu1 %v781_v18 }
 0x317   : > { %v774_v19 = vpop.xlane.xlu0 %773 }
 0x318   : > { %1309 = vrcp.f32 %v774_v19 }
 0x319   : > { %v777_v22 = vpop.xlane.xlu1 %776 }
 0x31a   : > { %1311 = vrcp.f32 %v777_v22 }
 0x31f   : > { %v780_v24 = vpop.xlane.xlu0 %779 }
 0x320   : > { %1313 = vrcp.f32 %v780_v24 }
 0x321   : > { %v783_v25 = vpop.xlane.xlu1 %782 }
 0x322   : > { %v1310_v26 = vpop.eup %1309  ;;  %1315 = vrcp.f32 %v783_v25 }
 0x323   : > { %v788_v32 = vmul.f32 %v1310_v26, %v1302_v6 }
 0x324   : > { %v1312_v33 = vpop.eup %1311 }
 0x325   : > { %v789_v36 = vmul.f32 %v1312_v33, %v1304_v9  ;;  %v792_v37 = vpack.c.bf16 %v788_v32, %v788_v32 }
 0x327   : > { %1260 = vmatmul.mubr.msk.bf16.vlgmr.msra.gmra.mrb[8].mxu0 %vm747_vm3, %v792_v37  ;;  %v793_v39 = vpack.c.bf16 %v789_v36, %v789_v36 }
 0x328   : > { %1270 = vmatpush3.bf16.msra.mxu0 %v1442_v42  ;;  %1271 = vmatprep.mubr.msk.bf16.mxu0 %vm1332_vm0, %v1331_v28 }
 0x329   : > { %1266 = vmatmul.mubr.msk.bf16.vlgmr.msra.gmra.mrb[8].mxu1 %vm747_vm3, %v793_v39 }
 0x32a   : > { %v1314_v40 = vpop.eup %1313  ;;  %1276 = vmatpush3.bf16.msra.mxu1 %v1445_v44  ;;  %1277 = vmatprep.mubr.msk.bf16.mxu1 %vm1332_vm0, %v1331_v28 }
 0x32b   : > { %v790_v41 = vmul.f32 %v1314_v40, %v1306_v11 }
 0x32c   : > { %v1316_v43 = vpop.eup %1315 }
 0x32d   : > { %v791_v45 = vmul.f32 %v1316_v43, %v1308_v16  ;;  %v794_v46 = vpack.c.bf16 %v790_v41, %v790_v41 }
 0x32f   : > { %1272 = vmatmul.mubr.msk.bf16.vlgmr.msra.gmra.mrb[12].mxu0 %vm747_vm3, %v794_v46  ;;  %v795_v47 = vpack.c.bf16 %v791_v45, %v791_v45 }
 0x331   : > { %1278 = vmatmul.mubr.msk.bf16.vlgmr.msra.gmra.mrb[12].mxu1 %vm747_vm3, %v795_v47 }
 0x3fa   : > { %v837_v42 = vpop.f32.mrb[8].mxu0 }
 0x3fb   : > { %v1261_v12 = vpop.f32.mrb[9].mxu0 }
 0x3fc   : > { %v840_v7 = vpop.f32.mrb[10].mxu0  ;;  %v883_v17 = vpop.f32.mrb[8].mxu1 }
 0x3fd   : > { %v1262_v13 = vpop.f32.mrb[11].mxu0  ;;  %v1267_v20 = vpop.f32.mrb[9].mxu1 }
 0x3fe   : > { %v886_v21 = vpop.f32.mrb[10].mxu1 }
 0x3ff   : > { %v1268_v44 = vpop.f32.mrb[11].mxu1 }
 0x402   : > { %v929_v23 = vpop.f32.mrb[12].mxu0 }
 0x403   : > { %v981_v27 = vcombine.low %v837_v42, %v929_v23  ;;  %v982_v28 = vcombine.high %v837_v42, %v929_v23  ;;  %v1273_v29 = vpop.f32.mrb[13].mxu0 }
 0x404   : > { %v932_v31 = vpop.f32.mrb[14].mxu0  ;;  %v975_v34 = vpop.f32.mrb[12].mxu1 }
 0x405   : > { %v997_v35 = vcombine.low %v883_v17, %v975_v34  ;;  %v998_v38 = vcombine.high %v883_v17, %v975_v34  ;;  %v1274_v48 = vpop.f32.mrb[15].mxu0  ;;  %v1279_v49 = vpop.f32.mrb[13].mxu1  ;;  %v989_v51 = vrot.slane %v981_v27, %v1363_v15  ;;  %v996_v52 = vrot.slane %v982_v28, %v1363_v15 }
 0x406   : > { %v978_v50 = vpop.f32.mrb[14].mxu1 }
 0x407   : > { %v1005_v53 = vrot.slane %v997_v35, %v1363_v15  ;;  %v1012_v54 = vrot.slane %v998_v38, %v1363_v15  ;;  %v1280_v55 = vpop.f32.mrb[15].mxu1 }
 0x409   : > { %v1013_v56 = vcombine.low %v989_v51, %v1005_v53  ;;  %v1014_v57 = vcombine.high %v989_v51, %v1005_v53  ;;  %v1029_v58 = vcombine.low %v996_v52, %v1012_v54  ;;  %v1030_v59 = vcombine.high %v996_v52, %v1012_v54 }
 0x40b   : > { %v1021_v60 = vrot.slane %v1013_v56, %v1369_v30  ;;  %v1028_v61 = vrot.slane %v1014_v57, %v1369_v30  ;;  %v1037_v62 = vrot.slane %v1029_v58, %v1369_v30  ;;  %v1044_v63 = vrot.slane %v1030_v59, %v1369_v30 }
 0x40d   : > { %v1049_v0 = vcombine.low %v1021_v60, %v1028_v61  ;;  %v1212_v1 = vcombine.high %v1021_v60, %v1028_v61  ;;  %v1065_v2 = vcombine.low %v1037_v62, %v1044_v63  ;;  %v1213_v3 = vcombine.high %v1037_v62, %v1044_v63 }
 0x40f   : > { %v1056_v4 = vrot.slane %v1049_v0, %v1363_v15  ;;  %v1064_v5 = vrot.slane %v1212_v1, %v1363_v15  ;;  %v1072_v6 = vrot.slane %v1065_v2, %v1363_v15  ;;  %v1080_v8 = vrot.slane %v1213_v3, %v1363_v15 }
 0x411   : > { %v1082_v9 = vcombine.high %v1056_v4, %v1064_v5  ;;  %v1098_v10 = vcombine.high %v1072_v6, %v1080_v8  ;;  %v1081_v11 = vcombine.low %v1056_v4, %v1064_v5  ;;  %v1097_v14 = vcombine.low %v1072_v6, %v1080_v8 }
 0x413   : > { %v1096_v16 = vrot.slane %v1082_v9, %v1369_v30  ;;  %v1112_v18 = vrot.slane %v1098_v10, %v1369_v30  ;;  %v1089_v19 = vrot.slane %v1081_v11, %v1369_v30  ;;  %v1105_v22 = vrot.slane %v1097_v14, %v1369_v30 }
 0x415   : > { %v1115_v24 = vcombine.low %v1096_v16, %v1112_v18  ;;  %v1114_v25 = vcombine.high %v1089_v19, %v1105_v22  ;;  %v1116_v26 = vcombine.high %v1096_v16, %v1112_v18  ;;  %v1113_v32 = vcombine.low %v1089_v19, %v1105_v22 }
 0x417   : > { %1122 = vrot.lane.b32.xlu1 %v1115_v24, %s1334_s16  ;;  %1118 = vrot.lane.b32.xlu0 %v1114_v25, %s1335_s17 }
 0x41b   : > { %1126 = vrot.lane.b32.xlu1 %v1116_v26, %s1336_s18 }
 0x489   : > { %v1123_v15 = vpop.permute.xlu1 %1122  ;;  %v1119_v33 = vpop.permute.xlu0 %1118 }
 0x48a   : > { %v1129_v36 = vsel %vm562_vm2, %v1113_v32, %v1119_v33 }
 0x48b   : > { %v1131_v39 = vsel %vm1130_vm4, %v1129_v36, %v1123_v15 }
 0x48d   : > { %v1127_v37 = vpop.permute.xlu1 %1126 }
 0x48e   : > { %v1133_v30 = vsel %vm1132_vm5, %v1131_v39, %v1127_v37 }
 0x48f   : > { %v1134_v40 = vpack.c.bf16 %v1133_v30, %v1133_v30 }
 0x491   : > { %1136 = vst.msk [vmem:[%s114_s22] sm:$0xf] %vm1135_vm6, %v1134_v40 }
 0x492 PF: > { %s11_s6 = sadd.s32 1, %s1323_s6  }
 0x493   : > { %p8_p4 = scmp.ge.s32.totalorder %s11_s6, 8  }
 0x495   :  { %10 = sbr.rel (!%p8_p4) target bundleno = 1 (0x1), region = 54 }

// kernel: mmer_forward.72
= control target key start
LH: loop header
LB: loop body
LE: loop exit
PB: predicated region body
PF: predicated region fallthrough
CT: control target
= control target key end

     0   :  { %s836_s21 = smov 0   ;;  %s838_s22 = smov 0   ;;  %s901_s0 = inlined_call_operand.vmem [shape: bf16[3,16,64], index: 0, kind: input, shape index: {}]   ;;  %s902_s1 = inlined_call_operand.vmem [shape: bf16[3,64,64], index: 1, kind: input, shape index: {}]   ;;  %s903_s2 = inlined_call_operand.vmem [shape: f32[3,1,64], index: 2, kind: input, shape index: {}]   ;;  %s904_s3 = inlined_call_operand.vmem [shape: bf16[3,16,64], index: 3, kind: input, shape index: {}]   ;;  %s905_s4 = inlined_call_operand.vmem [shape: f32[3,1,64], index: 4, kind: input, shape index: {}]   ;;  %s906_s5 = inlined_call_operand.vmem [shape: f32[3,1,64], index: 5, kind: input, shape index: {}]   ;;  %s907_s6 = inlined_call_operand.vmem [shape: bf16[3,16,64], index: 6, kind: output, shape index: {}]  }
   0x1   :  { %s840_s23 = smov 0  }
   0x2 LB: > { %s28_s24 = sadd.s32 1, %s793_s22  ;;  %p691_p0 = scmp.ge.s32.totalorder %s797_s23, 1  ;;  %s797_s23 = sphi %s840_s23, %s16_s23   ;;  %s793_s22 = sphi %s838_s22, %s909_s22   ;;  %s789_s21 = sphi %s836_s21, %s908_s21  }
   0x3   : > { %p30_p1 = scmp.ge.s32.totalorder %s28_s24, 3  ;;  %p284_p2 = scmp.lt.s32.totalorder %s797_s23, 4 }
   0x5   : > { %s911_s24 = smov (%p30_p1, %s28_s24), 0  ;;  %p285_p3 = pnand %p691_p0, %p284_p2 }
   0x6   : > { %p346_p4 = scmp.lt.s32.totalorder (!%p285_p3), %s789_s21, 2  ;;  %v799_v0 = vmov (!%p285_p3), 0.0   ;;  %vm800_vm0 = vmmov (!%p285_p3), 0   ;;  %vm436_vm1 = vcmask (!%p285_p3), 523264   ;;  %vm540_vm2 = vcmask (!%p285_p3), 519168  }
   0x7   : > { %288 = sbr.rel (%p285_p3) target bundleno = 569 (0x239), region = 44  ;;  %728 = vmatprep.subr.bf16.mxu0 (!%p285_p3), %v799_v0  ;;  %736 = vmatprep.mubr.msk.bf16.mxu0 (!%p285_p3), %vm800_vm0, %v799_v0 }
   0xe   : > { %s913_s21 = smov (!%p346_p4, %s789_s21), 2 }
   0xf   : > { %s714_s25 = sshll.u32 %s913_s21, 5  ;;  %s861_s29 = sshll.u32 %s913_s21, 3 }
  0x10   : > { %s359_s28 = scalar_lea.vmem %s902_s1, %s714_s25  ;;  %s353_s8 = scalar_lea.vmem %s901_s0, %s861_s29 }
  0x11   : > { %v766_v1 = vld [vmem:[%s359_s28] sm:$0xff]   ;;  %v767_v2 = vld [vmem:[%s359_s28 + $0x8] sm:$0xff]   ;;  %v768_v3 = vld [vmem:[%s359_s28 + $0x10] sm:$0xff]   ;;  %s371_s11 = scalar_lea.vmem %s904_s3, %s861_s29  ;;  %s362_s14 = scalar_lea.vmem %s903_s2, %s913_s21 }
  0x12   : > { %729 = vmatpush3.bf16.msra.mxu0 %v766_v1  ;;  %v769_v4 = vld [vmem:[%s359_s28 + $0x18] sm:$0xff]   ;;  %v770_v5 = vld [vmem:[%s353_s8] sm:$0xff]   ;;  %s375_s17 = scalar_lea.vmem %s905_s4, %s913_s21  ;;  %s378_s20 = scalar_lea.vmem %s906_s5, %s913_s21 }
  0x13   : > { %730 = vmatprep.subr.bf16.mxu0 %v799_v0  ;;  %v720_v6 = vld [vmem:[%s371_s11] sm:$0xff]   ;;  %s387_s27 = scalar_lea.vmem %s907_s6, %s861_s29 }
  0x14   : > { %v700_v7 = vld [vmem:[%s362_s14] ss:$0 sm:$0xff]  ;;  %v721_v8 = vunpack.c.l.bf16 %v720_v6  ;;  %v722_v12 = vunpack.c.h.bf16 %v720_v6 }
  0x15   : > { %v707_v37 = vld [vmem:[%s375_s17] ss:$0 sm:$0xff] }
  0x16   : > { %731 = vmatpush3.bf16.msra.mxu0 %v767_v2  ;;  %v708_v39 = vld [vmem:[%s378_s20] ss:$0 sm:$0xff] }
  0x17   : > { %732 = vmatprep.subr.bf16.mxu0 %v799_v0 }
  0x1a   : > { %733 = vmatpush3.bf16.msra.mxu0 %v768_v3 }
  0x1b   : > { %734 = vmatprep.subr.bf16.mxu0 %v799_v0 }
  0x1e   : > { %735 = vmatpush3.bf16.msra.mxu0 %v769_v4 }
  0x21   : > { %737 = vmatmul.mubr.msk.bf16.vlgmr.msra.gmra.mrb[0].mxu0 %vm436_vm1, %v770_v5 }
  0xf4   : > { %v474_v9 = vpop.f32.mrb[0].mxu0 }
  0xf5   : > { %v475_v10 = vadd.f32 %v700_v7, %v474_v9  ;;  %v738_v11 = vpop.f32.mrb[1].mxu0 }
  0xf6   : > { %v477_v13 = vpop.f32.mrb[2].mxu0 }
  0xf7   : > { %v478_v14 = vadd.f32 %v700_v7, %v477_v13  ;;  %v739_v15 = vpop.f32.mrb[3].mxu0  ;;  %v485_v16 = vadd.f32 %v721_v8, %v475_v10 }
  0xf9   : > { %v489_v17 = vsel %vm436_vm1, %v485_v16, 0.0  ;;  %v486_v18 = vadd.f32 %v722_v12, %v478_v14 }
  0xfa   : > { %490 = vadd.xlane.f32.xlu0 %v489_v17 }
  0xfb   : > { %v492_v19 = vsel %vm436_vm1, %v486_v18, 0.0 }
  0xfe   : > { %493 = vadd.xlane.f32.xlu0 %v492_v19 }
 0x187   : > { %v491_v20 = vpop.xlane.xlu0 %490 }
 0x188   : > { %v496_v21 = vmul.f32 0.015625, %v491_v20 }
 0x18a   : > { %v498_v22 = vsub.f32 %v485_v16, %v496_v21 }
 0x18b   : > { %v494_v23 = vpop.xlane.xlu0 %493 }
 0x18c   : > { %v497_v24 = vmul.f32 0.015625, %v494_v23  ;;  %v500_v25 = vmul.f32 %v498_v22, %v498_v22 }
 0x18e   : > { %v499_v26 = vsub.f32 %v486_v18, %v497_v24  ;;  %v502_v27 = vsel %vm436_vm1, %v500_v25, 0.0 }
 0x18f   : > { %503 = vadd.xlane.f32.xlu1 %v502_v27 }
 0x190   : > { %v501_v28 = vmul.f32 %v499_v26, %v499_v26 }
 0x192   : > { %v505_v29 = vsel %vm436_vm1, %v501_v28, 0.0 }
 0x193   : > { %506 = vadd.xlane.f32.xlu1 %v505_v29 }
 0x21c   : > { %v504_v30 = vpop.xlane.xlu1 %503 }
 0x21d   : > { %v508_v31 = vmul.f32 0.015625, %v504_v30 }
 0x21f   : > { %v510_v32 = vadd.f32 1e-05, %v508_v31 }
 0x220   : > { %v507_v33 = vpop.xlane.xlu1 %506 }
 0x221   : > { %771 = vrsqrt.f32 %v510_v32  ;;  %v509_v34 = vmul.f32 0.015625, %v507_v33 }
 0x223   : > { %v511_v35 = vadd.f32 1e-05, %v509_v34 }
 0x225   : > { %773 = vrsqrt.f32 %v511_v35 }
 0x22b   : > { %v772_v36 = vpop.eup %771 }
 0x22c   : > { %v514_v38 = vmul.f32 %v772_v36, %v498_v22 }
 0x22e   : > { %v522_v40 = vmul.f32 %v707_v37, %v514_v38 }
 0x22f   : > { %v774_v41 = vpop.eup %773 }
 0x230   : > { %v530_v42 = vadd.f32 %v708_v39, %v522_v40  ;;  %v515_v43 = vmul.f32 %v774_v41, %v499_v26 }
 0x232   : > { %v717_v44 = vpack.c.bf16 %v530_v42, %v530_v42  ;;  %v523_v45 = vmul.f32 %v707_v37, %v515_v43 }
 0x234   : > { %541 = vst.msk [vmem:[%s387_s27] sm:$0xf] %vm540_vm2, %v717_v44  ;;  %v531_v46 = vadd.f32 %v708_v39, %v523_v45 }
 0x236   : > { %v718_v47 = vpack.c.bf16 %v531_v46, %v531_v46 }
 0x238   : > { %542 = vst.msk [vmem:[%s387_s27 + $0x4] sm:$0xf] %vm540_vm2, %v718_v47 }
 0x239 PF: > { %s16_s23 = sadd.s32 1, %s797_s23   ;;  %s908_s21 = smov %s793_s22 }
 0x23a   : > { %p13_p5 = scmp.ge.s32.totalorder %s16_s23, 5   ;;  %s909_s22 = smov %s911_s24 }
 0x23c   :  { %15 = sbr.rel (!%p13_p5) target bundleno = 2 (0x2), region = 89 }

// kernel: mmer_forward.73
= control target key start
LH: loop header
LB: loop body
LE: loop exit
PB: predicated region body
PF: predicated region fallthrough
CT: control target
= control target key end

     0   :  { %s641_s12 = smov 0   ;;  %s643_s13 = smov 0   ;;  %s685_s0 = inlined_call_operand.vmem [shape: bf16[3,16,64], index: 0, kind: input, shape index: {}]   ;;  %s686_s1 = inlined_call_operand.vmem [shape: bf16[3,64,128], index: 1, kind: input, shape index: {}]   ;;  %s687_s2 = inlined_call_operand.vmem [shape: f32[3,1,128], index: 2, kind: input, shape index: {}]   ;;  %s688_s3 = inlined_call_operand.vmem [shape: bf16[3,16,128], index: 3, kind: output, shape index: {}]  }
   0x1   :  { %s645_s14 = smov 0  }
   0x2 LB: > { %s32_s15 = sadd.s32 1, %s613_s13  ;;  %p519_p0 = scmp.ge.s32.totalorder %s617_s14, 1  ;;  %s617_s14 = sphi %s645_s14, %s13_s14   ;;  %s613_s13 = sphi %s643_s13, %s690_s13   ;;  %s609_s12 = sphi %s641_s12, %s689_s12  }
   0x3   : > { %p34_p1 = scmp.ge.s32.totalorder %s32_s15, 3  ;;  %p195_p2 = scmp.lt.s32.totalorder %s617_s14, 4 }
   0x5   : > { %s692_s15 = smov (%p34_p1, %s32_s15), 0  ;;  %p196_p3 = pnand %p519_p0, %p195_p2 }
   0x6   : > { %p245_p4 = scmp.lt.s32.totalorder (!%p196_p3), %s609_s12, 2  ;;  %v619_v0 = vmov (!%p196_p3), 0.0   ;;  %vm620_vm0 = vmmov (!%p196_p3), 0   ;;  %vm328_vm1 = vcmask (!%p196_p3), 523264  }
   0x7   : > { %199 = sbr.rel (%p196_p3) target bundleno = 254 (0xfe), region = 32  ;;  %552 = vmatprep.subr.bf16.mxu0 (!%p196_p3), %v619_v0  ;;  %560 = vmatprep.mubr.msk.bf16.mxu0 (!%p196_p3), %vm620_vm0, %v619_v0 }
   0xe   : > { %s694_s12 = smov (!%p245_p4, %s609_s12), 2 }
   0xf   : > { %s538_s16 = sshll.u32 %s694_s12, 5  ;;  %s537_s20 = sshll.u32 %s694_s12, 3 }
  0x10   : > { %s261_s19 = scalar_lea.vmem %s686_s1, %s538_s16  ;;  %s252_s23 = scalar_lea.vmem %s685_s0, %s537_s20 }
  0x11   : > { %v590_v1 = vld [vmem:[%s261_s19] sm:$0xff]   ;;  %v591_v2 = vld [vmem:[%s261_s19 + $0x8] sm:$0xff]   ;;  %v592_v3 = vld [vmem:[%s261_s19 + $0x10] sm:$0xff]   ;;  %s267_s26 = scalar_lea.vmem %s687_s2, %s694_s12  ;;  %s279_s29 = scalar_lea.vmem %s688_s3, %s537_s20 }
  0x12   : > { %553 = vmatpush3.bf16.msra.mxu0 %v590_v1  ;;  %v593_v4 = vld [vmem:[%s261_s19 + $0x18] sm:$0xff]   ;;  %v594_v5 = vld [vmem:[%s252_s23] sm:$0xff]  }
  0x13   : > { %554 = vmatprep.subr.bf16.mxu0 %v619_v0  ;;  %v526_v6 = vld [vmem:[%s267_s26] ss:$0 sm:$0xff] }
  0x16   : > { %555 = vmatpush3.bf16.msra.mxu0 %v591_v2 }
  0x17   : > { %556 = vmatprep.subr.bf16.mxu0 %v619_v0 }
  0x1a   : > { %557 = vmatpush3.bf16.msra.mxu0 %v592_v3 }
  0x1b   : > { %558 = vmatprep.subr.bf16.mxu0 %v619_v0 }
  0x1e   : > { %559 = vmatpush3.bf16.msra.mxu0 %v593_v4 }
  0x21   : > { %561 = vmatmul.mubr.msk.bf16.vlgmr.msra.gmra.mrb[0].mxu0 %vm328_vm1, %v594_v5 }
  0xf4   : > { %v366_v7 = vpop.f32.mrb[0].mxu0 }
  0xf5   : > { %v367_v8 = vadd.f32 %v526_v6, %v366_v7  ;;  %v562_v9 = vpop.f32.mrb[1].mxu0 }
  0xf6   : > { %v369_v10 = vpop.f32.mrb[2].mxu0 }
  0xf7   : > { %v370_v11 = vadd.f32 %v526_v6, %v369_v10  ;;  %v563_v12 = vpop.f32.mrb[3].mxu0  ;;  %v373_v13 = vmax.f32 %v367_v8, 0.0 }
  0xf9   : > { %v374_v14 = vmax.f32 %v370_v11, 0.0 }
  0xfb   : > { %v545_v15 = vpack.c.bf16 %v374_v14, %v373_v13 }
  0xfd   : > { %546 = vst [vmem:[%s279_s29] sm:$0xff] %v545_v15  }
  0xfe PF: > { %s13_s14 = sadd.s32 1, %s617_s14   ;;  %s689_s12 = smov %s613_s13 }
  0xff   : > { %p10_p5 = scmp.ge.s32.totalorder %s13_s14, 5   ;;  %s690_s13 = smov %s692_s15 }
 0x101   :  { %12 = sbr.rel (!%p10_p5) target bundleno = 2 (0x2), region = 68 }

// kernel: mmer_forward.80
= control target key start
LH: loop header
LB: loop body
LE: loop exit
PB: predicated region body
PF: predicated region fallthrough
CT: control target
= control target key end

     0   :  { %s499_s12 = smov 0   ;;  %s501_s13 = smov 0   ;;  %s551_s0 = inlined_call_operand.vmem [shape: bf16[3,16,64], index: 0, kind: input, shape index: {}]   ;;  %s552_s1 = inlined_call_operand.vmem [shape: f32[3,1,64], index: 1, kind: input, shape index: {}]   ;;  %s553_s2 = inlined_call_operand.vmem [shape: f32[3,1,64], index: 2, kind: input, shape index: {}]   ;;  %s554_s3 = inlined_call_operand.vmem [shape: bf16[3,16,64], index: 3, kind: output, shape index: {}]  }
   0x1   :  { %s503_s14 = smov 0  }
   0x2 LB: > { %s25_s15 = sadd.s32 1, %s473_s13  ;;  %p408_p0 = scmp.ge.s32.totalorder %s477_s14, 1  ;;  %s477_s14 = sphi %s503_s14, %s13_s14   ;;  %s473_s13 = sphi %s501_s13, %s556_s13   ;;  %s469_s12 = sphi %s499_s12, %s555_s12  }
   0x3   : > { %p27_p1 = scmp.ge.s32.totalorder %s25_s15, 3  ;;  %p174_p2 = scmp.lt.s32.totalorder %s477_s14, 4 }
   0x5   : > { %s558_s15 = smov (%p27_p1, %s25_s15), 0  ;;  %p175_p3 = pnand %p408_p0, %p174_p2 }
   0x6   : > { %p213_p4 = scmp.lt.s32.totalorder (!%p175_p3), %s469_s12, 2  ;;  %vm244_vm0 = vcmask (!%p175_p3), 523264   ;;  %vm296_vm1 = vcmask (!%p175_p3), 519168  }
   0x7   : > { %178 = sbr.rel (%p175_p3) target bundleno = 340 (0x154), region = 32 }
   0xe   : > { %s560_s12 = smov (!%p213_p4, %s469_s12), 2 }
   0xf   : > { %s419_s16 = sshll.u32 %s560_s12, 3  ;;  %s224_s22 = scalar_lea.vmem %s552_s1, %s560_s12 }
  0x10   : > { %s220_s19 = scalar_lea.vmem %s551_s0, %s419_s16  ;;  %s227_s25 = scalar_lea.vmem %s553_s2, %s560_s12  ;;  %v413_v22 = vld [vmem:[%s224_s22] ss:$0 sm:$0xff] }
  0x11   : > { %v424_v0 = vld [vmem:[%s220_s19] sm:$0xff]   ;;  %s236_s28 = scalar_lea.vmem %s554_s3, %s419_s16 }
  0x12   : > { %v425_v1 = vunpack.c.l.bf16 %v424_v0  ;;  %v426_v2 = vunpack.c.h.bf16 %v424_v0  ;;  %v414_v24 = vld [vmem:[%s227_s25] ss:$0 sm:$0xff] }
  0x14   : > { %v245_v3 = vsel %vm244_vm0, %v425_v1, 0.0  ;;  %v248_v4 = vsel %vm244_vm0, %v426_v2, 0.0 }
  0x15   : > { %246 = vadd.xlane.f32.xlu0 %v245_v3 }
  0x19   : > { %249 = vadd.xlane.f32.xlu0 %v248_v4 }
  0xa2   : > { %v247_v5 = vpop.xlane.xlu0 %246 }
  0xa3   : > { %v252_v6 = vmul.f32 0.015625, %v247_v5 }
  0xa5   : > { %v254_v7 = vsub.f32 %v425_v1, %v252_v6 }
  0xa6   : > { %v250_v8 = vpop.xlane.xlu0 %249 }
  0xa7   : > { %v253_v9 = vmul.f32 0.015625, %v250_v8  ;;  %v256_v10 = vmul.f32 %v254_v7, %v254_v7 }
  0xa9   : > { %v255_v11 = vsub.f32 %v426_v2, %v253_v9  ;;  %v258_v12 = vsel %vm244_vm0, %v256_v10, 0.0 }
  0xaa   : > { %259 = vadd.xlane.f32.xlu1 %v258_v12 }
  0xab   : > { %v257_v13 = vmul.f32 %v255_v11, %v255_v11 }
  0xad   : > { %v261_v14 = vsel %vm244_vm0, %v257_v13, 0.0 }
  0xae   : > { %262 = vadd.xlane.f32.xlu1 %v261_v14 }
 0x137   : > { %v260_v15 = vpop.xlane.xlu1 %259 }
 0x138   : > { %v264_v16 = vmul.f32 0.015625, %v260_v15 }
 0x13a   : > { %v266_v17 = vadd.f32 1e-05, %v264_v16 }
 0x13b   : > { %v263_v18 = vpop.xlane.xlu1 %262 }
 0x13c   : > { %451 = vrsqrt.f32 %v266_v17  ;;  %v265_v19 = vmul.f32 0.015625, %v263_v18 }
 0x13e   : > { %v267_v20 = vadd.f32 1e-05, %v265_v19 }
 0x140   : > { %453 = vrsqrt.f32 %v267_v20 }
 0x146   : > { %v452_v21 = vpop.eup %451 }
 0x147   : > { %v270_v23 = vmul.f32 %v452_v21, %v254_v7 }
 0x149   : > { %v278_v25 = vmul.f32 %v413_v22, %v270_v23 }
 0x14a   : > { %v454_v26 = vpop.eup %453 }
 0x14b   : > { %v286_v27 = vadd.f32 %v414_v24, %v278_v25  ;;  %v271_v28 = vmul.f32 %v454_v26, %v255_v11 }
 0x14d   : > { %v421_v29 = vpack.c.bf16 %v286_v27, %v286_v27  ;;  %v279_v30 = vmul.f32 %v413_v22, %v271_v28 }
 0x14f   : > { %297 = vst.msk [vmem:[%s236_s28] sm:$0xf] %vm296_vm1, %v421_v29  ;;  %v287_v31 = vadd.f32 %v414_v24, %v279_v30 }
 0x151   : > { %v422_v32 = vpack.c.bf16 %v287_v31, %v287_v31 }
 0x153   : > { %298 = vst.msk [vmem:[%s236_s28 + $0x4] sm:$0xf] %vm296_vm1, %v422_v32 }
 0x154 PF: > { %s13_s14 = sadd.s32 1, %s477_s14   ;;  %s555_s12 = smov %s473_s13 }
 0x155   : > { %p10_p5 = scmp.ge.s32.totalorder %s13_s14, 5   ;;  %s556_s13 = smov %s558_s15 }
 0x157   :  { %12 = sbr.rel (!%p10_p5) target bundleno = 2 (0x2), region = 68 }

// kernel: mmer_forward.74
= control target key start
LH: loop header
LB: loop body
LE: loop exit
PB: predicated region body
PF: predicated region fallthrough
CT: control target
= control target key end

     0   :  { %s885_s21 = smov 0   ;;  %s887_s22 = smov 0   ;;  %s949_s0 = inlined_call_operand.vmem [shape: bf16[3,16,128], index: 0, kind: input, shape index: {}]   ;;  %s950_s1 = inlined_call_operand.vmem [shape: bf16[3,128,64], index: 1, kind: input, shape index: {}]   ;;  %s951_s2 = inlined_call_operand.vmem [shape: f32[3,1,64], index: 2, kind: input, shape index: {}]   ;;  %s952_s3 = inlined_call_operand.vmem [shape: bf16[3,16,64], index: 3, kind: input, shape index: {}]   ;;  %s953_s4 = inlined_call_operand.vmem [shape: f32[3,1,64], index: 4, kind: input, shape index: {}]   ;;  %s954_s5 = inlined_call_operand.vmem [shape: f32[3,1,64], index: 5, kind: input, shape index: {}]   ;;  %s955_s6 = inlined_call_operand.vmem [shape: bf16[3,16,64], index: 6, kind: output, shape index: {}]  }
   0x1   :  { %s889_s23 = smov 0  }
   0x2 LB: > { %s28_s24 = sadd.s32 1, %s842_s22  ;;  %p721_p0 = scmp.ge.s32.totalorder %s846_s23, 1  ;;  %s846_s23 = sphi %s889_s23, %s16_s23   ;;  %s842_s22 = sphi %s887_s22, %s957_s22   ;;  %s838_s21 = sphi %s885_s21, %s956_s21  }
   0x3   : > { %p30_p1 = scmp.ge.s32.totalorder %s28_s24, 3  ;;  %p284_p2 = scmp.lt.s32.totalorder %s846_s23, 4 }
   0x5   : > { %s959_s24 = smov (%p30_p1, %s28_s24), 0  ;;  %p285_p3 = pnand %p721_p0, %p284_p2 }
   0x6   : > { %p346_p4 = scmp.lt.s32.totalorder (!%p285_p3), %s838_s21, 2  ;;  %v848_v0 = vmov (!%p285_p3), 0.0   ;;  %vm849_vm0 = vmmov (!%p285_p3), 0   ;;  %vm518_vm1 = vcmask (!%p285_p3), 523264   ;;  %vm570_vm2 = vcmask (!%p285_p3), 519168  }
   0x7   : > { %288 = sbr.rel (%p285_p3) target bundleno = 585 (0x249), region = 44  ;;  %765 = vmatprep.subr.bf16.mxu0 (!%p285_p3), %v848_v0  ;;  %781 = vmatprep.mubr.msk.bf16.mxu0 (!%p285_p3), %vm849_vm0, %v848_v0 }
   0xe   : > { %s961_s21 = smov (!%p346_p4, %s838_s21), 2 }
   0xf   : > { %s747_s25 = sshll.u32 %s961_s21, 6  ;;  %s910_s29 = sshll.u32 %s961_s21, 3 }
  0x10   : > { %s359_s28 = scalar_lea.vmem %s950_s1, %s747_s25  ;;  %s353_s8 = scalar_lea.vmem %s949_s0, %s910_s29 }
  0x11   : > { %v811_v1 = vld [vmem:[%s359_s28] sm:$0xff]   ;;  %v812_v2 = vld [vmem:[%s359_s28 + $0x8] sm:$0xff]   ;;  %v813_v3 = vld [vmem:[%s359_s28 + $0x10] sm:$0xff]   ;;  %s371_s11 = scalar_lea.vmem %s952_s3, %s910_s29  ;;  %s362_s14 = scalar_lea.vmem %s951_s2, %s961_s21 }
  0x12   : > { %766 = vmatpush3.bf16.msra.mxu0 %v811_v1  ;;  %v814_v4 = vld [vmem:[%s359_s28 + $0x18] sm:$0xff]   ;;  %v815_v5 = vld [vmem:[%s359_s28 + $0x20] sm:$0xff]   ;;  %v816_v6 = vld [vmem:[%s359_s28 + $0x28] sm:$0xff]   ;;  %s375_s17 = scalar_lea.vmem %s953_s4, %s961_s21  ;;  %s378_s20 = scalar_lea.vmem %s954_s5, %s961_s21 }
  0x13   : > { %767 = vmatprep.subr.bf16.mxu0 %v848_v0  ;;  %v817_v7 = vld [vmem:[%s359_s28 + $0x30] sm:$0xff]   ;;  %v818_v8 = vld [vmem:[%s359_s28 + $0x38] sm:$0xff]   ;;  %v819_v9 = vld [vmem:[%s353_s8] sm:$0xff]   ;;  %s387_s27 = scalar_lea.vmem %s955_s6, %s910_s29 }
  0x14   : > { %v753_v10 = vld [vmem:[%s371_s11] sm:$0xff]  }
  0x15   : > { %v730_v11 = vld [vmem:[%s362_s14] ss:$0 sm:$0xff]  ;;  %v754_v12 = vunpack.c.l.bf16 %v753_v10  ;;  %v755_v16 = vunpack.c.h.bf16 %v753_v10 }
  0x16   : > { %768 = vmatpush3.bf16.msra.mxu0 %v812_v2  ;;  %v740_v41 = vld [vmem:[%s375_s17] ss:$0 sm:$0xff] }
  0x17   : > { %769 = vmatprep.subr.bf16.mxu0 %v848_v0  ;;  %v741_v43 = vld [vmem:[%s378_s20] ss:$0 sm:$0xff] }
  0x1a   : > { %770 = vmatpush3.bf16.msra.mxu0 %v813_v3 }
  0x1b   : > { %771 = vmatprep.subr.bf16.mxu0 %v848_v0 }
  0x1e   : > { %772 = vmatpush3.bf16.msra.mxu0 %v814_v4 }
  0x1f   : > { %773 = vmatprep.subr.bf16.mxu0 %v848_v0 }
  0x22   : > { %774 = vmatpush3.bf16.msra.mxu0 %v815_v5 }
  0x23   : > { %775 = vmatprep.subr.bf16.mxu0 %v848_v0 }
  0x26   : > { %776 = vmatpush3.bf16.msra.mxu0 %v816_v6 }
  0x27   : > { %777 = vmatprep.subr.bf16.mxu0 %v848_v0 }
  0x2a   : > { %778 = vmatpush3.bf16.msra.mxu0 %v817_v7 }
  0x2b   : > { %779 = vmatprep.subr.bf16.mxu0 %v848_v0 }
  0x2e   : > { %780 = vmatpush3.bf16.msra.mxu0 %v818_v8 }
  0x31   : > { %782 = vmatmul.mubr.bf16.vlgmr.msra.gmra.mrb[0].mxu0 %v819_v9 }
 0x104   : > { %v503_v13 = vpop.f32.mrb[0].mxu0 }
 0x105   : > { %v504_v14 = vadd.f32 %v730_v11, %v503_v13  ;;  %v783_v15 = vpop.f32.mrb[1].mxu0 }
 0x106   : > { %v506_v17 = vpop.f32.mrb[2].mxu0 }
 0x107   : > { %v507_v18 = vadd.f32 %v730_v11, %v506_v17  ;;  %v784_v19 = vpop.f32.mrb[3].mxu0  ;;  %v514_v20 = vadd.f32 %v754_v12, %v504_v14 }
 0x109   : > { %v519_v21 = vsel %vm518_vm1, %v514_v20, 0.0  ;;  %v515_v22 = vadd.f32 %v755_v16, %v507_v18 }
 0x10a   : > { %520 = vadd.xlane.f32.xlu0 %v519_v21 }
 0x10b   : > { %v522_v23 = vsel %vm518_vm1, %v515_v22, 0.0 }
 0x10e   : > { %523 = vadd.xlane.f32.xlu0 %v522_v23 }
 0x197   : > { %v521_v24 = vpop.xlane.xlu0 %520 }
 0x198   : > { %v526_v25 = vmul.f32 0.015625, %v521_v24 }
 0x19a   : > { %v528_v26 = vsub.f32 %v514_v20, %v526_v25 }
 0x19b   : > { %v524_v27 = vpop.xlane.xlu0 %523 }
 0x19c   : > { %v527_v28 = vmul.f32 0.015625, %v524_v27  ;;  %v530_v29 = vmul.f32 %v528_v26, %v528_v26 }
 0x19e   : > { %v529_v30 = vsub.f32 %v515_v22, %v527_v28  ;;  %v532_v31 = vsel %vm518_vm1, %v530_v29, 0.0 }
 0x19f   : > { %533 = vadd.xlane.f32.xlu1 %v532_v31 }
 0x1a0   : > { %v531_v32 = vmul.f32 %v529_v30, %v529_v30 }
 0x1a2   : > { %v535_v33 = vsel %vm518_vm1, %v531_v32, 0.0 }
 0x1a3   : > { %536 = vadd.xlane.f32.xlu1 %v535_v33 }
 0x22c   : > { %v534_v34 = vpop.xlane.xlu1 %533 }
 0x22d   : > { %v538_v35 = vmul.f32 0.015625, %v534_v34 }
 0x22f   : > { %v540_v36 = vadd.f32 1e-05, %v538_v35 }
 0x230   : > { %v537_v37 = vpop.xlane.xlu1 %536 }
 0x231   : > { %820 = vrsqrt.f32 %v540_v36  ;;  %v539_v38 = vmul.f32 0.015625, %v537_v37 }
 0x233   : > { %v541_v39 = vadd.f32 1e-05, %v539_v38 }
 0x235   : > { %822 = vrsqrt.f32 %v541_v39 }
 0x23b   : > { %v821_v40 = vpop.eup %820 }
 0x23c   : > { %v544_v42 = vmul.f32 %v821_v40, %v528_v26 }
 0x23e   : > { %v552_v44 = vmul.f32 %v740_v41, %v544_v42 }
 0x23f   : > { %v823_v45 = vpop.eup %822 }
 0x240   : > { %v560_v46 = vadd.f32 %v741_v43, %v552_v44  ;;  %v545_v47 = vmul.f32 %v823_v45, %v529_v30 }
 0x242   : > { %v750_v48 = vpack.c.bf16 %v560_v46, %v560_v46  ;;  %v553_v49 = vmul.f32 %v740_v41, %v545_v47 }
 0x244   : > { %571 = vst.msk [vmem:[%s387_s27] sm:$0xf] %vm570_vm2, %v750_v48  ;;  %v561_v50 = vadd.f32 %v741_v43, %v553_v49 }
 0x246   : > { %v751_v51 = vpack.c.bf16 %v561_v50, %v561_v50 }
 0x248   : > { %572 = vst.msk [vmem:[%s387_s27 + $0x4] sm:$0xf] %vm570_vm2, %v751_v51 }
 0x249 PF: > { %s16_s23 = sadd.s32 1, %s846_s23   ;;  %s956_s21 = smov %s842_s22 }
 0x24a   : > { %p13_p5 = scmp.ge.s32.totalorder %s16_s23, 5   ;;  %s957_s22 = smov %s959_s24 }
 0x24c   :  { %15 = sbr.rel (!%p13_p5) target bundleno = 2 (0x2), region = 89 }

// kernel: mmer_forward.113
= control target key start
LH: loop header
LB: loop body
LE: loop exit
PB: predicated region body
PF: predicated region fallthrough
CT: control target
= control target key end

     0   :  { %v268_v1 = vmov 0   ;;  %vm96_vm0 = vcmask 523264   ;;  %v31_v12 = vlaneseq  ;;  %vm205_vm1 = vcmask 1043456   ;;  %s359_s1 = inlined_call_operand.vmem [shape: bf16[1,64,192], index: 1, kind: input, shape index: {}]   ;;  %s360_s0 = inlined_call_operand.vmem [shape: bf16[1,48,64], index: 0, kind: input, shape index: {}]   ;;  %s361_s2 = inlined_call_operand.vmem [shape: f32[1,1,192], index: 2, kind: input, shape index: {}]   ;;  %s362_s3 = inlined_call_operand.vmem [shape: bf16[1,48,192], index: 3, kind: output, shape index: {}]  }
   0x1   :  { %v253_v0 = vld [vmem:[%s359_s1 + $0x4] ss:$8 sps:$4 sm:$0xff]   ;;  %148 = vmatprep.mubr.bf16.mxu1 %v268_v1  ;;  %138 = vmatprep.mubr.bf16.mxu0 %v268_v1  ;;  %v255_v2 = vld [vmem:[%s359_s1] ss:$8 sps:$4 sm:$0xff]   ;;  %v256_v3 = vld [vmem:[%s359_s1 + $0x14] ss:$8 sps:$4 sm:$0xff]  }
   0x2   :  { %244 = vmatprep.subr.bf16.mxu1 %v253_v0  ;;  %106 = vmatprep.subr.bf16.mxu0 %v253_v0  ;;  %v258_v4 = vld [vmem:[%s359_s1 + $0x10] ss:$8 sps:$4 sm:$0xff]   ;;  %v259_v5 = vld [vmem:[%s359_s1 + $0x24] ss:$8 sps:$4 sm:$0xff]   ;;  %v261_v6 = vld [vmem:[%s359_s1 + $0x20] ss:$8 sps:$4 sm:$0xff]  }
   0x3   :  { %248 = vmatpush1.bf16.msra.mxu1 %v255_v2  ;;  %107 = vmatpush1.bf16.msra.mxu0 %v255_v2  ;;  %v262_v7 = vld [vmem:[%s359_s1 + $0x34] ss:$8 sps:$4 sm:$0xff]   ;;  %v264_v8 = vld [vmem:[%s359_s1 + $0x30] ss:$8 sps:$4 sm:$0xff]   ;;  %v265_v9 = vld [vmem:[%s360_s0 + $0x8] sm:$0xff]   ;;  %v32_v13 = vshrl.u32 %v31_v12, 7 }
   0x4   :  { %245 = vmatprep.subr.bf16.mxu1 %v256_v3  ;;  %108 = vmatprep.subr.bf16.mxu0 %v256_v3  ;;  %v266_v10 = vld [vmem:[%s360_s0] sm:$0xff]   ;;  %v267_v11 = vld [vmem:[%s360_s0 + $0x10] sm:$0xff]   ;;  %vm206_vm2 = vcmask 523268  }
   0x5   :  { %v33_v14 = vsub.s32 0, %v32_v13  ;;  %v29_v15 = vld [vmem:[%s361_s2] sm:$0x3]  ;;  %v37_v16 = vsub.s32 1, %v32_v13  ;;  %vm325_vm3 = vmor %vm206_vm2, %vm205_vm1 }
   0x7   :  { %249 = vmatpush1.bf16.msra.mxu1 %v258_v4  ;;  %109 = vmatpush1.bf16.msra.mxu0 %v258_v4  ;;  %v34_v17 = vrot.slane %v29_v15, %v33_v14  ;;  %v38_v18 = vrot.slane %v29_v15, %v37_v16 }
   0x8   :  { %246 = vmatprep.subr.bf16.mxu1 %v259_v5  ;;  %110 = vmatprep.subr.bf16.mxu0 %v259_v5 }
   0xb   :  { %250 = vmatpush1.bf16.msra.mxu1 %v261_v6  ;;  %111 = vmatpush1.bf16.msra.mxu0 %v261_v6 }
   0xc   :  { %247 = vmatprep.subr.bf16.mxu1 %v262_v7  ;;  %112 = vmatprep.subr.bf16.mxu0 %v262_v7 }
   0xf   :  { %251 = vmatpush1.bf16.msra.mxu1 %v264_v8  ;;  %113 = vmatpush1.bf16.msra.mxu0 %v264_v8 }
  0x12   :  { %230 = vmatmul.mubr.msk.bf16.vlgmr.msra.gmra.mrb[0].mxu1 %vm96_vm0, %v265_v9  ;;  %229 = vmatmul.mubr.msk.bf16.vlgmr.msra.gmra.mrb[0].mxu0 %vm96_vm0, %v266_v10 }
  0x13   :  { %158 = vmatprep.mubr.bf16.mxu1 %v268_v1 }
  0x1a   :  { %231 = vmatmul.mubr.msk.bf16.gmra.mrb[4].mxu1 %vm96_vm0, %v267_v11 }
  0xe5   :  { %v150_v19 = vpop.f32.mrb[0].mxu1  ;;  %v140_v20 = vpop.f32.mrb[0].mxu0 }
  0xe6   :  { %v151_v21 = vadd.f32 %v150_v19, %v34_v17  ;;  %v152_v22 = vpop.f32.mrb[1].mxu1  ;;  %v141_v23 = vadd.f32 %v140_v20, %v34_v17  ;;  %v142_v24 = vpop.f32.mrb[1].mxu0 }
  0xe7   :  { %v153_v25 = vadd.f32 %v152_v22, %v38_v18  ;;  %v154_v26 = vpop.f32.mrb[2].mxu1  ;;  %v143_v27 = vadd.f32 %v142_v24, %v38_v18  ;;  %v144_v28 = vpop.f32.mrb[2].mxu0 }
  0xe8   :  { %v155_v30 = vadd.f32 %v154_v26, %v34_v17  ;;  %v156_v31 = vpop.f32.mrb[3].mxu1  ;;  %v145_v32 = vadd.f32 %v144_v28, %v34_v17  ;;  %v146_v33 = vpop.f32.mrb[3].mxu0 }
  0xe9   :  { %v240_v34 = vpack.c.bf16 %v153_v25, %v151_v21  ;;  %v157_v35 = vadd.f32 %v156_v31, %v38_v18  ;;  %v238_v36 = vpack.c.bf16 %v143_v27, %v141_v23  ;;  %v147_v37 = vadd.f32 %v146_v33, %v38_v18 }
  0xeb   :  { %210 = vst.msk [vmem:[%s362_s3 + $0x10] sm:$0xff] %vm325_vm3, %v240_v34  ;;  %v241_v38 = vpack.c.bf16 %v157_v35, %v155_v30  ;;  %208 = vst.msk [vmem:[%s362_s3] sm:$0xff] %vm325_vm3, %v238_v36  ;;  %v239_v39 = vpack.c.bf16 %v147_v37, %v145_v32 }
  0xed   :  { %211 = vst.msk [vmem:[%s362_s3 + $0x18] sm:$0xff] %vm325_vm3, %v241_v38  ;;  %209 = vst.msk [vmem:[%s362_s3 + $0x8] sm:$0xff] %vm325_vm3, %v239_v39  ;;  %v160_v40 = vpop.f32.mrb[4].mxu1 }
  0xee   :  { %v161_v41 = vadd.f32 %v160_v40, %v34_v17  ;;  %v162_v42 = vpop.f32.mrb[5].mxu1 }
  0xef   :  { %v163_v43 = vadd.f32 %v162_v42, %v38_v18  ;;  %v164_v44 = vpop.f32.mrb[6].mxu1 }
  0xf0   :  { %v165_v45 = vadd.f32 %v164_v44, %v34_v17  ;;  %v166_v46 = vpop.f32.mrb[7].mxu1 }
  0xf1   :  { %v242_v47 = vpack.c.bf16 %v163_v43, %v161_v41  ;;  %v167_v48 = vadd.f32 %v166_v46, %v38_v18 }
  0xf3   :  { %212 = vst.msk [vmem:[%s362_s3 + $0x20] sm:$0xff] %vm325_vm3, %v242_v47  ;;  %v243_v49 = vpack.c.bf16 %v167_v48, %v165_v45 }
  0xf5   :  { %213 = vst.msk [vmem:[%s362_s3 + $0x28] sm:$0xff] %vm325_vm3, %v243_v49 }

// kernel: mmer_forward.115
= control target key start
LH: loop header
LB: loop body
LE: loop exit
PB: predicated region body
PF: predicated region fallthrough
CT: control target
= control target key end

     0   :  { %v404_v0 = vmov 0.0   ;;  %vm405_vm0 = vmmov 0   ;;  %vm84_vm1 = vcmask 523264   ;;  %vm298_vm2 = vcmask 519168   ;;  %s537_s1 = inlined_call_operand.vmem [shape: bf16[1,64,64], index: 1, kind: input, shape index: {}]   ;;  %s538_s0 = inlined_call_operand.vmem [shape: bf16[1,48,64], index: 0, kind: input, shape index: {}]   ;;  %s539_s3 = inlined_call_operand.vmem [shape: bf16[1,48,64], index: 3, kind: input, shape index: {}]   ;;  %s540_s2 = inlined_call_operand.vmem [shape: f32[1,1,64], index: 2, kind: input, shape index: {}]   ;;  %s541_s4 = inlined_call_operand.vmem [shape: f32[1,1,64], index: 4, kind: input, shape index: {}]   ;;  %s542_s5 = inlined_call_operand.vmem [shape: f32[1,1,64], index: 5, kind: input, shape index: {}]   ;;  %s543_s6 = inlined_call_operand.vmem [shape: bf16[1,48,64], index: 6, kind: output, shape index: {}]  }
   0x1   :  { %355 = vmatprep.subr.bf16.mxu0 %v404_v0  ;;  %375 = vmatprep.subr.bf16.mxu1 %v404_v0  ;;  %v385_v1 = vld [vmem:[%s537_s1] sm:$0xff]   ;;  %v386_v2 = vld [vmem:[%s537_s1 + $0x8] sm:$0xff]   ;;  %v387_v3 = vld [vmem:[%s537_s1 + $0x10] sm:$0xff]  }
   0x2   :  { %363 = vmatprep.mubr.msk.bf16.mxu0 %vm405_vm0, %v404_v0  ;;  %367 = vmatprep.mubr.msk.bf16.mxu1 %vm405_vm0, %v404_v0  ;;  %v388_v4 = vld [vmem:[%s537_s1 + $0x18] sm:$0xff]   ;;  %v389_v5 = vld [vmem:[%s538_s0] sm:$0xff]   ;;  %v390_v6 = vld [vmem:[%s538_s0 + $0x8] sm:$0xff]  }
   0x3   :  { %356 = vmatpush3.bf16.msra.mxu0 %v385_v1  ;;  %379 = vmatpush3.bf16.msra.mxu1 %v385_v1  ;;  %v391_v7 = vld [vmem:[%s538_s0 + $0x10] sm:$0xff]   ;;  %v346_v8 = vld [vmem:[%s539_s3 + $0x8] sm:$0xff]   ;;  %v335_v9 = vld [vmem:[%s539_s3] sm:$0xff]  }
   0x4   :  { %357 = vmatprep.subr.bf16.mxu0 %v404_v0  ;;  %376 = vmatprep.subr.bf16.mxu1 %v404_v0  ;;  %v309_v10 = vld [vmem:[%s540_s2] ss:$0 sm:$0xff]  ;;  %v340_v11 = vunpack.c.l.bf16 %v346_v8  ;;  %v336_v12 = vunpack.c.l.bf16 %v335_v9  ;;  %v341_v19 = vunpack.c.h.bf16 %v346_v8  ;;  %v337_v20 = vunpack.c.h.bf16 %v335_v9  ;;  %v347_v29 = vld [vmem:[%s539_s3 + $0x10] sm:$0xff]  }
   0x5   :  { %v344_v34 = vunpack.c.l.bf16 %v347_v29  ;;  %v345_v40 = vunpack.c.h.bf16 %v347_v29 }
   0x7   :  { %358 = vmatpush3.bf16.msra.mxu0 %v386_v2  ;;  %380 = vmatpush3.bf16.msra.mxu1 %v386_v2 }
   0x8   :  { %359 = vmatprep.subr.bf16.mxu0 %v404_v0  ;;  %377 = vmatprep.subr.bf16.mxu1 %v404_v0 }
   0xb   :  { %360 = vmatpush3.bf16.msra.mxu0 %v387_v3  ;;  %381 = vmatpush3.bf16.msra.mxu1 %v387_v3 }
   0xc   :  { %361 = vmatprep.subr.bf16.mxu0 %v404_v0  ;;  %378 = vmatprep.subr.bf16.mxu1 %v404_v0 }
   0xf   :  { %362 = vmatpush3.bf16.msra.mxu0 %v388_v4  ;;  %382 = vmatpush3.bf16.msra.mxu1 %v388_v4 }
  0x12   :  { %364 = vmatmul.mubr.msk.bf16.vlgmr.msra.gmra.mrb[0].mxu0 %vm84_vm1, %v389_v5  ;;  %368 = vmatmul.mubr.msk.bf16.vlgmr.msra.gmra.mrb[0].mxu1 %vm84_vm1, %v390_v6 }
  0x13   :  { %371 = vmatprep.mubr.msk.bf16.mxu1 %vm405_vm0, %v404_v0 }
  0x1a   :  { %372 = vmatmul.mubr.msk.bf16.gmra.mrb[4].mxu1 %vm84_vm1, %v391_v7 }
  0xe5   :  { %v128_v13 = vpop.f32.mrb[0].mxu0  ;;  %v136_v14 = vpop.f32.mrb[0].mxu1 }
  0xe6   :  { %v129_v15 = vadd.f32 %v309_v10, %v128_v13  ;;  %v137_v16 = vadd.f32 %v309_v10, %v136_v14  ;;  %v365_v17 = vpop.f32.mrb[1].mxu0  ;;  %v369_v18 = vpop.f32.mrb[1].mxu1 }
  0xe7   :  { %v131_v21 = vpop.f32.mrb[2].mxu0  ;;  %v139_v22 = vpop.f32.mrb[2].mxu1 }
  0xe8   :  { %v132_v23 = vadd.f32 %v309_v10, %v131_v21  ;;  %v140_v24 = vadd.f32 %v309_v10, %v139_v22  ;;  %v366_v25 = vpop.f32.mrb[3].mxu0  ;;  %v370_v26 = vpop.f32.mrb[3].mxu1  ;;  %v165_v27 = vadd.f32 %v340_v11, %v137_v16  ;;  %v163_v28 = vadd.f32 %v336_v12, %v129_v15 }
  0xea   :  { %v177_v30 = vsel %vm84_vm1, %v165_v27, 0.0  ;;  %v171_v31 = vsel %vm84_vm1, %v163_v28, 0.0  ;;  %v166_v32 = vadd.f32 %v341_v19, %v140_v24  ;;  %v164_v33 = vadd.f32 %v337_v20, %v132_v23 }
  0xeb   :  { %178 = vadd.xlane.f32.xlu1 %v177_v30  ;;  %172 = vadd.xlane.f32.xlu0 %v171_v31 }
  0xec   :  { %v180_v38 = vsel %vm84_vm1, %v166_v32, 0.0  ;;  %v174_v39 = vsel %vm84_vm1, %v164_v33, 0.0 }
  0xed   :  { %v144_v35 = vpop.f32.mrb[4].mxu1 }
  0xee   :  { %v145_v36 = vadd.f32 %v309_v10, %v144_v35  ;;  %v373_v37 = vpop.f32.mrb[5].mxu1  ;;  %v321_v35 = vld [vmem:[%s542_s5] ss:$0 sm:$0xff] }
  0xef   :  { %181 = vadd.xlane.f32.xlu1 %v180_v38  ;;  %v147_v41 = vpop.f32.mrb[6].mxu1  ;;  %175 = vadd.xlane.f32.xlu0 %v174_v39 }
  0xf0   :  { %v148_v42 = vadd.f32 %v309_v10, %v147_v41  ;;  %v374_v43 = vpop.f32.mrb[7].mxu1  ;;  %v167_v44 = vadd.f32 %v344_v34, %v145_v36 }
  0xf2   :  { %v183_v45 = vsel %vm84_vm1, %v167_v44, 0.0  ;;  %v168_v46 = vadd.f32 %v345_v40, %v148_v42 }
  0xf3   :  { %184 = vadd.xlane.f32.xlu0 %v183_v45 }
  0xf4   :  { %v186_v47 = vsel %vm84_vm1, %v168_v46, 0.0 }
  0xf5   :  { %187 = vadd.xlane.f32.xlu1 %v186_v47 }
 0x178   :  { %v179_v48 = vpop.xlane.xlu1 %178  ;;  %v173_v49 = vpop.xlane.xlu0 %172 }
 0x179   :  { %v192_v50 = vmul.f32 0.015625, %v179_v48  ;;  %v190_v51 = vmul.f32 0.015625, %v173_v49 }
 0x17b   :  { %v486_v52 = vsub.f32 %v165_v27, %v192_v50  ;;  %v196_v53 = vsub.f32 %v163_v28, %v190_v51 }
 0x17c   :  { %v182_v54 = vpop.xlane.xlu1 %181  ;;  %v176_v55 = vpop.xlane.xlu0 %175 }
 0x17d   :  { %v193_v56 = vmul.f32 0.015625, %v182_v54  ;;  %v191_v57 = vmul.f32 0.015625, %v176_v55  ;;  %v202_v58 = vmul.f32 %v196_v53, %v196_v53  ;;  %v204_v59 = vmul.f32 %v486_v52, %v486_v52 }
 0x17f   :  { %v490_v60 = vsub.f32 %v166_v32, %v193_v56  ;;  %v197_v61 = vsub.f32 %v164_v33, %v191_v57  ;;  %v208_v62 = vsel %vm84_vm1, %v202_v58, 0.0  ;;  %v214_v3 = vsel %vm84_vm1, %v204_v59, 0.0  ;;  %v320_v32 = vld [vmem:[%s541_s4] ss:$0 sm:$0xff] }
 0x180   :  { %209 = vadd.xlane.f32.xlu0 %v208_v62  ;;  %v185_v63 = vpop.xlane.xlu0 %184 }
 0x181   :  { %v194_v0 = vmul.f32 0.015625, %v185_v63  ;;  %v203_v1 = vmul.f32 %v197_v61, %v197_v61  ;;  %v205_v7 = vmul.f32 %v490_v60, %v490_v60 }
 0x182   :  { %v188_v2 = vpop.xlane.xlu1 %187 }
 0x183   :  { %v200_v4 = vsub.f32 %v167_v44, %v194_v0  ;;  %v195_v5 = vmul.f32 0.015625, %v188_v2  ;;  %v211_v6 = vsel %vm84_vm1, %v203_v1, 0.0  ;;  %v217_v10 = vsel %vm84_vm1, %v205_v7, 0.0 }
 0x184   :  { %215 = vadd.xlane.f32.xlu0 %v214_v3  ;;  %212 = vadd.xlane.f32.xlu1 %v211_v6 }
 0x185   :  { %v497_v8 = vsub.f32 %v168_v46, %v195_v5  ;;  %v206_v9 = vmul.f32 %v200_v4, %v200_v4 }
 0x187   :  { %v220_v11 = vsel %vm84_vm1, %v206_v9, 0.0  ;;  %v207_v12 = vmul.f32 %v497_v8, %v497_v8 }
 0x188   :  { %218 = vadd.xlane.f32.xlu1 %v217_v10  ;;  %221 = vadd.xlane.f32.xlu0 %v220_v11 }
 0x189   :  { %v223_v13 = vsel %vm84_vm1, %v207_v12, 0.0 }
 0x18c   :  { %224 = vadd.xlane.f32.xlu1 %v223_v13 }
 0x20d   :  { %v210_v14 = vpop.xlane.xlu0 %209 }
 0x20e   :  { %v226_v15 = vmul.f32 0.015625, %v210_v14 }
 0x210   :  { %v232_v16 = vadd.f32 1e-05, %v226_v15 }
 0x211   :  { %v213_v17 = vpop.xlane.xlu1 %212  ;;  %v216_v18 = vpop.xlane.xlu0 %215 }
 0x212   :  { %392 = vrsqrt.f32 %v232_v16  ;;  %v227_v19 = vmul.f32 0.015625, %v213_v17  ;;  %v228_v20 = vmul.f32 0.015625, %v216_v18 }
 0x214   :  { %v233_v21 = vadd.f32 1e-05, %v227_v19  ;;  %v234_v22 = vadd.f32 1e-05, %v228_v20 }
 0x215   :  { %v219_v23 = vpop.xlane.xlu1 %218  ;;  %v222_v24 = vpop.xlane.xlu0 %221 }
 0x216   :  { %394 = vrsqrt.f32 %v233_v21  ;;  %v229_v25 = vmul.f32 0.015625, %v219_v23  ;;  %v230_v26 = vmul.f32 0.015625, %v222_v24 }
 0x217   :  { %396 = vrsqrt.f32 %v234_v22 }
 0x218   :  { %v235_v27 = vadd.f32 1e-05, %v229_v25  ;;  %v236_v28 = vadd.f32 1e-05, %v230_v26 }
 0x219   :  { %v225_v29 = vpop.xlane.xlu1 %224 }
 0x21a   :  { %398 = vrsqrt.f32 %v235_v27  ;;  %v231_v30 = vmul.f32 0.015625, %v225_v29 }
 0x21b   :  { %400 = vrsqrt.f32 %v236_v28 }
 0x21c   :  { %v393_v31 = vpop.eup %392  ;;  %v237_v33 = vadd.f32 1e-05, %v231_v30 }
 0x21d   :  { %v244_v34 = vmul.f32 %v393_v31, %v196_v53 }
 0x21e   :  { %402 = vrsqrt.f32 %v237_v33 }
 0x21f   :  { %v256_v36 = vmul.f32 %v320_v32, %v244_v34 }
 0x220   :  { %v395_v37 = vpop.eup %394 }
 0x221   :  { %v397_v38 = vpop.eup %396  ;;  %v268_v39 = vadd.f32 %v321_v35, %v256_v36  ;;  %v245_v40 = vmul.f32 %v395_v37, %v197_v61 }
 0x222   :  { %v246_v41 = vmul.f32 %v397_v38, %v486_v52 }
 0x223   :  { %v328_v42 = vpack.c.bf16 %v268_v39, %v268_v39  ;;  %v257_v43 = vmul.f32 %v320_v32, %v245_v40 }
 0x224   :  { %v399_v44 = vpop.eup %398  ;;  %v258_v45 = vmul.f32 %v320_v32, %v246_v41 }
 0x225   :  { %v401_v46 = vpop.eup %400  ;;  %299 = vst.msk [vmem:[%s543_s6] sm:$0xf] %vm298_vm2, %v328_v42  ;;  %v269_v47 = vadd.f32 %v321_v35, %v257_v43  ;;  %v247_v48 = vmul.f32 %v399_v44, %v490_v60 }
 0x226   :  { %v270_v49 = vadd.f32 %v321_v35, %v258_v45  ;;  %v248_v50 = vmul.f32 %v401_v46, %v200_v4 }
 0x227   :  { %v329_v51 = vpack.c.bf16 %v269_v47, %v269_v47  ;;  %v259_v53 = vmul.f32 %v320_v32, %v247_v48 }
 0x228   :  { %v403_v54 = vpop.eup %402  ;;  %v330_v55 = vpack.c.bf16 %v270_v49, %v270_v49  ;;  %v260_v52 = vmul.f32 %v320_v32, %v248_v50 }
 0x229   :  { %300 = vst.msk [vmem:[%s543_s6 + $0x4] sm:$0xf] %vm298_vm2, %v329_v51  ;;  %v271_v56 = vadd.f32 %v321_v35, %v259_v53  ;;  %v249_v57 = vmul.f32 %v403_v54, %v497_v8 }
 0x22a   :  { %301 = vst.msk [vmem:[%s543_s6 + $0x8] sm:$0xf] %vm298_vm2, %v330_v55  ;;  %v272_v58 = vadd.f32 %v321_v35, %v260_v52 }
 0x22b   :  { %v331_v59 = vpack.c.bf16 %v271_v56, %v271_v56  ;;  %v261_v60 = vmul.f32 %v320_v32, %v249_v57 }
 0x22c   :  { %v332_v61 = vpack.c.bf16 %v272_v58, %v272_v58 }
 0x22d   :  { %302 = vst.msk [vmem:[%s543_s6 + $0xc] sm:$0xf] %vm298_vm2, %v331_v59  ;;  %v273_v62 = vadd.f32 %v321_v35, %v261_v60 }
 0x22e   :  { %303 = vst.msk [vmem:[%s543_s6 + $0x10] sm:$0xf] %vm298_vm2, %v332_v61 }
 0x22f   :  { %v333_v63 = vpack.c.bf16 %v273_v62, %v273_v62 }
 0x231   :  { %304 = vst.msk [vmem:[%s543_s6 + $0x14] sm:$0xf] %vm298_vm2, %v333_v63 }

// kernel: mmer_forward.116
= control target key start
LH: loop header
LB: loop body
LE: loop exit
PB: predicated region body
PF: predicated region fallthrough
CT: control target
= control target key end

     0   :  { %v266_v0 = vmov 0.0   ;;  %vm267_vm0 = vmmov 0   ;;  %vm75_vm1 = vcmask 523264   ;;  %s324_s1 = inlined_call_operand.vmem [shape: bf16[1,64,128], index: 1, kind: input, shape index: {}]   ;;  %s325_s0 = inlined_call_operand.vmem [shape: bf16[1,48,64], index: 0, kind: input, shape index: {}]   ;;  %s326_s2 = inlined_call_operand.vmem [shape: f32[1,1,128], index: 2, kind: input, shape index: {}]   ;;  %s327_s3 = inlined_call_operand.vmem [shape: bf16[1,48,128], index: 3, kind: output, shape index: {}]  }
   0x1   :  { %249 = vmatprep.subr.bf16.mxu1 %v266_v0  ;;  %v259_v1 = vld [vmem:[%s324_s1] sm:$0xff]   ;;  %229 = vmatprep.subr.bf16.mxu0 %v266_v0  ;;  %v260_v2 = vld [vmem:[%s324_s1 + $0x8] sm:$0xff]   ;;  %v261_v3 = vld [vmem:[%s324_s1 + $0x10] sm:$0xff]  }
   0x2   :  { %241 = vmatprep.mubr.msk.bf16.mxu1 %vm267_vm0, %v266_v0  ;;  %237 = vmatprep.mubr.msk.bf16.mxu0 %vm267_vm0, %v266_v0  ;;  %v262_v4 = vld [vmem:[%s324_s1 + $0x18] sm:$0xff]   ;;  %v263_v5 = vld [vmem:[%s325_s0 + $0x8] sm:$0xff]   ;;  %v264_v6 = vld [vmem:[%s325_s0] sm:$0xff]  }
   0x3   :  { %253 = vmatpush3.bf16.msra.mxu1 %v259_v1  ;;  %230 = vmatpush3.bf16.msra.mxu0 %v259_v1  ;;  %v265_v7 = vld [vmem:[%s325_s0 + $0x10] sm:$0xff]   ;;  %v182_v8 = vld [vmem:[%s326_s2] ss:$0 sm:$0xff] }
   0x4   :  { %250 = vmatprep.subr.bf16.mxu1 %v266_v0  ;;  %231 = vmatprep.subr.bf16.mxu0 %v266_v0 }
   0x7   :  { %254 = vmatpush3.bf16.msra.mxu1 %v260_v2  ;;  %232 = vmatpush3.bf16.msra.mxu0 %v260_v2 }
   0x8   :  { %251 = vmatprep.subr.bf16.mxu1 %v266_v0  ;;  %233 = vmatprep.subr.bf16.mxu0 %v266_v0 }
   0xb   :  { %255 = vmatpush3.bf16.msra.mxu1 %v261_v3  ;;  %234 = vmatpush3.bf16.msra.mxu0 %v261_v3 }
   0xc   :  { %252 = vmatprep.subr.bf16.mxu1 %v266_v0  ;;  %235 = vmatprep.subr.bf16.mxu0 %v266_v0 }
   0xf   :  { %256 = vmatpush3.bf16.msra.mxu1 %v262_v4  ;;  %236 = vmatpush3.bf16.msra.mxu0 %v262_v4 }
  0x12   :  { %242 = vmatmul.mubr.msk.bf16.vlgmr.msra.gmra.mrb[0].mxu1 %vm75_vm1, %v263_v5  ;;  %238 = vmatmul.mubr.msk.bf16.vlgmr.msra.gmra.mrb[0].mxu0 %vm75_vm1, %v264_v6 }
  0x13   :  { %245 = vmatprep.mubr.msk.bf16.mxu1 %vm267_vm0, %v266_v0 }
  0x1a   :  { %246 = vmatmul.mubr.msk.bf16.gmra.mrb[4].mxu1 %vm75_vm1, %v265_v7 }
  0xe5   :  { %v127_v9 = vpop.f32.mrb[0].mxu1  ;;  %v119_v10 = vpop.f32.mrb[0].mxu0 }
  0xe6   :  { %v128_v11 = vadd.f32 %v182_v8, %v127_v9  ;;  %v243_v12 = vpop.f32.mrb[1].mxu1  ;;  %v120_v13 = vadd.f32 %v182_v8, %v119_v10  ;;  %v239_v14 = vpop.f32.mrb[1].mxu0 }
  0xe7   :  { %v130_v15 = vpop.f32.mrb[2].mxu1  ;;  %v122_v16 = vpop.f32.mrb[2].mxu0 }
  0xe8   :  { %v131_v17 = vadd.f32 %v182_v8, %v130_v15  ;;  %v244_v18 = vpop.f32.mrb[3].mxu1  ;;  %v142_v19 = vmax.f32 %v120_v13, 0.0  ;;  %v123_v20 = vadd.f32 %v182_v8, %v122_v16  ;;  %v240_v21 = vpop.f32.mrb[3].mxu0  ;;  %v144_v22 = vmax.f32 %v128_v11, 0.0 }
  0xea   :  { %v145_v23 = vmax.f32 %v131_v17, 0.0  ;;  %v143_v24 = vmax.f32 %v123_v20, 0.0 }
  0xec   :  { %v213_v25 = vpack.c.bf16 %v145_v23, %v144_v22  ;;  %v208_v26 = vpack.c.bf16 %v143_v24, %v142_v19 }
  0xed   :  { %v135_v27 = vpop.f32.mrb[4].mxu1 }
  0xee   :  { %220 = vst [vmem:[%s327_s3 + $0x8] sm:$0xff] %v213_v25   ;;  %209 = vst [vmem:[%s327_s3] sm:$0xff] %v208_v26   ;;  %v136_v28 = vadd.f32 %v182_v8, %v135_v27  ;;  %v247_v29 = vpop.f32.mrb[5].mxu1 }
  0xef   :  { %v138_v30 = vpop.f32.mrb[6].mxu1 }
  0xf0   :  { %v139_v31 = vadd.f32 %v182_v8, %v138_v30  ;;  %v248_v32 = vpop.f32.mrb[7].mxu1  ;;  %v146_v33 = vmax.f32 %v136_v28, 0.0 }
  0xf2   :  { %v147_v34 = vmax.f32 %v139_v31, 0.0 }
  0xf4   :  { %v218_v35 = vpack.c.bf16 %v147_v34, %v146_v33 }
  0xf6   :  { %221 = vst [vmem:[%s327_s3 + $0x10] sm:$0xff] %v218_v35  }

// kernel: mmer_forward.114
= control target key start
LH: loop header
LB: loop body
LE: loop exit
PB: predicated region body
PF: predicated region fallthrough
CT: control target
= control target key end

     0   :  { %s2956_s6 = smov 0   ;;  %s3535_s0 = inlined_call_operand.vmem [shape: bf16[2,24,192], index: 0, kind: input, shape index: {}]   ;;  %s3536_s1 = inlined_call_operand.vmem [shape: bf16[2,24,64], index: 1, kind: output, shape index: {}]  }
   0x1 LB: > { %s2658_s7 = sadd.s32 4294967295, %s2934_s6   ;;  %p2662_p0 = scmp.ge.s32.totalorder %s2934_s6, 1  ;;  %s2934_s6 = sphi %s2956_s6, %s11_s6  }
   0x2   : > { %p87_p1 = scmp.lt.s32.totalorder %s2934_s6, 3 }
   0x4   : > { %p88_p2 = pnand %p2662_p0, %p87_p1 }
   0x5   : > { %p107_p3 = scmp.lt.s32.totalorder (!%p88_p2), %s2658_s7, 1  ;;  %s2936_s12 = smov (!%p88_p2), 96   ;;  %v2940_v3 = vmov (!%p88_p2), 1983009808   ;;  %v182_v5 = vlaneseq (!%p88_p2)  ;;  %v2941_v6 = vmov (!%p88_p2), 1934713408  }
   0x6   : > { %91 = sbr.rel (%p88_p2) target bundleno = 1222 (0x4c6), region = 24  ;;  %s2937_s13 = smov (!%p88_p2), 112   ;;  %v180_v4 = vunpack.c.l.s4 (!%p88_p2), %v2940_v3  ;;  %v197_v7 = vunpack.c.l.s4 (!%p88_p2), %v2941_v6  ;;  %vm1466_vm0 = vcmask (!%p88_p2), 130048   ;;  %vm1890_vm1 = vcmask (!%p88_p2), 1043456  }
   0x7   : > { %s2938_s14 = smov (!%p88_p2), 80   ;;  %s2939_s15 = smov (!%p88_p2), 64   ;;  %v183_v9 = vshrl.u32 (!%p88_p2), %v182_v5, 7  ;;  %vm1737_vm2 = vcmask (!%p88_p2), 195584   ;;  %vm2578_vm3 = vcmask (!%p88_p2), 261120   ;;  %vm2582_vm4 = vcmask (!%p88_p2), 392192  }
   0x8   : > { %v181_v8 = vunpack.c.0.s8 (!%p88_p2), %v180_v4  ;;  %v198_v13 = vunpack.c.0.s8 (!%p88_p2), %v197_v7  ;;  %s2943_s16 = smov (!%p88_p2), 32   ;;  %s2944_s17 = smov (!%p88_p2), 16   ;;  %vm2599_vm5 = vcmask (!%p88_p2), 519168  }
   0x9   : > { %s2945_s18 = smov (!%p88_p2), 48  }
   0xa   : > { %v2989_v19 = vsub.s32 (!%p88_p2), %v181_v8, %v183_v9  ;;  %v2994_v26 = vsub.s32 (!%p88_p2), %v198_v13, %v183_v9 }
   0xd   : > { %s3538_s7 = smov (!%p107_p3, %s2658_s7), 1 }
   0xe   : > { %s2845_s8 = smul.u32 24, %s3538_s7 }
   0xf   : > { %s2846_s19 = smul.u32 12, %s3538_s7 }
  0x10   : > { %s111_s11 = scalar_lea.vmem %s3535_s0, %s2845_s8 }
  0x11   : > { %v118_v0 = vld [vmem:[%s111_s11] sm:$0xff]  ;;  %v2970_v1 = vld [vmem:[%s111_s11 + $0x8] sm:$0xff]  ;;  %v2975_v2 = vld [vmem:[%s111_s11 + $0x10] sm:$0xff]  ;;  %s116_s22 = scalar_lea.vmem %s3536_s1, %s2846_s19 }
  0x12   : > { %130 = vrot.lane.b32.xlu1 %v118_v0, %s2936_s12  ;;  %124 = vrot.lane.b32.xlu0 %v118_v0, %s2937_s13  ;;  %v145_v10 = vshrl.u32 %v118_v0, 16  ;;  %v1018_v11 = vrot.slane %v118_v0, 4  ;;  %v1019_v12 = vrot.slane %v2970_v1, 4  ;;  %v1020_v16 = vrot.slane %v2975_v2, 4 }
  0x13   : > { %v157_v22 = vshrl.u32 %v2970_v1, 16  ;;  %v169_v31 = vshrl.u32 %v2975_v2, 16 }
  0x14   : > { %v2992_v24 = vshrl.u32 %v1018_v11, 16  ;;  %v1045_v25 = vshrl.u32 %v1019_v12, 16  ;;  %v2999_v32 = vshrl.u32 %v1020_v16, 16 }
  0x16   : > { %132 = vrot.lane.b32.xlu1 %v2970_v1, %s2936_s12  ;;  %126 = vrot.lane.b32.xlu0 %v2970_v1, %s2937_s13 }
  0x1a   : > { %138 = vrot.lane.b32.xlu1 %v2970_v1, %s2938_s14  ;;  %136 = vrot.lane.b32.xlu0 %v118_v0, %s2938_s14 }
  0x1e   : > { %128 = vrot.lane.b32.xlu0 %v2975_v2, %s2937_s13  ;;  %134 = vrot.lane.b32.xlu1 %v2975_v2, %s2936_s12 }
  0x22   : > { %140 = vrot.lane.b32.xlu0 %v2975_v2, %s2938_s14  ;;  %568 = vrot.lane.b32.xlu1 %v118_v0, %s2939_s15 }
  0x26   : > { %570 = vrot.lane.b32.xlu0 %v2970_v1, %s2939_s15 }
  0x84   : > { %v2984_v14 = vpop.permute.xlu1 %130  ;;  %v125_v15 = vpop.permute.xlu0 %124 }
  0x85   : > { %v1024_v17 = vrot.slane %v2984_v14, 4  ;;  %v146_v18 = vshrl.u32 %v125_v15, 16  ;;  %574 = vrot.lane.b32.xlu1 %v125_v15, %s2939_s15  ;;  %v144_v20 = vpack.i.b16 %v125_v15, %v118_v0  ;;  %v1021_v21 = vrot.slane %v125_v15, 4 }
  0x86   : > { %v151_v33 = vshrl.u32 %v2984_v14, 16 }
  0x87   : > { %v147_v23 = vpack.i.b16 %v146_v18, %v145_v10  ;;  %v1032_v27 = vpack.i.b16 %v1021_v21, %v1018_v11  ;;  %v1034_v28 = vshrl.u32 %v1021_v21, 16  ;;  %v3004_v34 = vshrl.u32 %v1024_v17, 16 }
  0x88   : > { %v133_v29 = vpop.permute.xlu1 %132  ;;  %v127_v30 = vpop.permute.xlu0 %126  ;;  %v3010_v36 = vrot.slane %v144_v20, %v2989_v19 }
  0x89   : > { %v1025_v35 = vrot.slane %v133_v29, 4  ;;  %580 = vrot.lane.b32.xlu1 %v2984_v14, %s2939_s15  ;;  %576 = vrot.lane.b32.xlu0 %v127_v30, %s2939_s15  ;;  %v156_v37 = vpack.i.b16 %v127_v30, %v2970_v1  ;;  %v158_v38 = vshrl.u32 %v127_v30, 16  ;;  %v1022_v39 = vrot.slane %v127_v30, 4 }
  0x8a   : > { %v3014_v40 = vrot.slane %v147_v23, %v2989_v19  ;;  %v1035_v41 = vpack.i.b16 %v1034_v28, %v2992_v24  ;;  %v3018_v42 = vrot.slane %v1032_v27, %v2989_v19  ;;  %v163_v43 = vshrl.u32 %v133_v29, 16 }
  0x8b   : > { %v1051_v44 = vshrl.u32 %v1025_v35, 16  ;;  %v159_v45 = vpack.i.b16 %v158_v38, %v157_v22  ;;  %v1044_v46 = vpack.i.b16 %v1022_v39, %v1019_v12  ;;  %v1046_v47 = vshrl.u32 %v1022_v39, 16 }
  0x8c   : > { %v139_v48 = vpop.permute.xlu1 %138  ;;  %v3020_v49 = vpop.permute.xlu0 %136  ;;  %v253_v54 = vrot.slane %v156_v37, %v2989_v19  ;;  %v3051_v24 = vrot.slane %v1035_v41, %v2989_v19 }
  0x8d   : > { %v162_v50 = vpack.i.b16 %v139_v48, %v133_v29  ;;  %v164_v51 = vshrl.u32 %v139_v48, 16  ;;  %v1028_v52 = vrot.slane %v139_v48, 4  ;;  %v150_v53 = vpack.i.b16 %v3020_v49, %v2984_v14  ;;  %582 = vrot.lane.b32.xlu0 %v133_v29, %s2939_s15  ;;  %586 = vrot.lane.b32.xlu1 %v3020_v49, %s2939_s15 }
  0x8e   : > { %v287_v55 = vrot.slane %v159_v45, %v2989_v19  ;;  %v1047_v56 = vpack.i.b16 %v1046_v47, %v1045_v25  ;;  %v152_v57 = vshrl.u32 %v3020_v49, 16  ;;  %v1141_v62 = vrot.slane %v1044_v46, %v2989_v19 }
  0x8f   : > { %v165_v58 = vpack.i.b16 %v164_v51, %v163_v43  ;;  %v261_v59 = vrot.slane %v162_v50, %v2989_v19  ;;  %v1050_v60 = vpack.i.b16 %v1028_v52, %v1025_v35  ;;  %v1052_v61 = vshrl.u32 %v1028_v52, 16 }
  0x90   : > { %v1175_v63 = vrot.slane %v1047_v56, %v2989_v19  ;;  %v153_v0 = vpack.i.b16 %v152_v57, %v151_v33  ;;  %v193_v1 = vrot.slane %v150_v53, %v2989_v19  ;;  %v1027_v10 = vrot.slane %v3020_v49, 4  ;;  %v129_v11 = vpop.permute.xlu0 %128  ;;  %v135_v29 = vpop.permute.xlu1 %134 }
  0x91   : > { %v262_v3 = vcombine.low %v253_v54, %v261_v59  ;;  %v263_v4 = vcombine.high %v253_v54, %v261_v59  ;;  %v295_v5 = vrot.slane %v165_v58, %v2989_v19  ;;  %v1053_v6 = vpack.i.b16 %v1052_v61, %v1051_v44  ;;  %588 = vrot.lane.b32.xlu0 %v139_v48, %s2939_s15 }
  0x92   : > { %v1149_v7 = vrot.slane %v1050_v60, %v2989_v19  ;;  %v194_v8 = vcombine.low %v3010_v36, %v193_v1  ;;  %v195_v9 = vcombine.high %v3010_v36, %v193_v1  ;;  %572 = vrot.lane.b32.xlu1 %v2975_v2, %s2939_s15  ;;  %v227_v18 = vrot.slane %v153_v0, %v2989_v19 }
  0x93   : > { %v3043_v12 = vrot.slane %v262_v3, %v2994_v26  ;;  %v296_v13 = vcombine.low %v287_v55, %v295_v5  ;;  %v297_v15 = vcombine.high %v287_v55, %v295_v5  ;;  %v3047_v20 = vrot.slane %v263_v4, %v2994_v26 }
  0x94   : > { %v1150_v21 = vcombine.low %v1141_v62, %v1149_v7  ;;  %v1151_v22 = vcombine.high %v1141_v62, %v1149_v7  ;;  %v1183_v23 = vrot.slane %v1053_v6, %v2989_v19  ;;  %v202_v28 = vrot.slane %v194_v8, %v2994_v26  ;;  %v141_v47 = vpop.permute.xlu0 %140 }
  0x95   : > { %v3054_v25 = vrot.slane %v296_v13, %v2994_v26  ;;  %v3057_v27 = vrot.slane %v297_v15, %v2994_v26  ;;  %578 = vrot.lane.b32.xlu0 %v129_v11, %s2939_s15  ;;  %v209_v37 = vrot.slane %v195_v9, %v2994_v26  ;;  %v228_v38 = vcombine.low %v3014_v40, %v227_v18 }
  0x96   : > { %v3062_v30 = vrot.slane %v1150_v21, %v2994_v26  ;;  %v3065_v33 = vrot.slane %v1151_v22, %v2994_v26  ;;  %v1184_v35 = vcombine.low %v1175_v63, %v1183_v23  ;;  %v1185_v36 = vcombine.high %v1175_v63, %v1183_v23  ;;  %584 = vrot.lane.b32.xlu1 %v135_v29, %s2939_s15 }
  0x97   : > { %v229_v39 = vcombine.high %v3014_v40, %v227_v18  ;;  %v1038_v41 = vpack.i.b16 %v1027_v10, %v1024_v17  ;;  %v432_v43 = vcombine.low %v3043_v12, %v3047_v20  ;;  %v2667_v44 = vcombine.high %v3043_v12, %v3047_v20 }
  0x98   : > { %v1320_v45 = vcombine.low %v3062_v30, %v3065_v33  ;;  %v2679_v46 = vcombine.high %v3062_v30, %v3065_v33  ;;  %v3082_v48 = vrot.slane %v1184_v35, %v2994_v26  ;;  %v3085_v40 = vrot.slane %v1185_v36, %v2994_v26 }
  0x99   : > { %v3088_v14 = vrot.slane %v228_v38, %v2994_v26  ;;  %v3091_v17 = vrot.slane %v229_v39, %v2994_v26  ;;  %590 = vrot.lane.b32.xlu0 %v141_v47, %s2939_s15  ;;  %v1040_v49 = vshrl.u32 %v1027_v10, 16  ;;  %v1081_v50 = vrot.slane %v1038_v41, %v2989_v19 }
  0x9a   : > { %v168_v51 = vpack.i.b16 %v129_v11, %v2975_v2  ;;  %v170_v52 = vshrl.u32 %v129_v11, 16  ;;  %v382_v53 = vcombine.low %v202_v28, %v209_v37  ;;  %v1023_v54 = vrot.slane %v129_v11, 4 }
  0x9b   : > { %v1026_v55 = vrot.slane %v135_v29, 4  ;;  %v174_v56 = vpack.i.b16 %v141_v47, %v135_v29  ;;  %v2665_v57 = vcombine.high %v202_v28, %v209_v37  ;;  %v1041_v58 = vpack.i.b16 %v1040_v49, %v3004_v34 }
  0x9c   : > { %v1082_v59 = vcombine.low %v3018_v42, %v1081_v50  ;;  %v1083_v60 = vcombine.high %v3018_v42, %v1081_v50  ;;  %v171_v61 = vpack.i.b16 %v170_v52, %v169_v31  ;;  %v321_v62 = vrot.slane %v168_v51, %v2989_v19 }
  0x9d   : > { %v1058_v63 = vshrl.u32 %v1023_v54, 16  ;;  %v175_v0 = vshrl.u32 %v135_v29, 16  ;;  %v3109_v4 = vrot.slane %v1041_v58, %v2989_v19  ;;  %v1056_v34 = vpack.i.b16 %v1023_v54, %v1020_v16 }
  0x9e   : > { %v3103_v1 = vrot.slane %v1082_v59, %v2994_v26  ;;  %v3106_v3 = vrot.slane %v1083_v60, %v2994_v26  ;;  %v1063_v5 = vshrl.u32 %v1026_v55, 16  ;;  %v176_v31 = vshrl.u32 %v141_v47, 16 }
  0x9f   : > { %v1059_v42 = vpack.i.b16 %v1058_v63, %v2999_v32  ;;  %v329_v6 = vrot.slane %v174_v56, %v2989_v19  ;;  %v1116_v7 = vcombine.low %v3051_v24, %v3109_v4  ;;  %v1117_v8 = vcombine.high %v3051_v24, %v3109_v4 }
  0xa0   : > { %v1270_v9 = vcombine.low %v3103_v1, %v3106_v3  ;;  %v2677_v10 = vcombine.high %v3103_v1, %v3106_v3  ;;  %v355_v2 = vrot.slane %v171_v61, %v2989_v19  ;;  %v177_v16 = vpack.i.b16 %v176_v31, %v175_v0 }
  0xa1   : > { %v330_v32 = vcombine.low %v321_v62, %v329_v6  ;;  %v331_v11 = vcombine.high %v321_v62, %v329_v6  ;;  %v1209_v13 = vrot.slane %v1056_v34, %v2989_v19  ;;  %v1243_v15 = vrot.slane %v1059_v42, %v2989_v19 }
  0xa2   : > { %v1029_v18 = vrot.slane %v141_v47, 4  ;;  %v389_v21 = vrot.slane %v382_v53, %v2989_v19  ;;  %v363_v24 = vrot.slane %v177_v16, %v2989_v19  ;;  %v397_v28 = vrot.slane %v2665_v57, %v2989_v19 }
  0xa3   : > { %v338_v22 = vrot.slane %v330_v32, %v2994_v26  ;;  %v345_v23 = vrot.slane %v331_v11, %v2994_v26  ;;  %v407_v36 = vcombine.low %v3088_v14, %v3091_v17  ;;  %v2666_v37 = vcombine.high %v3088_v14, %v3091_v17 }
  0xa4   : > { %v1062_v29 = vpack.i.b16 %v1029_v18, %v1026_v55  ;;  %v1064_v35 = vshrl.u32 %v1029_v18, 16  ;;  %v364_v38 = vcombine.low %v355_v2, %v363_v24  ;;  %v365_v39 = vcombine.high %v355_v2, %v363_v24 }
  0xa5   : > { %v482_v41 = vcombine.low %v338_v22, %v345_v23  ;;  %v2669_v47 = vcombine.high %v338_v22, %v345_v23  ;;  %v398_v51 = vcombine.low %v389_v21, %v397_v28  ;;  %v414_v52 = vrot.slane %v407_v36, %v2989_v19 }
  0xa6   : > { %v1065_v49 = vpack.i.b16 %v1064_v35, %v1063_v5  ;;  %v1217_v50 = vrot.slane %v1062_v29, %v2989_v19  ;;  %v372_v53 = vrot.slane %v364_v38, %v2994_v26  ;;  %v379_v54 = vrot.slane %v365_v39, %v2994_v26 }
  0xa7   : > { %v489_v55 = vrot.slane %v482_v41, %v2989_v19  ;;  %v497_v56 = vrot.slane %v2669_v47, %v2989_v19  ;;  %v405_v58 = vrot.slane %v398_v51, %v2994_v26  ;;  %v422_v61 = vrot.slane %v2666_v37, %v2989_v19 }
  0xa8   : > { %v1218_v57 = vcombine.low %v1209_v13, %v1217_v50  ;;  %v1219_v14 = vcombine.high %v1209_v13, %v1217_v50  ;;  %v1251_v17 = vrot.slane %v1065_v49, %v2989_v19  ;;  %v507_v59 = vcombine.low %v372_v53, %v379_v54 }
  0xa9   : > { %v2670_v60 = vcombine.high %v372_v53, %v379_v54  ;;  %v439_v62 = vrot.slane %v432_v43, %v2989_v19  ;;  %v423_v42 = vcombine.low %v414_v52, %v422_v61  ;;  %v447_v5 = vrot.slane %v2667_v44, %v2989_v19 }
  0xaa   : > { %v3149_v63 = vrot.slane %v1218_v57, %v2994_v26  ;;  %v3152_v0 = vrot.slane %v1219_v14, %v2994_v26  ;;  %v1252_v4 = vcombine.low %v1243_v15, %v1251_v17  ;;  %v1253_v34 = vcombine.high %v1243_v15, %v1251_v17 }
  0xab   : > { %v457_v31 = vcombine.low %v3054_v25, %v3057_v27  ;;  %v2668_v43 = vcombine.high %v3054_v25, %v3057_v27  ;;  %v430_v12 = vrot.slane %v423_v42, %v2994_v26  ;;  %v448_v20 = vcombine.low %v439_v62, %v447_v5 }
  0xac   : > { %v3163_v6 = vrot.slane %v1252_v4, %v2994_v26  ;;  %v3166_v2 = vrot.slane %v1253_v34, %v2994_v26  ;;  %v1370_v16 = vcombine.low %v3149_v63, %v3152_v0  ;;  %v2681_v32 = vcombine.high %v3149_v63, %v3152_v0 }
  0xad   : > { %v464_v44 = vrot.slane %v457_v31, %v2989_v19  ;;  %v472_v25 = vrot.slane %v2668_v43, %v2989_v19  ;;  %v1124_v27 = vrot.slane %v1116_v7, %v2994_v26  ;;  %v1131_v11 = vrot.slane %v1117_v8, %v2994_v26 }
  0xae   : > { %v1395_v13 = vcombine.low %v3163_v6, %v3166_v2  ;;  %v2682_v15 = vcombine.high %v3163_v6, %v3166_v2  ;;  %v455_v18 = vrot.slane %v448_v20, %v2994_v26  ;;  %v535_v22 = vshrl.u32 %v405_v58, 16 }
  0xaf   : > { %v473_v21 = vcombine.low %v464_v44, %v472_v25  ;;  %v536_v23 = vshrl.u32 %v430_v12, 16  ;;  %v534_v24 = vpack.i.b16 %v430_v12, %v405_v58  ;;  %v498_v28 = vcombine.low %v489_v55, %v497_v56 }
  0xb0   : > { %v514_v29 = vrot.slane %v507_v59, %v2989_v19  ;;  %v522_v35 = vrot.slane %v2670_v60, %v2989_v19  ;;  %v547_v36 = vshrl.u32 %v455_v18, 16  ;;  %v2942_v37 = vmov 0  }
  0xb1   : > { %v480_v7 = vrot.slane %v473_v21, %v2994_v26  ;;  %v537_v8 = vpack.i.b16 %v536_v23, %v535_v22  ;;  %v406_v38 = vcombine.high %v405_v58, %v2942_v37  ;;  %v505_v39 = vrot.slane %v498_v28, %v2994_v26 }
  0xb2   : > { %v523_v41 = vcombine.low %v514_v29, %v522_v35  ;;  %v431_v47 = vcombine.high %v430_v12, %v2942_v37  ;;  %v456_v49 = vcombine.high %v455_v18, %v2942_v37  ;;  %v1277_v5 = vrot.slane %v1270_v9, %v2989_v19 }
  0xb3   : > { %v546_v50 = vpack.i.b16 %v480_v7, %v455_v18  ;;  %v548_v51 = vshrl.u32 %v480_v7, 16  ;;  %v481_v52 = vcombine.high %v480_v7, %v2942_v37  ;;  %v541_v53 = vshrl.u32 %v406_v38, 16 }
  0xb4   : > { %v530_v54 = vrot.slane %v523_v41, %v2994_v26  ;;  %v540_v55 = vpack.i.b16 %v431_v47, %v406_v38  ;;  %v559_v56 = vshrl.u32 %v505_v39, 16  ;;  %v542_v57 = vshrl.u32 %v431_v47, 16 }
  0xb5   : > { %v2683_v14 = vcombine.low %v534_v24, %v546_v50  ;;  %v549_v17 = vpack.i.b16 %v548_v51, %v547_v36  ;;  %v552_v58 = vpack.i.b16 %v481_v52, %v456_v49  ;;  %v553_v59 = vshrl.u32 %v456_v49, 16 }
  0xb6   : > { %v3191_v60 = vpack.i.b16 %v530_v54, %v505_v39  ;;  %v560_v61 = vshrl.u32 %v530_v54, 16  ;;  %v3193_v62 = vpack.i.b16 %v542_v57, %v541_v53  ;;  %v554_v4 = vshrl.u32 %v481_v52, 16 }
  0xb7   : > { %2773 = vmatprep.mubr.msk.bf16.mxu0 %vm1466_vm0, %v2683_v14  ;;  %v2689_v34 = vcombine.low %v537_v8, %v549_v17  ;;  %v3196_v42 = vcombine.low %v540_v55, %v552_v58  ;;  %v1285_v31 = vrot.slane %v2677_v10, %v2989_v19  ;;  %v1295_v20 = vcombine.low %v1124_v27, %v1131_v11 }
  0xb8   : > { %v3206_v43 = vpack.i.b16 %v560_v61, %v559_v56  ;;  %v3208_v12 = vpack.i.b16 %v554_v4, %v553_v59  ;;  %v2678_v25 = vcombine.high %v1124_v27, %v1131_v11  ;;  %v1327_v18 = vrot.slane %v1320_v45, %v2989_v19 }
  0xb9   : > { %2781 = vmatprep.mubr.msk.bf16.mxu1 %vm1466_vm0, %v2689_v34  ;;  %v1286_v44 = vcombine.low %v1277_v5, %v1285_v31  ;;  %v1335_v1 = vrot.slane %v2679_v46, %v2989_v19  ;;  %v1302_v9 = vrot.slane %v1295_v20, %v2989_v19  ;;  %v1345_v10 = vcombine.low %v3082_v48, %v3085_v40 }
  0xba   : > { %v2701_v3 = vcombine.low %v3193_v62, %v3208_v12  ;;  %v1310_v11 = vrot.slane %v2678_v25, %v2989_v19  ;;  %v2680_v45 = vcombine.high %v3082_v48, %v3085_v40  ;;  %v506_v30 = vcombine.high %v505_v39, %v2942_v37 }
  0xbb   : > { %v1293_v27 = vrot.slane %v1286_v44, %v2994_v26  ;;  %v1336_v21 = vcombine.low %v1327_v18, %v1335_v1  ;;  %v1352_v22 = vrot.slane %v1345_v10, %v2989_v19  ;;  %v531_v33 = vcombine.high %v530_v54, %v2942_v37 }
  0xbc   : > { %v1377_v46 = vrot.slane %v1370_v16, %v2989_v19  ;;  %v1311_v23 = vcombine.low %v1302_v9, %v1310_v11  ;;  %v1360_v28 = vrot.slane %v2680_v45, %v2989_v19  ;;  %v565_v35 = vshrl.u32 %v506_v30, 16 }
  0xbd   : > { %v1343_v24 = vrot.slane %v1336_v21, %v2994_v26  ;;  %v3237_v29 = vpack.i.b16 %v531_v33, %v506_v30  ;;  %v566_v48 = vshrl.u32 %v531_v33, 16  ;;  %v1385_v40 = vrot.slane %v2681_v32, %v2989_v19  ;;  %v571_v30 = vpop.permute.xlu0 %570 }
  0xbe   : > { %v1318_v7 = vrot.slane %v1311_v23, %v2994_v26  ;;  %v1361_v8 = vcombine.low %v1352_v22, %v1360_v28  ;;  %v1402_v16 = vrot.slane %v1395_v13, %v2989_v19  ;;  %v1423_v36 = vshrl.u32 %v1293_v27, 16  ;;  %v569_v22 = vpop.permute.xlu1 %568 }
  0xbf   : > { %v3248_v38 = vpack.i.b16 %v566_v48, %v565_v35  ;;  %v1386_v39 = vcombine.low %v1377_v46, %v1385_v40  ;;  %v1410_v41 = vrot.slane %v2682_v15, %v2989_v19  ;;  %v1294_v47 = vcombine.high %v1293_v27, %v2942_v37 }
  0xc0   : > { %v1368_v63 = vrot.slane %v1361_v8, %v2994_v26  ;;  %v1422_v0 = vpack.i.b16 %v1318_v7, %v1293_v27  ;;  %v1424_v32 = vshrl.u32 %v1318_v7, 16  ;;  %v1435_v49 = vshrl.u32 %v1343_v24, 16 }
  0xc1   : > { %v1393_v50 = vrot.slane %v1386_v39, %v2994_v26  ;;  %v1411_v51 = vcombine.low %v1402_v16, %v1410_v41  ;;  %v1319_v13 = vcombine.high %v1318_v7, %v2942_v37  ;;  %v1344_v55 = vcombine.high %v1343_v24, %v2942_v37 }
  0xc2   : > { %v1434_v52 = vpack.i.b16 %v1368_v63, %v1343_v24  ;;  %v1425_v53 = vpack.i.b16 %v1424_v32, %v1423_v36  ;;  %v1436_v54 = vshrl.u32 %v1368_v63, 16  ;;  %v1369_v15 = vcombine.high %v1368_v63, %v2942_v37 }
  0xc3   : > { %v1418_v6 = vrot.slane %v1411_v51, %v2994_v26  ;;  %v1447_v2 = vshrl.u32 %v1393_v50, 16  ;;  %v1428_v56 = vpack.i.b16 %v1319_v13, %v1294_v47  ;;  %v1429_v17 = vshrl.u32 %v1294_v47, 16 }
  0xc4   : > { %v3261_v57 = vcombine.low %v1422_v0, %v1434_v52  ;;  %v1437_v14 = vpack.i.b16 %v1436_v54, %v1435_v49  ;;  %v1430_v58 = vshrl.u32 %v1319_v13, 16  ;;  %v1440_v4 = vpack.i.b16 %v1369_v15, %v1344_v55 }
  0xc5   : > { %v3263_v59 = vpack.i.b16 %v1418_v6, %v1393_v50  ;;  %v1448_v61 = vshrl.u32 %v1418_v6, 16  ;;  %v1441_v34 = vshrl.u32 %v1344_v55, 16  ;;  %v1442_v20 = vshrl.u32 %v1369_v15, 16 }
  0xc6   : > { %v3265_v5 = vcombine.low %v1425_v53, %v1437_v14  ;;  %v1431_v31 = vpack.i.b16 %v1430_v58, %v1429_v17  ;;  %v1394_v44 = vcombine.high %v1393_v50, %v2942_v37  ;;  %v3270_v18 = vcombine.low %v1428_v56, %v1440_v4 }
  0xc7   : > { %v3268_v25 = vpack.i.b16 %v1448_v61, %v1447_v2  ;;  %v1419_v1 = vcombine.high %v1418_v6, %v2942_v37  ;;  %v1443_v9 = vpack.i.b16 %v1442_v20, %v1441_v34  ;;  %v595_v46 = vshrl.u32 %v569_v22, 16 }
  0xc8   : > { %v1453_v27 = vshrl.u32 %v1394_v44, 16  ;;  %v607_v41 = vshrl.u32 %v571_v30, 16  ;;  %v2702_v62 = vcombine.low %v3248_v38, %v3248_v38  ;;  %v2708_v12 = vcombine.low %v3263_v59, %v3263_v59 }
  0xc9   : > { %v3273_v10 = vpack.i.b16 %v1419_v1, %v1394_v44  ;;  %v1454_v11 = vshrl.u32 %v1419_v1, 16  ;;  %v3275_v21 = vcombine.low %v1431_v31, %v1443_v9 }
  0xcb   : > { %v3277_v45 = vpack.i.b16 %v1454_v11, %v1453_v27 }
  0xf7   : > { %v575_v33 = vpop.permute.xlu1 %574 }
  0xf8   : > { %v596_v23 = vshrl.u32 %v575_v33, 16  ;;  %v594_v35 = vpack.i.b16 %v575_v33, %v569_v22 }
  0xfa   : > { %v597_v48 = vpack.i.b16 %v596_v23, %v595_v46  ;;  %v635_v0 = vrot.slane %v594_v35, %v2989_v19 }
  0xfb   : > { %v581_v24 = vpop.permute.xlu1 %580  ;;  %v577_v28 = vpop.permute.xlu0 %576 }
  0xfc   : > { %v608_v40 = vshrl.u32 %v577_v28, 16  ;;  %v601_v16 = vshrl.u32 %v581_v24, 16  ;;  %v606_v63 = vpack.i.b16 %v577_v28, %v571_v30  ;;  %v669_v49 = vrot.slane %v597_v48, %v2989_v19 }
  0xfe   : > { %v609_v50 = vpack.i.b16 %v608_v40, %v607_v41  ;;  %v703_v6 = vrot.slane %v606_v63, %v2989_v19 }
  0xff   : > { %v587_v7 = vpop.permute.xlu1 %586  ;;  %v583_v8 = vpop.permute.xlu0 %582 }
 0x100   : > { %v600_v36 = vpack.i.b16 %v587_v7, %v581_v24  ;;  %v602_v39 = vshrl.u32 %v587_v7, 16  ;;  %v613_v2 = vshrl.u32 %v583_v8, 16  ;;  %v737_v61 = vrot.slane %v609_v50, %v2989_v19 }
 0x102   : > { %v603_v32 = vpack.i.b16 %v602_v39, %v601_v16  ;;  %v643_v47 = vrot.slane %v600_v36, %v2989_v19 }
 0x103   : > { %v589_v51 = vpop.permute.xlu0 %588 }
 0x104   : > { %v644_v13 = vcombine.low %v635_v0, %v643_v47  ;;  %v645_v52 = vcombine.high %v635_v0, %v643_v47  ;;  %v677_v53 = vrot.slane %v603_v32, %v2989_v19  ;;  %v612_v54 = vpack.i.b16 %v589_v51, %v583_v8  ;;  %v573_v55 = vpop.permute.xlu1 %572 }
 0x105   : > { %v614_v15 = vshrl.u32 %v589_v51, 16  ;;  %v619_v31 = vshrl.u32 %v573_v55, 16 }
 0x106   : > { %v652_v56 = vrot.slane %v644_v13, %v2994_v26  ;;  %v659_v14 = vrot.slane %v645_v52, %v2994_v26  ;;  %v678_v17 = vcombine.low %v669_v49, %v677_v53  ;;  %v679_v58 = vcombine.high %v669_v49, %v677_v53 }
 0x107   : > { %v615_v4 = vpack.i.b16 %v614_v15, %v613_v2  ;;  %v711_v34 = vrot.slane %v612_v54, %v2989_v19  ;;  %v579_v20 = vpop.permute.xlu0 %578 }
 0x108   : > { %v686_v44 = vrot.slane %v678_v17, %v2994_v26  ;;  %v693_v1 = vrot.slane %v679_v58, %v2994_v26  ;;  %v832_v9 = vcombine.low %v652_v56, %v659_v14  ;;  %v2671_v27 = vcombine.high %v652_v56, %v659_v14  ;;  %v585_v46 = vpop.permute.xlu1 %584 }
 0x109   : > { %v712_v11 = vcombine.low %v703_v6, %v711_v34  ;;  %v713_v22 = vcombine.high %v703_v6, %v711_v34  ;;  %v745_v30 = vrot.slane %v615_v4, %v2989_v19  ;;  %v618_v33 = vpack.i.b16 %v579_v20, %v573_v55 }
 0x10a   : > { %v839_v23 = vrot.slane %v832_v9, %v2989_v19  ;;  %v847_v24 = vrot.slane %v2671_v27, %v2989_v19  ;;  %v857_v28 = vcombine.low %v686_v44, %v693_v1  ;;  %v2672_v35 = vcombine.high %v686_v44, %v693_v1 }
 0x10b   : > { %v720_v48 = vrot.slane %v712_v11, %v2994_v26  ;;  %v727_v40 = vrot.slane %v713_v22, %v2994_v26  ;;  %v746_v7 = vcombine.low %v737_v61, %v745_v30  ;;  %v747_v8 = vcombine.high %v737_v61, %v745_v30  ;;  %v591_v16 = vpop.permute.xlu0 %590 }
 0x10c   : > { %v620_v36 = vshrl.u32 %v579_v20, 16  ;;  %v771_v39 = vrot.slane %v618_v33, %v2989_v19  ;;  %v625_v41 = vshrl.u32 %v585_v46, 16  ;;  %v624_v63 = vpack.i.b16 %v591_v16, %v585_v46 }
 0x10d   : > { %v754_v0 = vrot.slane %v746_v7, %v2994_v26  ;;  %v761_v32 = vrot.slane %v747_v8, %v2994_v26  ;;  %v882_v47 = vcombine.low %v720_v48, %v727_v40  ;;  %v2673_v49 = vcombine.high %v720_v48, %v727_v40 }
 0x10e   : > { %v621_v50 = vpack.i.b16 %v620_v36, %v619_v31  ;;  %v626_v51 = vshrl.u32 %v591_v16, 16  ;;  %v779_v13 = vrot.slane %v624_v63, %v2989_v19  ;;  %v848_v52 = vcombine.low %v839_v23, %v847_v24 }
 0x10f   : > { %v889_v53 = vrot.slane %v882_v47, %v2989_v19  ;;  %v897_v54 = vrot.slane %v2673_v49, %v2989_v19  ;;  %v907_v55 = vcombine.low %v754_v0, %v761_v32  ;;  %v2674_v6 = vcombine.high %v754_v0, %v761_v32 }
 0x110   : > { %v627_v2 = vpack.i.b16 %v626_v51, %v625_v41  ;;  %v780_v15 = vcombine.low %v771_v39, %v779_v13  ;;  %v781_v56 = vcombine.high %v771_v39, %v779_v13  ;;  %v805_v14 = vrot.slane %v621_v50, %v2989_v19 }
 0x111   : > { %v864_v17 = vrot.slane %v857_v28, %v2989_v19  ;;  %v872_v58 = vrot.slane %v2672_v35, %v2989_v19  ;;  %v898_v61 = vcombine.low %v889_v53, %v897_v54  ;;  %v914_v20 = vrot.slane %v907_v55, %v2989_v19 }
 0x112   : > { %v788_v4 = vrot.slane %v780_v15, %v2994_v26  ;;  %v795_v34 = vrot.slane %v781_v56, %v2994_v26  ;;  %v813_v31 = vrot.slane %v627_v2, %v2989_v19  ;;  %v855_v44 = vrot.slane %v848_v52, %v2994_v26 }
 0x113   : > { %v873_v1 = vcombine.low %v864_v17, %v872_v58  ;;  %v922_v9 = vrot.slane %v2674_v6, %v2989_v19  ;;  %v905_v46 = vrot.slane %v898_v61, %v2994_v26 }
 0x114   : > { %v814_v27 = vcombine.low %v805_v14, %v813_v31  ;;  %v815_v11 = vcombine.high %v805_v14, %v813_v31  ;;  %v932_v22 = vcombine.low %v788_v4, %v795_v34  ;;  %v2675_v30 = vcombine.high %v788_v4, %v795_v34 }
 0x115   : > { %v880_v33 = vrot.slane %v873_v1, %v2994_v26  ;;  %v923_v23 = vcombine.low %v914_v20, %v922_v9  ;;  %v985_v39 = vshrl.u32 %v855_v44, 16  ;;  %v997_v0 = vshrl.u32 %v905_v46, 16 }
 0x116   : > { %v822_v24 = vrot.slane %v814_v27, %v2994_v26  ;;  %v829_v28 = vrot.slane %v815_v11, %v2994_v26  ;;  %v939_v35 = vrot.slane %v932_v22, %v2989_v19  ;;  %v947_v48 = vrot.slane %v2675_v30, %v2989_v19 }
 0x117   : > { %v930_v40 = vrot.slane %v923_v23, %v2994_v26  ;;  %v986_v7 = vshrl.u32 %v880_v33, 16  ;;  %v984_v41 = vpack.i.b16 %v880_v33, %v855_v44  ;;  %v881_v2 = vcombine.high %v880_v33, %v2942_v37 }
 0x118   : > { %v948_v8 = vcombine.low %v939_v35, %v947_v48  ;;  %v957_v16 = vcombine.low %v822_v24, %v829_v28  ;;  %v2676_v36 = vcombine.high %v822_v24, %v829_v28  ;;  %v906_v15 = vcombine.high %v905_v46, %v2942_v37 }
 0x119   : > { %v996_v63 = vpack.i.b16 %v930_v40, %v905_v46  ;;  %v998_v32 = vshrl.u32 %v930_v40, 16  ;;  %v987_v51 = vpack.i.b16 %v986_v7, %v985_v39  ;;  %v931_v52 = vcombine.high %v930_v40, %v2942_v37 }
 0x11a   : > { %v964_v47 = vrot.slane %v957_v16, %v2989_v19  ;;  %v972_v49 = vrot.slane %v2676_v36, %v2989_v19  ;;  %v955_v53 = vrot.slane %v948_v8, %v2994_v26  ;;  %v856_v17 = vcombine.high %v855_v44, %v2942_v37 }
 0x11b   : > { %v2685_v50 = vcombine.low %v984_v41, %v996_v63  ;;  %v999_v13 = vpack.i.b16 %v998_v32, %v997_v0  ;;  %v1004_v58 = vshrl.u32 %v931_v52, 16  ;;  %v1002_v31 = vpack.i.b16 %v931_v52, %v906_v15 }
 0x11c   : > { %v973_v54 = vcombine.low %v964_v47, %v972_v49  ;;  %v1009_v4 = vshrl.u32 %v955_v53, 16  ;;  %v992_v20 = vshrl.u32 %v881_v2, 16  ;;  %v1003_v1 = vshrl.u32 %v906_v15, 16 }
 0x11d   : > { %2833 = vmatprep.subr.msk.bf16.mxu0 %vm1466_vm0, %v2685_v50  ;;  %v1474_v55 = vsel %vm1466_vm0, %v2685_v50, 0  ;;  %v2691_v6 = vcombine.low %v987_v51, %v999_v13  ;;  %v990_v11 = vpack.i.b16 %v881_v2, %v856_v17  ;;  %v991_v22 = vshrl.u32 %v856_v17, 16 }
 0x11e   : > { %2770 = vmatpush3.bf16.xpose.msra.mxu0 %v1474_v55  ;;  %v980_v56 = vrot.slane %v973_v54, %v2994_v26  ;;  %v1005_v30 = vpack.i.b16 %v1004_v58, %v1003_v1  ;;  %v956_v28 = vcombine.high %v955_v53, %v2942_v37  ;;  %v2684_v16 = vcombine.low %v3191_v60, %v3191_v60 }
 0x11f   : > { %2835 = vmatprep.subr.msk.bf16.mxu1 %vm1466_vm0, %v2691_v6  ;;  %v1544_v14 = vsel %vm1466_vm0, %v2691_v6, 0  ;;  %v2697_v23 = vcombine.low %v990_v11, %v1002_v31  ;;  %v993_v24 = vpack.i.b16 %v992_v20, %v991_v22  ;;  %v2690_v39 = vcombine.low %v3206_v43, %v3206_v43 }
 0x120   : > { %2778 = vmatpush3.bf16.xpose.msra.mxu1 %v1544_v14  ;;  %v1008_v61 = vpack.i.b16 %v980_v56, %v955_v53  ;;  %v1010_v34 = vshrl.u32 %v980_v56, 16  ;;  %v981_v33 = vcombine.high %v980_v56, %v2942_v37  ;;  %v1015_v8 = vshrl.u32 %v956_v28, 16 }
 0x121   : > { %v2703_v48 = vcombine.low %v993_v24, %v1005_v30  ;;  %v1614_v37 = vsel %vm1466_vm0, %v2697_v23, 0  ;;  %v2696_v0 = vcombine.low %v3237_v29, %v3237_v29  ;;  %v1892_v29 = vsel %vm1890_vm1, %v2708_v12, 0 }
 0x122   : > { %v2686_v9 = vcombine.low %v1008_v61, %v1008_v61  ;;  %v1011_v27 = vpack.i.b16 %v1010_v34, %v1009_v4  ;;  %v1016_v40 = vshrl.u32 %v981_v33, 16  ;;  %v1014_v7 = vpack.i.b16 %v981_v33, %v956_v28 }
 0x123   : > { %v1684_v63 = vsel %vm1466_vm0, %v2703_v48, 0 }
 0x124   : > { %2834 = vmatprep.subr.msk.bf16.mxu0 %vm1466_vm0, %v2686_v9  ;;  %v1477_v46 = vsel %vm1466_vm0, %v2686_v9, 0  ;;  %v2692_v44 = vcombine.low %v1011_v27, %v1011_v27  ;;  %v1017_v36 = vpack.i.b16 %v1016_v40, %v1015_v8  ;;  %v2698_v41 = vcombine.low %v1014_v7, %v1014_v7 }
 0x126   : > { %2772 = vmatpush3.bf16.xpose.msra.mxu0 %v1477_v46  ;;  %2836 = vmatprep.subr.msk.bf16.mxu1 %vm1466_vm0, %v2692_v44  ;;  %v1547_v35 = vsel %vm1466_vm0, %v2692_v44, 0  ;;  %v2704_v60 = vcombine.low %v1017_v36, %v1017_v36  ;;  %v1617_v43 = vsel %vm1466_vm0, %v2698_v41, 0 }
 0x127   : > { %2837 = vmatprep.subr.msk.bf16.mxu0 %vm1466_vm0, %v2697_v23 }
 0x128   : > { %2780 = vmatpush3.bf16.xpose.msra.mxu1 %v1547_v35 }
 0x129   : > { %2839 = vmatprep.subr.msk.bf16.mxu1 %vm1466_vm0, %v2703_v48 }
 0x12d   : > { %2774 = vmatmul.mubr.msk.bf16.vlgmr.msra.gmra.mrb[0].mxu0 %vm1466_vm0, %v2684_v16 }
 0x12e   : > { %2786 = vmatpush3.bf16.xpose.msra.mxu0 %v1614_v37  ;;  %2789 = vmatprep.mubr.msk.bf16.mxu0 %vm1466_vm0, %v3196_v42  ;;  %v1687_v42 = vsel %vm1466_vm0, %v2704_v60, 0 }
 0x12f   : > { %2782 = vmatmul.mubr.msk.bf16.vlgmr.msra.gmra.mrb[0].mxu1 %vm1466_vm0, %v2690_v39  ;;  %2838 = vmatprep.subr.msk.bf16.mxu0 %vm1466_vm0, %v2698_v41 }
 0x130   : > { %2794 = vmatpush3.bf16.xpose.msra.mxu1 %v1684_v63  ;;  %2797 = vmatprep.mubr.msk.bf16.mxu1 %vm1466_vm0, %v2701_v3  ;;  %v2712_v3 = vcombine.low %v3268_v25, %v3268_v25 }
 0x131   : > { %2840 = vmatprep.subr.msk.bf16.mxu1 %vm1466_vm0, %v2704_v60 }
 0x132   : > { %v1955_v38 = vsel %vm1890_vm1, %v2712_v3, 0 }
 0x136   : > { %2788 = vmatpush3.bf16.xpose.msra.mxu0 %v1617_v43 }
 0x137   : > { %2801 = vmatprep.subr.bf16.mxu0 %v3261_v57 }
 0x138   : > { %2796 = vmatpush3.bf16.xpose.msra.mxu1 %v1687_v42 }
 0x139   : > { %2809 = vmatprep.subr.bf16.mxu1 %v3265_v5 }
 0x13d   : > { %2790 = vmatmul.mubr.msk.bf16.vlgmr.msra.gmra.mrb[4].mxu0 %vm1466_vm0, %v2696_v0 }
 0x13e   : > { %2802 = vmatpush3.bf16.msra.mxu0 %v3261_v57 }
 0x13f   : > { %2798 = vmatmul.mubr.msk.bf16.vlgmr.msra.gmra.mrb[4].mxu1 %vm1466_vm0, %v2702_v62  ;;  %2841 = vmatprep.subr.msk.bf16.mxu0 %vm1890_vm1, %v2708_v12 }
 0x140   : > { %2810 = vmatpush3.bf16.msra.mxu1 %v3265_v5 }
 0x141   : > { %2842 = vmatprep.subr.msk.bf16.mxu1 %vm1890_vm1, %v2712_v3 }
 0x142   : > { %2804 = vmatpush3.bf16.msra.mxu0 %v1892_v29 }
 0x143   : > { %2817 = vmatprep.subr.bf16.mxu0 %v3270_v18 }
 0x144   : > { %2812 = vmatpush3.bf16.msra.mxu1 %v1955_v38 }
 0x145   : > { %2825 = vmatprep.subr.bf16.mxu1 %v3275_v21 }
 0x200   : > { %v2775_v57 = vpop.f32.mrb[0].mxu0 }
 0x201   : > { %v1513_v59 = vpop.f32.mrb[1].mxu0  ;;  %v1744_v32 = vsel %vm1737_vm2, %v2775_v57, -inf }
 0x202   : > { %v2783_v25 = vpop.f32.mrb[0].mxu1  ;;  %1745 = vmax.xlane.f32.xlu0 %v1744_v32  ;;  %v2776_v5 = vpop.f32.mrb[2].mxu0  ;;  %v1738_v47 = vsel %vm1737_vm2, %v1513_v59, -inf }
 0x203   : > { %v1583_v49 = vpop.f32.mrb[1].mxu1  ;;  %1739 = vmax.xlane.f32.xlu1 %v1738_v47  ;;  %v1516_v50 = vpop.f32.mrb[3].mxu0  ;;  %v1753_v53 = vsel %vm1737_vm2, %v2783_v25, -inf }
 0x204   : > { %v2784_v51 = vpop.f32.mrb[2].mxu1  ;;  %v1741_v13 = vsel %vm1737_vm2, %v1516_v50, -inf  ;;  %v1747_v54 = vsel %vm1737_vm2, %v1583_v49, -inf }
 0x205   : > { %v1586_v52 = vpop.f32.mrb[3].mxu1 }
 0x206   : > { %1742 = vmax.xlane.f32.xlu0 %v1741_v13  ;;  %v1750_v55 = vsel %vm1737_vm2, %v1586_v52, -inf }
 0x207   : > { %1754 = vmax.xlane.f32.xlu1 %v1753_v53 }
 0x20a   : > { %1748 = vmax.xlane.f32.xlu0 %v1747_v54 }
 0x20b   : > { %1751 = vmax.xlane.f32.xlu1 %v1750_v55 }
 0x210   : > { %v3381_v6 = vpop.f32.mrb[4].mxu0 }
 0x211   : > { %v1653_v2 = vpop.f32.mrb[5].mxu0  ;;  %v1762_v1 = vsel %vm1737_vm2, %v3381_v6, -inf }
 0x212   : > { %v2792_v15 = vpop.f32.mrb[6].mxu0  ;;  %v3383_v56 = vpop.f32.mrb[4].mxu1  ;;  %v1756_v14 = vsel %vm1737_vm2, %v1653_v2, -inf }
 0x213   : > { %v1723_v17 = vpop.f32.mrb[5].mxu1  ;;  %1757 = vmax.xlane.f32.xlu0 %v1756_v14  ;;  %v1656_v58 = vpop.f32.mrb[7].mxu0  ;;  %v1771_v9 = vsel %vm1737_vm2, %v3383_v56, -inf }
 0x214   : > { %v2800_v61 = vpop.f32.mrb[6].mxu1  ;;  %v1759_v4 = vsel %vm1737_vm2, %v1656_v58, -inf  ;;  %v1765_v31 = vsel %vm1737_vm2, %v1723_v17, -inf }
 0x215   : > { %v3387_v34 = vpop.f32.mrb[7].mxu1  ;;  %1760 = vmax.xlane.f32.xlu1 %v1759_v4 }
 0x216   : > { %v1768_v20 = vsel %vm1737_vm2, %v3387_v34, -inf }
 0x217   : > { %1766 = vmax.xlane.f32.xlu0 %v1765_v31 }
 0x219   : > { %1769 = vmax.xlane.f32.xlu1 %v1768_v20 }
 0x21b   : > { %1763 = vmax.xlane.f32.xlu0 %v1762_v1 }
 0x21d   : > { %1772 = vmax.xlane.f32.xlu1 %v1771_v9 }
 0x28f   : > { %v1746_v27 = vpop.xlane.xlu0 %1745 }
 0x290   : > { %v1776_v11 = vsub.f32 %v2775_v57, %v1746_v27  ;;  %v1740_v22 = vpop.xlane.xlu1 %1739 }
 0x291   : > { %v1774_v30 = vsub.f32 %v1513_v59, %v1740_v22 }
 0x292   : > { %v1790_v33 = vmul.f32 1.442695, %v1776_v11 }
 0x293   : > { %v1786_v46 = vmul.f32 1.442695, %v1774_v30  ;;  %v1743_v44 = vpop.xlane.xlu0 %1742 }
 0x294   : > { %2880 = vpow2.f32 %v1790_v33  ;;  %v1775_v23 = vsub.f32 %v1516_v50, %v1743_v44  ;;  %v1755_v24 = vpop.xlane.xlu1 %1754 }
 0x295   : > { %v1779_v28 = vsub.f32 %v2783_v25, %v1755_v24  ;;  %2882 = vpow2.f32 %v1786_v46 }
 0x296   : > { %v1788_v35 = vmul.f32 1.442695, %v1775_v23 }
 0x297   : > { %v1796_v48 = vmul.f32 1.442695, %v1779_v28  ;;  %v1749_v40 = vpop.xlane.xlu0 %1748 }
 0x298   : > { %v1777_v7 = vsub.f32 %v1583_v49, %v1749_v40  ;;  %v1752_v8 = vpop.xlane.xlu1 %1751 }
 0x299   : > { %2884 = vpow2.f32 %v1796_v48  ;;  %v1778_v16 = vsub.f32 %v1586_v52, %v1752_v8 }
 0x29a   : > { %v1792_v36 = vmul.f32 1.442695, %v1777_v7  ;;  %2886 = vpow2.f32 %v1788_v35 }
 0x29b   : > { %v1794_v37 = vmul.f32 1.442695, %v1778_v16 }
 0x29c   : > { %2888 = vpow2.f32 %v1792_v36 }
 0x29d   : > { %2890 = vpow2.f32 %v1794_v37 }
 0x29e   : > { %v3396_v39 = vpop.eup %2880 }
 0x29f   : > { %v1816_v41 = vsel %vm1737_vm2, %v3396_v39, 0.0  ;;  %v3400_v63 = vpop.eup %2882 }
 0x2a0   : > { %1817 = vadd.xlane.f32.xlu0 %v1816_v41  ;;  %v1758_v60 = vpop.xlane.xlu0 %1757  ;;  %v1810_v3 = vsel %vm1737_vm2, %v3400_v63, 0.0 }
 0x2a1   : > { %v1780_v43 = vsub.f32 %v1653_v2, %v1758_v60 }
 0x2a2   : > { %v1761_v42 = vpop.xlane.xlu1 %1760 }
 0x2a3   : > { %v3402_v0 = vpop.eup %2884  ;;  %v1798_v62 = vmul.f32 1.442695, %v1780_v43  ;;  %v1781_v12 = vsub.f32 %v1656_v58, %v1761_v42 }
 0x2a4   : > { %1811 = vadd.xlane.f32.xlu0 %v1810_v3  ;;  %v1767_v29 = vpop.xlane.xlu0 %1766  ;;  %v1825_v38 = vsel %vm1737_vm2, %v3402_v0, 0.0  ;;  %v3408_v57 = vpop.eup %2886 }
 0x2a5   : > { %2892 = vpow2.f32 %v1798_v62  ;;  %v1800_v59 = vmul.f32 1.442695, %v1781_v12  ;;  %v1783_v32 = vsub.f32 %v1723_v17, %v1767_v29  ;;  %1826 = vadd.xlane.f32.xlu1 %v1825_v38  ;;  %v1813_v13 = vsel %vm1737_vm2, %v3408_v57, 0.0 }
 0x2a6   : > { %v3410_v25 = vpop.eup %2888  ;;  %v1770_v5 = vpop.xlane.xlu1 %1769 }
 0x2a7   : > { %2894 = vpow2.f32 %v1800_v59  ;;  %v1804_v47 = vmul.f32 1.442695, %v1783_v32  ;;  %v1784_v49 = vsub.f32 %v3387_v34, %v1770_v5  ;;  %v1819_v50 = vsel %vm1737_vm2, %v3410_v25, 0.0  ;;  %v3417_v52 = vpop.eup %2890 }
 0x2a8   : > { %1820 = vadd.xlane.f32.xlu0 %v1819_v50  ;;  %v1764_v51 = vpop.xlane.xlu0 %1763  ;;  %v1822_v14 = vsel %vm1737_vm2, %v3417_v52, 0.0  ;;  %v2720_v5 = vcombine.low %v3277_v45, %v3277_v45 }
 0x2a9   : > { %2896 = vpow2.f32 %v1804_v47  ;;  %v1806_v53 = vmul.f32 1.442695, %v1784_v49  ;;  %v1782_v54 = vsub.f32 %v3381_v6, %v1764_v51  ;;  %1814 = vadd.xlane.f32.xlu1 %v1813_v13 }
 0x2aa   : > { %v1773_v55 = vpop.xlane.xlu1 %1772  ;;  %v2081_v51 = vsel %vm1890_vm1, %v2720_v5, 0 }
 0x2ab   : > { %2898 = vpow2.f32 %v1806_v53  ;;  %v1802_v2 = vmul.f32 1.442695, %v1782_v54  ;;  %v1785_v15 = vsub.f32 %v3383_v56, %v1773_v55 }
 0x2ad   : > { %2900 = vpow2.f32 %v1802_v2  ;;  %v1808_v17 = vmul.f32 1.442695, %v1785_v15  ;;  %1823 = vadd.xlane.f32.xlu1 %v1822_v14 }
 0x2af   : > { %v3423_v58 = vpop.eup %2892  ;;  %2902 = vpow2.f32 %v1808_v17 }
 0x2b0   : > { %v1828_v61 = vsel %vm1737_vm2, %v3423_v58, 0.0 }
 0x2b1   : > { %v3427_v4 = vpop.eup %2894  ;;  %1829 = vadd.xlane.f32.xlu0 %v1828_v61 }
 0x2b2   : > { %v1831_v6 = vsel %vm1737_vm2, %v3427_v4, 0.0 }
 0x2b3   : > { %v3431_v34 = vpop.eup %2896  ;;  %1832 = vadd.xlane.f32.xlu1 %v1831_v6 }
 0x2b4   : > { %v1837_v56 = vsel %vm1737_vm2, %v3431_v34, 0.0 }
 0x2b5   : > { %v3435_v31 = vpop.eup %2898  ;;  %1838 = vadd.xlane.f32.xlu0 %v1837_v56 }
 0x2b6   : > { %v1840_v20 = vsel %vm1737_vm2, %v3435_v31, 0.0 }
 0x2b7   : > { %v3439_v1 = vpop.eup %2900  ;;  %1841 = vadd.xlane.f32.xlu1 %v1840_v20 }
 0x2b8   : > { %v1834_v9 = vsel %vm1737_vm2, %v3439_v1, 0.0 }
 0x2b9   : > { %v3443_v27 = vpop.eup %2902  ;;  %1835 = vadd.xlane.f32.xlu0 %v1834_v9 }
 0x2ba   : > { %v1843_v11 = vsel %vm1737_vm2, %v3443_v27, 0.0 }
 0x2bb   : > { %1844 = vadd.xlane.f32.xlu1 %v1843_v11 }
 0x32d   : > { %v1818_v22 = vpop.xlane.xlu0 %1817 }
 0x32e   : > { %2904 = vrcp.f32 %v1818_v22 }
 0x331   : > { %v1812_v30 = vpop.xlane.xlu0 %1811 }
 0x332   : > { %v1827_v33 = vpop.xlane.xlu1 %1826  ;;  %2906 = vrcp.f32 %v1812_v30 }
 0x335   : > { %v1821_v46 = vpop.xlane.xlu0 %1820 }
 0x336   : > { %v1815_v44 = vpop.xlane.xlu1 %1814 }
 0x337   : > { %2908 = vrcp.f32 %v1815_v44 }
 0x338   : > { %2910 = vrcp.f32 %v1827_v33  ;;  %v2905_v24 = vpop.eup %2904 }
 0x339   : > { %2912 = vrcp.f32 %v1821_v46  ;;  %v1860_v7 = vmul.f32 %v2905_v24, %v3396_v39 }
 0x33a   : > { %v1824_v23 = vpop.xlane.xlu1 %1823 }
 0x33b   : > { %2914 = vrcp.f32 %v1824_v23  ;;  %v1871_v12 = vpack.c.bf16 %v1860_v7, %v1860_v7 }
 0x33c   : > { %v2907_v35 = vpop.eup %2906 }
 0x33d   : > { %v1858_v36 = vmul.f32 %v2907_v35, %v3400_v63  ;;  %v2716_v63 = vcombine.low %v3273_v10, %v3273_v10 }
 0x33e   : > { %v1830_v28 = vpop.xlane.xlu0 %1829 }
 0x33f   : > { %2916 = vrcp.f32 %v1830_v28 }
 0x340   : > { %v1833_v48 = vpop.xlane.xlu1 %1832 }
 0x341   : > { %v2909_v40 = vpop.eup %2908  ;;  %2918 = vrcp.f32 %v1833_v48 }
 0x342   : > { %v2911_v8 = vpop.eup %2910  ;;  %v1839_v16 = vpop.xlane.xlu0 %1838  ;;  %v1859_v37 = vmul.f32 %v2909_v40, %v3408_v57 }
 0x343   : > { %v2913_v41 = vpop.eup %2912  ;;  %2920 = vrcp.f32 %v1839_v16  ;;  %v1863_v62 = vmul.f32 %v2911_v8, %v3402_v0 }
 0x344   : > { %v1842_v60 = vpop.xlane.xlu1 %1841  ;;  %v1870_v43 = vpack.c.bf16 %v1859_v37, %v1858_v36  ;;  %v1861_v39 = vmul.f32 %v2913_v41, %v3410_v25  ;;  %v2018_v25 = vsel %vm1890_vm1, %v2716_v63, 0 }
 0x345   : > { %v2915_v42 = vpop.eup %2914  ;;  %2922 = vrcp.f32 %v1842_v60  ;;  %v1873_v59 = vpack.c.bf16 %v1863_v62, %v1863_v62 }
 0x346   : > { %v1836_v3 = vpop.xlane.xlu0 %1835  ;;  %2805 = vmatprep.mubr.msk.bf16.mxu0 %vm1737_vm2, %v1870_v43  ;;  %v1862_v29 = vmul.f32 %v2915_v42, %v3417_v52 }
 0x347   : > { %2924 = vrcp.f32 %v1836_v3  ;;  %2806 = vmatmul.mubr.msk.bf16.vlgmr.msra.gmra.mrb[8].mxu0 %vm1737_vm2, %v1871_v12 }
 0x348   : > { %2818 = vmatpush3.bf16.msra.mxu0 %v3270_v18  ;;  %v1845_v38 = vpop.xlane.xlu1 %1844  ;;  %v1872_v57 = vpack.c.bf16 %v1862_v29, %v1861_v39 }
 0x349   : > { %v2917_v0 = vpop.eup %2916  ;;  %2843 = vmatprep.subr.msk.bf16.mxu0 %vm1890_vm1, %v2716_v63  ;;  %2926 = vrcp.f32 %v1845_v38 }
 0x34a   : > { %2813 = vmatprep.mubr.msk.bf16.mxu1 %vm1737_vm2, %v1872_v57  ;;  %v1864_v18 = vmul.f32 %v2917_v0, %v3423_v58 }
 0x34b   : > { %v2919_v32 = vpop.eup %2918  ;;  %2814 = vmatmul.mubr.msk.bf16.vlgmr.msra.gmra.mrb[8].mxu1 %vm1737_vm2, %v1873_v59 }
 0x34c   : > { %2820 = vmatpush3.bf16.msra.mxu0 %v2018_v25  ;;  %2826 = vmatpush3.bf16.msra.mxu1 %v3275_v21  ;;  %v1865_v10 = vmul.f32 %v2919_v32, %v3427_v4 }
 0x34d   : > { %v2921_v47 = vpop.eup %2920  ;;  %2844 = vmatprep.subr.msk.bf16.mxu1 %vm1890_vm1, %v2720_v5 }
 0x34e   : > { %v1874_v49 = vpack.c.bf16 %v1865_v10, %v1864_v18  ;;  %v1867_v13 = vmul.f32 %v2921_v47, %v3431_v34 }
 0x34f   : > { %v2923_v50 = vpop.eup %2922 }
 0x350   : > { %2828 = vmatpush3.bf16.msra.mxu1 %v2081_v51  ;;  %2821 = vmatprep.mubr.msk.bf16.mxu0 %vm1737_vm2, %v1874_v49  ;;  %v1868_v45 = vmul.f32 %v2923_v50, %v3435_v31 }
 0x351   : > { %v2925_v52 = vpop.eup %2924 }
 0x352   : > { %v1866_v21 = vmul.f32 %v2925_v52, %v3439_v1  ;;  %v1876_v53 = vpack.c.bf16 %v1868_v45, %v1867_v13 }
 0x353   : > { %v2927_v54 = vpop.eup %2926 }
 0x354   : > { %v1869_v55 = vmul.f32 %v2927_v54, %v3443_v27  ;;  %2829 = vmatprep.mubr.msk.bf16.mxu1 %vm1737_vm2, %v1876_v53  ;;  %v1875_v2 = vpack.c.bf16 %v1866_v21, %v1866_v21 }
 0x356   : > { %2822 = vmatmul.mubr.msk.bf16.vlgmr.msra.gmra.mrb[12].mxu0 %vm1737_vm2, %v1875_v2  ;;  %v1877_v15 = vpack.c.bf16 %v1869_v55, %v1869_v55 }
 0x358   : > { %2830 = vmatmul.mubr.msk.bf16.vlgmr.msra.gmra.mrb[12].mxu1 %vm1737_vm2, %v1877_v15 }
 0x41a   : > { %v2807_v14 = vpop.f32.mrb[8].mxu0 }
 0x41b   : > { %v1928_v17 = vpop.f32.mrb[9].mxu0 }
 0x41c   : > { %v2808_v58 = vpop.f32.mrb[10].mxu0 }
 0x41d   : > { %v1931_v61 = vpop.f32.mrb[11].mxu0 }
 0x41e   : > { %v2815_v4 = vpop.f32.mrb[8].mxu1 }
 0x41f   : > { %v1991_v6 = vpop.f32.mrb[9].mxu1 }
 0x420   : > { %v2816_v34 = vpop.f32.mrb[10].mxu1 }
 0x421   : > { %v1994_v56 = vpop.f32.mrb[11].mxu1 }
 0x429   : > { %v2823_v31 = vpop.f32.mrb[12].mxu0 }
 0x42a   : > { %v2267_v20 = vcombine.low %v2807_v14, %v2823_v31  ;;  %v2268_v1 = vcombine.high %v2807_v14, %v2823_v31  ;;  %v2054_v9 = vpop.f32.mrb[13].mxu0 }
 0x42b   : > { %v2131_v27 = vcombine.low %v1928_v17, %v2054_v9  ;;  %v2132_v11 = vcombine.high %v1928_v17, %v2054_v9  ;;  %v2824_v22 = vpop.f32.mrb[14].mxu0  ;;  %v2831_v30 = vpop.f32.mrb[12].mxu1 }
 0x42c   : > { %v2275_v33 = vrot.slane %v2267_v20, %v2989_v19  ;;  %v2282_v46 = vrot.slane %v2268_v1, %v2989_v19  ;;  %v2283_v44 = vcombine.low %v2815_v4, %v2831_v30  ;;  %v2284_v23 = vcombine.high %v2815_v4, %v2831_v30  ;;  %v2057_v24 = vpop.f32.mrb[15].mxu0  ;;  %v2117_v28 = vpop.f32.mrb[13].mxu1 }
 0x42d   : > { %v2139_v35 = vrot.slane %v2131_v27, %v2989_v19  ;;  %v2146_v48 = vrot.slane %v2132_v11, %v2989_v19  ;;  %v2199_v40 = vcombine.low %v1931_v61, %v2057_v24  ;;  %v2200_v7 = vcombine.high %v1931_v61, %v2057_v24  ;;  %v2832_v8 = vpop.f32.mrb[14].mxu1 }
 0x42e   : > { %v2291_v16 = vrot.slane %v2283_v44, %v2989_v19  ;;  %v2298_v36 = vrot.slane %v2284_v23, %v2989_v19  ;;  %v2147_v37 = vcombine.low %v1991_v6, %v2117_v28  ;;  %v2148_v41 = vcombine.high %v1991_v6, %v2117_v28  ;;  %v2120_v60 = vpop.f32.mrb[15].mxu1 }
 0x42f   : > { %v2207_v43 = vrot.slane %v2199_v40, %v2989_v19  ;;  %v2214_v42 = vrot.slane %v2200_v7, %v2989_v19  ;;  %v2215_v62 = vcombine.low %v1994_v56, %v2120_v60  ;;  %v2216_v12 = vcombine.high %v1994_v56, %v2120_v60 }
 0x430   : > { %v2299_v3 = vcombine.low %v2275_v33, %v2291_v16  ;;  %v2300_v39 = vcombine.high %v2275_v33, %v2291_v16  ;;  %v2315_v29 = vcombine.low %v2282_v46, %v2298_v36  ;;  %v2316_v63 = vcombine.high %v2282_v46, %v2298_v36 }
 0x431   : > { %v2155_v38 = vrot.slane %v2147_v37, %v2989_v19  ;;  %v2162_v57 = vrot.slane %v2148_v41, %v2989_v19  ;;  %v2223_v0 = vrot.slane %v2215_v62, %v2989_v19  ;;  %v2230_v59 = vrot.slane %v2216_v12, %v2989_v19 }
 0x432   : > { %v2307_v32 = vrot.slane %v2299_v3, %v2994_v26  ;;  %v2314_v25 = vrot.slane %v2300_v39, %v2994_v26  ;;  %v2323_v5 = vrot.slane %v2315_v29, %v2994_v26  ;;  %v2330_v18 = vrot.slane %v2316_v63, %v2994_v26 }
 0x433   : > { %v2163_v10 = vcombine.low %v2139_v35, %v2155_v38  ;;  %v2164_v47 = vcombine.high %v2139_v35, %v2155_v38  ;;  %v2179_v49 = vcombine.low %v2146_v48, %v2162_v57  ;;  %v2180_v50 = vcombine.high %v2146_v48, %v2162_v57 }
 0x434   : > { %v2471_v51 = vcombine.low %v2307_v32, %v2314_v25  ;;  %v2727_v13 = vcombine.high %v2307_v32, %v2314_v25  ;;  %v2487_v45 = vcombine.low %v2323_v5, %v2330_v18  ;;  %v2728_v52 = vcombine.high %v2323_v5, %v2330_v18 }
 0x435   : > { %v2171_v21 = vrot.slane %v2163_v10, %v2994_v26  ;;  %v2178_v53 = vrot.slane %v2164_v47, %v2994_v26  ;;  %v2187_v54 = vrot.slane %v2179_v49, %v2994_v26  ;;  %v2194_v55 = vrot.slane %v2180_v50, %v2994_v26 }
 0x436   : > { %v2231_v2 = vcombine.low %v2207_v43, %v2223_v0  ;;  %v2232_v15 = vcombine.high %v2207_v43, %v2223_v0  ;;  %v2247_v14 = vcombine.low %v2214_v42, %v2230_v59  ;;  %v2248_v17 = vcombine.high %v2214_v42, %v2230_v59 }
 0x437   : > { %v2335_v58 = vcombine.low %v2171_v21, %v2178_v53  ;;  %v2723_v61 = vcombine.high %v2171_v21, %v2178_v53  ;;  %v2351_v4 = vcombine.low %v2187_v54, %v2194_v55  ;;  %v2724_v6 = vcombine.high %v2187_v54, %v2194_v55 }
 0x438   : > { %v2239_v34 = vrot.slane %v2231_v2, %v2994_v26  ;;  %v2246_v56 = vrot.slane %v2232_v15, %v2994_v26  ;;  %v2255_v31 = vrot.slane %v2247_v14, %v2994_v26  ;;  %v2262_v20 = vrot.slane %v2248_v17, %v2994_v26 }
 0x439   : > { %v2342_v1 = vrot.slane %v2335_v58, %v2989_v19  ;;  %v2350_v9 = vrot.slane %v2723_v61, %v2989_v19  ;;  %v2358_v27 = vrot.slane %v2351_v4, %v2989_v19  ;;  %v2366_v11 = vrot.slane %v2724_v6, %v2989_v19 }
 0x43a   : > { %v2403_v22 = vcombine.low %v2239_v34, %v2246_v56  ;;  %v2725_v30 = vcombine.high %v2239_v34, %v2246_v56  ;;  %v2419_v33 = vcombine.low %v2255_v31, %v2262_v20  ;;  %v2726_v46 = vcombine.high %v2255_v31, %v2262_v20 }
 0x43b   : > { %v2478_v44 = vrot.slane %v2471_v51, %v2989_v19  ;;  %v2486_v23 = vrot.slane %v2727_v13, %v2989_v19  ;;  %v2494_v24 = vrot.slane %v2487_v45, %v2989_v19  ;;  %v2502_v28 = vrot.slane %v2728_v52, %v2989_v19 }
 0x43c   : > { %v2410_v35 = vrot.slane %v2403_v22, %v2989_v19  ;;  %v2418_v48 = vrot.slane %v2725_v30, %v2989_v19  ;;  %v2426_v40 = vrot.slane %v2419_v33, %v2989_v19  ;;  %v2434_v7 = vrot.slane %v2726_v46, %v2989_v19 }
 0x43d   : > { %v2504_v8 = vcombine.high %v2478_v44, %v2486_v23  ;;  %v2520_v16 = vcombine.high %v2494_v24, %v2502_v28  ;;  %v2503_v36 = vcombine.low %v2478_v44, %v2486_v23  ;;  %v2519_v37 = vcombine.low %v2494_v24, %v2502_v28 }
 0x43e   : > { %v2368_v41 = vcombine.high %v2342_v1, %v2350_v9  ;;  %v2384_v60 = vcombine.high %v2358_v27, %v2366_v11  ;;  %v2436_v43 = vcombine.high %v2410_v35, %v2418_v48  ;;  %v2452_v42 = vcombine.high %v2426_v40, %v2434_v7 }
 0x43f   : > { %v2518_v62 = vrot.slane %v2504_v8, %v2994_v26  ;;  %v2534_v12 = vrot.slane %v2520_v16, %v2994_v26  ;;  %v2511_v3 = vrot.slane %v2503_v36, %v2994_v26  ;;  %v2527_v39 = vrot.slane %v2519_v37, %v2994_v26 }
 0x440   : > { %v2382_v29 = vrot.slane %v2368_v41, %v2994_v26  ;;  %v2398_v19 = vrot.slane %v2384_v60, %v2994_v26  ;;  %v2450_v63 = vrot.slane %v2436_v43, %v2994_v26  ;;  %v2466_v38 = vrot.slane %v2452_v42, %v2994_v26 }
 0x441   : > { %v2537_v57 = vcombine.low %v2518_v62, %v2534_v12  ;;  %v2536_v0 = vcombine.high %v2511_v3, %v2527_v39  ;;  %v2367_v59 = vcombine.low %v2342_v1, %v2350_v9  ;;  %v2383_v32 = vcombine.low %v2358_v27, %v2366_v11 }
 0x442   : > { %v2401_v25 = vcombine.low %v2382_v29, %v2398_v19  ;;  %v2469_v5 = vcombine.low %v2450_v63, %v2466_v38  ;;  %v2435_v18 = vcombine.low %v2410_v35, %v2418_v48  ;;  %v2451_v10 = vcombine.low %v2426_v40, %v2434_v7 }
 0x443   : > { %2558 = vrot.lane.b32.xlu0 %v2537_v57, %s2943_s16  ;;  %2546 = vrot.lane.b32.xlu1 %v2536_v0, %s2944_s17  ;;  %v2375_v47 = vrot.slane %v2367_v59, %v2994_v26  ;;  %v2391_v49 = vrot.slane %v2383_v32, %v2994_v26  ;;  %v2402_v50 = vcombine.high %v2382_v29, %v2398_v19 }
 0x444   : > { %v2870_v51 = vpack.i.bf16 %v2469_v5, %v2401_v25  ;;  %v2443_v13 = vrot.slane %v2435_v18, %v2994_v26  ;;  %v2459_v45 = vrot.slane %v2451_v10, %v2994_v26  ;;  %v2470_v52 = vcombine.high %v2450_v63, %v2466_v38 }
 0x445   : > { %v2399_v21 = vcombine.low %v2375_v47, %v2391_v49  ;;  %v2400_v53 = vcombine.high %v2375_v47, %v2391_v49  ;;  %v2538_v54 = vcombine.high %v2518_v62, %v2534_v12  ;;  %v2535_v55 = vcombine.low %v2511_v3, %v2527_v39 }
 0x446   : > { %v2468_v2 = vcombine.high %v2443_v13, %v2459_v45  ;;  %v2467_v15 = vcombine.low %v2443_v13, %v2459_v45  ;;  %v2875_v14 = vpack.i.bf16 %v2470_v52, %v2402_v50 }
 0x447   : > { %2871 = vrot.lane.b32.xlu1 %v2870_v51, %s2943_s16 }
 0x448   : > { %v2865_v17 = vpack.i.bf16 %v2468_v2, %v2400_v53 }
 0x44a   : > { %2866 = vrot.lane.b32.xlu0 %v2865_v17, %s2944_s17 }
 0x44b   : > { %2876 = vrot.lane.b32.xlu1 %v2875_v14, %s2945_s18 }
 0x44e   : > { %2570 = vrot.lane.b32.xlu0 %v2538_v54, %s2945_s18 }
 0x4b5   : > { %v2547_v58 = vpop.permute.xlu1 %2546  ;;  %v2559_v61 = vpop.permute.xlu0 %2558 }
 0x4b6   : > { %v2577_v56 = vsel %vm1466_vm0, %v2535_v55, %v2547_v58 }
 0x4b7   : > { %v2581_v30 = vsel %vm2578_vm3, %v2577_v56, %v2559_v61 }
 0x4b9   : > { %v2872_v4 = vpop.permute.xlu1 %2871 }
 0x4ba   : > { %v2874_v6 = vunpack.i.h.bf16 %v2872_v4  ;;  %v2873_v26 = vunpack.i.l.bf16 %v2872_v4 }
 0x4bc   : > { %v2867_v34 = vpop.permute.xlu0 %2866 }
 0x4bd   : > { %v2869_v31 = vunpack.i.h.bf16 %v2867_v34  ;;  %v2868_v20 = vunpack.i.l.bf16 %v2867_v34  ;;  %v2877_v1 = vpop.permute.xlu1 %2876 }
 0x4be   : > { %v2879_v9 = vunpack.i.h.bf16 %v2877_v1  ;;  %v2878_v27 = vunpack.i.l.bf16 %v2877_v1 }
 0x4bf   : > { %v2575_v11 = vsel %vm1466_vm0, %v2399_v21, %v2868_v20  ;;  %v2576_v22 = vsel %vm1466_vm0, %v2467_v15, %v2869_v31 }
 0x4c0   : > { %v2571_v33 = vpop.permute.xlu0 %2570  ;;  %v2579_v46 = vsel %vm2578_vm3, %v2575_v11, %v2873_v26  ;;  %v2580_v44 = vsel %vm2578_vm3, %v2576_v22, %v2874_v6 }
 0x4c1   : > { %v2583_v23 = vsel %vm2582_vm4, %v2579_v46, %v2878_v27  ;;  %v2584_v24 = vsel %vm2582_vm4, %v2580_v44, %v2879_v9  ;;  %v2585_v28 = vsel %vm2582_vm4, %v2581_v30, %v2571_v33 }
 0x4c2   : > { %v2734_v35 = vpack.c.bf16 %v2583_v23, %v2583_v23  ;;  %v2735_v48 = vpack.c.bf16 %v2584_v24, %v2584_v24  ;;  %v2736_v40 = vpack.c.bf16 %v2585_v28, %v2585_v28 }
 0x4c4   : > { %2600 = vst.msk [vmem:[%s116_s22] sm:$0xf] %vm2599_vm5, %v2734_v35  ;;  %2601 = vst.msk [vmem:[%s116_s22 + $0x4] sm:$0xf] %vm2599_vm5, %v2735_v48 }
 0x4c5   : > { %2602 = vst.msk [vmem:[%s116_s22 + $0x8] sm:$0xf] %vm2599_vm5, %v2736_v40 }
 0x4c6 PF: > { %s11_s6 = sadd.s32 1, %s2934_s6  }
 0x4c7   : > { %p8_p4 = scmp.ge.s32.totalorder %s11_s6, 4  }
 0x4c9   :  { %10 = sbr.rel (!%p8_p4) target bundleno = 1 (0x1), region = 54 }

// kernel: mmer_forward.117
= control target key start
LH: loop header
LB: loop body
LE: loop exit
PB: predicated region body
PF: predicated region fallthrough
CT: control target
= control target key end

     0   :  { %v455_v0 = vmov 0.0   ;;  %vm456_vm0 = vmmov 0   ;;  %vm196_vm1 = vcmask 523264   ;;  %vm324_vm2 = vcmask 519168   ;;  %s597_s1 = inlined_call_operand.vmem [shape: bf16[1,128,64], index: 1, kind: input, shape index: {}]   ;;  %s598_s0 = inlined_call_operand.vmem [shape: bf16[1,48,128], index: 0, kind: input, shape index: {}]   ;;  %s599_s3 = inlined_call_operand.vmem [shape: bf16[1,48,64], index: 3, kind: input, shape index: {}]   ;;  %s600_s2 = inlined_call_operand.vmem [shape: f32[1,1,64], index: 2, kind: input, shape index: {}]   ;;  %s601_s4 = inlined_call_operand.vmem [shape: f32[1,1,64], index: 4, kind: input, shape index: {}]   ;;  %s602_s5 = inlined_call_operand.vmem [shape: f32[1,1,64], index: 5, kind: input, shape index: {}]   ;;  %s603_s6 = inlined_call_operand.vmem [shape: bf16[1,48,64], index: 6, kind: output, shape index: {}]  }
   0x1   :  { %386 = vmatprep.subr.bf16.mxu0 %v455_v0  ;;  %414 = vmatprep.subr.bf16.mxu1 %v455_v0  ;;  %v432_v1 = vld [vmem:[%s597_s1] sm:$0xff]   ;;  %v433_v2 = vld [vmem:[%s597_s1 + $0x8] sm:$0xff]   ;;  %v434_v3 = vld [vmem:[%s597_s1 + $0x10] sm:$0xff]  }
   0x2   :  { %402 = vmatprep.mubr.msk.bf16.mxu0 %vm456_vm0, %v455_v0  ;;  %406 = vmatprep.mubr.msk.bf16.mxu1 %vm456_vm0, %v455_v0  ;;  %v435_v4 = vld [vmem:[%s597_s1 + $0x18] sm:$0xff]   ;;  %v436_v5 = vld [vmem:[%s597_s1 + $0x20] sm:$0xff]   ;;  %v437_v6 = vld [vmem:[%s597_s1 + $0x28] sm:$0xff]  }
   0x3   :  { %387 = vmatpush3.bf16.msra.mxu0 %v432_v1  ;;  %422 = vmatpush3.bf16.msra.mxu1 %v432_v1  ;;  %v438_v7 = vld [vmem:[%s597_s1 + $0x30] sm:$0xff]   ;;  %v439_v8 = vld [vmem:[%s597_s1 + $0x38] sm:$0xff]   ;;  %v440_v9 = vld [vmem:[%s598_s0] sm:$0xff]  }
   0x4   :  { %388 = vmatprep.subr.bf16.mxu0 %v455_v0  ;;  %415 = vmatprep.subr.bf16.mxu1 %v455_v0  ;;  %v441_v10 = vld [vmem:[%s598_s0 + $0x8] sm:$0xff]   ;;  %v442_v11 = vld [vmem:[%s598_s0 + $0x10] sm:$0xff]   ;;  %v362_v13 = vld [vmem:[%s599_s3] sm:$0xff]  }
   0x5   :  { %v373_v12 = vld [vmem:[%s599_s3 + $0x8] sm:$0xff]   ;;  %v335_v14 = vld [vmem:[%s600_s2] ss:$0 sm:$0xff]  ;;  %v363_v16 = vunpack.c.l.bf16 %v362_v13  ;;  %v364_v24 = vunpack.c.h.bf16 %v362_v13  ;;  %v374_v33 = vld [vmem:[%s599_s3 + $0x10] sm:$0xff]  }
   0x6   :  { %v367_v15 = vunpack.c.l.bf16 %v373_v12  ;;  %v368_v23 = vunpack.c.h.bf16 %v373_v12  ;;  %v371_v38 = vunpack.c.l.bf16 %v374_v33  ;;  %v372_v44 = vunpack.c.h.bf16 %v374_v33 }
   0x7   :  { %389 = vmatpush3.bf16.msra.mxu0 %v433_v2  ;;  %423 = vmatpush3.bf16.msra.mxu1 %v433_v2 }
   0x8   :  { %390 = vmatprep.subr.bf16.mxu0 %v455_v0  ;;  %416 = vmatprep.subr.bf16.mxu1 %v455_v0 }
   0xb   :  { %391 = vmatpush3.bf16.msra.mxu0 %v434_v3  ;;  %424 = vmatpush3.bf16.msra.mxu1 %v434_v3 }
   0xc   :  { %392 = vmatprep.subr.bf16.mxu0 %v455_v0  ;;  %417 = vmatprep.subr.bf16.mxu1 %v455_v0 }
   0xf   :  { %393 = vmatpush3.bf16.msra.mxu0 %v435_v4  ;;  %425 = vmatpush3.bf16.msra.mxu1 %v435_v4 }
  0x10   :  { %394 = vmatprep.subr.bf16.mxu0 %v455_v0  ;;  %418 = vmatprep.subr.bf16.mxu1 %v455_v0 }
  0x13   :  { %395 = vmatpush3.bf16.msra.mxu0 %v436_v5  ;;  %426 = vmatpush3.bf16.msra.mxu1 %v436_v5 }
  0x14   :  { %396 = vmatprep.subr.bf16.mxu0 %v455_v0  ;;  %419 = vmatprep.subr.bf16.mxu1 %v455_v0 }
  0x17   :  { %397 = vmatpush3.bf16.msra.mxu0 %v437_v6  ;;  %427 = vmatpush3.bf16.msra.mxu1 %v437_v6 }
  0x18   :  { %398 = vmatprep.subr.bf16.mxu0 %v455_v0  ;;  %420 = vmatprep.subr.bf16.mxu1 %v455_v0 }
  0x1b   :  { %399 = vmatpush3.bf16.msra.mxu0 %v438_v7  ;;  %428 = vmatpush3.bf16.msra.mxu1 %v438_v7 }
  0x1c   :  { %400 = vmatprep.subr.bf16.mxu0 %v455_v0  ;;  %421 = vmatprep.subr.bf16.mxu1 %v455_v0 }
  0x1f   :  { %401 = vmatpush3.bf16.msra.mxu0 %v439_v8  ;;  %429 = vmatpush3.bf16.msra.mxu1 %v439_v8 }
  0x22   :  { %403 = vmatmul.mubr.bf16.vlgmr.msra.gmra.mrb[0].mxu0 %v440_v9  ;;  %407 = vmatmul.mubr.bf16.vlgmr.msra.gmra.mrb[0].mxu1 %v441_v10 }
  0x23   :  { %410 = vmatprep.mubr.msk.bf16.mxu1 %vm456_vm0, %v455_v0 }
  0x2a   :  { %411 = vmatmul.mubr.bf16.gmra.mrb[4].mxu1 %v442_v11 }
  0xf5   :  { %v153_v17 = vpop.f32.mrb[0].mxu0  ;;  %v161_v18 = vpop.f32.mrb[0].mxu1 }
  0xf6   :  { %v154_v19 = vadd.f32 %v335_v14, %v153_v17  ;;  %v162_v20 = vadd.f32 %v335_v14, %v161_v18  ;;  %v404_v21 = vpop.f32.mrb[1].mxu0  ;;  %v408_v22 = vpop.f32.mrb[1].mxu1 }
  0xf7   :  { %v156_v25 = vpop.f32.mrb[2].mxu0  ;;  %v164_v26 = vpop.f32.mrb[2].mxu1 }
  0xf8   :  { %v157_v27 = vadd.f32 %v335_v14, %v156_v25  ;;  %v165_v28 = vadd.f32 %v335_v14, %v164_v26  ;;  %v405_v29 = vpop.f32.mrb[3].mxu0  ;;  %v409_v30 = vpop.f32.mrb[3].mxu1  ;;  %v190_v31 = vadd.f32 %v367_v15, %v162_v20  ;;  %v188_v32 = vadd.f32 %v363_v16, %v154_v19 }
  0xfa   :  { %v203_v34 = vsel %vm196_vm1, %v190_v31, 0.0  ;;  %v197_v35 = vsel %vm196_vm1, %v188_v32, 0.0  ;;  %v191_v36 = vadd.f32 %v368_v23, %v165_v28  ;;  %v189_v37 = vadd.f32 %v364_v24, %v157_v27 }
  0xfb   :  { %204 = vadd.xlane.f32.xlu1 %v203_v34  ;;  %198 = vadd.xlane.f32.xlu0 %v197_v35 }
  0xfc   :  { %v206_v42 = vsel %vm196_vm1, %v191_v36, 0.0  ;;  %v200_v43 = vsel %vm196_vm1, %v189_v37, 0.0 }
  0xfd   :  { %v169_v39 = vpop.f32.mrb[4].mxu1 }
  0xfe   :  { %v170_v40 = vadd.f32 %v335_v14, %v169_v39  ;;  %v412_v41 = vpop.f32.mrb[5].mxu1  ;;  %v348_v39 = vld [vmem:[%s602_s5] ss:$0 sm:$0xff] }
  0xff   :  { %207 = vadd.xlane.f32.xlu1 %v206_v42  ;;  %v172_v45 = vpop.f32.mrb[6].mxu1  ;;  %201 = vadd.xlane.f32.xlu0 %v200_v43 }
 0x100   :  { %v173_v46 = vadd.f32 %v335_v14, %v172_v45  ;;  %v413_v47 = vpop.f32.mrb[7].mxu1  ;;  %v192_v48 = vadd.f32 %v371_v38, %v170_v40 }
 0x102   :  { %v209_v49 = vsel %vm196_vm1, %v192_v48, 0.0  ;;  %v193_v50 = vadd.f32 %v372_v44, %v173_v46 }
 0x103   :  { %210 = vadd.xlane.f32.xlu0 %v209_v49 }
 0x104   :  { %v212_v51 = vsel %vm196_vm1, %v193_v50, 0.0 }
 0x105   :  { %213 = vadd.xlane.f32.xlu1 %v212_v51 }
 0x188   :  { %v205_v52 = vpop.xlane.xlu1 %204  ;;  %v199_v53 = vpop.xlane.xlu0 %198 }
 0x189   :  { %v218_v54 = vmul.f32 0.015625, %v205_v52  ;;  %v216_v55 = vmul.f32 0.015625, %v199_v53 }
 0x18b   :  { %v546_v56 = vsub.f32 %v190_v31, %v218_v54  ;;  %v222_v57 = vsub.f32 %v188_v32, %v216_v55 }
 0x18c   :  { %v208_v58 = vpop.xlane.xlu1 %207  ;;  %v202_v59 = vpop.xlane.xlu0 %201 }
 0x18d   :  { %v219_v60 = vmul.f32 0.015625, %v208_v58  ;;  %v217_v61 = vmul.f32 0.015625, %v202_v59  ;;  %v228_v62 = vmul.f32 %v222_v57, %v222_v57  ;;  %v230_v63 = vmul.f32 %v546_v56, %v546_v56 }
 0x18f   :  { %v550_v0 = vsub.f32 %v191_v36, %v219_v60  ;;  %v223_v1 = vsub.f32 %v189_v37, %v217_v61  ;;  %v234_v2 = vsel %vm196_vm1, %v228_v62, 0.0  ;;  %v240_v7 = vsel %vm196_vm1, %v230_v63, 0.0  ;;  %v347_v36 = vld [vmem:[%s601_s4] ss:$0 sm:$0xff] }
 0x190   :  { %235 = vadd.xlane.f32.xlu0 %v234_v2  ;;  %v211_v3 = vpop.xlane.xlu0 %210 }
 0x191   :  { %v220_v4 = vmul.f32 0.015625, %v211_v3  ;;  %v229_v5 = vmul.f32 %v223_v1, %v223_v1  ;;  %v231_v11 = vmul.f32 %v550_v0, %v550_v0 }
 0x192   :  { %v214_v6 = vpop.xlane.xlu1 %213 }
 0x193   :  { %v226_v8 = vsub.f32 %v192_v48, %v220_v4  ;;  %v221_v9 = vmul.f32 0.015625, %v214_v6  ;;  %v237_v10 = vsel %vm196_vm1, %v229_v5, 0.0  ;;  %v243_v14 = vsel %vm196_vm1, %v231_v11, 0.0 }
 0x194   :  { %241 = vadd.xlane.f32.xlu0 %v240_v7  ;;  %238 = vadd.xlane.f32.xlu1 %v237_v10 }
 0x195   :  { %v557_v12 = vsub.f32 %v193_v50, %v221_v9  ;;  %v232_v13 = vmul.f32 %v226_v8, %v226_v8 }
 0x197   :  { %v246_v15 = vsel %vm196_vm1, %v232_v13, 0.0  ;;  %v233_v16 = vmul.f32 %v557_v12, %v557_v12 }
 0x198   :  { %244 = vadd.xlane.f32.xlu1 %v243_v14  ;;  %247 = vadd.xlane.f32.xlu0 %v246_v15 }
 0x199   :  { %v249_v17 = vsel %vm196_vm1, %v233_v16, 0.0 }
 0x19c   :  { %250 = vadd.xlane.f32.xlu1 %v249_v17 }
 0x21d   :  { %v236_v18 = vpop.xlane.xlu0 %235 }
 0x21e   :  { %v252_v19 = vmul.f32 0.015625, %v236_v18 }
 0x220   :  { %v258_v20 = vadd.f32 1e-05, %v252_v19 }
 0x221   :  { %v239_v21 = vpop.xlane.xlu1 %238  ;;  %v242_v22 = vpop.xlane.xlu0 %241 }
 0x222   :  { %443 = vrsqrt.f32 %v258_v20  ;;  %v253_v23 = vmul.f32 0.015625, %v239_v21  ;;  %v254_v24 = vmul.f32 0.015625, %v242_v22 }
 0x224   :  { %v259_v25 = vadd.f32 1e-05, %v253_v23  ;;  %v260_v26 = vadd.f32 1e-05, %v254_v24 }
 0x225   :  { %v245_v27 = vpop.xlane.xlu1 %244  ;;  %v248_v28 = vpop.xlane.xlu0 %247 }
 0x226   :  { %445 = vrsqrt.f32 %v259_v25  ;;  %v255_v29 = vmul.f32 0.015625, %v245_v27  ;;  %v256_v30 = vmul.f32 0.015625, %v248_v28 }
 0x227   :  { %447 = vrsqrt.f32 %v260_v26 }
 0x228   :  { %v261_v31 = vadd.f32 1e-05, %v255_v29  ;;  %v262_v32 = vadd.f32 1e-05, %v256_v30 }
 0x229   :  { %v251_v33 = vpop.xlane.xlu1 %250 }
 0x22a   :  { %449 = vrsqrt.f32 %v261_v31  ;;  %v257_v34 = vmul.f32 0.015625, %v251_v33 }
 0x22b   :  { %451 = vrsqrt.f32 %v262_v32 }
 0x22c   :  { %v444_v35 = vpop.eup %443  ;;  %v263_v37 = vadd.f32 1e-05, %v257_v34 }
 0x22d   :  { %v270_v38 = vmul.f32 %v444_v35, %v222_v57 }
 0x22e   :  { %453 = vrsqrt.f32 %v263_v37 }
 0x22f   :  { %v282_v40 = vmul.f32 %v347_v36, %v270_v38 }
 0x230   :  { %v446_v41 = vpop.eup %445 }
 0x231   :  { %v448_v42 = vpop.eup %447  ;;  %v294_v43 = vadd.f32 %v348_v39, %v282_v40  ;;  %v271_v44 = vmul.f32 %v446_v41, %v223_v1 }
 0x232   :  { %v272_v45 = vmul.f32 %v448_v42, %v546_v56 }
 0x233   :  { %v355_v46 = vpack.c.bf16 %v294_v43, %v294_v43  ;;  %v283_v47 = vmul.f32 %v347_v36, %v271_v44 }
 0x234   :  { %v450_v48 = vpop.eup %449  ;;  %v284_v49 = vmul.f32 %v347_v36, %v272_v45 }
 0x235   :  { %v452_v50 = vpop.eup %451  ;;  %325 = vst.msk [vmem:[%s603_s6] sm:$0xf] %vm324_vm2, %v355_v46  ;;  %v295_v51 = vadd.f32 %v348_v39, %v283_v47  ;;  %v273_v52 = vmul.f32 %v450_v48, %v550_v0 }
 0x236   :  { %v296_v53 = vadd.f32 %v348_v39, %v284_v49  ;;  %v274_v54 = vmul.f32 %v452_v50, %v226_v8 }
 0x237   :  { %v356_v55 = vpack.c.bf16 %v295_v51, %v295_v51  ;;  %v285_v57 = vmul.f32 %v347_v36, %v273_v52 }
 0x238   :  { %v454_v58 = vpop.eup %453  ;;  %v357_v59 = vpack.c.bf16 %v296_v53, %v296_v53  ;;  %v286_v56 = vmul.f32 %v347_v36, %v274_v54 }
 0x239   :  { %326 = vst.msk [vmem:[%s603_s6 + $0x4] sm:$0xf] %vm324_vm2, %v356_v55  ;;  %v297_v60 = vadd.f32 %v348_v39, %v285_v57  ;;  %v275_v61 = vmul.f32 %v454_v58, %v557_v12 }
 0x23a   :  { %327 = vst.msk [vmem:[%s603_s6 + $0x8] sm:$0xf] %vm324_vm2, %v357_v59  ;;  %v298_v62 = vadd.f32 %v348_v39, %v286_v56 }
 0x23b   :  { %v358_v63 = vpack.c.bf16 %v297_v60, %v297_v60  ;;  %v287_v0 = vmul.f32 %v347_v36, %v275_v61 }
 0x23c   :  { %v359_v1 = vpack.c.bf16 %v298_v62, %v298_v62 }
 0x23d   :  { %328 = vst.msk [vmem:[%s603_s6 + $0xc] sm:$0xf] %vm324_vm2, %v358_v63  ;;  %v299_v2 = vadd.f32 %v348_v39, %v287_v0 }
 0x23e   :  { %329 = vst.msk [vmem:[%s603_s6 + $0x10] sm:$0xf] %vm324_vm2, %v359_v1 }
 0x23f   :  { %v360_v3 = vpack.c.bf16 %v299_v2, %v299_v2 }
 0x241   :  { %330 = vst.msk [vmem:[%s603_s6 + $0x14] sm:$0xf] %vm324_vm2, %v360_v3 }

// kernel: mmer_forward.124
= control target key start
LH: loop header
LB: loop body
LE: loop exit
PB: predicated region body
PF: predicated region fallthrough
CT: control target
= control target key end

     0   :  { %v260_v0 = vmov 0.0   ;;  %vm261_vm0 = vmmov 0   ;;  %vm75_vm1 = vcmask 523264   ;;  %s318_s1 = inlined_call_operand.vmem [shape: bf16[1,64,128], index: 1, kind: input, shape index: {}]   ;;  %s319_s0 = inlined_call_operand.vmem [shape: bf16[1,48,64], index: 0, kind: input, shape index: {}]   ;;  %s320_s2 = inlined_call_operand.vmem [shape: f32[1,1,128], index: 2, kind: input, shape index: {}]   ;;  %s321_s3 = inlined_call_operand.vmem [shape: bf16[1,48,128], index: 3, kind: output, shape index: {}]  }
   0x1   :  { %243 = vmatprep.subr.bf16.mxu1 %v260_v0  ;;  %v253_v1 = vld [vmem:[%s318_s1] sm:$0xff]   ;;  %223 = vmatprep.subr.bf16.mxu0 %v260_v0  ;;  %v254_v2 = vld [vmem:[%s318_s1 + $0x8] sm:$0xff]   ;;  %v255_v3 = vld [vmem:[%s318_s1 + $0x10] sm:$0xff]  }
   0x2   :  { %235 = vmatprep.mubr.msk.bf16.mxu1 %vm261_vm0, %v260_v0  ;;  %231 = vmatprep.mubr.msk.bf16.mxu0 %vm261_vm0, %v260_v0  ;;  %v256_v4 = vld [vmem:[%s318_s1 + $0x18] sm:$0xff]   ;;  %v257_v5 = vld [vmem:[%s319_s0 + $0x8] sm:$0xff]   ;;  %v258_v6 = vld [vmem:[%s319_s0] sm:$0xff]  }
   0x3   :  { %247 = vmatpush3.bf16.msra.mxu1 %v253_v1  ;;  %224 = vmatpush3.bf16.msra.mxu0 %v253_v1  ;;  %v259_v7 = vld [vmem:[%s319_s0 + $0x10] sm:$0xff]   ;;  %v176_v8 = vld [vmem:[%s320_s2] ss:$0 sm:$0xff] }
   0x4   :  { %244 = vmatprep.subr.bf16.mxu1 %v260_v0  ;;  %225 = vmatprep.subr.bf16.mxu0 %v260_v0 }
   0x7   :  { %248 = vmatpush3.bf16.msra.mxu1 %v254_v2  ;;  %226 = vmatpush3.bf16.msra.mxu0 %v254_v2 }
   0x8   :  { %245 = vmatprep.subr.bf16.mxu1 %v260_v0  ;;  %227 = vmatprep.subr.bf16.mxu0 %v260_v0 }
   0xb   :  { %249 = vmatpush3.bf16.msra.mxu1 %v255_v3  ;;  %228 = vmatpush3.bf16.msra.mxu0 %v255_v3 }
   0xc   :  { %246 = vmatprep.subr.bf16.mxu1 %v260_v0  ;;  %229 = vmatprep.subr.bf16.mxu0 %v260_v0 }
   0xf   :  { %250 = vmatpush3.bf16.msra.mxu1 %v256_v4  ;;  %230 = vmatpush3.bf16.msra.mxu0 %v256_v4 }
  0x12   :  { %236 = vmatmul.mubr.msk.bf16.vlgmr.msra.gmra.mrb[0].mxu1 %vm75_vm1, %v257_v5  ;;  %232 = vmatmul.mubr.msk.bf16.vlgmr.msra.gmra.mrb[0].mxu0 %vm75_vm1, %v258_v6 }
  0x13   :  { %239 = vmatprep.mubr.msk.bf16.mxu1 %vm261_vm0, %v260_v0 }
  0x1a   :  { %240 = vmatmul.mubr.msk.bf16.gmra.mrb[4].mxu1 %vm75_vm1, %v259_v7 }
  0xe5   :  { %v127_v9 = vpop.f32.mrb[0].mxu1  ;;  %v119_v10 = vpop.f32.mrb[0].mxu0 }
  0xe6   :  { %v237_v11 = vpop.f32.mrb[1].mxu1  ;;  %v120_v12 = vadd.f32 %v176_v8, %v119_v10  ;;  %v233_v13 = vpop.f32.mrb[1].mxu0  ;;  %v128_v16 = vadd.f32 %v176_v8, %v127_v9 }
  0xe7   :  { %v130_v14 = vpop.f32.mrb[2].mxu1  ;;  %v122_v15 = vpop.f32.mrb[2].mxu0 }
  0xe8   :  { %v131_v17 = vadd.f32 %v176_v8, %v130_v14  ;;  %v238_v18 = vpop.f32.mrb[3].mxu1  ;;  %v123_v19 = vadd.f32 %v176_v8, %v122_v15  ;;  %v234_v20 = vpop.f32.mrb[3].mxu0 }
  0xea   :  { %v207_v21 = vpack.c.bf16 %v131_v17, %v128_v16  ;;  %v202_v22 = vpack.c.bf16 %v123_v19, %v120_v12 }
  0xec   :  { %214 = vst [vmem:[%s321_s3 + $0x8] sm:$0xff] %v207_v21   ;;  %203 = vst [vmem:[%s321_s3] sm:$0xff] %v202_v22  }
  0xed   :  { %v135_v23 = vpop.f32.mrb[4].mxu1 }
  0xee   :  { %v241_v24 = vpop.f32.mrb[5].mxu1  ;;  %v136_v26 = vadd.f32 %v176_v8, %v135_v23 }
  0xef   :  { %v138_v25 = vpop.f32.mrb[6].mxu1 }
  0xf0   :  { %v139_v27 = vadd.f32 %v176_v8, %v138_v25  ;;  %v242_v28 = vpop.f32.mrb[7].mxu1 }
  0xf2   :  { %v212_v29 = vpack.c.bf16 %v139_v27, %v136_v26 }
  0xf4   :  { %215 = vst [vmem:[%s321_s3 + $0x10] sm:$0xff] %v212_v29  }

// kernel: mmer_forward.123
= control target key start
LH: loop header
LB: loop body
LE: loop exit
PB: predicated region body
PF: predicated region fallthrough
CT: control target
= control target key end

     0   :  { %vm28_vm0 = vcmask 523264   ;;  %vm156_vm1 = vcmask 519168   ;;  %s293_s0 = inlined_call_operand.vmem [shape: bf16[1,48,64], index: 0, kind: input, shape index: {}]   ;;  %s294_s1 = inlined_call_operand.vmem [shape: f32[1,1,64], index: 1, kind: input, shape index: {}]   ;;  %s295_s2 = inlined_call_operand.vmem [shape: f32[1,1,64], index: 2, kind: input, shape index: {}]   ;;  %s296_s3 = inlined_call_operand.vmem [shape: bf16[1,48,64], index: 3, kind: output, shape index: {}]  }
   0x1   :  { %v182_v0 = vld [vmem:[%s293_s0] sm:$0xff]   ;;  %v193_v1 = vld [vmem:[%s293_s0 + $0x8] sm:$0xff]   ;;  %v194_v6 = vld [vmem:[%s293_s0 + $0x10] sm:$0xff]  }
   0x2   :  { %v183_v2 = vunpack.c.l.bf16 %v182_v0  ;;  %v187_v3 = vunpack.c.l.bf16 %v193_v1  ;;  %v184_v4 = vunpack.c.h.bf16 %v182_v0  ;;  %v188_v5 = vunpack.c.h.bf16 %v193_v1  ;;  %v167_v63 = vld [vmem:[%s294_s1] ss:$0 sm:$0xff] }
   0x3   :  { %v191_v11 = vunpack.c.l.bf16 %v194_v6  ;;  %v192_v12 = vunpack.c.h.bf16 %v194_v6 }
   0x4   :  { %v29_v7 = vsel %vm28_vm0, %v183_v2, 0.0  ;;  %v35_v8 = vsel %vm28_vm0, %v187_v3, 0.0  ;;  %v32_v9 = vsel %vm28_vm0, %v184_v4, 0.0  ;;  %v38_v10 = vsel %vm28_vm0, %v188_v5, 0.0 }
   0x5   :  { %30 = vadd.xlane.f32.xlu0 %v29_v7  ;;  %36 = vadd.xlane.f32.xlu1 %v35_v8  ;;  %v41_v13 = vsel %vm28_vm0, %v191_v11, 0.0  ;;  %v44_v14 = vsel %vm28_vm0, %v192_v12, 0.0 }
   0x9   :  { %33 = vadd.xlane.f32.xlu0 %v32_v9  ;;  %39 = vadd.xlane.f32.xlu1 %v38_v10 }
   0xd   :  { %42 = vadd.xlane.f32.xlu0 %v41_v13  ;;  %45 = vadd.xlane.f32.xlu1 %v44_v14 }
  0x92   :  { %v31_v15 = vpop.xlane.xlu0 %30  ;;  %v37_v16 = vpop.xlane.xlu1 %36 }
  0x93   :  { %v48_v17 = vmul.f32 0.015625, %v31_v15  ;;  %v50_v18 = vmul.f32 0.015625, %v37_v16 }
  0x95   :  { %v54_v19 = vsub.f32 %v183_v2, %v48_v17  ;;  %v242_v20 = vsub.f32 %v187_v3, %v50_v18  ;;  %v168_v2 = vld [vmem:[%s295_s2] ss:$0 sm:$0xff] }
  0x96   :  { %v34_v21 = vpop.xlane.xlu0 %33  ;;  %v40_v22 = vpop.xlane.xlu1 %39 }
  0x97   :  { %v49_v23 = vmul.f32 0.015625, %v34_v21  ;;  %v51_v24 = vmul.f32 0.015625, %v40_v22  ;;  %v60_v25 = vmul.f32 %v54_v19, %v54_v19  ;;  %v62_v26 = vmul.f32 %v242_v20, %v242_v20 }
  0x99   :  { %v55_v27 = vsub.f32 %v184_v4, %v49_v23  ;;  %v246_v28 = vsub.f32 %v188_v5, %v51_v24  ;;  %v66_v29 = vsel %vm28_vm0, %v60_v25, 0.0  ;;  %v72_v32 = vsel %vm28_vm0, %v62_v26, 0.0 }
  0x9a   :  { %67 = vadd.xlane.f32.xlu0 %v66_v29  ;;  %v43_v30 = vpop.xlane.xlu0 %42  ;;  %v46_v31 = vpop.xlane.xlu1 %45 }
  0x9b   :  { %v52_v33 = vmul.f32 0.015625, %v43_v30  ;;  %v53_v34 = vmul.f32 0.015625, %v46_v31  ;;  %v61_v35 = vmul.f32 %v55_v27, %v55_v27  ;;  %v63_v36 = vmul.f32 %v246_v28, %v246_v28 }
  0x9d   :  { %v58_v37 = vsub.f32 %v191_v11, %v52_v33  ;;  %v252_v38 = vsub.f32 %v192_v12, %v53_v34  ;;  %v69_v39 = vsel %vm28_vm0, %v61_v35, 0.0  ;;  %v75_v40 = vsel %vm28_vm0, %v63_v36, 0.0 }
  0x9e   :  { %73 = vadd.xlane.f32.xlu0 %v72_v32  ;;  %70 = vadd.xlane.f32.xlu1 %v69_v39 }
  0x9f   :  { %v64_v41 = vmul.f32 %v58_v37, %v58_v37  ;;  %v65_v42 = vmul.f32 %v252_v38, %v252_v38 }
  0xa1   :  { %v78_v43 = vsel %vm28_vm0, %v64_v41, 0.0  ;;  %v81_v44 = vsel %vm28_vm0, %v65_v42, 0.0 }
  0xa2   :  { %76 = vadd.xlane.f32.xlu1 %v75_v40  ;;  %79 = vadd.xlane.f32.xlu0 %v78_v43 }
  0xa6   :  { %82 = vadd.xlane.f32.xlu1 %v81_v44 }
 0x127   :  { %v68_v45 = vpop.xlane.xlu0 %67 }
 0x128   :  { %v84_v46 = vmul.f32 0.015625, %v68_v45 }
 0x12a   :  { %v90_v47 = vadd.f32 1e-05, %v84_v46 }
 0x12b   :  { %v71_v48 = vpop.xlane.xlu1 %70  ;;  %v74_v49 = vpop.xlane.xlu0 %73 }
 0x12c   :  { %195 = vrsqrt.f32 %v90_v47  ;;  %v85_v50 = vmul.f32 0.015625, %v71_v48  ;;  %v86_v51 = vmul.f32 0.015625, %v74_v49 }
 0x12e   :  { %v91_v52 = vadd.f32 1e-05, %v85_v50  ;;  %v92_v53 = vadd.f32 1e-05, %v86_v51 }
 0x12f   :  { %v77_v54 = vpop.xlane.xlu1 %76  ;;  %v80_v55 = vpop.xlane.xlu0 %79 }
 0x130   :  { %197 = vrsqrt.f32 %v91_v52  ;;  %v87_v56 = vmul.f32 0.015625, %v77_v54  ;;  %v88_v57 = vmul.f32 0.015625, %v80_v55 }
 0x131   :  { %199 = vrsqrt.f32 %v92_v53 }
 0x132   :  { %v93_v58 = vadd.f32 1e-05, %v87_v56  ;;  %v94_v59 = vadd.f32 1e-05, %v88_v57 }
 0x133   :  { %v83_v60 = vpop.xlane.xlu1 %82 }
 0x134   :  { %201 = vrsqrt.f32 %v93_v58  ;;  %v89_v61 = vmul.f32 0.015625, %v83_v60 }
 0x135   :  { %203 = vrsqrt.f32 %v94_v59 }
 0x136   :  { %v196_v62 = vpop.eup %195  ;;  %v95_v0 = vadd.f32 1e-05, %v89_v61 }
 0x137   :  { %v102_v1 = vmul.f32 %v196_v62, %v54_v19 }
 0x138   :  { %205 = vrsqrt.f32 %v95_v0 }
 0x139   :  { %v114_v3 = vmul.f32 %v167_v63, %v102_v1 }
 0x13a   :  { %v198_v4 = vpop.eup %197 }
 0x13b   :  { %v200_v5 = vpop.eup %199  ;;  %v126_v6 = vadd.f32 %v168_v2, %v114_v3  ;;  %v103_v7 = vmul.f32 %v198_v4, %v55_v27 }
 0x13c   :  { %v104_v8 = vmul.f32 %v200_v5, %v242_v20 }
 0x13d   :  { %v175_v9 = vpack.c.bf16 %v126_v6, %v126_v6  ;;  %v115_v10 = vmul.f32 %v167_v63, %v103_v7 }
 0x13e   :  { %v202_v11 = vpop.eup %201  ;;  %v116_v12 = vmul.f32 %v167_v63, %v104_v8 }
 0x13f   :  { %v204_v13 = vpop.eup %203  ;;  %157 = vst.msk [vmem:[%s296_s3] sm:$0xf] %vm156_vm1, %v175_v9  ;;  %v127_v14 = vadd.f32 %v168_v2, %v115_v10  ;;  %v105_v15 = vmul.f32 %v202_v11, %v246_v28 }
 0x140   :  { %v128_v16 = vadd.f32 %v168_v2, %v116_v12  ;;  %v106_v17 = vmul.f32 %v204_v13, %v58_v37 }
 0x141   :  { %v176_v18 = vpack.c.bf16 %v127_v14, %v127_v14  ;;  %v117_v19 = vmul.f32 %v167_v63, %v105_v15 }
 0x142   :  { %v206_v21 = vpop.eup %205  ;;  %v177_v22 = vpack.c.bf16 %v128_v16, %v128_v16  ;;  %v118_v20 = vmul.f32 %v167_v63, %v106_v17 }
 0x143   :  { %158 = vst.msk [vmem:[%s296_s3 + $0x4] sm:$0xf] %vm156_vm1, %v176_v18  ;;  %v129_v23 = vadd.f32 %v168_v2, %v117_v19  ;;  %v107_v24 = vmul.f32 %v206_v21, %v252_v38 }
 0x144   :  { %159 = vst.msk [vmem:[%s296_s3 + $0x8] sm:$0xf] %vm156_vm1, %v177_v22  ;;  %v130_v25 = vadd.f32 %v168_v2, %v118_v20 }
 0x145   :  { %v178_v26 = vpack.c.bf16 %v129_v23, %v129_v23  ;;  %v119_v27 = vmul.f32 %v167_v63, %v107_v24 }
 0x146   :  { %v179_v28 = vpack.c.bf16 %v130_v25, %v130_v25 }
 0x147   :  { %160 = vst.msk [vmem:[%s296_s3 + $0xc] sm:$0xf] %vm156_vm1, %v178_v26  ;;  %v131_v29 = vadd.f32 %v168_v2, %v119_v27 }
 0x148   :  { %161 = vst.msk [vmem:[%s296_s3 + $0x10] sm:$0xf] %vm156_vm1, %v179_v28 }
 0x149   :  { %v180_v30 = vpack.c.bf16 %v131_v29, %v131_v29 }
 0x14b   :  { %162 = vst.msk [vmem:[%s296_s3 + $0x14] sm:$0xf] %vm156_vm1, %v180_v30 }

// kernel: mmer_forward.127
= control target key start
LH: loop header
LB: loop body
LE: loop exit
PB: predicated region body
PF: predicated region fallthrough
CT: control target
= control target key end

     0   :  { %v157_v0 = vmov 0.0   ;;  %vm158_vm0 = vmmov 0   ;;  %vm61_vm1 = vcmask 523264   ;;  %s203_s1 = inlined_call_operand.vmem [shape: bf16[1,64,128], index: 1, kind: input, shape index: {}]   ;;  %s204_s0 = inlined_call_operand.vmem [shape: bf16[1,12,64], index: 0, kind: input, shape index: {}]   ;;  %s205_s2 = inlined_call_operand.vmem [shape: f32[1,1,128], index: 2, kind: input, shape index: {}]   ;;  %s206_s3 = inlined_call_operand.vmem [shape: bf16[1,12,128], index: 3, kind: output, shape index: {}]  }
   0x1   :  { %138 = vmatprep.subr.bf16.mxu0 %v157_v0  ;;  %v152_v1 = vld [vmem:[%s203_s1] sm:$0xff]   ;;  %146 = vmatprep.mubr.msk.bf16.mxu0 %vm158_vm0, %v157_v0  ;;  %v153_v2 = vld [vmem:[%s203_s1 + $0x8] sm:$0xff]   ;;  %v154_v3 = vld [vmem:[%s203_s1 + $0x10] sm:$0xff]  }
   0x2   :  { %139 = vmatpush3.bf16.msra.mxu0 %v152_v1  ;;  %v155_v4 = vld [vmem:[%s203_s1 + $0x18] sm:$0xff]   ;;  %v156_v5 = vld [vmem:[%s204_s0] sm:$0x3f]  }
   0x3   :  { %140 = vmatprep.subr.bf16.mxu0 %v157_v0  ;;  %v122_v6 = vld [vmem:[%s205_s2] ss:$0 sm:$0xff] }
   0x6   :  { %141 = vmatpush3.bf16.msra.mxu0 %v153_v2 }
   0x7   :  { %142 = vmatprep.subr.bf16.mxu0 %v157_v0 }
   0xa   :  { %143 = vmatpush3.bf16.msra.mxu0 %v154_v3 }
   0xb   :  { %144 = vmatprep.subr.bf16.mxu0 %v157_v0 }
   0xe   :  { %145 = vmatpush3.bf16.msra.mxu0 %v155_v4 }
  0x11   :  { %147 = vmatmul.mubr.msk.bf16.vlgmr.msra.gmra.mrb[0].mxu0 %vm61_vm1, %v156_v5 }
  0xe4   :  { %v99_v7 = vpop.f32.mrb[0].mxu0 }
  0xe5   :  { %v100_v8 = vadd.f32 %v122_v6, %v99_v7  ;;  %v148_v9 = vpop.f32.mrb[1].mxu0 }
  0xe6   :  { %v102_v10 = vpop.f32.mrb[2].mxu0 }
  0xe7   :  { %v106_v11 = vmax.f32 %v100_v8, 0.0  ;;  %v103_v12 = vadd.f32 %v122_v6, %v102_v10  ;;  %v149_v13 = vpop.f32.mrb[3].mxu0 }
  0xe9   :  { %v131_v14 = vpack.c.bf16 %v106_v11, %v106_v11  ;;  %v107_v15 = vmax.f32 %v103_v12, 0.0 }
  0xeb   :  { %116 = vst [vmem:[%s206_s3] sm:$0xf] %v131_v14  ;;  %v132_v16 = vpack.c.bf16 %v107_v15, %v107_v15 }
  0xed   :  { %117 = vst [vmem:[%s206_s3 + $0x4] sm:$0x3] %v132_v16 }

// kernel: mmer_forward.129
= control target key start
LH: loop header
LB: loop body
LE: loop exit
PB: predicated region body
PF: predicated region fallthrough
CT: control target
= control target key end

     0   :  { %vm20_vm0 = vcmask 523264   ;;  %vm24_vm1 = vcmask 519168   ;;  %s121_s0 = inlined_call_operand.vmem [shape: bf16[1,12,64], index: 0, kind: input, shape index: {}]   ;;  %s122_s1 = inlined_call_operand.vmem [shape: f32[1,1,64], index: 1, kind: input, shape index: {}]   ;;  %s123_s2 = inlined_call_operand.vmem [shape: f32[1,1,64], index: 2, kind: input, shape index: {}]   ;;  %s124_s3 = inlined_call_operand.vmem [shape: f32[1,12,64], index: 3, kind: output, shape index: {}]  }
   0x1   :  { %v14_v0 = vld [vmem:[%s121_s0] sm:$0xf]  ;;  %v15_v1 = vld [vmem:[%s121_s0 + $0x4] sm:$0x3] }
   0x2   :  { %v16_v2 = vunpack.c.l.bf16 %v14_v0  ;;  %v17_v3 = vunpack.c.l.bf16 %v15_v1  ;;  %v71_v23 = vld [vmem:[%s122_s1] ss:$0 sm:$0xff] }
   0x3   :  { %v72_v25 = vld [vmem:[%s123_s2] ss:$0 sm:$0xff] }
   0x4   :  { %v21_v4 = vsel %vm20_vm0, %v16_v2, 0.0  ;;  %v25_v5 = vsel %vm24_vm1, %v17_v3, 0.0 }
   0x5   :  { %22 = vadd.xlane.f32.xlu0 %v21_v4 }
   0x9   :  { %26 = vadd.xlane.f32.xlu0 %v25_v5 }
  0x92   :  { %v23_v6 = vpop.xlane.xlu0 %22 }
  0x93   :  { %v29_v7 = vmul.f32 0.015625, %v23_v6 }
  0x95   :  { %v31_v8 = vsub.f32 %v16_v2, %v29_v7 }
  0x96   :  { %v27_v9 = vpop.xlane.xlu0 %26 }
  0x97   :  { %v30_v10 = vmul.f32 0.015625, %v27_v9  ;;  %v33_v11 = vmul.f32 %v31_v8, %v31_v8 }
  0x99   :  { %v32_v12 = vsub.f32 %v17_v3, %v30_v10  ;;  %v35_v13 = vsel %vm20_vm0, %v33_v11, 0.0 }
  0x9a   :  { %36 = vadd.xlane.f32.xlu1 %v35_v13 }
  0x9b   :  { %v34_v14 = vmul.f32 %v32_v12, %v32_v12 }
  0x9d   :  { %v38_v15 = vsel %vm24_vm1, %v34_v14, 0.0 }
  0x9e   :  { %39 = vadd.xlane.f32.xlu1 %v38_v15 }
 0x127   :  { %v37_v16 = vpop.xlane.xlu1 %36 }
 0x128   :  { %v41_v17 = vmul.f32 0.015625, %v37_v16 }
 0x12a   :  { %v43_v18 = vadd.f32 1e-05, %v41_v17 }
 0x12b   :  { %v40_v19 = vpop.xlane.xlu1 %39 }
 0x12c   :  { %73 = vrsqrt.f32 %v43_v18  ;;  %v42_v20 = vmul.f32 0.015625, %v40_v19 }
 0x12e   :  { %v44_v21 = vadd.f32 1e-05, %v42_v20 }
 0x130   :  { %75 = vrsqrt.f32 %v44_v21 }
 0x136   :  { %v74_v22 = vpop.eup %73 }
 0x137   :  { %v47_v24 = vmul.f32 %v74_v22, %v31_v8 }
 0x139   :  { %v55_v26 = vmul.f32 %v71_v23, %v47_v24 }
 0x13a   :  { %v76_v27 = vpop.eup %75 }
 0x13b   :  { %v63_v28 = vadd.f32 %v72_v25, %v55_v26  ;;  %v48_v29 = vmul.f32 %v76_v27, %v32_v12 }
 0x13d   :  { %65 = vst.msk [vmem:[%s124_s3] sm:$0xff] %vm20_vm0, %v63_v28  ;;  %v56_v30 = vmul.f32 %v71_v23, %v48_v29 }
 0x13f   :  { %v64_v31 = vadd.f32 %v72_v25, %v56_v30 }
 0x141   :  { %66 = vst.msk [vmem:[%s124_s3 + $0x8] sm:$0xf] %vm24_vm1, %v64_v31 }

// kernel: mmer_forward.128
= control target key start
LH: loop header
LB: loop body
LE: loop exit
PB: predicated region body
PF: predicated region fallthrough
CT: control target
= control target key end

     0   :  { %v272_v0 = vmov 0.0   ;;  %vm273_vm0 = vmmov 0   ;;  %vm152_vm1 = vcmask 523264   ;;  %vm156_vm2 = vcmask 519168   ;;  %s362_s1 = inlined_call_operand.vmem [shape: bf16[1,128,64], index: 1, kind: input, shape index: {}]   ;;  %s363_s0 = inlined_call_operand.vmem [shape: bf16[1,12,128], index: 0, kind: input, shape index: {}]   ;;  %s364_s3 = inlined_call_operand.vmem [shape: bf16[1,12,64], index: 3, kind: input, shape index: {}]   ;;  %s365_s2 = inlined_call_operand.vmem [shape: f32[1,1,64], index: 2, kind: input, shape index: {}]   ;;  %s366_s4 = inlined_call_operand.vmem [shape: f32[1,1,64], index: 4, kind: input, shape index: {}]   ;;  %s367_s5 = inlined_call_operand.vmem [shape: f32[1,1,64], index: 5, kind: input, shape index: {}]   ;;  %s368_s6 = inlined_call_operand.vmem [shape: bf16[1,12,64], index: 6, kind: output, shape index: {}]  }
   0x1   :  { %237 = vmatprep.subr.bf16.mxu0 %v272_v0  ;;  %v259_v1 = vld [vmem:[%s362_s1] sm:$0xff]   ;;  %253 = vmatprep.mubr.msk.bf16.mxu0 %vm273_vm0, %v272_v0  ;;  %v260_v2 = vld [vmem:[%s362_s1 + $0x8] sm:$0xff]   ;;  %v261_v3 = vld [vmem:[%s362_s1 + $0x10] sm:$0xff]   ;;  %vm206_vm3 = vcmask 517120  }
   0x2   :  { %238 = vmatpush3.bf16.msra.mxu0 %v259_v1  ;;  %v262_v4 = vld [vmem:[%s362_s1 + $0x18] sm:$0xff]   ;;  %v263_v5 = vld [vmem:[%s362_s1 + $0x20] sm:$0xff]   ;;  %v264_v6 = vld [vmem:[%s362_s1 + $0x28] sm:$0xff]  }
   0x3   :  { %239 = vmatprep.subr.bf16.mxu0 %v272_v0  ;;  %v265_v7 = vld [vmem:[%s362_s1 + $0x30] sm:$0xff]   ;;  %v266_v8 = vld [vmem:[%s362_s1 + $0x38] sm:$0xff]   ;;  %v267_v9 = vld [vmem:[%s363_s0] sm:$0x3f]  }
   0x4   :  { %v144_v10 = vld [vmem:[%s364_s3] sm:$0xf]  ;;  %v145_v12 = vld [vmem:[%s364_s3 + $0x4] sm:$0x3] }
   0x5   :  { %v212_v11 = vld [vmem:[%s365_s2] ss:$0 sm:$0xff]  ;;  %v146_v13 = vunpack.c.l.bf16 %v144_v10  ;;  %v147_v17 = vunpack.c.l.bf16 %v145_v12 }
   0x6   :  { %240 = vmatpush3.bf16.msra.mxu0 %v260_v2  ;;  %v222_v42 = vld [vmem:[%s366_s4] ss:$0 sm:$0xff] }
   0x7   :  { %241 = vmatprep.subr.bf16.mxu0 %v272_v0  ;;  %v223_v44 = vld [vmem:[%s367_s5] ss:$0 sm:$0xff] }
   0xa   :  { %242 = vmatpush3.bf16.msra.mxu0 %v261_v3 }
   0xb   :  { %243 = vmatprep.subr.bf16.mxu0 %v272_v0 }
   0xe   :  { %244 = vmatpush3.bf16.msra.mxu0 %v262_v4 }
   0xf   :  { %245 = vmatprep.subr.bf16.mxu0 %v272_v0 }
  0x12   :  { %246 = vmatpush3.bf16.msra.mxu0 %v263_v5 }
  0x13   :  { %247 = vmatprep.subr.bf16.mxu0 %v272_v0 }
  0x16   :  { %248 = vmatpush3.bf16.msra.mxu0 %v264_v6 }
  0x17   :  { %249 = vmatprep.subr.bf16.mxu0 %v272_v0 }
  0x1a   :  { %250 = vmatpush3.bf16.msra.mxu0 %v265_v7 }
  0x1b   :  { %251 = vmatprep.subr.bf16.mxu0 %v272_v0 }
  0x1e   :  { %252 = vmatpush3.bf16.msra.mxu0 %v266_v8 }
  0x21   :  { %254 = vmatmul.mubr.bf16.vlgmr.msra.gmra.mrb[0].mxu0 %v267_v9 }
  0xf4   :  { %v137_v14 = vpop.f32.mrb[0].mxu0 }
  0xf5   :  { %v138_v15 = vadd.f32 %v212_v11, %v137_v14  ;;  %v255_v16 = vpop.f32.mrb[1].mxu0 }
  0xf6   :  { %v140_v18 = vpop.f32.mrb[2].mxu0 }
  0xf7   :  { %v141_v19 = vadd.f32 %v212_v11, %v140_v18  ;;  %v256_v20 = vpop.f32.mrb[3].mxu0  ;;  %v148_v21 = vadd.f32 %v146_v13, %v138_v15 }
  0xf9   :  { %v153_v22 = vsel %vm152_vm1, %v148_v21, 0.0  ;;  %v149_v23 = vadd.f32 %v147_v17, %v141_v19 }
  0xfa   :  { %154 = vadd.xlane.f32.xlu0 %v153_v22 }
  0xfb   :  { %v157_v24 = vsel %vm156_vm2, %v149_v23, 0.0 }
  0xfe   :  { %158 = vadd.xlane.f32.xlu0 %v157_v24 }
 0x187   :  { %v155_v25 = vpop.xlane.xlu0 %154 }
 0x188   :  { %v161_v26 = vmul.f32 0.015625, %v155_v25 }
 0x18a   :  { %v163_v27 = vsub.f32 %v148_v21, %v161_v26 }
 0x18b   :  { %v159_v28 = vpop.xlane.xlu0 %158 }
 0x18c   :  { %v162_v29 = vmul.f32 0.015625, %v159_v28  ;;  %v165_v30 = vmul.f32 %v163_v27, %v163_v27 }
 0x18e   :  { %v164_v31 = vsub.f32 %v149_v23, %v162_v29  ;;  %v167_v32 = vsel %vm152_vm1, %v165_v30, 0.0 }
 0x18f   :  { %168 = vadd.xlane.f32.xlu1 %v167_v32 }
 0x190   :  { %v166_v33 = vmul.f32 %v164_v31, %v164_v31 }
 0x192   :  { %v170_v34 = vsel %vm156_vm2, %v166_v33, 0.0 }
 0x193   :  { %171 = vadd.xlane.f32.xlu1 %v170_v34 }
 0x21c   :  { %v169_v35 = vpop.xlane.xlu1 %168 }
 0x21d   :  { %v173_v36 = vmul.f32 0.015625, %v169_v35 }
 0x21f   :  { %v175_v37 = vadd.f32 1e-05, %v173_v36 }
 0x220   :  { %v172_v38 = vpop.xlane.xlu1 %171 }
 0x221   :  { %268 = vrsqrt.f32 %v175_v37  ;;  %v174_v39 = vmul.f32 0.015625, %v172_v38 }
 0x223   :  { %v176_v40 = vadd.f32 1e-05, %v174_v39 }
 0x225   :  { %270 = vrsqrt.f32 %v176_v40 }
 0x22b   :  { %v269_v41 = vpop.eup %268 }
 0x22c   :  { %v179_v43 = vmul.f32 %v269_v41, %v163_v27 }
 0x22e   :  { %v187_v45 = vmul.f32 %v222_v42, %v179_v43 }
 0x22f   :  { %v271_v46 = vpop.eup %270 }
 0x230   :  { %v195_v47 = vadd.f32 %v223_v44, %v187_v45  ;;  %v180_v48 = vmul.f32 %v271_v46, %v164_v31 }
 0x232   :  { %v226_v49 = vpack.c.bf16 %v195_v47, %v195_v47  ;;  %v188_v50 = vmul.f32 %v222_v42, %v180_v48 }
 0x234   :  { %205 = vst.msk [vmem:[%s368_s6] sm:$0xf] %vm156_vm2, %v226_v49  ;;  %v196_v51 = vadd.f32 %v223_v44, %v188_v50 }
 0x236   :  { %v227_v52 = vpack.c.bf16 %v196_v51, %v196_v51 }
 0x238   :  { %207 = vst.msk [vmem:[%s368_s6 + $0x4] sm:$0x3] %vm206_vm3, %v227_v52 }

// kernel: mmer_forward.125
= control target key start
LH: loop header
LB: loop body
LE: loop exit
PB: predicated region body
PF: predicated region fallthrough
CT: control target
= control target key end

     0   :  { %s2096_s9 = smov 0   ;;  %s2435_s0 = inlined_call_operand.vmem [shape: bf16[2,6,64], index: 0, kind: input, shape index: {}]   ;;  %s2436_s1 = inlined_call_operand.vmem [shape: bf16[2,24,128], index: 1, kind: input, shape index: {}]   ;;  %s2437_s2 = inlined_call_operand.vmem [shape: bf16[2,6,64], index: 2, kind: output, shape index: {}]  }
   0x1 LB: > { %s1889_s10 = sadd.s32 4294967295, %s2067_s9   ;;  %p1893_p0 = scmp.ge.s32.totalorder %s2067_s9, 1  ;;  %s2067_s9 = sphi %s2096_s9, %s12_s9  }
   0x2   : > { %p121_p1 = scmp.lt.s32.totalorder %s2067_s9, 3 }
   0x4   : > { %p122_p2 = pnand %p1893_p0, %p121_p1 }
   0x5   : > { %p146_p3 = scmp.lt.s32.totalorder (!%p122_p2), %s1889_s10, 1  ;;  %s2069_s15 = smov (!%p122_p2), 96   ;;  %v2072_v4 = vmov (!%p122_p2), 0.0   ;;  %vm2074_vm0 = vmmov (!%p122_p2), 0   ;;  %v2075_v5 = vmov (!%p122_p2), 1983009808   ;;  %v174_v7 = vlaneseq (!%p122_p2) }
   0x6   : > { %125 = sbr.rel (%p122_p2) target bundleno = 1126 (0x466), region = 28  ;;  %s2070_s16 = smov (!%p122_p2), 112   ;;  %1960 = vmatprep.subr.bf16.mxu0 (!%p122_p2), %v2072_v4  ;;  %1968 = vmatprep.subr.bf16.mxu1 (!%p122_p2), %v2072_v4  ;;  %v172_v6 = vunpack.c.l.s4 (!%p122_p2), %v2075_v5  ;;  %v2076_v16 = vmov (!%p122_p2), 1934713408   ;;  %vm1208_vm1 = vcmask (!%p122_p2), 130048   ;;  %vm1420_vm2 = vcmask (!%p122_p2), 193536  }
   0x7   : > { %s2071_s18 = smov (!%p122_p2), 80   ;;  %s2073_s22 = smov (!%p122_p2), 64   ;;  %1964 = vmatprep.mubr.msk.bf16.mxu0 (!%p122_p2), %vm2074_vm0, %v2072_v4  ;;  %1972 = vmatprep.mubr.msk.bf16.mxu1 (!%p122_p2), %vm2074_vm0, %v2072_v4  ;;  %v175_v11 = vshrl.u32 (!%p122_p2), %v174_v7, 7  ;;  %v189_v17 = vunpack.c.l.s4 (!%p122_p2), %v2076_v16  ;;  %vm1479_vm3 = vcmask (!%p122_p2), 1043456   ;;  %vm1475_vm4 = vcmask (!%p122_p2), 195584  }
   0x8   : > { %v173_v10 = vunpack.c.0.s8 (!%p122_p2), %v172_v6  ;;  %s2078_s23 = smov (!%p122_p2), 32   ;;  %s2079_s24 = smov (!%p122_p2), 16   ;;  %vm1817_vm5 = vcmask (!%p122_p2), 261120   ;;  %vm1819_vm6 = vcmask (!%p122_p2), 392192   ;;  %vm1822_vm7 = vcmask (!%p122_p2), 518144  }
   0x9   : > { %v190_v25 = vunpack.c.0.s8 (!%p122_p2), %v189_v17  ;;  %s2080_s25 = smov (!%p122_p2), 48  }
   0xa   : > { %v2151_v20 = vsub.s32 (!%p122_p2), %v173_v10, %v175_v11 }
   0xb   : > { %v2161_v39 = vsub.s32 (!%p122_p2), %v190_v25, %v175_v11 }
   0xd   : > { %s2439_s10 = smov (!%p146_p3, %s1889_s10), 1 }
   0xe   : > { %s2024_s11 = smul.u32 12, %s2439_s10  ;;  %s1894_s17 = sshll.u32 %s2439_s10, 2 }
   0xf   : > { %s149_s21 = scalar_lea.vmem %s2435_s0, %s1894_s17  ;;  %s158_s28 = scalar_lea.vmem %s2437_s2, %s1894_s17 }
  0x10   : > { %s154_s14 = scalar_lea.vmem %s2436_s1, %s2024_s11  ;;  %v2130_v3 = vld [vmem:[%s149_s21] sm:$0x7] }
  0x11   : > { %v2110_v0 = vld [vmem:[%s154_s14] sm:$0xf]  ;;  %v2114_v1 = vld [vmem:[%s154_s14 + $0x4] sm:$0xf]  ;;  %v2121_v2 = vld [vmem:[%s154_s14 + $0x8] sm:$0xf]  ;;  %v177_v60 = vrot.slane %v2130_v3, %v2151_v20 }
  0x12   : > { %315 = vrot.lane.b32.xlu1 %v2110_v0, %s2069_s15  ;;  %309 = vrot.lane.b32.xlu0 %v2110_v0, %s2070_s16  ;;  %v330_v12 = vshrl.u32 %v2110_v0, 16  ;;  %v342_v18 = vshrl.u32 %v2114_v1, 16  ;;  %v354_v59 = vshrl.u32 %v2121_v2, 16 }
  0x16   : > { %317 = vrot.lane.b32.xlu1 %v2114_v1, %s2069_s15  ;;  %311 = vrot.lane.b32.xlu0 %v2114_v1, %s2070_s16 }
  0x1a   : > { %323 = vrot.lane.b32.xlu1 %v2114_v1, %s2071_s18  ;;  %321 = vrot.lane.b32.xlu0 %v2110_v0, %s2071_s18 }
  0x1e   : > { %319 = vrot.lane.b32.xlu1 %v2121_v2, %s2069_s15  ;;  %313 = vrot.lane.b32.xlu0 %v2121_v2, %s2070_s16 }
  0x22   : > { %325 = vrot.lane.b32.xlu0 %v2121_v2, %s2071_s18  ;;  %165 = vrot.lane.b32.xlu1 %v2130_v3, %s2070_s16 }
  0x26   : > { %167 = vrot.lane.b32.xlu0 %v2130_v3, %s2069_s15  ;;  %169 = vrot.lane.b32.xlu1 %v2130_v3, %s2071_s18 }
  0x2a   : > { %755 = vrot.lane.b32.xlu0 %v2114_v1, %s2073_s22  ;;  %753 = vrot.lane.b32.xlu1 %v2110_v0, %s2073_s22 }
  0x84   : > { %v316_v8 = vpop.permute.xlu1 %315  ;;  %v310_v9 = vpop.permute.xlu0 %309 }
  0x85   : > { %765 = vrot.lane.b32.xlu0 %v316_v8, %s2073_s22  ;;  %759 = vrot.lane.b32.xlu1 %v310_v9, %s2073_s22  ;;  %v331_v13 = vshrl.u32 %v310_v9, 16  ;;  %v329_v21 = vpack.i.b16 %v310_v9, %v2110_v0  ;;  %v336_v32 = vshrl.u32 %v316_v8, 16 }
  0x87   : > { %v332_v22 = vpack.i.b16 %v331_v13, %v330_v12  ;;  %v370_v34 = vrot.slane %v329_v21, %v2151_v20 }
  0x88   : > { %v318_v14 = vpop.permute.xlu1 %317  ;;  %v312_v15 = vpop.permute.xlu0 %311 }
  0x89   : > { %v343_v19 = vshrl.u32 %v312_v15, 16  ;;  %761 = vrot.lane.b32.xlu1 %v312_v15, %s2073_s22  ;;  %v348_v23 = vshrl.u32 %v318_v14, 16  ;;  %v341_v24 = vpack.i.b16 %v312_v15, %v2114_v1  ;;  %v404_v43 = vrot.slane %v332_v22, %v2151_v20 }
  0x8b   : > { %v344_v28 = vpack.i.b16 %v343_v19, %v342_v18  ;;  %v438_v38 = vrot.slane %v341_v24, %v2151_v20 }
  0x8c   : > { %v324_v26 = vpop.permute.xlu1 %323  ;;  %v322_v27 = vpop.permute.xlu0 %321 }
  0x8d   : > { %v347_v29 = vpack.i.b16 %v324_v26, %v318_v14  ;;  %v349_v30 = vshrl.u32 %v324_v26, 16  ;;  %v335_v31 = vpack.i.b16 %v322_v27, %v316_v8  ;;  %771 = vrot.lane.b32.xlu0 %v322_v27, %s2073_s22  ;;  %767 = vrot.lane.b32.xlu1 %v318_v14, %s2073_s22  ;;  %v337_v33 = vshrl.u32 %v322_v27, 16 }
  0x8e   : > { %v472_v44 = vrot.slane %v344_v28, %v2151_v20 }
  0x8f   : > { %v350_v35 = vpack.i.b16 %v349_v30, %v348_v23  ;;  %v446_v36 = vrot.slane %v347_v29, %v2151_v20  ;;  %v378_v37 = vrot.slane %v335_v31, %v2151_v20  ;;  %v338_v40 = vpack.i.b16 %v337_v33, %v336_v32 }
  0x90   : > { %v2163_v41 = vpop.permute.xlu1 %319  ;;  %v2165_v42 = vpop.permute.xlu0 %313 }
  0x91   : > { %v480_v45 = vrot.slane %v350_v35, %v2151_v20  ;;  %v379_v46 = vcombine.low %v370_v34, %v378_v37  ;;  %773 = vrot.lane.b32.xlu1 %v324_v26, %s2073_s22  ;;  %v447_v47 = vcombine.low %v438_v38, %v446_v36  ;;  %v448_v48 = vcombine.high %v438_v38, %v446_v36 }
  0x92   : > { %v380_v49 = vcombine.high %v370_v34, %v378_v37  ;;  %v412_v50 = vrot.slane %v338_v40, %v2151_v20  ;;  %v360_v58 = vshrl.u32 %v2163_v41, 16  ;;  %v353_v0 = vpack.i.b16 %v2165_v42, %v2121_v2 }
  0x93   : > { %v481_v51 = vcombine.low %v472_v44, %v480_v45  ;;  %v482_v52 = vcombine.high %v472_v44, %v480_v45  ;;  %v387_v53 = vrot.slane %v379_v46, %v2161_v39  ;;  %v2181_v61 = vrot.slane %v447_v47, %v2161_v39 }
  0x94   : > { %v394_v54 = vrot.slane %v380_v49, %v2161_v39  ;;  %v413_v55 = vcombine.low %v404_v43, %v412_v50  ;;  %v2174_v56 = vpop.permute.xlu0 %325  ;;  %v166_v57 = vpop.permute.xlu1 %165  ;;  %v2184_v62 = vrot.slane %v448_v48, %v2161_v39  ;;  %v414_v63 = vcombine.high %v404_v43, %v412_v50 }
  0x95   : > { %v2189_v1 = vrot.slane %v481_v51, %v2161_v39  ;;  %v2192_v5 = vrot.slane %v482_v52, %v2161_v39  ;;  %v355_v7 = vshrl.u32 %v2165_v42, 16  ;;  %v359_v9 = vpack.i.b16 %v2174_v56, %v2163_v41 }
  0x96   : > { %v567_v6 = vcombine.low %v387_v53, %v394_v54  ;;  %v421_v3 = vrot.slane %v413_v55, %v2161_v39  ;;  %v1897_v8 = vcombine.high %v387_v53, %v394_v54  ;;  %v361_v10 = vshrl.u32 %v2174_v56, 16 }
  0x97   : > { %v356_v13 = vpack.i.b16 %v355_v7, %v354_v59  ;;  %v210_v14 = vrot.slane %v166_v57, %v2151_v20  ;;  %v428_v17 = vrot.slane %v414_v63, %v2161_v39  ;;  %v506_v18 = vrot.slane %v353_v0, %v2151_v20 }
  0x98   : > { %v168_v11 = vpop.permute.xlu0 %167  ;;  %v170_v12 = vpop.permute.xlu1 %169  ;;  %v362_v19 = vpack.i.b16 %v361_v10, %v360_v58  ;;  %v514_v21 = vrot.slane %v359_v9, %v2151_v20  ;;  %v574_v25 = vrot.slane %v567_v6, %v2151_v20  ;;  %v582_v33 = vrot.slane %v1897_v8, %v2151_v20 }
  0x99   : > { %v185_v15 = vrot.slane %v168_v11, %v2151_v20  ;;  %v218_v16 = vrot.slane %v170_v12, %v2151_v20  ;;  %v540_v26 = vrot.slane %v356_v13, %v2151_v20  ;;  %v617_v38 = vcombine.low %v2181_v61, %v2184_v62 }
  0x9a   : > { %v515_v27 = vcombine.low %v506_v18, %v514_v21  ;;  %v516_v28 = vcombine.high %v506_v18, %v514_v21  ;;  %v548_v29 = vrot.slane %v362_v19, %v2151_v20  ;;  %v1899_v40 = vcombine.high %v2181_v61, %v2184_v62 }
  0x9b   : > { %v186_v22 = vcombine.low %v177_v60, %v185_v15  ;;  %v187_v23 = vcombine.high %v177_v60, %v185_v15  ;;  %v219_v24 = vcombine.low %v210_v14, %v218_v16  ;;  %v220_v32 = vcombine.high %v210_v14, %v218_v16 }
  0x9c   : > { %v523_v34 = vrot.slane %v515_v27, %v2161_v39  ;;  %v530_v35 = vrot.slane %v516_v28, %v2161_v39  ;;  %v549_v36 = vcombine.low %v540_v26, %v548_v29  ;;  %v550_v37 = vcombine.high %v540_v26, %v548_v29 }
  0x9d   : > { %v2209_v30 = vrot.slane %v186_v22, %v2161_v39  ;;  %v2212_v31 = vrot.slane %v187_v23, %v2161_v39  ;;  %v642_v43 = vcombine.low %v2189_v1, %v2192_v5  ;;  %v227_v44 = vrot.slane %v219_v24, %v2161_v39 }
  0x9e   : > { %v592_v45 = vcombine.low %v421_v3, %v428_v17  ;;  %v1898_v46 = vcombine.high %v421_v3, %v428_v17  ;;  %v557_v47 = vrot.slane %v549_v36, %v2161_v39  ;;  %v564_v48 = vrot.slane %v550_v37, %v2161_v39 }
  0x9f   : > { %v1900_v49 = vcombine.high %v2189_v1, %v2192_v5  ;;  %v2077_v50 = vmov 0   ;;  %v235_v52 = vrot.slane %v220_v32, %v2161_v39  ;;  %v583_v53 = vcombine.low %v574_v25, %v582_v33 }
  0xa0   : > { %v2230_v51 = vcombine.high %v2209_v30, %v2077_v50  ;;  %v667_v54 = vcombine.low %v523_v34, %v530_v35  ;;  %v240_v55 = vshrl.u32 %v2209_v30, 16  ;;  %v254_v57 = vshrl.u32 %v2212_v31, 16 }
  0xa1   : > { %v2236_v58 = vcombine.high %v227_v44, %v2077_v50  ;;  %v1901_v59 = vcombine.high %v523_v34, %v530_v35  ;;  %v692_v60 = vcombine.low %v557_v47, %v564_v48  ;;  %v241_v61 = vshrl.u32 %v227_v44, 16 }
  0xa2   : > { %v255_v62 = vshrl.u32 %v235_v52, 16  ;;  %v1902_v63 = vcombine.high %v557_v47, %v564_v48  ;;  %v599_v0 = vrot.slane %v592_v45, %v2151_v20  ;;  %v607_v1 = vrot.slane %v1898_v46, %v2151_v20 }
  0xa3   : > { %v624_v5 = vrot.slane %v617_v38, %v2151_v20  ;;  %v247_v6 = vshrl.u32 %v2230_v51, 16  ;;  %v590_v7 = vrot.slane %v583_v53, %v2161_v39  ;;  %v632_v3 = vrot.slane %v1899_v40, %v2151_v20 }
  0xa4   : > { %v649_v8 = vrot.slane %v642_v43, %v2151_v20  ;;  %v238_v9 = vpack.i.b16 %v227_v44, %v2209_v30  ;;  %v608_v10 = vcombine.low %v599_v0, %v607_v1  ;;  %v657_v11 = vrot.slane %v1900_v49, %v2151_v20 }
  0xa5   : > { %v674_v12 = vrot.slane %v667_v54, %v2151_v20  ;;  %v242_v13 = vpack.i.b16 %v241_v61, %v240_v55  ;;  %v256_v14 = vpack.i.b16 %v255_v62, %v254_v57  ;;  %v633_v15 = vcombine.low %v624_v5, %v632_v3 }
  0xa6   : > { %v682_v16 = vrot.slane %v1901_v59, %v2151_v20  ;;  %v615_v17 = vrot.slane %v608_v10, %v2161_v39  ;;  %v658_v18 = vcombine.low %v649_v8, %v657_v11  ;;  %v699_v19 = vrot.slane %v692_v60, %v2151_v20 }
  0xa7   : > { %v707_v21 = vrot.slane %v1902_v63, %v2151_v20  ;;  %v252_v22 = vpack.i.b16 %v235_v52, %v2212_v31  ;;  %v640_v23 = vrot.slane %v633_v15, %v2161_v39  ;;  %v720_v24 = vshrl.u32 %v590_v7, 16 }
  0xa8   : > { %v683_v25 = vcombine.low %v674_v12, %v682_v16  ;;  %v665_v26 = vrot.slane %v658_v18, %v2161_v39  ;;  %v719_v27 = vpack.i.b16 %v615_v17, %v590_v7  ;;  %v721_v28 = vshrl.u32 %v615_v17, 16 }
  0xa9   : > { %v708_v29 = vcombine.low %v699_v19, %v707_v21  ;;  %v248_v30 = vshrl.u32 %v2236_v58, 16  ;;  %v276_v32 = vcombine.low %v242_v13, %v256_v14  ;;  %v732_v33 = vshrl.u32 %v640_v23, 16 }
  0xaa   : > { %v690_v34 = vrot.slane %v683_v25, %v2161_v39  ;;  %v731_v35 = vpack.i.b16 %v665_v26, %v640_v23  ;;  %v722_v36 = vpack.i.b16 %v721_v28, %v720_v24  ;;  %v733_v37 = vshrl.u32 %v665_v26, 16 }
  0xab   : > { %v715_v31 = vrot.slane %v708_v29, %v2161_v39  ;;  %v258_v38 = vcombine.low %v238_v9, %v252_v22  ;;  %v249_v47 = vpack.i.b16 %v248_v30, %v247_v6  ;;  %v283_v48 = vrot.slane %v276_v32, %v2151_v20 }
  0xac   : > { %v744_v40 = vshrl.u32 %v690_v34, 16  ;;  %v1909_v43 = vcombine.low %v719_v27, %v731_v35  ;;  %v734_v44 = vpack.i.b16 %v733_v37, %v732_v33  ;;  %v246_v54 = vpack.i.b16 %v2236_v58, %v2230_v51 }
  0xad   : > { %v743_v45 = vpack.i.b16 %v715_v31, %v690_v34  ;;  %v745_v46 = vshrl.u32 %v715_v31, 16  ;;  %v265_v55 = vrot.slane %v258_v38, %v2151_v20  ;;  %v616_v60 = vcombine.high %v615_v17, %v2077_v50 }
  0xae   : > { %v1213_v49 = vsel %vm1208_vm1, %v1909_v43, 0  ;;  %v1912_v52 = vcombine.low %v722_v36, %v734_v44  ;;  %v666_v61 = vcombine.high %v665_v26, %v2077_v50  ;;  %v285_v62 = vcombine.low %v283_v48, %v249_v47  ;;  %v754_v43 = vpop.permute.xlu1 %753  ;;  %v756_v44 = vpop.permute.xlu0 %755 }
  0xaf   : > { %v746_v53 = vpack.i.b16 %v745_v46, %v744_v40  ;;  %1961 = vmatpush3.bf16.xpose.msra.mxu0 %v1213_v49  ;;  %v1910_v59 = vcombine.low %v743_v45, %v743_v45  ;;  %v591_v0 = vcombine.high %v590_v7, %v2077_v50  ;;  %v641_v51 = vcombine.high %v640_v23, %v2077_v50 }
  0xb0   : > { %v1267_v57 = vsel %vm1208_vm1, %v1912_v52, 0  ;;  %1962 = vmatprep.subr.bf16.mxu0 %v2072_v4  ;;  %v267_v58 = vcombine.low %v265_v55, %v246_v54  ;;  %v727_v5 = vshrl.u32 %v616_v60, 16  ;;  %v739_v6 = vshrl.u32 %v666_v61, 16 }
  0xb1   : > { %1969 = vmatpush3.bf16.xpose.msra.mxu1 %v1267_v57  ;;  %v1913_v63 = vcombine.low %v746_v53, %v746_v53  ;;  %v1216_v1 = vsel %vm1208_vm1, %v1910_v59, 0  ;;  %v292_v3 = vrot.slane %v285_v62, %v2161_v39  ;;  %v725_v8 = vpack.i.b16 %v616_v60, %v591_v0 }
  0xb2   : > { %1970 = vmatprep.subr.bf16.mxu1 %v2072_v4  ;;  %v737_v10 = vpack.i.b16 %v666_v61, %v641_v51  ;;  %v726_v11 = vshrl.u32 %v591_v0, 16  ;;  %v738_v12 = vshrl.u32 %v641_v51, 16  ;;  %v274_v13 = vrot.slane %v267_v58, %v2161_v39 }
  0xb3   : > { %v1270_v9 = vsel %vm1208_vm1, %v1913_v63, 0  ;;  %v716_v15 = vcombine.high %v715_v31, %v2077_v50  ;;  %v298_v17 = vshrl.u32 %v292_v3, 16  ;;  %v691_v18 = vcombine.high %v690_v34, %v2077_v50 }
  0xb4   : > { %v728_v7 = vpack.i.b16 %v727_v5, %v726_v11  ;;  %v740_v14 = vpack.i.b16 %v739_v6, %v738_v12  ;;  %v1915_v16 = vcombine.low %v725_v8, %v737_v10  ;;  %v296_v19 = vpack.i.b16 %v292_v3, %v274_v13 }
  0xb5   : > { %v297_v21 = vshrl.u32 %v274_v13, 16  ;;  %v751_v23 = vshrl.u32 %v716_v15, 16  ;;  %v749_v26 = vpack.i.b16 %v716_v15, %v691_v18  ;;  %v750_v27 = vshrl.u32 %v691_v18, 16 }
  0xb6   : > { %v1918_v22 = vcombine.low %v728_v7, %v740_v14  ;;  %v1321_v24 = vsel %vm1208_vm1, %v1915_v16, 0  ;;  %v293_v34 = vcombine.high %v292_v3, %v2077_v50  ;;  %v275_v36 = vcombine.high %v274_v13, %v2077_v50 }
  0xb7   : > { %1963 = vmatpush3.bf16.xpose.msra.mxu0 %v1216_v1  ;;  %v299_v25 = vpack.i.b16 %v298_v17, %v297_v21  ;;  %v752_v29 = vpack.i.b16 %v751_v23, %v750_v27  ;;  %v1916_v30 = vcombine.low %v749_v26, %v749_v26  ;;  %v780_v46 = vshrl.u32 %v754_v43, 16 }
  0xb8   : > { %1976 = vmatprep.subr.bf16.mxu0 %v2072_v4  ;;  %v1375_v28 = vsel %vm1208_vm1, %v1918_v22, 0  ;;  %v304_v37 = vshrl.u32 %v293_v34, 16  ;;  %v302_v31 = vpack.i.b16 %v293_v34, %v275_v36  ;;  %v303_v38 = vshrl.u32 %v275_v36, 16 }
  0xb9   : > { %1971 = vmatpush3.bf16.xpose.msra.mxu1 %v1270_v9  ;;  %v1919_v32 = vcombine.low %v752_v29, %v752_v29  ;;  %v1324_v33 = vsel %vm1208_vm1, %v1916_v30, 0  ;;  %v792_v61 = vshrl.u32 %v756_v44, 16 }
  0xba   : > { %1984 = vmatprep.subr.bf16.mxu1 %v2072_v4  ;;  %v305_v40 = vpack.i.b16 %v304_v37, %v303_v38 }
  0xbb   : > { %v1378_v35 = vsel %vm1208_vm1, %v1919_v32, 0 }
  0xbe   : > { %1965 = vmatmul.mubr.msk.bf16.vlgmr.msra.gmra.mrb[0].mxu0 %vm1208_vm1, %v296_v19 }
  0xbf   : > { %1977 = vmatpush3.bf16.xpose.msra.mxu0 %v1321_v24  ;;  %1980 = vmatprep.mubr.msk.bf16.mxu0 %vm2074_vm0, %v2072_v4 }
  0xc0   : > { %1973 = vmatmul.mubr.msk.bf16.vlgmr.msra.gmra.mrb[0].mxu1 %vm1208_vm1, %v299_v25  ;;  %1978 = vmatprep.subr.bf16.mxu0 %v2072_v4 }
  0xc1   : > { %1985 = vmatpush3.bf16.xpose.msra.mxu1 %v1375_v28  ;;  %1988 = vmatprep.mubr.msk.bf16.mxu1 %vm2074_vm0, %v2072_v4 }
  0xc2   : > { %1986 = vmatprep.subr.bf16.mxu1 %v2072_v4 }
  0xc7   : > { %1979 = vmatpush3.bf16.xpose.msra.mxu0 %v1324_v33 }
  0xc8   : > { %1992 = vmatprep.subr.bf16.mxu0 %v2072_v4 }
  0xc9   : > { %1987 = vmatpush3.bf16.xpose.msra.mxu1 %v1378_v35 }
  0xca   : > { %2000 = vmatprep.subr.bf16.mxu1 %v2072_v4 }
  0xce   : > { %1981 = vmatmul.mubr.msk.bf16.vlgmr.msra.gmra.mrb[4].mxu0 %vm1208_vm1, %v302_v31 }
  0xcf   : > { %1996 = vmatprep.mubr.msk.bf16.mxu0 %vm2074_vm0, %v2072_v4 }
  0xd0   : > { %1989 = vmatmul.mubr.msk.bf16.vlgmr.msra.gmra.mrb[4].mxu1 %vm1208_vm1, %v305_v40 }
  0xd1   : > { %2004 = vmatprep.mubr.msk.bf16.mxu1 %vm2074_vm0, %v2072_v4 }
  0xf7   : > { %v760_v45 = vpop.permute.xlu1 %759  ;;  %v766_v47 = vpop.permute.xlu0 %765 }
  0xf8   : > { %v781_v48 = vshrl.u32 %v760_v45, 16  ;;  %v779_v52 = vpack.i.b16 %v760_v45, %v754_v43  ;;  %v786_v57 = vshrl.u32 %v766_v47, 16 }
  0xfa   : > { %v782_v53 = vpack.i.b16 %v781_v48, %v780_v46  ;;  %v820_v63 = vrot.slane %v779_v52, %v2151_v20 }
  0xfb   : > { %v762_v49 = vpop.permute.xlu1 %761 }
  0xfc   : > { %v793_v62 = vshrl.u32 %v762_v49, 16  ;;  %v854_v58 = vrot.slane %v782_v53, %v2151_v20  ;;  %v791_v1 = vpack.i.b16 %v762_v49, %v756_v44 }
  0xfe   : > { %v794_v10 = vpack.i.b16 %v793_v62, %v792_v61  ;;  %v888_v16 = vrot.slane %v791_v1, %v2151_v20 }
  0xff   : > { %v772_v54 = vpop.permute.xlu0 %771  ;;  %v768_v55 = vpop.permute.xlu1 %767 }
 0x100   : > { %v785_v59 = vpack.i.b16 %v772_v54, %v766_v47  ;;  %v787_v60 = vshrl.u32 %v772_v54, 16  ;;  %v798_v11 = vshrl.u32 %v768_v55, 16  ;;  %v922_v24 = vrot.slane %v794_v10, %v2151_v20 }
 0x102   : > { %v788_v0 = vpack.i.b16 %v787_v60, %v786_v57  ;;  %v828_v51 = vrot.slane %v785_v59, %v2151_v20 }
 0x103   : > { %v774_v5 = vpop.permute.xlu1 %773 }
 0x104   : > { %v829_v6 = vcombine.low %v820_v63, %v828_v51  ;;  %v830_v3 = vcombine.high %v820_v63, %v828_v51  ;;  %v862_v8 = vrot.slane %v788_v0, %v2151_v20  ;;  %v797_v9 = vpack.i.b16 %v774_v5, %v768_v55 }
 0x105   : > { %v799_v12 = vshrl.u32 %v774_v5, 16 }
 0x106   : > { %v837_v13 = vrot.slane %v829_v6, %v2161_v39  ;;  %v844_v7 = vrot.slane %v830_v3, %v2161_v39  ;;  %v863_v14 = vcombine.low %v854_v58, %v862_v8  ;;  %v864_v15 = vcombine.high %v854_v58, %v862_v8 }
 0x107   : > { %v800_v17 = vpack.i.b16 %v799_v12, %v798_v11  ;;  %v896_v18 = vrot.slane %v797_v9, %v2151_v20 }
 0x108   : > { %v871_v19 = vrot.slane %v863_v14, %v2161_v39  ;;  %v878_v21 = vrot.slane %v864_v15, %v2161_v39  ;;  %v1017_v22 = vcombine.low %v837_v13, %v844_v7  ;;  %v1903_v23 = vcombine.high %v837_v13, %v844_v7 }
 0x109   : > { %v897_v25 = vcombine.low %v888_v16, %v896_v18  ;;  %v898_v26 = vcombine.high %v888_v16, %v896_v18  ;;  %v930_v27 = vrot.slane %v800_v17, %v2151_v20 }
 0x10a   : > { %v1024_v28 = vrot.slane %v1017_v22, %v2151_v20  ;;  %v1032_v29 = vrot.slane %v1903_v23, %v2151_v20  ;;  %v1042_v30 = vcombine.low %v871_v19, %v878_v21  ;;  %v1904_v32 = vcombine.high %v871_v19, %v878_v21 }
 0x10b   : > { %v905_v33 = vrot.slane %v897_v25, %v2161_v39  ;;  %v912_v34 = vrot.slane %v898_v26, %v2161_v39  ;;  %v931_v35 = vcombine.low %v922_v24, %v930_v27  ;;  %v932_v36 = vcombine.high %v922_v24, %v930_v27 }
 0x10c   : > { %v1033_v37 = vcombine.low %v1024_v28, %v1032_v29  ;;  %v1049_v31 = vrot.slane %v1042_v30, %v2151_v20  ;;  %v1057_v38 = vrot.slane %v1904_v32, %v2151_v20 }
 0x10d   : > { %v939_v40 = vrot.slane %v931_v35, %v2161_v39  ;;  %v946_v43 = vrot.slane %v932_v36, %v2161_v39  ;;  %v1067_v44 = vcombine.low %v905_v33, %v912_v34  ;;  %v1905_v45 = vcombine.high %v905_v33, %v912_v34 }
 0x10e   : > { %v1058_v46 = vcombine.low %v1049_v31, %v1057_v38  ;;  %v1040_v47 = vrot.slane %v1033_v37, %v2161_v39 }
 0x10f   : > { %v1074_v48 = vrot.slane %v1067_v44, %v2151_v20  ;;  %v1082_v49 = vrot.slane %v1905_v45, %v2151_v20  ;;  %v1092_v52 = vcombine.low %v939_v40, %v946_v43  ;;  %v1906_v53 = vcombine.high %v939_v40, %v946_v43 }
 0x110   : > { %v1065_v54 = vrot.slane %v1058_v46, %v2161_v39  ;;  %v1041_v55 = vcombine.high %v1040_v47, %v2077_v50  ;;  %v1170_v8 = vshrl.u32 %v1040_v47, 16 }
 0x111   : > { %v1083_v57 = vcombine.low %v1074_v48, %v1082_v49  ;;  %v1099_v59 = vrot.slane %v1092_v52, %v2151_v20  ;;  %v1107_v60 = vrot.slane %v1906_v53, %v2151_v20 }
 0x112   : > { %v1066_v61 = vcombine.high %v1065_v54, %v2077_v50  ;;  %v1171_v0 = vshrl.u32 %v1065_v54, 16  ;;  %v1176_v58 = vshrl.u32 %v1041_v55, 16  ;;  %v1169_v3 = vpack.i.b16 %v1065_v54, %v1040_v47 }
 0x113   : > { %v1108_v62 = vcombine.low %v1099_v59, %v1107_v60  ;;  %v1090_v63 = vrot.slane %v1083_v57, %v2161_v39 }
 0x114   : > { %v1175_v51 = vpack.i.b16 %v1066_v61, %v1041_v55  ;;  %v1177_v1 = vshrl.u32 %v1066_v61, 16  ;;  %v1172_v7 = vpack.i.b16 %v1171_v0, %v1170_v8 }
 0x115   : > { %v1115_v5 = vrot.slane %v1108_v62, %v2161_v39  ;;  %v1091_v6 = vcombine.high %v1090_v63, %v2077_v50  ;;  %v1182_v11 = vshrl.u32 %v1090_v63, 16 }
 0x116   : > { %v2331_v9 = vpack.i.b16 %v1177_v1, %v1176_v58 }
 0x117   : > { %v1181_v10 = vpack.i.b16 %v1115_v5, %v1090_v63  ;;  %v1183_v12 = vshrl.u32 %v1115_v5, 16  ;;  %v1116_v13 = vcombine.high %v1115_v5, %v2077_v50  ;;  %v1188_v14 = vshrl.u32 %v1091_v6, 16 }
 0x119   : > { %v1921_v15 = vcombine.low %v1169_v3, %v1181_v10  ;;  %v1184_v16 = vpack.i.b16 %v1183_v12, %v1182_v11  ;;  %v1187_v17 = vpack.i.b16 %v1116_v13, %v1091_v6  ;;  %v1189_v18 = vshrl.u32 %v1116_v13, 16 }
 0x11b   : > { %1993 = vmatpush3.bf16.msra.mxu0 %v1921_v15  ;;  %v1924_v19 = vcombine.low %v1172_v7, %v1184_v16  ;;  %v2334_v21 = vcombine.low %v1175_v51, %v1187_v17  ;;  %v2336_v22 = vpack.i.b16 %v1189_v18, %v1188_v14 }
 0x11c   : > { %1994 = vmatprep.subr.bf16.mxu0 %v2072_v4 }
 0x11d   : > { %2001 = vmatpush3.bf16.msra.mxu1 %v1924_v19  ;;  %v1930_v23 = vcombine.low %v2331_v9, %v2336_v22 }
 0x11e   : > { %2002 = vmatprep.subr.bf16.mxu1 %v2072_v4 }
 0x191   : > { %v1252_v24 = vpop.f32.mrb[0].mxu0 }
 0x192   : > { %v1966_v25 = vpop.f32.mrb[1].mxu0  ;;  %v1421_v26 = vsel %vm1420_vm2, %v1252_v24, -inf }
 0x193   : > { %v1306_v27 = vpop.f32.mrb[0].mxu1  ;;  %1422 = vmax.xlane.f32.xlu0 %v1421_v26  ;;  %v1255_v28 = vpop.f32.mrb[2].mxu0 }
 0x194   : > { %v1967_v29 = vpop.f32.mrb[3].mxu0  ;;  %v1974_v30 = vpop.f32.mrb[1].mxu1  ;;  %v1424_v32 = vsel %vm1420_vm2, %v1306_v27, -inf }
 0x195   : > { %1425 = vmax.xlane.f32.xlu1 %v1424_v32  ;;  %v1309_v33 = vpop.f32.mrb[2].mxu1 }
 0x196   : > { %v1975_v34 = vpop.f32.mrb[3].mxu1 }
 0x1a1   : > { %v1360_v35 = vpop.f32.mrb[4].mxu0 }
 0x1a2   : > { %v1982_v36 = vpop.f32.mrb[5].mxu0  ;;  %v1427_v37 = vsel %vm1420_vm2, %v1360_v35, -inf }
 0x1a3   : > { %v1414_v31 = vpop.f32.mrb[4].mxu1  ;;  %1428 = vmax.xlane.f32.xlu0 %v1427_v37  ;;  %v1363_v38 = vpop.f32.mrb[6].mxu0 }
 0x1a4   : > { %v1983_v40 = vpop.f32.mrb[7].mxu0  ;;  %v1990_v43 = vpop.f32.mrb[5].mxu1  ;;  %v1430_v46 = vsel %vm1420_vm2, %v1414_v31, -inf }
 0x1a5   : > { %v1417_v44 = vpop.f32.mrb[6].mxu1 }
 0x1a6   : > { %763 = vrot.lane.b32.xlu1 %v2165_v42, %s2073_s22  ;;  %v1991_v45 = vpop.f32.mrb[7].mxu1 }
 0x1a7   : > { %1431 = vmax.xlane.f32.xlu0 %v1430_v46 }
 0x1bd   : > { %757 = vrot.lane.b32.xlu0 %v2121_v2, %s2073_s22 }
 0x220   : > { %v1423_v47 = vpop.xlane.xlu0 %1422 }
 0x221   : > { %v1433_v48 = vsub.f32 %v1252_v24, %v1423_v47 }
 0x222   : > { %v1426_v49 = vpop.xlane.xlu1 %1425 }
 0x223   : > { %v1437_v52 = vmul.f32 1.442695, %v1433_v48  ;;  %v1434_v53 = vsub.f32 %v1306_v27, %v1426_v49 }
 0x225   : > { %2045 = vpow2.f32 %v1437_v52  ;;  %v1439_v54 = vmul.f32 1.442695, %v1434_v53 }
 0x226   : > { %v764_v5 = vpop.permute.xlu1 %763 }
 0x227   : > { %2047 = vpow2.f32 %v1439_v54  ;;  %v805_v11 = vshrl.u32 %v764_v5, 16 }
 0x22f   : > { %v2350_v55 = vpop.eup %2045 }
 0x230   : > { %v1445_v42 = vsel %vm1420_vm2, %v2350_v55, 0.0  ;;  %v1429_v2 = vpop.xlane.xlu0 %1428 }
 0x231   : > { %v2354_v57 = vpop.eup %2047  ;;  %1446 = vadd.xlane.f32.xlu0 %v1445_v42  ;;  %v1435_v61 = vsub.f32 %v1360_v35, %v1429_v2 }
 0x232   : > { %v1448_v59 = vsel %vm1420_vm2, %v2354_v57, 0.0 }
 0x233   : > { %1449 = vadd.xlane.f32.xlu1 %v1448_v59  ;;  %v1441_v63 = vmul.f32 1.442695, %v1435_v61 }
 0x234   : > { %v1432_v60 = vpop.xlane.xlu0 %1431 }
 0x235   : > { %v1436_v62 = vsub.f32 %v1414_v31, %v1432_v60  ;;  %2049 = vpow2.f32 %v1441_v63 }
 0x237   : > { %v1443_v0 = vmul.f32 1.442695, %v1436_v62 }
 0x239   : > { %2051 = vpow2.f32 %v1443_v0 }
 0x23f   : > { %v2362_v51 = vpop.eup %2049 }
 0x240   : > { %v1451_v1 = vsel %vm1420_vm2, %v2362_v51, 0.0 }
 0x243   : > { %v2364_v58 = vpop.eup %2051 }
 0x244   : > { %775 = vrot.lane.b32.xlu1 %v2174_v56, %s2073_s22  ;;  %v1454_v56 = vsel %vm1420_vm2, %v2364_v58, 0.0 }
 0x247   : > { %769 = vrot.lane.b32.xlu0 %v2163_v41, %s2073_s22  ;;  %v758_v41 = vpop.permute.xlu0 %757 }
 0x248   : > { %v804_v8 = vshrl.u32 %v758_v41, 16  ;;  %v803_v12 = vpack.i.b16 %v764_v5, %v758_v41 }
 0x24a   : > { %v806_v7 = vpack.i.b16 %v805_v11, %v804_v8  ;;  %v956_v17 = vrot.slane %v803_v12, %v2151_v20 }
 0x24c   : > { %v990_v24 = vrot.slane %v806_v7, %v2151_v20 }
 0x266   : > { %1452 = vadd.xlane.f32.xlu0 %v1451_v1 }
 0x268   : > { %1455 = vadd.xlane.f32.xlu1 %v1454_v56 }
 0x2be   : > { %v1447_v6 = vpop.xlane.xlu0 %1446 }
 0x2bf   : > { %2053 = vrcp.f32 %v1447_v6 }
 0x2c0   : > { %v1450_v3 = vpop.xlane.xlu1 %1449 }
 0x2c1   : > { %2055 = vrcp.f32 %v1450_v3 }
 0x2c2   : > { %v770_v10 = vpop.permute.xlu0 %769 }
 0x2c3   : > { %v810_v14 = vshrl.u32 %v770_v10, 16 }
 0x2c4   : > { %v776_v13 = vpop.permute.xlu1 %775 }
 0x2c5   : > { %v809_v15 = vpack.i.b16 %v776_v13, %v770_v10  ;;  %v811_v16 = vshrl.u32 %v776_v13, 16 }
 0x2c7   : > { %v812_v18 = vpack.i.b16 %v811_v16, %v810_v14  ;;  %v964_v19 = vrot.slane %v809_v15, %v2151_v20 }
 0x2c9   : > { %v965_v25 = vcombine.low %v956_v17, %v964_v19  ;;  %v966_v26 = vcombine.high %v956_v17, %v964_v19  ;;  %v998_v27 = vrot.slane %v812_v18, %v2151_v20  ;;  %v2054_v48 = vpop.eup %2053 }
 0x2ca   : > { %v1461_v60 = vmul.f32 %v2054_v48, %v2350_v55 }
 0x2cb   : > { %v973_v28 = vrot.slane %v965_v25, %v2161_v39  ;;  %v980_v29 = vrot.slane %v966_v26, %v2161_v39  ;;  %v999_v30 = vcombine.low %v990_v24, %v998_v27  ;;  %v1000_v32 = vcombine.high %v990_v24, %v998_v27  ;;  %v2056_v52 = vpop.eup %2055 }
 0x2cc   : > { %v1462_v0 = vmul.f32 %v2056_v52, %v2354_v57  ;;  %v1465_v3 = vpack.c.bf16 %v1461_v60, %v1461_v60 }
 0x2cd   : > { %v1007_v33 = vrot.slane %v999_v30, %v2161_v39  ;;  %v1014_v34 = vrot.slane %v1000_v32, %v2161_v39  ;;  %v1117_v35 = vcombine.low %v973_v28, %v980_v29  ;;  %v1907_v36 = vcombine.high %v973_v28, %v980_v29 }
 0x2ce   : > { %v1466_v55 = vpack.c.bf16 %v1462_v0, %v1462_v0 }
 0x2cf   : > { %v1124_v37 = vrot.slane %v1117_v35, %v2151_v20  ;;  %v1132_v31 = vrot.slane %v1907_v36, %v2151_v20  ;;  %v1142_v38 = vcombine.low %v1007_v33, %v1014_v34  ;;  %v1908_v40 = vcombine.high %v1007_v33, %v1014_v34 }
 0x2d1   : > { %v1149_v43 = vrot.slane %v1142_v38, %v2151_v20  ;;  %v1157_v44 = vrot.slane %v1908_v40, %v2151_v20  ;;  %v1133_v45 = vcombine.low %v1124_v37, %v1132_v31 }
 0x2d3   : > { %v1140_v46 = vrot.slane %v1133_v45, %v2161_v39  ;;  %v1158_v47 = vcombine.low %v1149_v43, %v1157_v44 }
 0x2d5   : > { %v1165_v49 = vrot.slane %v1158_v47, %v2161_v39  ;;  %v1194_v53 = vshrl.u32 %v1140_v46, 16  ;;  %v1141_v59 = vcombine.high %v1140_v46, %v2077_v50 }
 0x2d7   : > { %v1193_v54 = vpack.i.b16 %v1165_v49, %v1140_v46  ;;  %v1195_v42 = vshrl.u32 %v1165_v49, 16  ;;  %v1166_v2 = vcombine.high %v1165_v49, %v2077_v50  ;;  %v1200_v5 = vshrl.u32 %v1141_v59, 16 }
 0x2d9   : > { %v1922_v61 = vcombine.low %v1193_v54, %v1193_v54  ;;  %v1196_v62 = vpack.i.b16 %v1195_v42, %v1194_v53  ;;  %v1201_v63 = vshrl.u32 %v1166_v2, 16  ;;  %v1199_v41 = vpack.i.b16 %v1166_v2, %v1141_v59 }
 0x2db   : > { %v1481_v1 = vsel %vm1479_vm3, %v1922_v61, 0  ;;  %v1925_v56 = vcombine.low %v1196_v62, %v1196_v62  ;;  %v1202_v50 = vpack.i.b16 %v1201_v63, %v1200_v5  ;;  %v1928_v57 = vcombine.low %v1199_v41, %v1199_v41 }
 0x2dc   : > { %1995 = vmatpush3.bf16.msra.mxu0 %v1481_v1 }
 0x2dd   : > { %v1533_v6 = vsel %vm1479_vm3, %v1925_v56, 0  ;;  %2008 = vmatprep.subr.bf16.mxu0 %v2072_v4  ;;  %v1931_v8 = vcombine.low %v1202_v50, %v1202_v50  ;;  %v1585_v10 = vsel %vm1479_vm3, %v1928_v57, 0 }
 0x2de   : > { %2003 = vmatpush3.bf16.msra.mxu1 %v1533_v6 }
 0x2df   : > { %1997 = vmatmul.mubr.msk.bf16.vlgmr.msra.gmra.mrb[8].mxu0 %vm1475_vm4, %v1465_v3  ;;  %2016 = vmatprep.subr.bf16.mxu1 %v2072_v4 }
 0x2e0   : > { %2009 = vmatpush3.bf16.msra.mxu0 %v2334_v21  ;;  %2012 = vmatprep.mubr.msk.bf16.mxu0 %vm2074_vm0, %v2072_v4  ;;  %v1637_v21 = vsel %vm1479_vm3, %v1931_v8, 0 }
 0x2e1   : > { %2005 = vmatmul.mubr.msk.bf16.vlgmr.msra.gmra.mrb[8].mxu1 %vm1475_vm4, %v1466_v55  ;;  %2010 = vmatprep.subr.bf16.mxu0 %v2072_v4 }
 0x2e2   : > { %2017 = vmatpush3.bf16.msra.mxu1 %v1930_v23  ;;  %2020 = vmatprep.mubr.msk.bf16.mxu1 %vm2074_vm0, %v2072_v4 }
 0x2e3   : > { %2018 = vmatprep.subr.bf16.mxu1 %v2072_v4 }
 0x2e4   : > { %2011 = vmatpush3.bf16.msra.mxu0 %v1585_v10 }
 0x2e6   : > { %2019 = vmatpush3.bf16.msra.mxu1 %v1637_v21 }
 0x2f3   : > { %v1453_v11 = vpop.xlane.xlu0 %1452 }
 0x2f4   : > { %2057 = vrcp.f32 %v1453_v11 }
 0x2f5   : > { %v1456_v12 = vpop.xlane.xlu1 %1455 }
 0x2f6   : > { %2059 = vrcp.f32 %v1456_v12 }
 0x2fe   : > { %v2058_v13 = vpop.eup %2057 }
 0x2ff   : > { %v1463_v7 = vmul.f32 %v2058_v13, %v2362_v51 }
 0x300   : > { %v2060_v9 = vpop.eup %2059 }
 0x301   : > { %v1464_v22 = vmul.f32 %v2060_v9, %v2364_v58  ;;  %v1467_v23 = vpack.c.bf16 %v1463_v7, %v1463_v7 }
 0x303   : > { %2013 = vmatmul.mubr.msk.bf16.vlgmr.msra.gmra.mrb[12].mxu0 %vm1475_vm4, %v1467_v23  ;;  %v1468_v14 = vpack.c.bf16 %v1464_v22, %v1464_v22 }
 0x305   : > { %2021 = vmatmul.mubr.msk.bf16.vlgmr.msra.gmra.mrb[12].mxu1 %vm1475_vm4, %v1468_v14 }
 0x3b2   : > { %v1517_v15 = vpop.f32.mrb[8].mxu0 }
 0x3b3   : > { %v1998_v16 = vpop.f32.mrb[9].mxu0 }
 0x3b4   : > { %v1520_v17 = vpop.f32.mrb[10].mxu0  ;;  %v1569_v18 = vpop.f32.mrb[8].mxu1 }
 0x3b5   : > { %v1999_v19 = vpop.f32.mrb[11].mxu0  ;;  %v2006_v24 = vpop.f32.mrb[9].mxu1 }
 0x3b6   : > { %v1572_v25 = vpop.f32.mrb[10].mxu1 }
 0x3b7   : > { %v2007_v26 = vpop.f32.mrb[11].mxu1 }
 0x3d6   : > { %v1621_v27 = vpop.f32.mrb[12].mxu0 }
 0x3d7   : > { %v1679_v28 = vcombine.low %v1517_v15, %v1621_v27  ;;  %v1680_v51 = vcombine.high %v1517_v15, %v1621_v27  ;;  %v2014_v29 = vpop.f32.mrb[13].mxu0 }
 0x3d8   : > { %v1624_v30 = vpop.f32.mrb[14].mxu0  ;;  %v1673_v58 = vpop.f32.mrb[12].mxu1 }
 0x3d9   : > { %v1695_v32 = vcombine.low %v1569_v18, %v1673_v58  ;;  %v1696_v33 = vcombine.high %v1569_v18, %v1673_v58  ;;  %v2015_v34 = vpop.f32.mrb[15].mxu0  ;;  %v2022_v35 = vpop.f32.mrb[13].mxu1  ;;  %v1687_v37 = vrot.slane %v1679_v28, %v2151_v20  ;;  %v1694_v31 = vrot.slane %v1680_v51, %v2151_v20 }
 0x3da   : > { %v1676_v36 = vpop.f32.mrb[14].mxu1 }
 0x3db   : > { %v1703_v38 = vrot.slane %v1695_v32, %v2151_v20  ;;  %v1710_v40 = vrot.slane %v1696_v33, %v2151_v20  ;;  %v2023_v43 = vpop.f32.mrb[15].mxu1 }
 0x3dd   : > { %v1711_v44 = vcombine.low %v1687_v37, %v1703_v38  ;;  %v1712_v45 = vcombine.high %v1687_v37, %v1703_v38  ;;  %v1727_v46 = vcombine.low %v1694_v31, %v1710_v40 }
 0x3df   : > { %v1719_v47 = vrot.slane %v1711_v44, %v2161_v39  ;;  %v1726_v48 = vrot.slane %v1712_v45, %v2161_v39  ;;  %v1734_v49 = vrot.slane %v1727_v46, %v2161_v39 }
 0x3e1   : > { %v1737_v52 = vcombine.low %v1719_v47, %v1726_v48  ;;  %v1933_v53 = vcombine.high %v1719_v47, %v1726_v48  ;;  %v1760_v54 = vcombine.high %v1734_v49, %v2072_v4  ;;  %v1759_v42 = vrot.slane %v1734_v49, %v2151_v20 }
 0x3e3   : > { %v1744_v59 = vrot.slane %v1737_v52, %v2151_v20  ;;  %v1752_v2 = vrot.slane %v1933_v53, %v2151_v20  ;;  %v1767_v60 = vrot.slane %v1760_v54, %v2151_v20 }
 0x3e5   : > { %v1769_v61 = vcombine.high %v1744_v59, %v1752_v2  ;;  %v1785_v62 = vcombine.high %v1759_v42, %v1767_v60  ;;  %v1768_v63 = vcombine.low %v1744_v59, %v1752_v2  ;;  %v1784_v0 = vcombine.low %v1759_v42, %v1767_v60 }
 0x3e7   : > { %v1783_v1 = vrot.slane %v1769_v61, %v2161_v39  ;;  %v1799_v56 = vrot.slane %v1785_v62, %v2161_v39  ;;  %v1776_v41 = vrot.slane %v1768_v63, %v2161_v39  ;;  %v1792_v4 = vrot.slane %v1784_v0, %v2161_v39 }
 0x3e9   : > { %v1802_v5 = vcombine.low %v1783_v1, %v1799_v56  ;;  %v1801_v6 = vcombine.high %v1776_v41, %v1792_v4  ;;  %v1803_v3 = vcombine.high %v1783_v1, %v1799_v56  ;;  %v1800_v50 = vcombine.low %v1776_v41, %v1792_v4 }
 0x3eb   : > { %1809 = vrot.lane.b32.xlu1 %v1802_v5, %s2078_s23  ;;  %1805 = vrot.lane.b32.xlu0 %v1801_v6, %s2079_s24 }
 0x3ef   : > { %1813 = vrot.lane.b32.xlu0 %v1803_v3, %s2080_s25 }
 0x45d   : > { %v1806_v20 = vpop.permute.xlu0 %1805  ;;  %v1810_v55 = vpop.permute.xlu1 %1809 }
 0x45e   : > { %v1816_v57 = vsel %vm1208_vm1, %v1800_v50, %v1806_v20 }
 0x45f   : > { %v1818_v10 = vsel %vm1817_vm5, %v1816_v57, %v1810_v55 }
 0x461   : > { %v1814_v8 = vpop.permute.xlu0 %1813 }
 0x462   : > { %v1820_v39 = vsel %vm1819_vm6, %v1818_v10, %v1814_v8 }
 0x463   : > { %v1821_v21 = vpack.c.bf16 %v1820_v39, %v1820_v39 }
 0x465   : > { %1823 = vst.msk [vmem:[%s158_s28] sm:$0x7] %vm1822_vm7, %v1821_v21 }
 0x466 PF: > { %s12_s9 = sadd.s32 1, %s2067_s9  }
 0x467   : > { %p9_p4 = scmp.ge.s32.totalorder %s12_s9, 4  }
 0x469   :  { %11 = sbr.rel (!%p9_p4) target bundleno = 1 (0x1), region = 61 }

</bundles_post_ra>
